<compile_context>
chip_gen: v5e
topology: v5e:2x2
jax: 0.10.0
libtpu: 0.0.40
codegen_flags: <defaults>
</compile_context>

<pallas_src>
import functools

import jax
import jax.numpy as jnp
from jax.experimental import pallas as pl
from jax.experimental.pallas import tpu as pltpu

CHANNELS = 3
ROW_TILE = 1024                      # rows per block (multiple of 8)
VMEM_LIMIT = 48 * 1024 * 1024        # scoped-VMEM budget (safe v5e/v6e/v7x)


def _round_up(n, m):
    return (n + m - 1) // m * m


def _row_tile(m, max_tile=ROW_TILE):
    return min(max_tile, _round_up(m, 8))


def _compiler_params(semantics):
    return pltpu.CompilerParams(dimension_semantics=semantics,
                                vmem_limit_bytes=VMEM_LIMIT)


# ----------------------------- kernels ------------------------------------ #

def _gelu_exact(x):
    # nn.GELU() default = exact erf formulation (computed in f32).
    return 0.5 * x * (1.0 + jax.lax.erf(x * 0.7071067811865476))


def conv_gelu_kernel(p_ref, w_ref, b_ref, o_ref):
    # GELU(patches @ W + b) for one row tile (bf16 in, f32 accumulate, bf16 out).
    z = jnp.dot(p_ref[...], w_ref[...], preferred_element_type=jnp.float32)
    z = z + b_ref[...]
    o_ref[...] = _gelu_exact(z).astype(o_ref.dtype)


def conv_bn_gelu_kernel(p_ref, w_ref, b_ref, g_ref, beta_ref, o_ref,
                        z_scr, stats_scr, *, m_true, tm, eps):
    # Fused Conv + BatchNorm(batch stats) + GELU.
    # Every step: z = patches @ W + b for this row tile, kept in a resident
    # VMEM scratch; per-channel sum / sum-of-squares accumulated across tiles
    # (padded tail rows masked out).  Last step: fold the batch statistics
    # into scale/shift and write the whole normalized + GELU'd output block
    # (output stays resident in VMEM across the grid, no z HBM round trip).
    i = pl.program_id(0)
    nt = pl.num_programs(0)

    z = jnp.dot(p_ref[...], w_ref[...], preferred_element_type=jnp.float32)
    z = z + b_ref[...]
    start = pl.multiple_of(i * tm, tm)
    z_scr[pl.ds(start, tm), :] = z

    row = i * tm + jax.lax.broadcasted_iota(jnp.int32, z.shape, 0)
    zm = jnp.where(row < m_true, z, 0.0)

    @pl.when(i == 0)
    def _():
        stats_scr[...] = jnp.zeros_like(stats_scr)

    stats_scr[...] += jnp.concatenate(
        [jnp.sum(zm, axis=0, keepdims=True),
         jnp.sum(zm * zm, axis=0, keepdims=True)], axis=0)

    @pl.when(i == nt - 1)
    def _():
        inv_m = 1.0 / m_true
        mean = stats_scr[0:1, :] * inv_m
        var = stats_scr[1:2, :] * inv_m - mean * mean      # biased (train mode)
        scale = g_ref[...] * jax.lax.rsqrt(var + eps)
        shift = beta_ref[...] - mean * scale
        y = z_scr[...] * scale + shift
        o_ref[...] = _gelu_exact(y).astype(o_ref.dtype)


def linear_sigmoid_kernel(x_ref, w_ref, b_ref, o_ref):
    # Linear(1024 -> 1) + Sigmoid as VPU multiply + cross-lane reduction
    # (an MXU matmul here would use 1 of 256 output lanes).
    x = x_ref[...].astype(jnp.float32)
    z = jnp.sum(x * w_ref[...], axis=-1, keepdims=True) + b_ref[...]
    o_ref[...] = jax.nn.sigmoid(z)


# --------------------------- pallas wrappers ------------------------------- #

def _conv_gelu(p, w, b, oc):
    m, k = p.shape
    tm = _row_tile(m)
    mp = _round_up(m, tm)
    if mp != m:
        p = jnp.pad(p, ((0, mp - m), (0, 0)))
    y = pl.pallas_call(
        conv_gelu_kernel,
        out_shape=jax.ShapeDtypeStruct((mp, oc), jnp.bfloat16),
        grid=(mp // tm,),
        in_specs=[pl.BlockSpec((tm, k), lambda i: (i, 0)),
                  pl.BlockSpec((k, oc), lambda i: (0, 0)),
                  pl.BlockSpec((1, oc), lambda i: (0, 0))],
        out_specs=pl.BlockSpec((tm, oc), lambda i: (i, 0)),
        compiler_params=_compiler_params(("parallel",)),
    )(p, w, b)
    return y[:m]


def _conv_bn_gelu(p, w, b, gamma, beta, oc, eps=1e-5):
    # TODO(synk): z scratch + resident output scale with total rows (B*OH*OW);
    # for extremely large batches fall back to a two-pass tiled BN.
    m, k = p.shape
    tm = _row_tile(m)
    mp = _round_up(m, tm)
    if mp != m:
        p = jnp.pad(p, ((0, mp - m), (0, 0)))
    y = pl.pallas_call(
        functools.partial(conv_bn_gelu_kernel, m_true=m, tm=tm, eps=eps),
        out_shape=jax.ShapeDtypeStruct((mp, oc), jnp.bfloat16),
        grid=(mp // tm,),
        in_specs=[pl.BlockSpec((tm, k), lambda i: (i, 0)),
                  pl.BlockSpec((k, oc), lambda i: (0, 0)),
                  pl.BlockSpec((1, oc), lambda i: (0, 0)),
                  pl.BlockSpec((1, oc), lambda i: (0, 0)),
                  pl.BlockSpec((1, oc), lambda i: (0, 0))],
        # Output is resident in VMEM across the whole (reduction) grid axis and
        # written once in the finalize step -> axis must be "arbitrary".
        out_specs=pl.BlockSpec((mp, oc), lambda i: (0, 0)),
        scratch_shapes=[pltpu.VMEM((mp, oc), jnp.float32),   # z
                        pltpu.VMEM((2, oc), jnp.float32)],   # sum / sum-of-sq
        compiler_params=_compiler_params(("arbitrary",)),
    )(p, w, b, gamma, beta)
    return y[:m]


def _linear_sigmoid(x, w, b):
    bsz, d = x.shape
    tb = _row_tile(bsz)
    bp = _round_up(bsz, tb)
    if bp != bsz:
        x = jnp.pad(x, ((0, bp - bsz), (0, 0)))
    out = pl.pallas_call(
        linear_sigmoid_kernel,
        out_shape=jax.ShapeDtypeStruct((bp, 1), jnp.float32),
        grid=(bp // tb,),
        in_specs=[pl.BlockSpec((tb, d), lambda i: (i, 0)),
                  pl.BlockSpec((1, d), lambda i: (0, 0)),
                  pl.BlockSpec((1, 1), lambda i: (0, 0))],
        out_specs=pl.BlockSpec((tb, 1), lambda i: (i, 0)),
        compiler_params=_compiler_params(("parallel",)),
    )(x, w, b)
    return out[:bsz]


# ------------------------------ glue: im2col ------------------------------- #

def _im2col_nhwc(x, k, s):
    """x: [B, H, W, C] -> rows [B*OH*OW, k*k*C], feature order (kh, kw, c).

    Channels-last: pure slice + concat + reshape, no transposes.
    TODO(synk): fold this patch extraction into the conv kernels (strided
    in-VMEM gather) to remove the remaining XLA glue at small batch.
    """
    B, H, W, C = x.shape
    OH = (H - k) // s + 1
    OW = (W - k) // s + 1
    taps = [x[:, i:i + s * OH:s, j:j + s * OW:s, :]
            for i in range(k) for j in range(k)]        # each [B, OH, OW, C]
    col = jnp.concatenate(taps, axis=-1)                # [B, OH, OW, k*k*C]
    return col.reshape(B * OH * OW, k * k * C), OH, OW


# ------------------------------ parameters --------------------------------- #

def init_params(key):
    ks = jax.random.split(key, 5)

    def conv_init(k, oc, ic, kk):
        fan_in = ic * kk * kk
        bound = 1.0 / jnp.sqrt(fan_in)
        w = jax.random.uniform(k, (oc, ic, kk, kk), jnp.float32, -bound, bound)
        b = jax.random.uniform(jax.random.fold_in(k, 1), (oc,), jnp.float32,
                               -bound, bound)
        # Pack once: [OC, IC, K, K] -> [(KH, KW, IC), OC] bf16 (matches the
        # channels-last im2col feature order); bias as [1, OC] f32.
        w_packed = w.transpose(2, 3, 1, 0).reshape(kk * kk * ic, oc)
        return w_packed.astype(jnp.bfloat16), b.reshape(1, oc)

    w1, b1 = conv_init(ks[0], 64, CHANNELS, 4)
    w2, b2 = conv_init(ks[1], 128, 64, 4)
    w3, b3 = conv_init(ks[2], 256, 128, 4)
    g2, be2 = jnp.ones((1, 128), jnp.float32), jnp.zeros((1, 128), jnp.float32)
    g3, be3 = jnp.ones((1, 256), jnp.float32), jnp.zeros((1, 256), jnp.float32)
    # Linear(1024 -> 1): weight stored in channels-last (h, w, c) flatten
    # order (fresh i.i.d. init, so equivalent to the torch (c, h, w) order).
    bound = 1.0 / jnp.sqrt(1024.0)
    wl = jax.random.uniform(ks[3], (1, 1024), jnp.float32, -bound, bound)
    bl = jax.random.uniform(ks[4], (1, 1), jnp.float32, -bound, bound)
    return dict(w1=w1, b1=b1, w2=w2, b2=b2, g2=g2, be2=be2,
                w3=w3, b3=b3, g3=g3, be3=be3, wl=wl, bl=bl)


# ------------------------------ forward pass -------------------------------- #

@jax.jit
def discriminator_forward(params, x):
    B = x.shape[0]
    # Single layout change at entry: NCHW -> NHWC, bf16 activations.
    x = x.transpose(0, 2, 3, 1).astype(jnp.bfloat16)

    # Conv1(3 -> 64, k=4, s=2) + GELU
    p1, oh1, ow1 = _im2col_nhwc(x, 4, 2)
    y1 = _conv_gelu(p1, params["w1"], params["b1"], 64)
    h1 = y1.reshape(B, oh1, ow1, 64)                     # [B, 15, 15, 64]

    # Conv2(64 -> 128) + BatchNorm(batch stats) + GELU (single fused kernel)
    p2, oh2, ow2 = _im2col_nhwc(h1, 4, 2)
    y2 = _conv_bn_gelu(p2, params["w2"], params["b2"],
                       params["g2"], params["be2"], 128)
    h2 = y2.reshape(B, oh2, ow2, 128)                    # [B, 6, 6, 128]

    # Conv3(128 -> 256) + BatchNorm(batch stats) + GELU (single fused kernel)
    p3, oh3, ow3 = _im2col_nhwc(h2, 4, 2)
    y3 = _conv_bn_gelu(p3, params["w3"], params["b3"],
                       params["g3"], params["be3"], 256)

    # Flatten (channels-last order, matching the packed Linear weight)
    flat = y3.reshape(B, oh3 * ow3 * 256)                # [B, 1024]
    return _linear_sigmoid(flat, params["wl"], params["bl"])  # [B, 1] f32


# ---------------------------------- main ------------------------------------ #

if __name__ == "__main__":
    key = jax.random.PRNGKey(0)
    pkey, xkey = jax.random.split(key)
    params = init_params(pkey)
    # 32x32 input -> 15 -> 6 -> 2 spatial; 256*2*2 = 1024 matches Linear(1024, 1)
    x = jax.random.normal(xkey, (2, CHANNELS, 32, 32), jnp.float32)

    out = discriminator_forward(params, x)
    out = jax.block_until_ready(out)
    assert out.shape == (2, 1)
    assert bool(jnp.all((out >= 0.0) & (out <= 1.0)))
    print("KERNEL_OK")
</pallas_src>

<mosaic_0001>
module attributes {stable_mosaic.version = 11 : i64} {
  func.func @conv_gelu_kernel(%arg0: i32, %arg1: memref<456x48xbf16, #tpu.memory_space<vmem>>, %arg2: memref<48x64xbf16, #tpu.memory_space<vmem>>, %arg3: memref<1x64xf32, #tpu.memory_space<vmem>>, %arg4: memref<456x64xbf16, #tpu.memory_space<vmem>>) attributes {dimension_semantics = [#tpu.dimension_semantics<parallel>], iteration_bounds = array<i64: 1>, scalar_prefetch = 0 : i64, scratch_operands = 0 : i64, tpu.core_type = #tpu.core_type<tc>, window_params = [{transform_indices = @transform_0, window_bounds = array<i64: 456, 48>}, {pipeline_mode = #tpu.pipeline_mode<synchronous>, transform_indices = @transform_1, window_bounds = array<i64: 48, 64>}, {pipeline_mode = #tpu.pipeline_mode<synchronous>, transform_indices = @transform_2, window_bounds = array<i64: 1, 64>}, {transform_indices = @transform_3, window_bounds = array<i64: 456, 64>}]} {
    %c0 = arith.constant 0 : index
    %c0_0 = arith.constant 0 : index
    %0 = vector.load %arg1[%c0, %c0_0] : memref<456x48xbf16, #tpu.memory_space<vmem>>, vector<456x48xbf16>
    %c0_1 = arith.constant 0 : index
    %c0_2 = arith.constant 0 : index
    %1 = vector.load %arg2[%c0_1, %c0_2] : memref<48x64xbf16, #tpu.memory_space<vmem>>, vector<48x64xbf16>
    %cst = arith.constant dense<0.000000e+00> : vector<456x64xf32>
    %2 = tpu.matmul %0, %1, %cst {dimension_numbers = #tpu.dot_dimension_numbers<[1], [0], [0], [1], [0, 0, 1, 1], [], []>} : vector<456x48xbf16>, vector<48x64xbf16>, vector<456x64xf32> -> vector<456x64xf32>
    %c0_3 = arith.constant 0 : index
    %c0_4 = arith.constant 0 : index
    %3 = vector.load %arg3[%c0_3, %c0_4] : memref<1x64xf32, #tpu.memory_space<vmem>>, vector<1x64xf32>
    %4 = vector.broadcast %3 : vector<1x64xf32> to vector<456x64xf32>
    %5 = arith.addf %2, %4 : vector<456x64xf32>
    %cst_5 = arith.constant 5.000000e-01 : f32
    %6 = vector.broadcast %cst_5 : f32 to vector<456x64xf32>
    %7 = arith.mulf %6, %5 : vector<456x64xf32>
    %cst_6 = arith.constant 0.707106769 : f32
    %8 = vector.broadcast %cst_6 : f32 to vector<456x64xf32>
    %9 = arith.mulf %5, %8 : vector<456x64xf32>
    %10 = math.erf %9 : vector<456x64xf32>
    %cst_7 = arith.constant 1.000000e+00 : f32
    %11 = vector.broadcast %cst_7 : f32 to vector<456x64xf32>
    %12 = arith.addf %11, %10 : vector<456x64xf32>
    %13 = arith.mulf %7, %12 : vector<456x64xf32>
    %14 = arith.truncf %13 : vector<456x64xf32> to vector<456x64xbf16>
    %c0_8 = arith.constant 0 : index
    %c0_9 = arith.constant 0 : index
    %15 = vector.load %arg4[%c0_8, %c0_9] : memref<456x64xbf16, #tpu.memory_space<vmem>>, vector<456x64xbf16>
    tpu.vector_store %arg4[%c0_8, %c0_9], %14 {strides = array<i32>} : memref<456x64xbf16, #tpu.memory_space<vmem>>, vector<456x64xbf16>,
    return
  }
  func.func @transform_0(%arg0: i32) -> (i32, i32) {
    %c0_i32 = arith.constant 0 : i32
    %c0_i32_0 = arith.constant 0 : i32
    return %arg0, %c0_i32 : i32, i32
  }
  func.func @transform_1(%arg0: i32) -> (i32, i32) {
    %c0_i32 = arith.constant 0 : i32
    %c0_i32_0 = arith.constant 0 : i32
    %c0_i32_1 = arith.constant 0 : i32
    return %c0_i32, %c0_i32_0 : i32, i32
  }
  func.func @transform_2(%arg0: i32) -> (i32, i32) {
    %c0_i32 = arith.constant 0 : i32
    %c0_i32_0 = arith.constant 0 : i32
    %c0_i32_1 = arith.constant 0 : i32
    return %c0_i32, %c0_i32_0 : i32, i32
  }
  func.func @transform_3(%arg0: i32) -> (i32, i32) {
    %c0_i32 = arith.constant 0 : i32
    %c0_i32_0 = arith.constant 0 : i32
    return %arg0, %c0_i32 : i32, i32
  }
}

module attributes {stable_mosaic.version = 11 : i64} {
  func.func @conv_bn_gelu_kernel(%arg0: i32, %arg1: memref<72x1024xbf16, #tpu.memory_space<vmem>>, %arg2: memref<1024x128xbf16, #tpu.memory_space<vmem>>, %arg3: memref<1x128xf32, #tpu.memory_space<vmem>>, %arg4: memref<1x128xf32, #tpu.memory_space<vmem>>, %arg5: memref<1x128xf32, #tpu.memory_space<vmem>>, %arg6: memref<72x128xbf16, #tpu.memory_space<vmem>>, %arg7: memref<72x128xf32, #tpu.memory_space<vmem>>, %arg8: memref<2x128xf32, #tpu.memory_space<vmem>>) attributes {dimension_semantics = [#tpu.dimension_semantics<arbitrary>], iteration_bounds = array<i64: 1>, scalar_prefetch = 0 : i64, scratch_operands = 2 : i64, tpu.core_type = #tpu.core_type<tc>, window_params = [{transform_indices = @transform_0, window_bounds = array<i64: 72, 1024>}, {pipeline_mode = #tpu.pipeline_mode<synchronous>, transform_indices = @transform_1, window_bounds = array<i64: 1024, 128>}, {pipeline_mode = #tpu.pipeline_mode<synchronous>, transform_indices = @transform_2, window_bounds = array<i64: 1, 128>}, {pipeline_mode = #tpu.pipeline_mode<synchronous>, transform_indices = @transform_3, window_bounds = array<i64: 1, 128>}, {pipeline_mode = #tpu.pipeline_mode<synchronous>, transform_indices = @transform_4, window_bounds = array<i64: 1, 128>}, {pipeline_mode = #tpu.pipeline_mode<synchronous>, transform_indices = @transform_5, window_bounds = array<i64: 72, 128>}]} {
    %c0 = arith.constant 0 : index
    %c0_0 = arith.constant 0 : index
    %0 = vector.load %arg1[%c0, %c0_0] : memref<72x1024xbf16, #tpu.memory_space<vmem>>, vector<72x1024xbf16>
    %c0_1 = arith.constant 0 : index
    %c0_2 = arith.constant 0 : index
    %1 = vector.load %arg2[%c0_1, %c0_2] : memref<1024x128xbf16, #tpu.memory_space<vmem>>, vector<1024x128xbf16>
    %cst = arith.constant dense<0.000000e+00> : vector<72x128xf32>
    %2 = tpu.matmul %0, %1, %cst {dimension_numbers = #tpu.dot_dimension_numbers<[1], [0], [0], [1], [0, 0, 1, 1], [], []>} : vector<72x1024xbf16>, vector<1024x128xbf16>, vector<72x128xf32> -> vector<72x128xf32>
    %c0_3 = arith.constant 0 : index
    %c0_4 = arith.constant 0 : index
    %3 = vector.load %arg3[%c0_3, %c0_4] : memref<1x128xf32, #tpu.memory_space<vmem>>, vector<1x128xf32>
    %4 = vector.broadcast %3 : vector<1x128xf32> to vector<72x128xf32>
    %5 = arith.addf %2, %4 : vector<72x128xf32>
    %c72_i32 = arith.constant 72 : i32
    %6 = arith.muli %arg0, %c72_i32 : i32
    %7 = tpu.assume_multiple %6, 72 : i32
    %8 = arith.index_cast %7 : i32 to index
    %c0_5 = arith.constant 0 : index
    %9 = vector.load %arg7[%8, %c0_5] : memref<72x128xf32, #tpu.memory_space<vmem>>, vector<72x128xf32>
    tpu.vector_store %arg7[%8, %c0_5], %5 {strides = array<i32>} : memref<72x128xf32, #tpu.memory_space<vmem>>, vector<72x128xf32>,
    %c72_i32_6 = arith.constant 72 : i32
    %10 = arith.muli %arg0, %c72_i32_6 : i32
    %11 = tpu.iota {dimensions = array<i32: 0>} : vector<72x128xi32>
    %12 = vector.broadcast %10 : i32 to vector<72x128xi32>
    %13 = arith.addi %12, %11 : vector<72x128xi32>
    %c72_i32_7 = arith.constant 72 : i32
    %14 = vector.broadcast %c72_i32_7 : i32 to vector<72x128xi32>
    %15 = arith.cmpi slt, %13, %14 : vector<72x128xi32>
    %cst_8 = arith.constant 0.000000e+00 : f32
    %16 = vector.broadcast %cst_8 : f32 to vector<72x128xf32>
    %17 = arith.select %15, %5, %16 : vector<72x128xi1>, vector<72x128xf32>
    %c0_i32 = arith.constant 0 : i32
    %18 = arith.cmpi eq, %arg0, %c0_i32 : i32
    %19 = arith.extui %18 : i1 to i32
    %c0_i32_9 = arith.constant 0 : i32
    %20 = arith.cmpi ne, %19, %c0_i32_9 : i32
    scf.if %20 {
      %cst_18 = arith.constant 0.000000e+00 : f32
      %33 = vector.broadcast %cst_18 : f32 to vector<2x128xf32>
      %c0_19 = arith.constant 0 : index
      %c0_20 = arith.constant 0 : index
      %34 = vector.load %arg8[%c0_19, %c0_20] : memref<2x128xf32, #tpu.memory_space<vmem>>, vector<2x128xf32>
      tpu.vector_store %arg8[%c0_19, %c0_20], %33 {strides = array<i32>} : memref<2x128xf32, #tpu.memory_space<vmem>>, vector<2x128xf32>,
    } else {
    }
    %c0_10 = arith.constant 0 : index
    %c0_11 = arith.constant 0 : index
    %21 = vector.load %arg8[%c0_10, %c0_11] : memref<2x128xf32, #tpu.memory_space<vmem>>, vector<2x128xf32>
    %cst_12 = arith.constant dense<0.000000e+00> : vector<128xf32>
    %22 = vector.multi_reduction <add>, %17, %cst_12 [0] : vector<72x128xf32> to vector<128xf32>
    %23 = vector.shape_cast %22 : vector<128xf32> to vector<1x128xf32>
    %24 = arith.mulf %17, %17 : vector<72x128xf32>
    %cst_13 = arith.constant dense<0.000000e+00> : vector<128xf32>
    %25 = vector.multi_reduction <add>, %24, %cst_13 [0] : vector<72x128xf32> to vector<128xf32>
    %26 = vector.shape_cast %25 : vector<128xf32> to vector<1x128xf32>
    %27 = tpu.concatenate %23, %26 in 0 : vector<1x128xf32>, vector<1x128xf32> -> vector<2x128xf32>
    %28 = arith.addf %21, %27 : vector<2x128xf32>
    %c0_14 = arith.constant 0 : index
    %c0_15 = arith.constant 0 : index
    %29 = vector.load %arg8[%c0_14, %c0_15] : memref<2x128xf32, #tpu.memory_space<vmem>>, vector<2x128xf32>
    tpu.vector_store %arg8[%c0_14, %c0_15], %28 {strides = array<i32>} : memref<2x128xf32, #tpu.memory_space<vmem>>, vector<2x128xf32>,
    %c0_i32_16 = arith.constant 0 : i32
    %30 = arith.cmpi eq, %arg0, %c0_i32_16 : i32
    %31 = arith.extui %30 : i1 to i32
    %c0_i32_17 = arith.constant 0 : i32
    %32 = arith.cmpi ne, %31, %c0_i32_17 : i32
    scf.if %32 {
      %c0_18 = arith.constant 0 : index
      %c0_19 = arith.constant 0 : index
      %33 = vector.load %arg8[%c0_18, %c0_19] : memref<2x128xf32, #tpu.memory_space<vmem>>, vector<1x128xf32>
      %cst_20 = arith.constant 0.013888889 : f32
      %34 = vector.broadcast %cst_20 : f32 to vector<1x128xf32>
      %35 = arith.mulf %33, %34 : vector<1x128xf32>
      %c1 = arith.constant 1 : index
      %c0_21 = arith.constant 0 : index
      %36 = vector.load %arg8[%c1, %c0_21] : memref<2x128xf32, #tpu.memory_space<vmem>>, vector<1x128xf32>
      %cst_22 = arith.constant 0.013888889 : f32
      %37 = vector.broadcast %cst_22 : f32 to vector<1x128xf32>
      %38 = arith.mulf %36, %37 : vector<1x128xf32>
      %39 = arith.mulf %35, %35 : vector<1x128xf32>
      %40 = arith.subf %38, %39 : vector<1x128xf32>
      %c0_23 = arith.constant 0 : index
      %c0_24 = arith.constant 0 : index
      %41 = vector.load %arg4[%c0_23, %c0_24] : memref<1x128xf32, #tpu.memory_space<vmem>>, vector<1x128xf32>
      %cst_25 = arith.constant 9.99999974E-6 : f32
      %42 = vector.broadcast %cst_25 : f32 to vector<1x128xf32>
      %43 = arith.addf %40, %42 : vector<1x128xf32>
      %44 = math.rsqrt %43 : vector<1x128xf32>
      %45 = arith.mulf %41, %44 : vector<1x128xf32>
      %c0_26 = arith.constant 0 : index
      %c0_27 = arith.constant 0 : index
      %46 = vector.load %arg5[%c0_26, %c0_27] : memref<1x128xf32, #tpu.memory_space<vmem>>, vector<1x128xf32>
      %47 = arith.mulf %35, %45 : vector<1x128xf32>
      %48 = arith.subf %46, %47 : vector<1x128xf32>
      %c0_28 = arith.constant 0 : index
      %c0_29 = arith.constant 0 : index
      %49 = vector.load %arg7[%c0_28, %c0_29] : memref<72x128xf32, #tpu.memory_space<vmem>>, vector<72x128xf32>
      %50 = vector.broadcast %45 : vector<1x128xf32> to vector<72x128xf32>
      %51 = arith.mulf %49, %50 : vector<72x128xf32>
      %52 = vector.broadcast %48 : vector<1x128xf32> to vector<72x128xf32>
      %53 = arith.addf %51, %52 : vector<72x128xf32>
      %cst_30 = arith.constant 5.000000e-01 : f32
      %54 = vector.broadcast %cst_30 : f32 to vector<72x128xf32>
      %55 = arith.mulf %54, %53 : vector<72x128xf32>
      %cst_31 = arith.constant 0.707106769 : f32
      %56 = vector.broadcast %cst_31 : f32 to vector<72x128xf32>
      %57 = arith.mulf %53, %56 : vector<72x128xf32>
      %58 = math.erf %57 : vector<72x128xf32>
      %cst_32 = arith.constant 1.000000e+00 : f32
      %59 = vector.broadcast %cst_32 : f32 to vector<72x128xf32>
      %60 = arith.addf %59, %58 : vector<72x128xf32>
      %61 = arith.mulf %55, %60 : vector<72x128xf32>
      %62 = arith.truncf %61 : vector<72x128xf32> to vector<72x128xbf16>
      %c0_33 = arith.constant 0 : index
      %c0_34 = arith.constant 0 : index
      %63 = vector.load %arg6[%c0_33, %c0_34] : memref<72x128xbf16, #tpu.memory_space<vmem>>, vector<72x128xbf16>
      tpu.vector_store %arg6[%c0_33, %c0_34], %62 {strides = array<i32>} : memref<72x128xbf16, #tpu.memory_space<vmem>>, vector<72x128xbf16>,
    } else {
    }
    return
  }
  func.func @transform_0(%arg0: i32) -> (i32, i32) {
    %c0_i32 = arith.constant 0 : i32
    %c0_i32_0 = arith.constant 0 : i32
    return %arg0, %c0_i32 : i32, i32
  }
  func.func @transform_1(%arg0: i32) -> (i32, i32) {
    %c0_i32 = arith.constant 0 : i32
    %c0_i32_0 = arith.constant 0 : i32
    %c0_i32_1 = arith.constant 0 : i32
    return %c0_i32, %c0_i32_0 : i32, i32
  }
  func.func @transform_2(%arg0: i32) -> (i32, i32) {
    %c0_i32 = arith.constant 0 : i32
    %c0_i32_0 = arith.constant 0 : i32
    %c0_i32_1 = arith.constant 0 : i32
    return %c0_i32, %c0_i32_0 : i32, i32
  }
  func.func @transform_3(%arg0: i32) -> (i32, i32) {
    %c0_i32 = arith.constant 0 : i32
    %c0_i32_0 = arith.constant 0 : i32
    %c0_i32_1 = arith.constant 0 : i32
    return %c0_i32, %c0_i32_0 : i32, i32
  }
  func.func @transform_4(%arg0: i32) -> (i32, i32) {
    %c0_i32 = arith.constant 0 : i32
    %c0_i32_0 = arith.constant 0 : i32
    %c0_i32_1 = arith.constant 0 : i32
    return %c0_i32, %c0_i32_0 : i32, i32
  }
  func.func @transform_5(%arg0: i32) -> (i32, i32) {
    %c0_i32 = arith.constant 0 : i32
    %c0_i32_0 = arith.constant 0 : i32
    %c0_i32_1 = arith.constant 0 : i32
    return %c0_i32, %c0_i32_0 : i32, i32
  }
}

module attributes {stable_mosaic.version = 11 : i64} {
  func.func @conv_bn_gelu_kernel(%arg0: i32, %arg1: memref<8x2048xbf16, #tpu.memory_space<vmem>>, %arg2: memref<2048x256xbf16, #tpu.memory_space<vmem>>, %arg3: memref<1x256xf32, #tpu.memory_space<vmem>>, %arg4: memref<1x256xf32, #tpu.memory_space<vmem>>, %arg5: memref<1x256xf32, #tpu.memory_space<vmem>>, %arg6: memref<8x256xbf16, #tpu.memory_space<vmem>>, %arg7: memref<8x256xf32, #tpu.memory_space<vmem>>, %arg8: memref<2x256xf32, #tpu.memory_space<vmem>>) attributes {dimension_semantics = [#tpu.dimension_semantics<arbitrary>], iteration_bounds = array<i64: 1>, scalar_prefetch = 0 : i64, scratch_operands = 2 : i64, tpu.core_type = #tpu.core_type<tc>, window_params = [{transform_indices = @transform_0, window_bounds = array<i64: 8, 2048>}, {pipeline_mode = #tpu.pipeline_mode<synchronous>, transform_indices = @transform_1, window_bounds = array<i64: 2048, 256>}, {pipeline_mode = #tpu.pipeline_mode<synchronous>, transform_indices = @transform_2, window_bounds = array<i64: 1, 256>}, {pipeline_mode = #tpu.pipeline_mode<synchronous>, transform_indices = @transform_3, window_bounds = array<i64: 1, 256>}, {pipeline_mode = #tpu.pipeline_mode<synchronous>, transform_indices = @transform_4, window_bounds = array<i64: 1, 256>}, {pipeline_mode = #tpu.pipeline_mode<synchronous>, transform_indices = @transform_5, window_bounds = array<i64: 8, 256>}]} {
    %c0 = arith.constant 0 : index
    %c0_0 = arith.constant 0 : index
    %0 = vector.load %arg1[%c0, %c0_0] : memref<8x2048xbf16, #tpu.memory_space<vmem>>, vector<8x2048xbf16>
    %c0_1 = arith.constant 0 : index
    %c0_2 = arith.constant 0 : index
    %1 = vector.load %arg2[%c0_1, %c0_2] : memref<2048x256xbf16, #tpu.memory_space<vmem>>, vector<2048x256xbf16>
    %cst = arith.constant dense<0.000000e+00> : vector<8x256xf32>
    %2 = tpu.matmul %0, %1, %cst {dimension_numbers = #tpu.dot_dimension_numbers<[1], [0], [0], [1], [0, 0, 1, 1], [], []>} : vector<8x2048xbf16>, vector<2048x256xbf16>, vector<8x256xf32> -> vector<8x256xf32>
    %c0_3 = arith.constant 0 : index
    %c0_4 = arith.constant 0 : index
    %3 = vector.load %arg3[%c0_3, %c0_4] : memref<1x256xf32, #tpu.memory_space<vmem>>, vector<1x256xf32>
    %4 = vector.broadcast %3 : vector<1x256xf32> to vector<8x256xf32>
    %5 = arith.addf %2, %4 : vector<8x256xf32>
    %c8_i32 = arith.constant 8 : i32
    %6 = arith.muli %arg0, %c8_i32 : i32
    %7 = tpu.assume_multiple %6, 8 : i32
    %8 = arith.index_cast %7 : i32 to index
    %c0_5 = arith.constant 0 : index
    %9 = vector.load %arg7[%8, %c0_5] : memref<8x256xf32, #tpu.memory_space<vmem>>, vector<8x256xf32>
    tpu.vector_store %arg7[%8, %c0_5], %5 {strides = array<i32>} : memref<8x256xf32, #tpu.memory_space<vmem>>, vector<8x256xf32>,
    %c8_i32_6 = arith.constant 8 : i32
    %10 = arith.muli %arg0, %c8_i32_6 : i32
    %11 = tpu.iota {dimensions = array<i32: 0>} : vector<8x256xi32>
    %12 = vector.broadcast %10 : i32 to vector<8x256xi32>
    %13 = arith.addi %12, %11 : vector<8x256xi32>
    %c8_i32_7 = arith.constant 8 : i32
    %14 = vector.broadcast %c8_i32_7 : i32 to vector<8x256xi32>
    %15 = arith.cmpi slt, %13, %14 : vector<8x256xi32>
    %cst_8 = arith.constant 0.000000e+00 : f32
    %16 = vector.broadcast %cst_8 : f32 to vector<8x256xf32>
    %17 = arith.select %15, %5, %16 : vector<8x256xi1>, vector<8x256xf32>
    %c0_i32 = arith.constant 0 : i32
    %18 = arith.cmpi eq, %arg0, %c0_i32 : i32
    %19 = arith.extui %18 : i1 to i32
    %c0_i32_9 = arith.constant 0 : i32
    %20 = arith.cmpi ne, %19, %c0_i32_9 : i32
    scf.if %20 {
      %cst_18 = arith.constant 0.000000e+00 : f32
      %33 = vector.broadcast %cst_18 : f32 to vector<2x256xf32>
      %c0_19 = arith.constant 0 : index
      %c0_20 = arith.constant 0 : index
      %34 = vector.load %arg8[%c0_19, %c0_20] : memref<2x256xf32, #tpu.memory_space<vmem>>, vector<2x256xf32>
      tpu.vector_store %arg8[%c0_19, %c0_20], %33 {strides = array<i32>} : memref<2x256xf32, #tpu.memory_space<vmem>>, vector<2x256xf32>,
    } else {
    }
    %c0_10 = arith.constant 0 : index
    %c0_11 = arith.constant 0 : index
    %21 = vector.load %arg8[%c0_10, %c0_11] : memref<2x256xf32, #tpu.memory_space<vmem>>, vector<2x256xf32>
    %cst_12 = arith.constant dense<0.000000e+00> : vector<256xf32>
    %22 = vector.multi_reduction <add>, %17, %cst_12 [0] : vector<8x256xf32> to vector<256xf32>
    %23 = vector.shape_cast %22 : vector<256xf32> to vector<1x256xf32>
    %24 = arith.mulf %17, %17 : vector<8x256xf32>
    %cst_13 = arith.constant dense<0.000000e+00> : vector<256xf32>
    %25 = vector.multi_reduction <add>, %24, %cst_13 [0] : vector<8x256xf32> to vector<256xf32>
    %26 = vector.shape_cast %25 : vector<256xf32> to vector<1x256xf32>
    %27 = tpu.concatenate %23, %26 in 0 : vector<1x256xf32>, vector<1x256xf32> -> vector<2x256xf32>
    %28 = arith.addf %21, %27 : vector<2x256xf32>
    %c0_14 = arith.constant 0 : index
    %c0_15 = arith.constant 0 : index
    %29 = vector.load %arg8[%c0_14, %c0_15] : memref<2x256xf32, #tpu.memory_space<vmem>>, vector<2x256xf32>
    tpu.vector_store %arg8[%c0_14, %c0_15], %28 {strides = array<i32>} : memref<2x256xf32, #tpu.memory_space<vmem>>, vector<2x256xf32>,
    %c0_i32_16 = arith.constant 0 : i32
    %30 = arith.cmpi eq, %arg0, %c0_i32_16 : i32
    %31 = arith.extui %30 : i1 to i32
    %c0_i32_17 = arith.constant 0 : i32
    %32 = arith.cmpi ne, %31, %c0_i32_17 : i32
    scf.if %32 {
      %c0_18 = arith.constant 0 : index
      %c0_19 = arith.constant 0 : index
      %33 = vector.load %arg8[%c0_18, %c0_19] : memref<2x256xf32, #tpu.memory_space<vmem>>, vector<1x256xf32>
      %cst_20 = arith.constant 1.250000e-01 : f32
      %34 = vector.broadcast %cst_20 : f32 to vector<1x256xf32>
      %35 = arith.mulf %33, %34 : vector<1x256xf32>
      %c1 = arith.constant 1 : index
      %c0_21 = arith.constant 0 : index
      %36 = vector.load %arg8[%c1, %c0_21] : memref<2x256xf32, #tpu.memory_space<vmem>>, vector<1x256xf32>
      %cst_22 = arith.constant 1.250000e-01 : f32
      %37 = vector.broadcast %cst_22 : f32 to vector<1x256xf32>
      %38 = arith.mulf %36, %37 : vector<1x256xf32>
      %39 = arith.mulf %35, %35 : vector<1x256xf32>
      %40 = arith.subf %38, %39 : vector<1x256xf32>
      %c0_23 = arith.constant 0 : index
      %c0_24 = arith.constant 0 : index
      %41 = vector.load %arg4[%c0_23, %c0_24] : memref<1x256xf32, #tpu.memory_space<vmem>>, vector<1x256xf32>
      %cst_25 = arith.constant 9.99999974E-6 : f32
      %42 = vector.broadcast %cst_25 : f32 to vector<1x256xf32>
      %43 = arith.addf %40, %42 : vector<1x256xf32>
      %44 = math.rsqrt %43 : vector<1x256xf32>
      %45 = arith.mulf %41, %44 : vector<1x256xf32>
      %c0_26 = arith.constant 0 : index
      %c0_27 = arith.constant 0 : index
      %46 = vector.load %arg5[%c0_26, %c0_27] : memref<1x256xf32, #tpu.memory_space<vmem>>, vector<1x256xf32>
      %47 = arith.mulf %35, %45 : vector<1x256xf32>
      %48 = arith.subf %46, %47 : vector<1x256xf32>
      %c0_28 = arith.constant 0 : index
      %c0_29 = arith.constant 0 : index
      %49 = vector.load %arg7[%c0_28, %c0_29] : memref<8x256xf32, #tpu.memory_space<vmem>>, vector<8x256xf32>
      %50 = vector.broadcast %45 : vector<1x256xf32> to vector<8x256xf32>
      %51 = arith.mulf %49, %50 : vector<8x256xf32>
      %52 = vector.broadcast %48 : vector<1x256xf32> to vector<8x256xf32>
      %53 = arith.addf %51, %52 : vector<8x256xf32>
      %cst_30 = arith.constant 5.000000e-01 : f32
      %54 = vector.broadcast %cst_30 : f32 to vector<8x256xf32>
      %55 = arith.mulf %54, %53 : vector<8x256xf32>
      %cst_31 = arith.constant 0.707106769 : f32
      %56 = vector.broadcast %cst_31 : f32 to vector<8x256xf32>
      %57 = arith.mulf %53, %56 : vector<8x256xf32>
      %58 = math.erf %57 : vector<8x256xf32>
      %cst_32 = arith.constant 1.000000e+00 : f32
      %59 = vector.broadcast %cst_32 : f32 to vector<8x256xf32>
      %60 = arith.addf %59, %58 : vector<8x256xf32>
      %61 = arith.mulf %55, %60 : vector<8x256xf32>
      %62 = arith.truncf %61 : vector<8x256xf32> to vector<8x256xbf16>
      %c0_33 = arith.constant 0 : index
      %c0_34 = arith.constant 0 : index
      %63 = vector.load %arg6[%c0_33, %c0_34] : memref<8x256xbf16, #tpu.memory_space<vmem>>, vector<8x256xbf16>
      tpu.vector_store %arg6[%c0_33, %c0_34], %62 {strides = array<i32>} : memref<8x256xbf16, #tpu.memory_space<vmem>>, vector<8x256xbf16>,
    } else {
    }
    return
  }
  func.func @transform_0(%arg0: i32) -> (i32, i32) {
    %c0_i32 = arith.constant 0 : i32
    %c0_i32_0 = arith.constant 0 : i32
    return %arg0, %c0_i32 : i32, i32
  }
  func.func @transform_1(%arg0: i32) -> (i32, i32) {
    %c0_i32 = arith.constant 0 : i32
    %c0_i32_0 = arith.constant 0 : i32
    %c0_i32_1 = arith.constant 0 : i32
    return %c0_i32, %c0_i32_0 : i32, i32
  }
  func.func @transform_2(%arg0: i32) -> (i32, i32) {
    %c0_i32 = arith.constant 0 : i32
    %c0_i32_0 = arith.constant 0 : i32
    %c0_i32_1 = arith.constant 0 : i32
    return %c0_i32, %c0_i32_0 : i32, i32
  }
  func.func @transform_3(%arg0: i32) -> (i32, i32) {
    %c0_i32 = arith.constant 0 : i32
    %c0_i32_0 = arith.constant 0 : i32
    %c0_i32_1 = arith.constant 0 : i32
    return %c0_i32, %c0_i32_0 : i32, i32
  }
  func.func @transform_4(%arg0: i32) -> (i32, i32) {
    %c0_i32 = arith.constant 0 : i32
    %c0_i32_0 = arith.constant 0 : i32
    %c0_i32_1 = arith.constant 0 : i32
    return %c0_i32, %c0_i32_0 : i32, i32
  }
  func.func @transform_5(%arg0: i32) -> (i32, i32) {
    %c0_i32 = arith.constant 0 : i32
    %c0_i32_0 = arith.constant 0 : i32
    %c0_i32_1 = arith.constant 0 : i32
    return %c0_i32, %c0_i32_0 : i32, i32
  }
}

module attributes {stable_mosaic.version = 11 : i64} {
  func.func @linear_sigmoid_kernel(%arg0: i32, %arg1: memref<8x1024xbf16, #tpu.memory_space<vmem>>, %arg2: memref<1x1024xf32, #tpu.memory_space<vmem>>, %arg3: memref<1x1xf32, #tpu.memory_space<vmem>>, %arg4: memref<8x1xf32, #tpu.memory_space<vmem>>) attributes {dimension_semantics = [#tpu.dimension_semantics<parallel>], iteration_bounds = array<i64: 1>, scalar_prefetch = 0 : i64, scratch_operands = 0 : i64, tpu.core_type = #tpu.core_type<tc>, window_params = [{transform_indices = @transform_0, window_bounds = array<i64: 8, 1024>}, {pipeline_mode = #tpu.pipeline_mode<synchronous>, transform_indices = @transform_1, window_bounds = array<i64: 1, 1024>}, {pipeline_mode = #tpu.pipeline_mode<synchronous>, transform_indices = @transform_2, window_bounds = array<i64: 1, 1>}, {transform_indices = @transform_3, window_bounds = array<i64: 8, 1>}]} {
    %c0 = arith.constant 0 : index
    %c0_0 = arith.constant 0 : index
    %0 = vector.load %arg1[%c0, %c0_0] : memref<8x1024xbf16, #tpu.memory_space<vmem>>, vector<8x1024xbf16>
    %1 = arith.extf %0 : vector<8x1024xbf16> to vector<8x1024xf32>
    %c0_1 = arith.constant 0 : index
    %c0_2 = arith.constant 0 : index
    %2 = vector.load %arg2[%c0_1, %c0_2] : memref<1x1024xf32, #tpu.memory_space<vmem>>, vector<1x1024xf32>
    %3 = vector.broadcast %2 : vector<1x1024xf32> to vector<8x1024xf32>
    %4 = arith.mulf %1, %3 : vector<8x1024xf32>
    %cst = arith.constant dense<0.000000e+00> : vector<8xf32>
    %5 = vector.multi_reduction <add>, %4, %cst [1] : vector<8x1024xf32> to vector<8xf32>
    %6 = vector.shape_cast %5 : vector<8xf32> to vector<8x1xf32>
    %c0_3 = arith.constant 0 : index
    %c0_4 = arith.constant 0 : index
    %7 = vector.load %arg3[%c0_3, %c0_4] : memref<1x1xf32, #tpu.memory_space<vmem>>, vector<1x1xf32>
    %8 = vector.broadcast %7 : vector<1x1xf32> to vector<8x1xf32>
    %9 = arith.addf %6, %8 : vector<8x1xf32>
    %10 = arith.negf %9 : vector<8x1xf32>
    %11 = math.exp %10 : vector<8x1xf32>
    %cst_5 = arith.constant 1.000000e+00 : f32
    %12 = vector.broadcast %cst_5 : f32 to vector<8x1xf32>
    %13 = arith.addf %12, %11 : vector<8x1xf32>
    %14 = arith.divf %12, %13 : vector<8x1xf32>
    %c0_6 = arith.constant 0 : index
    %c0_7 = arith.constant 0 : index
    %15 = vector.load %arg4[%c0_6, %c0_7] : memref<8x1xf32, #tpu.memory_space<vmem>>, vector<8x1xf32>
    tpu.vector_store %arg4[%c0_6, %c0_7], %14 {strides = array<i32>} : memref<8x1xf32, #tpu.memory_space<vmem>>, vector<8x1xf32>,
    return
  }
  func.func @transform_0(%arg0: i32) -> (i32, i32) {
    %c0_i32 = arith.constant 0 : i32
    %c0_i32_0 = arith.constant 0 : i32
    return %arg0, %c0_i32 : i32, i32
  }
  func.func @transform_1(%arg0: i32) -> (i32, i32) {
    %c0_i32 = arith.constant 0 : i32
    %c0_i32_0 = arith.constant 0 : i32
    %c0_i32_1 = arith.constant 0 : i32
    return %c0_i32, %c0_i32_0 : i32, i32
  }
  func.func @transform_2(%arg0: i32) -> (i32, i32) {
    %c0_i32 = arith.constant 0 : i32
    %c0_i32_0 = arith.constant 0 : i32
    %c0_i32_1 = arith.constant 0 : i32
    return %c0_i32, %c0_i32_0 : i32, i32
  }
  func.func @transform_3(%arg0: i32) -> (i32, i32) {
    %c0_i32 = arith.constant 0 : i32
    %c0_i32_0 = arith.constant 0 : i32
    return %arg0, %c0_i32 : i32, i32
  }
}

</mosaic_0001>

<bundles_post_ra>
// kernel: discriminator_forward.4
= control target key start
LH: loop header
LB: loop body
LE: loop exit
PB: predicated region body
PF: predicated region fallthrough
CT: control target
= control target key end

     0   :  { %vm243_vm0 = vcmask 392192   ;;  %vm3049_vm10 = vcmask 519168   ;;  %s5964_s1 = inlined_call_operand.vmem [shape: bf16[48,64], index: 1, kind: input, shape index: {}]   ;;  %s5965_s2 = inlined_call_operand.vmem [shape: f32[1,64], index: 2, kind: input, shape index: {}]   ;;  %s5966_s0 = inlined_call_operand.vmem [shape: bf16[456,48], index: 0, kind: input, shape index: {}]   ;;  %s5967_s3 = inlined_call_operand.vmem [shape: bf16[456,64], index: 3, kind: output, shape index: {}]  }
   0x1   :  { %v3351_v0 = vld [vmem:[%s5964_s1 + $0x10] sm:$0xff]  ;;  %v3350_v1 = vld [vmem:[%s5964_s1 + $0x8] sm:$0xff]  ;;  %v3349_v2 = vld [vmem:[%s5964_s1] sm:$0xff] }
   0x2   :  { %336 = vmatpush.bf16.msra.mxu0 %v3351_v0  ;;  %3352 = vmatpush.bf16.msra.mxu1 %v3351_v0  ;;  %v3321_v3 = vld [vmem:[%s5966_s0] sm:$0xff]  ;;  %v3328_v4 = vld [vmem:[%s5966_s0 + $0x38] sm:$0xff]  ;;  %v3322_v7 = vld [vmem:[%s5966_s0 + $0x8] sm:$0xff] }
   0x3   :  { %3353 = vmatpush.bf16.msra.mxu2 %v3351_v0  ;;  %3354 = vmatpush.bf16.msra.mxu3 %v3351_v0  ;;  %v3336_v5 = vld [vmem:[%s5966_s0 + $0x78] sm:$0xff]  ;;  %v3329_v8 = vld [vmem:[%s5966_s0 + $0x40] sm:$0xff]  ;;  %v3323_v11 = vld [vmem:[%s5966_s0 + $0x10] sm:$0xff] }
   0x4   :  { %v3344_v6 = vld [vmem:[%s5966_s0 + $0xb8] sm:$0xff]  ;;  %v3337_v9 = vld [vmem:[%s5966_s0 + $0x80] sm:$0xff]  ;;  %v3330_v12 = vld [vmem:[%s5966_s0 + $0x48] sm:$0xff] }
   0x5   :  { %v3345_v10 = vld [vmem:[%s5966_s0 + $0xc0] sm:$0xff]  ;;  %v3338_v13 = vld [vmem:[%s5966_s0 + $0x88] sm:$0xff]  ;;  %v3324_v15 = vld [vmem:[%s5966_s0 + $0x18] sm:$0xff] }
   0x6   :  { %337 = vmatpush.bf16.msra.mxu0 %v3350_v1  ;;  %3355 = vmatpush.bf16.msra.mxu1 %v3350_v1  ;;  %v3346_v14 = vld [vmem:[%s5966_s0 + $0xc8] sm:$0xff]  ;;  %v3331_v16 = vld [vmem:[%s5966_s0 + $0x50] sm:$0xff]  ;;  %v3325_v19 = vld [vmem:[%s5966_s0 + $0x20] sm:$0xff] }
   0x7   :  { %3356 = vmatpush.bf16.msra.mxu2 %v3350_v1  ;;  %3357 = vmatpush.bf16.msra.mxu3 %v3350_v1  ;;  %v3339_v17 = vld [vmem:[%s5966_s0 + $0x90] sm:$0xff]  ;;  %v3332_v20 = vld [vmem:[%s5966_s0 + $0x58] sm:$0xff]  ;;  %v71_v23 = vld [vmem:[%s5966_s0 + $0xe0] sm:$0xf] }
   0x8   :  { %v3347_v18 = vld [vmem:[%s5966_s0 + $0xd0] sm:$0xff]  ;;  %v3340_v21 = vld [vmem:[%s5966_s0 + $0x98] sm:$0xff]  ;;  %v195_v24 = vunpack.c.l.b16 %v71_v23  ;;  %v3326_v25 = vld [vmem:[%s5966_s0 + $0x28] sm:$0xff] }
   0x9   :  { %v3348_v22 = vld [vmem:[%s5966_s0 + $0xd8] sm:$0xff]  ;;  %v3333_v26 = vld [vmem:[%s5966_s0 + $0x60] sm:$0xff]  ;;  %v3327_v29 = vld [vmem:[%s5966_s0 + $0x30] sm:$0xff] }
   0xa   :  { %338 = vmatpush.bf16.msra.mxu0 %v3349_v2  ;;  %3358 = vmatpush.bf16.msra.mxu1 %v3349_v2  ;;  %v3341_v27 = vld [vmem:[%s5966_s0 + $0xa0] sm:$0xff]  ;;  %v224_v28 = vpack.c.b16 %v195_v24, %v195_v24  ;;  %v3334_v30 = vld [vmem:[%s5966_s0 + $0x68] sm:$0xff]  ;;  %v3335_v32 = vld [vmem:[%s5966_s0 + $0x70] sm:$0xff] }
   0xb   :  { %3359 = vmatpush.bf16.msra.mxu2 %v3349_v2  ;;  %3360 = vmatpush.bf16.msra.mxu3 %v3349_v2  ;;  %v3342_v31 = vld [vmem:[%s5966_s0 + $0xa8] sm:$0xff]  ;;  %v3343_v33 = vld [vmem:[%s5966_s0 + $0xb0] sm:$0xff]  ;;  %v3628_v34 = vld [vmem:[%s5965_s2] ss:$0 sm:$0xff] }
   0xd   :  { %3235 = vmatmul.msk.bf16.vlgmr.msra.gmra.mxu0 %vm243_vm0, %v3321_v3  ;;  %3242 = vmatmul.msk.bf16.vlgmr.msra.gmra.mxu1 %vm243_vm0, %v3328_v4 }
   0xe   :  { %3250 = vmatmul.msk.bf16.vlgmr.msra.gmra.mxu2 %vm243_vm0, %v3336_v5  ;;  %3258 = vmatmul.msk.bf16.vlgmr.msra.gmra.mxu3 %vm243_vm0, %v3344_v6 }
  0x1d   :  { %3236 = vmatmul.msk.bf16.gmra.mxu0 %vm243_vm0, %v3322_v7  ;;  %3243 = vmatmul.msk.bf16.gmra.mxu1 %vm243_vm0, %v3329_v8 }
  0x1e   :  { %3251 = vmatmul.msk.bf16.gmra.mxu2 %vm243_vm0, %v3337_v9  ;;  %3259 = vmatmul.msk.bf16.gmra.mxu3 %vm243_vm0, %v3345_v10 }
  0x2d   :  { %3237 = vmatmul.msk.bf16.gmra.mxu0 %vm243_vm0, %v3323_v11  ;;  %3244 = vmatmul.msk.bf16.gmra.mxu1 %vm243_vm0, %v3330_v12 }
  0x2e   :  { %3252 = vmatmul.msk.bf16.gmra.mxu2 %vm243_vm0, %v3338_v13  ;;  %3260 = vmatmul.msk.bf16.gmra.mxu3 %vm243_vm0, %v3346_v14 }
  0x3d   :  { %3238 = vmatmul.msk.bf16.gmra.mxu0 %vm243_vm0, %v3324_v15  ;;  %3245 = vmatmul.msk.bf16.gmra.mxu1 %vm243_vm0, %v3331_v16 }
  0x3e   :  { %3253 = vmatmul.msk.bf16.gmra.mxu2 %vm243_vm0, %v3339_v17  ;;  %3261 = vmatmul.msk.bf16.gmra.mxu3 %vm243_vm0, %v3347_v18 }
  0x4d   :  { %3239 = vmatmul.msk.bf16.gmra.mxu0 %vm243_vm0, %v3325_v19  ;;  %3246 = vmatmul.msk.bf16.gmra.mxu1 %vm243_vm0, %v3332_v20 }
  0x4e   :  { %3254 = vmatmul.msk.bf16.gmra.mxu2 %vm243_vm0, %v3340_v21  ;;  %3262 = vmatmul.msk.bf16.gmra.mxu3 %vm243_vm0, %v3348_v22 }
  0x5d   :  { %3240 = vmatmul.msk.bf16.gmra.mxu0 %vm243_vm0, %v3326_v25  ;;  %3247 = vmatmul.msk.bf16.gmra.mxu1 %vm243_vm0, %v3333_v26 }
  0x5e   :  { %3255 = vmatmul.msk.bf16.gmra.mxu2 %vm243_vm0, %v3341_v27  ;;  %3263 = vmatmul.msk.bf16.gmra.mxu3 %vm243_vm0, %v224_v28 }
  0x6d   :  { %3241 = vmatmul.msk.bf16.gmra.mxu0 %vm243_vm0, %v3327_v29  ;;  %3248 = vmatmul.msk.bf16.gmra.mxu1 %vm243_vm0, %v3334_v30 }
  0x6e   :  { %3256 = vmatmul.msk.bf16.gmra.mxu2 %vm243_vm0, %v3342_v31 }
  0x7d   :  { %3249 = vmatmul.msk.bf16.gmra.mxu1 %vm243_vm0, %v3335_v32 }
  0x7e   :  { %3257 = vmatmul.msk.bf16.gmra.mxu2 %vm243_vm0, %v3343_v33 }
  0x8a   :  { %v340_v35 = vpop.f32.mrf.mxu0  ;;  %v375_v36 = vpop.f32.mrf.mxu1 }
  0x8b   :  { %v341_v37 = vadd.f32 %v3628_v34, %v340_v35  ;;  %v3632_v38 = vadd.f32 %v3628_v34, %v375_v36 }
  0x8d   :  { %v3634_v39 = vmul.f32 0.70710677, %v341_v37  ;;  %v3637_v40 = vmul.f32 0.70710677, %v3632_v38  ;;  %v3690_v28 = vmul.f32 0.5, %v341_v37 }
  0x8f   :  { %v598_v41 = vmul.f32 %v3634_v39, %v3634_v39  ;;  %v1158_v42 = vmul.f32 %v3637_v40, %v3637_v40 }
  0x91   :  { %v3643_v43 = vmin.f32 %v598_v41, 16.0  ;;  %v3645_v44 = vmin.f32 %v1158_v42, 16.0  ;;  %v415_v45 = vpop.f32.mrf.mxu2  ;;  %v455_v46 = vpop.f32.mrf.mxu3 }
  0x92   :  { %v3648_v47 = vadd.f32 %v3628_v34, %v415_v45  ;;  %v3651_v48 = vadd.f32 %v3628_v34, %v455_v46  ;;  %v342_v2 = vpop.f32.mrf.mxu0  ;;  %v377_v32 = vpop.f32.mrf.mxu1 }
  0x93   :  { %v600_v49 = vmul.f32 2.1237322e-06, %v3643_v43  ;;  %v611_v50 = vmul.f32 3.8918573e-05, %v3643_v43  ;;  %v1160_v51 = vmul.f32 2.1237322e-06, %v3645_v44  ;;  %v343_v12 = vadd.f32 %v3628_v34, %v342_v2 }
  0x94   :  { %v1171_v52 = vmul.f32 3.8918573e-05, %v3645_v44  ;;  %v3658_v53 = vmul.f32 0.70710677, %v3648_v47  ;;  %v3663_v59 = vmul.f32 0.70710677, %v3651_v48 }
  0x95   :  { %v601_v54 = vadd.f32 0.00028619796, %v600_v49  ;;  %v612_v55 = vadd.f32 0.001143296, %v611_v50  ;;  %v1161_v56 = vadd.f32 0.00028619796, %v1160_v51 }
  0x96   :  { %v1172_v57 = vadd.f32 0.001143296, %v1171_v52  ;;  %v1798_v58 = vmul.f32 %v3658_v53, %v3658_v53  ;;  %v2438_v1 = vmul.f32 %v3663_v59, %v3663_v59  ;;  %v3688_v27 = vmul.f32 0.70710677, %v343_v12 }
  0x97   :  { %v602_v60 = vmul.f32 %v601_v54, %v3643_v43  ;;  %v613_v61 = vmul.f32 %v612_v55, %v3643_v43  ;;  %v1162_v62 = vmul.f32 %v1161_v56, %v3645_v44  ;;  %v378_v52 = vadd.f32 %v3628_v34, %v377_v32 }
  0x98   :  { %v1173_v63 = vmul.f32 %v1172_v57, %v3645_v44  ;;  %v3669_v0 = vmin.f32 %v1798_v58, 16.0  ;;  %v3680_v16 = vmin.f32 %v2438_v1, 16.0  ;;  %v638_v51 = vmul.f32 %v3688_v27, %v3688_v27 }
  0x99   :  { %v603_v3 = vadd.f32 0.0036580483, %v602_v60  ;;  %v614_v4 = vadd.f32 0.014752088, %v613_v61  ;;  %v1163_v5 = vadd.f32 0.0036580483, %v1162_v62  ;;  %v417_v49 = vpop.f32.mrf.mxu2 }
  0x9a   :  { %v1174_v6 = vadd.f32 0.014752088, %v1173_v63  ;;  %v1800_v7 = vmul.f32 2.1237322e-06, %v3669_v0  ;;  %v1811_v8 = vmul.f32 3.8918573e-05, %v3669_v0  ;;  %v3707_v62 = vadd.f32 %v3628_v34, %v417_v49 }
  0x9b   :  { %v604_v9 = vmul.f32 %v603_v3, %v3643_v43  ;;  %v615_v10 = vmul.f32 %v614_v4, %v3643_v43  ;;  %v1164_v11 = vmul.f32 %v1163_v5, %v3645_v44  ;;  %v2440_v23 = vmul.f32 2.1237322e-06, %v3680_v16 }
  0x9c   :  { %v1175_v13 = vmul.f32 %v1174_v6, %v3645_v44  ;;  %v1801_v14 = vadd.f32 0.00028619796, %v1800_v7  ;;  %v1812_v15 = vadd.f32 0.001143296, %v1811_v8  ;;  %v2451_v61 = vmul.f32 3.8918573e-05, %v3680_v16 }
  0x9d   :  { %v605_v17 = vadd.f32 0.05243302, %v604_v9  ;;  %v616_v18 = vadd.f32 0.112945676, %v615_v10  ;;  %v1165_v19 = vadd.f32 0.05243302, %v1164_v11 }
  0x9e   :  { %v1176_v20 = vadd.f32 0.112945676, %v1175_v13  ;;  %v1802_v21 = vmul.f32 %v1801_v14, %v3669_v0  ;;  %v1813_v22 = vmul.f32 %v1812_v15, %v3669_v0  ;;  %v2441_v46 = vadd.f32 0.00028619796, %v2440_v23 }
  0x9f   :  { %v606_v24 = vmul.f32 %v605_v17, %v3643_v43  ;;  %v617_v25 = vmul.f32 %v616_v18, %v3643_v43  ;;  %v1166_v26 = vmul.f32 %v1165_v19, %v3645_v44  ;;  %v3715_v4 = vmul.f32 0.5, %v3632_v38 }
  0xa0   :  { %v1177_v29 = vmul.f32 %v1176_v20, %v3645_v44  ;;  %v1803_v30 = vadd.f32 0.0036580483, %v1802_v21  ;;  %v1814_v31 = vadd.f32 0.014752088, %v1813_v22  ;;  %v2442_v57 = vmul.f32 %v2441_v46, %v3680_v16 }
  0xa1   :  { %v607_v33 = vadd.f32 0.18741608, %v606_v24  ;;  %v618_v35 = vadd.f32 0.4994258, %v617_v25  ;;  %v1167_v36 = vadd.f32 0.18741608, %v1166_v26 }
  0xa2   :  { %v1178_v41 = vadd.f32 0.4994258, %v1177_v29  ;;  %v1804_v42 = vmul.f32 %v1803_v30, %v3669_v0  ;;  %v1815_v45 = vmul.f32 %v1814_v31, %v3669_v0  ;;  %v2443_v2 = vadd.f32 0.0036580483, %v2442_v57 }
  0xa3   :  { %v608_v50 = vmul.f32 %v607_v33, %v3643_v43  ;;  %v619_v37 = vmul.f32 %v618_v35, %v3643_v43  ;;  %v1168_v60 = vmul.f32 %v1167_v36, %v3645_v44  ;;  %v3717_v5 = vmin.f32 %v638_v51, 16.0 }
  0xa4   :  { %v1179_v54 = vmul.f32 %v1178_v41, %v3645_v44  ;;  %v1805_v55 = vadd.f32 0.05243302, %v1804_v42  ;;  %v1816_v56 = vadd.f32 0.112945676, %v1815_v45  ;;  %v3721_v44 = vmul.f32 0.5, %v3648_v47 }
  0xa5   :  { %v3702_v58 = vadd.f32 1.0, %v619_v37  ;;  %v609_v3 = vadd.f32 1.1283791, %v608_v50  ;;  %v3723_v6 = vmul.f32 0.5, %v343_v12  ;;  %v3725_v7 = vmul.f32 0.5, %v378_v52 }
  0xa6   :  { %v3709_v43 = vadd.f32 1.0, %v1179_v54  ;;  %v1806_v63 = vmul.f32 %v1805_v55, %v3669_v0  ;;  %v1817_v1 = vmul.f32 %v1816_v56, %v3669_v0  ;;  %v1169_v8 = vadd.f32 1.1283791, %v1168_v60 }
  0xa7   :  { %3362 = vrcp.f32 %v3702_v58  ;;  %v3728_v10 = vmul.f32 0.5, %v3651_v48  ;;  %v3731_v11 = vmul.f32 0.5, %v3707_v62  ;;  %v630_v38 = vand.u32 2147483647, %v3702_v58 }
  0xa8   :  { %3364 = vrcp.f32 %v3709_v43  ;;  %v1807_v9 = vadd.f32 0.18741608, %v1806_v63  ;;  %v1818_v13 = vadd.f32 0.4994258, %v1817_v1  ;;  %v2444_v14 = vmul.f32 %v2443_v2, %v3680_v16 }
  0xa9   :  { %v2452_v15 = vadd.f32 0.001143296, %v2451_v61  ;;  %v610_v47 = vmul.f32 %v609_v3, %v3634_v39  ;;  %v632_v12 = vand.u32 2147483648, %v3702_v58  ;;  %v1190_v17 = vand.u32 2147483647, %v3709_v43 }
  0xaa   :  { %v640_v18 = vmul.f32 2.1237322e-06, %v3717_v5  ;;  %vm626_vm1 = vweird.f32 %v3702_v58  ;;  %v1192_v48 = vand.u32 2147483648, %v3709_v43  ;;  %v1819_v19 = vmul.f32 %v1818_v13, %v3669_v0 }
  0xab   :  { %v2453_v20 = vmul.f32 %v2452_v15, %v3680_v16  ;;  %v1170_v22 = vmul.f32 %v1169_v8, %v3637_v40  ;;  %vm1186_vm2 = vweird.f32 %v3709_v43  ;;  %v1808_v39 = vmul.f32 %v1807_v9, %v3669_v0 }
  0xac   :  { %v2445_v23 = vadd.f32 0.05243302, %v2444_v14  ;;  %vm3747_vm3 = vcmp.eq.f32.partialorder %v630_v38, 8.507059e+37  ;;  %v3751_v29 = vadd.f32 1.0, %v1819_v19  ;;  %v641_v30 = vadd.f32 0.00028619796, %v640_v18 }
  0xad   :  { %v3363_v21 = vpop.eup %3362  ;;  %v651_v31 = vmul.f32 3.8918573e-05, %v3717_v5  ;;  %v633_v32 = vor.u32 1.1754944e-38, %v632_v12  ;;  %vm3755_vm4 = vcmp.eq.f32.partialorder %v1190_v17, 8.507059e+37  ;;  %v2454_v0 = vadd.f32 0.014752088, %v2453_v20 }
  0xae   :  { %v3365_v24 = vpop.eup %3364  ;;  %v622_v25 = vmul.f32 %v3363_v21, %v3702_v58  ;;  %v1193_v36 = vor.u32 1.1754944e-38, %v1192_v48  ;;  %3366 = vrcp.f32 %v3751_v29  ;;  %v3760_v41 = vmul.f32 0.70710677, %v378_v52 }
  0xaf   :  { %v1182_v40 = vmul.f32 %v3365_v24, %v3709_v43  ;;  %v3762_v45 = vadd.f32 1.1283791, %v1808_v39  ;;  %v2446_v46 = vmul.f32 %v2445_v23, %v3680_v16  ;;  %v2455_v49 = vmul.f32 %v2454_v0, %v3680_v16 }
  0xb0   :  { %v623_v35 = vsub.f32 1.0, %v622_v25  ;;  %vm627_vm5 = vweird.f32 %v3363_v21  ;;  %v642_v37 = vmul.f32 %v641_v30, %v3717_v5  ;;  %v652_v51 = vadd.f32 0.001143296, %v651_v31 }
  0xb1   :  { %v1183_v42 = vsub.f32 1.0, %v1182_v40  ;;  %vm1187_vm6 = vweird.f32 %v3365_v24  ;;  %v1832_v55 = vand.u32 2147483648, %v3751_v29  ;;  %v2456_v56 = vadd.f32 0.112945676, %v2455_v49  ;;  %vm628_vm7 = vmor %vm626_vm1, %vm627_vm5  ;;  %v457_v49 = vpop.f32.mrf.mxu3 }
  0xb2   :  { %v624_v50 = vmul.f32 %v3363_v21, %v623_v35  ;;  %v643_v52 = vadd.f32 0.0036580483, %v642_v37  ;;  %v653_v60 = vmul.f32 %v652_v51, %v3717_v5  ;;  %v1198_v61 = vmul.f32 %v3760_v41, %v3760_v41  ;;  %vm1188_vm9 = vmor %vm1186_vm2, %vm1187_vm6 }
  0xb3   :  { %v1184_v54 = vmul.f32 %v3365_v24, %v1183_v42  ;;  %vm1826_vm8 = vweird.f32 %v3751_v29  ;;  %v1830_v1 = vand.u32 2147483647, %v3751_v29  ;;  %v2447_v2 = vadd.f32 0.18741608, %v2446_v46 }
  0xb4   :  { %v625_v57 = vadd.f32 %v3363_v21, %v624_v50  ;;  %v2457_v3 = vmul.f32 %v2456_v56, %v3680_v16  ;;  %v3367_v8 = vpop.eup %3366  ;;  %v644_v38 = vmul.f32 %v643_v52, %v3717_v5  ;;  %v654_v13 = vadd.f32 0.014752088, %v653_v60 }
  0xb5   :  { %v1185_v63 = vadd.f32 %v3365_v24, %v1184_v54  ;;  %v3780_v14 = vmin.f32 %v1198_v61, 16.0  ;;  %v1822_v12 = vmul.f32 %v3367_v8, %v3751_v29  ;;  %v1833_v17 = vor.u32 1.1754944e-38, %v1832_v55 }
  0xb6   :  { %v629_v9 = vsel %vm628_vm7, %v3363_v21, %v625_v57  ;;  %vm1827_vm11 = vweird.f32 %v3367_v8  ;;  %v2458_v43 = vadd.f32 0.4994258, %v2457_v3  ;;  %v645_v21 = vadd.f32 0.05243302, %v644_v38 }
  0xb7   :  { %v634_v58 = vsel %vm3747_vm3, %v633_v32, %v629_v9  ;;  %v1189_v15 = vsel %vm1188_vm9, %v3365_v24, %v1185_v63  ;;  %v1823_v20 = vsub.f32 1.0, %v1822_v12  ;;  %v655_v39 = vmul.f32 %v654_v13, %v3717_v5  ;;  %vm1828_vm12 = vmor %vm1826_vm8, %vm1827_vm11 }
  0xb8   :  { %v635_v18 = vmul.f32 %v634_v58, %v610_v47  ;;  %v1194_v48 = vsel %vm3755_vm4, %v1193_v36, %v1189_v15  ;;  %v2459_v25 = vmul.f32 %v2458_v43, %v3680_v16  ;;  %v1200_v26 = vmul.f32 2.1237322e-06, %v3780_v14 }
  0xb9   :  { %v1195_v19 = vmul.f32 %v1194_v48, %v1170_v22  ;;  %v1211_v24 = vmul.f32 3.8918573e-05, %v3780_v14  ;;  %v1824_v31 = vmul.f32 %v3367_v8, %v1823_v20  ;;  %v646_v47 = vmul.f32 %v645_v21, %v3717_v5 }
  0xba   :  { %v3264_v23 = vclamps-f32 %v635_v18, 1.0  ;;  %v656_v32 = vadd.f32 0.112945676, %v655_v39  ;;  %v2448_v33 = vmul.f32 %v2447_v2, %v3680_v16  ;;  %v2460_v22 = vadd.f32 1.0, %v2459_v25  ;;  %v345_v25 = vpop.f32.mrf.mxu0 }
  0xbb   :  { %v3278_v30 = vclamps-f32 %v1195_v19, 1.0  ;;  %v3794_v0 = vmul.f32 0.70710677, %v3707_v62  ;;  %v1825_v36 = vadd.f32 %v3367_v8, %v1824_v31  ;;  %v647_v42 = vadd.f32 0.18741608, %v646_v47 }
  0xbc   :  { %v2878_v40 = vadd.f32 1.0, %v3264_v23  ;;  %v657_v46 = vmul.f32 %v656_v32, %v3717_v5  ;;  %3368 = vrcp.f32 %v2460_v22  ;;  %v1201_v37 = vadd.f32 0.00028619796, %v1200_v26 }
  0xbd   :  { %v2892_v35 = vadd.f32 1.0, %v3278_v30  ;;  %v1212_v51 = vadd.f32 0.001143296, %v1211_v24  ;;  %v1810_v62 = vmul.f32 %v3762_v45, %v3658_v53  ;;  %v1829_v54 = vsel %vm1828_vm12, %v3367_v8, %v1825_v36 }
  0xbe   :  { %v2935_v50 = vmul.f32 %v2878_v40, %v3690_v28  ;;  %vm1831_vm13 = vcmp.eq.f32.partialorder %v1830_v1, 8.507059e+37  ;;  %v658_v57 = vadd.f32 0.4994258, %v657_v46  ;;  %v3805_v52 = vadd.f32 %v3628_v34, %v457_v49 }
  0xbf   :  { %v2949_v16 = vmul.f32 %v2892_v35, %v3715_v4  ;;  %v1834_v56 = vsel %vm1831_vm13, %v1833_v17, %v1829_v54  ;;  %v2449_v29 = vadd.f32 1.1283791, %v2448_v33  ;;  %v648_v61 = vmul.f32 %v647_v42, %v3717_v5 }
  0xc0   :  { %v2992_v55 = vpack.c.bf16 %v2935_v50, %v2935_v50  ;;  %v1835_v60 = vmul.f32 %v1834_v56, %v1810_v62  ;;  %v659_v53 = vmul.f32 %v658_v57, %v3717_v5  ;;  %v1202_v4 = vmul.f32 %v1201_v37, %v3780_v14 }
  0xc1   :  { %v3006_v28 = vpack.c.bf16 %v2949_v16, %v2949_v16  ;;  %v1213_v45 = vmul.f32 %v1212_v51, %v3780_v14  ;;  %v1838_v63 = vmul.f32 %v3794_v0, %v3794_v0  ;;  %v2470_v2 = vand.u32 2147483647, %v2460_v22 }
  0xc2   :  { %3050 = vst.msk [vmem:[%s5967_s3] sm:$0xf] %vm3049_vm10, %v2992_v55  ;;  %v3294_v1 = vclamps-f32 %v1835_v60, 1.0  ;;  %v2472_v3 = vand.u32 2147483648, %v2460_v22  ;;  %v3369_v8 = vpop.eup %3368  ;;  %v3821_v9 = vadd.f32 1.0, %v659_v53  ;;  %v2450_v15 = vmul.f32 %v2449_v29, %v3663_v59 }
  0xc3   :  { %3064 = vst.msk [vmem:[%s5967_s3 + $0x38] sm:$0xf] %vm3049_vm10, %v3006_v28  ;;  %v1203_v38 = vadd.f32 0.0036580483, %v1202_v4  ;;  %v1214_v5 = vadd.f32 0.014752088, %v1213_v45  ;;  %v2462_v12 = vmul.f32 %v3369_v8, %v2460_v22  ;;  %vm2466_vm14 = vweird.f32 %v2460_v22 }
  0xc4   :  { %v3823_v13 = vmin.f32 %v1838_v63, 16.0  ;;  %v2908_v58 = vadd.f32 1.0, %v3294_v1  ;;  %vm2467_vm15 = vweird.f32 %v3369_v8  ;;  %v649_v17 = vadd.f32 1.1283791, %v648_v61 }
  0xc5   :  { %3370 = vrcp.f32 %v3821_v9  ;;  %v3828_v18 = vmul.f32 0.70710677, %v3805_v52  ;;  %v2463_v43 = vsub.f32 1.0, %v2462_v12  ;;  %v1204_v19 = vmul.f32 %v1203_v38, %v3780_v14  ;;  %vm3841_vm1 = vmor %vm2466_vm14, %vm2467_vm15 }
  0xc6   :  { %v2965_v48 = vmul.f32 %v2908_v58, %v3721_v44  ;;  %v1215_v20 = vmul.f32 %v1214_v5, %v3780_v14  ;;  %vm3833_vm0 = vcmp.eq.f32.partialorder %v2470_v2, 8.507059e+37  ;;  %v2473_v59 = vor.u32 1.1754944e-38, %v2472_v3 }
  0xc7   :  { %v1840_v39 = vmul.f32 2.1237322e-06, %v3823_v13  ;;  %v1851_v23 = vmul.f32 3.8918573e-05, %v3823_v13  ;;  %v2464_v24 = vmul.f32 %v3369_v8, %v2463_v43  ;;  %v1205_v30 = vadd.f32 0.05243302, %v1204_v19 }
  0xc8   :  { %v3022_v26 = vpack.c.bf16 %v2965_v48, %v2965_v48  ;;  %v1216_v31 = vadd.f32 0.112945676, %v1215_v20  ;;  %v650_v47 = vmul.f32 %v649_v17, %v3688_v27  ;;  %v2478_v33 = vmul.f32 %v3828_v18, %v3828_v18 }
  0xc9   :  { %v1841_v32 = vadd.f32 0.00028619796, %v1840_v39  ;;  %v1852_v40 = vadd.f32 0.001143296, %v1851_v23  ;;  %v2465_v35 = vadd.f32 %v3369_v8, %v2464_v24  ;;  %v1206_v36 = vmul.f32 %v1205_v30, %v3780_v14 }
  0xca   :  { %3080 = vst.msk [vmem:[%s5967_s3 + $0x78] sm:$0xf] %vm3049_vm10, %v3022_v26  ;;  %v1217_v22 = vmul.f32 %v1216_v31, %v3780_v14  ;;  %v346_v42 = vadd.f32 %v3628_v34, %v345_v25  ;;  %vm666_vm2 = vweird.f32 %v3821_v9  ;;  %v670_v27 = vand.u32 2147483647, %v3821_v9  ;;  %v380_v26 = vpop.f32.mrf.mxu1 }
  0xcb   :  { %v3371_v46 = vpop.eup %3370  ;;  %v1842_v49 = vmul.f32 %v1841_v32, %v3823_v13  ;;  %v1853_v50 = vmul.f32 %v1852_v40, %v3823_v13  ;;  %v2469_v37 = vsel %vm3841_vm1, %v3369_v8, %v2465_v35  ;;  %v1207_v16 = vadd.f32 0.18741608, %v1206_v36 }
  0xcc   :  { %v662_v51 = vmul.f32 %v3371_v46, %v3821_v9  ;;  %v3862_v62 = vmin.f32 %v2478_v33, 16.0  ;;  %v2474_v54 = vsel %vm3833_vm0, %v2473_v59, %v2469_v37  ;;  %v1218_v55 = vadd.f32 0.4994258, %v1217_v22 }
  0xcd   :  { %v1843_v56 = vadd.f32 0.0036580483, %v1842_v49  ;;  %v1854_v57 = vadd.f32 0.014752088, %v1853_v50  ;;  %v2475_v28 = vmul.f32 %v2474_v54, %v2450_v15  ;;  %v672_v29 = vand.u32 2147483648, %v3821_v9 }
  0xce   :  { %v663_v60 = vsub.f32 1.0, %v662_v51  ;;  %v2480_v61 = vmul.f32 2.1237322e-06, %v3862_v62  ;;  %v1219_v53 = vmul.f32 %v1218_v55, %v3780_v14  ;;  %v3871_v63 = vmul.f32 0.70710677, %v346_v42 }
  0xcf   :  { %v1844_v4 = vmul.f32 %v1843_v56, %v3823_v13  ;;  %v1855_v45 = vmul.f32 %v1854_v57, %v3823_v13  ;;  %v3310_v1 = vclamps-f32 %v2475_v28, 1.0  ;;  %vm667_vm3 = vweird.f32 %v3371_v46 }
  0xd0   :  { %v664_v2 = vmul.f32 %v3371_v46, %v663_v60  ;;  %v2481_v3 = vadd.f32 0.00028619796, %v2480_v61  ;;  %v1208_v8 = vmul.f32 %v1207_v16, %v3780_v14  ;;  %v3874_v38 = vadd.f32 1.0, %v1219_v53  ;;  %vm668_vm5 = vmor %vm666_vm2, %vm667_vm3 }
  0xd1   :  { %v1845_v5 = vadd.f32 0.05243302, %v1844_v4  ;;  %v1856_v58 = vadd.f32 0.112945676, %v1855_v45  ;;  %v2924_v15 = vadd.f32 1.0, %v3310_v1  ;;  %vm671_vm4 = vcmp.eq.f32.partialorder %v670_v27, 8.507059e+37 }
  0xd2   :  { %v665_v12 = vadd.f32 %v3371_v46, %v664_v2  ;;  %v2482_v17 = vmul.f32 %v2481_v3, %v3862_v62  ;;  %v673_v48 = vor.u32 1.1754944e-38, %v672_v29  ;;  %3372 = vrcp.f32 %v3874_v38 }
  0xd3   :  { %v2491_v43 = vmul.f32 3.8918573e-05, %v3862_v62  ;;  %v678_v14 = vmul.f32 %v3871_v63, %v3871_v63  ;;  %v2981_v19 = vmul.f32 %v2924_v15, %v3728_v10  ;;  %v1846_v21 = vmul.f32 %v1845_v5, %v3823_v13 }
  0xd4   :  { %v669_v20 = vsel %vm668_vm5, %v3371_v46, %v665_v12  ;;  %v1857_v59 = vmul.f32 %v1856_v58, %v3823_v13  ;;  %v1209_v23 = vadd.f32 1.1283791, %v1208_v8  ;;  %v3887_v9 = vmul.f32 0.5, %v3805_v52  ;;  %v420_v12 = vpop.f32.mrf.mxu2 }
  0xd5   :  { %v674_v39 = vsel %vm671_vm4, %v673_v48, %v669_v20  ;;  %v2483_v25 = vadd.f32 0.0036580483, %v2482_v17  ;;  %v3038_v24 = vpack.c.bf16 %v2981_v19, %v2981_v19  ;;  %v1847_v31 = vadd.f32 0.18741608, %v1846_v21 }
  0xd6   :  { %v675_v30 = vmul.f32 %v674_v39, %v650_v47  ;;  %v1858_v44 = vadd.f32 0.4994258, %v1857_v59  ;;  %v2492_v40 = vadd.f32 0.001143296, %v2491_v43  ;;  %v3890_v10 = vmul.f32 0.5, %v346_v42 }
  0xd7   :  { %v2484_v32 = vmul.f32 %v2483_v25, %v3862_v62  ;;  %v3892_v33 = vmin.f32 %v678_v14, 16.0  ;;  %3096 = vst.msk [vmem:[%s5967_s3 + $0xb8] sm:$0xf] %vm3049_vm10, %v3038_v24  ;;  %v1848_v35 = vmul.f32 %v1847_v31, %v3823_v13  ;;  %v381_v47 = vadd.f32 %v3628_v34, %v380_v26 }
  0xd8   :  { %v3265_v52 = vclamps-f32 %v675_v30, 1.0  ;;  %v1859_v36 = vmul.f32 %v1858_v44, %v3823_v13  ;;  %v3373_v22 = vpop.eup %3372  ;;  %v2493_v27 = vmul.f32 %v2492_v40, %v3862_v62  ;;  %v1210_v37 = vmul.f32 %v1209_v23, %v3760_v41 }
  0xd9   :  { %v2485_v46 = vadd.f32 0.05243302, %v2484_v32  ;;  %v680_v42 = vmul.f32 2.1237322e-06, %v3892_v33  ;;  %v691_v49 = vmul.f32 3.8918573e-05, %v3892_v33  ;;  %v1222_v51 = vmul.f32 %v3373_v22, %v3874_v38 }
  0xda   :  { %v2879_v50 = vadd.f32 1.0, %v3265_v52  ;;  %v1230_v16 = vand.u32 2147483647, %v3874_v38  ;;  %v1232_v54 = vand.u32 2147483648, %v3874_v38  ;;  %v3908_v13 = vadd.f32 1.0, %v1859_v36 }
  0xdb   :  { %v2494_v55 = vadd.f32 0.014752088, %v2493_v27  ;;  %v681_v56 = vadd.f32 0.00028619796, %v680_v42  ;;  %v1223_v28 = vsub.f32 1.0, %v1222_v51  ;;  %vm1226_vm6 = vweird.f32 %v3874_v38 }
  0xdc   :  { %v2936_v57 = vmul.f32 %v2879_v50, %v3723_v6  ;;  %v692_v60 = vadd.f32 0.001143296, %v691_v49  ;;  %v3911_v29 = vmul.f32 0.70710677, %v381_v47  ;;  %v1849_v61 = vadd.f32 1.1283791, %v1848_v35 }
  0xdd   :  { %3374 = vrcp.f32 %v3908_v13  ;;  %v2486_v41 = vmul.f32 %v2485_v46, %v3862_v62  ;;  %v1224_v4 = vmul.f32 %v3373_v22, %v1223_v28  ;;  %vm1227_vm7 = vweird.f32 %v3373_v22 }
  0xde   :  { %v2993_v53 = vpack.c.bf16 %v2936_v57, %v2936_v57  ;;  %v2495_v45 = vmul.f32 %v2494_v55, %v3862_v62  ;;  %vm3917_vm8 = vcmp.eq.f32.partialorder %v1230_v16, 8.507059e+37  ;;  %v1233_v6 = vor.u32 1.1754944e-38, %v1232_v54  ;;  %vm1228_vm9 = vmor %vm1226_vm6, %vm1227_vm7 }
  0xdf   :  { %v682_v2 = vmul.f32 %v681_v56, %v3892_v33  ;;  %v693_v3 = vmul.f32 %v692_v60, %v3892_v33  ;;  %v1225_v8 = vadd.f32 %v3373_v22, %v1224_v4  ;;  %v3927_v58 = vmul.f32 0.5, %v381_v47  ;;  %v460_v56 = vpop.f32.mrf.mxu3 }
  0xe0   :  { %3051 = vst.msk [vmem:[%s5967_s3 + $0x4] sm:$0xf] %vm3049_vm10, %v2993_v53  ;;  %v2496_v5 = vadd.f32 0.112945676, %v2495_v45  ;;  %v1238_v15 = vmul.f32 %v3911_v29, %v3911_v29  ;;  %v1850_v17 = vmul.f32 %v1849_v61, %v3794_v0  ;;  %v2487_v48 = vadd.f32 0.18741608, %v2486_v41 }
  0xe1   :  { %v683_v43 = vadd.f32 0.0036580483, %v682_v2  ;;  %v694_v14 = vadd.f32 0.014752088, %v693_v3  ;;  %v1229_v19 = vsel %vm1228_vm9, %v3373_v22, %v1225_v8  ;;  %vm1866_vm11 = vweird.f32 %v3908_v13 }
  0xe2   :  { %v2497_v20 = vmul.f32 %v2496_v5, %v3862_v62  ;;  %v3936_v21 = vmin.f32 %v1238_v15, 16.0  ;;  %v1234_v39 = vsel %vm3917_vm8, %v1233_v6, %v1229_v19  ;;  %v421_v0 = vadd.f32 %v3628_v34, %v420_v12 }
  0xe3   :  { %v3375_v59 = vpop.eup %3374  ;;  %v684_v23 = vmul.f32 %v683_v43, %v3892_v33  ;;  %v695_v38 = vmul.f32 %v694_v14, %v3892_v33  ;;  %v1235_v25 = vmul.f32 %v1234_v39, %v1210_v37  ;;  %v1870_v24 = vand.u32 2147483647, %v3908_v13 }
  0xe4   :  { %v1862_v26 = vmul.f32 %v3375_v59, %v3908_v13  ;;  %v1872_v30 = vand.u32 2147483648, %v3908_v13  ;;  %v2488_v31 = vmul.f32 %v2487_v48, %v3862_v62  ;;  %v2498_v44 = vadd.f32 0.4994258, %v2497_v20  ;;  %v347_v13 = vpop.f32.mrf.mxu0 }
  0xe5   :  { %v685_v32 = vadd.f32 0.05243302, %v684_v23  ;;  %v696_v40 = vadd.f32 0.112945676, %v695_v38  ;;  %v3279_v52 = vclamps-f32 %v1235_v25, 1.0  ;;  %vm1867_vm12 = vweird.f32 %v3375_v59 }
  0xe6   :  { %v1863_v35 = vsub.f32 1.0, %v1862_v26  ;;  %v1240_v36 = vmul.f32 2.1237322e-06, %v3936_v21  ;;  %v1251_v47 = vmul.f32 3.8918573e-05, %v3936_v21  ;;  %v2499_v22 = vmul.f32 %v2498_v44, %v3862_v62  ;;  %vm1868_vm14 = vmor %vm1866_vm11, %vm1867_vm12 }
  0xe7   :  { %v697_v46 = vmul.f32 %v696_v40, %v3892_v33  ;;  %v3951_v27 = vmul.f32 0.70710677, %v421_v0  ;;  %v2893_v42 = vadd.f32 1.0, %v3279_v52  ;;  %vm3953_vm13 = vcmp.eq.f32.partialorder %v1870_v24, 8.507059e+37 }
  0xe8   :  { %v1864_v49 = vmul.f32 %v3375_v59, %v1863_v35  ;;  %v1241_v50 = vadd.f32 0.00028619796, %v1240_v36  ;;  %v1252_v37 = vadd.f32 0.001143296, %v1251_v47  ;;  %v2500_v16 = vadd.f32 1.0, %v2499_v22 }
  0xe9   :  { %v686_v54 = vmul.f32 %v685_v32, %v3892_v33  ;;  %v698_v55 = vadd.f32 0.4994258, %v697_v46  ;;  %v2950_v57 = vmul.f32 %v2893_v42, %v3725_v7  ;;  %v1878_v60 = vmul.f32 %v3951_v27, %v3951_v27 }
  0xea   :  { %v1865_v62 = vadd.f32 %v3375_v59, %v1864_v49  ;;  %v1242_v28 = vmul.f32 %v1241_v50, %v3936_v21  ;;  %v1873_v61 = vor.u32 1.1754944e-38, %v1872_v30  ;;  %v2489_v41 = vadd.f32 1.1283791, %v2488_v31 }
  0xeb   :  { %3376 = vrcp.f32 %v2500_v16  ;;  %v1253_v53 = vmul.f32 %v1252_v37, %v3936_v21  ;;  %v3007_v4 = vpack.c.bf16 %v2950_v57, %v2950_v57  ;;  %v699_v1 = vmul.f32 %v698_v55, %v3892_v33 }
  0xec   :  { %v1869_v45 = vsel %vm1868_vm14, %v3375_v59, %v1865_v62  ;;  %v3968_v7 = vadd.f32 %v3628_v34, %v460_v56  ;;  %v687_v2 = vadd.f32 0.18741608, %v686_v54  ;;  %v1243_v3 = vadd.f32 0.0036580483, %v1242_v28 }
  0xed   :  { %v1874_v6 = vsel %vm3953_vm13, %v1873_v61, %v1869_v45  ;;  %v3972_v8 = vmul.f32 0.5, %v421_v0  ;;  %3065 = vst.msk [vmem:[%s5967_s3 + $0x3c] sm:$0xf] %vm3049_vm10, %v3007_v4  ;;  %v2510_v15 = vand.u32 2147483647, %v2500_v16  ;;  %v3978_v12 = vadd.f32 1.0, %v699_v1 }
  0xee   :  { %v1875_v5 = vmul.f32 %v1874_v6, %v1850_v17  ;;  %v3980_v48 = vmin.f32 %v1878_v60, 16.0  ;;  %v2490_v43 = vmul.f32 %v2489_v41, %v3828_v18  ;;  %v2512_v14 = vand.u32 2147483648, %v2500_v16 }
  0xef   :  { %v1244_v19 = vmul.f32 %v1243_v3, %v3936_v21  ;;  %v1254_v20 = vadd.f32 0.014752088, %v1253_v53  ;;  %vm2506_vm15 = vweird.f32 %v2500_v16  ;;  %3378 = vrcp.f32 %v3978_v12 }
  0xf0   :  { %v3295_v59 = vclamps-f32 %v1875_v5, 1.0  ;;  %v3986_v39 = vadd.f32 %v3628_v34, %v347_v13  ;;  %v688_v17 = vmul.f32 %v687_v2, %v3892_v33  ;;  %v3991_v25 = vmul.f32 0.70710677, %v3968_v7 }
  0xf1   :  { %v3377_v23 = vpop.eup %3376  ;;  %v1245_v38 = vadd.f32 0.05243302, %v1244_v19  ;;  %v1255_v0 = vmul.f32 %v1254_v20, %v3936_v21  ;;  %vm3993_vm0 = vcmp.eq.f32.partialorder %v2510_v15, 8.507059e+37  ;;  %v1880_v30 = vmul.f32 2.1237322e-06, %v3980_v48 }
  0xf2   :  { %v2909_v18 = vadd.f32 1.0, %v3295_v59  ;;  %v2502_v26 = vmul.f32 %v3377_v23, %v2500_v16  ;;  %vm2507_vm1 = vweird.f32 %v3377_v23  ;;  %v2513_v31 = vor.u32 1.1754944e-38, %v2512_v14 }
  0xf3   :  { %v1246_v44 = vmul.f32 %v1245_v38, %v3936_v21  ;;  %v1256_v32 = vadd.f32 0.112945676, %v1255_v0  ;;  %v1881_v52 = vadd.f32 0.00028619796, %v1880_v30  ;;  %v1891_v35 = vmul.f32 3.8918573e-05, %v3980_v48  ;;  %vm4008_vm3 = vmor %vm2506_vm15, %vm2507_vm1 }
  0xf4   :  { %v2966_v33 = vmul.f32 %v2909_v18, %v3731_v11  ;;  %v2503_v40 = vsub.f32 1.0, %v2502_v26  ;;  %v689_v36 = vadd.f32 1.1283791, %v688_v17  ;;  %vm706_vm2 = vweird.f32 %v3978_v12 }
  0xf5   :  { %v1257_v47 = vmul.f32 %v1256_v32, %v3936_v21  ;;  %v2518_v22 = vmul.f32 %v3991_v25, %v3991_v25  ;;  %v3379_v46 = vpop.eup %3378  ;;  %v1882_v50 = vmul.f32 %v1881_v52, %v3980_v48  ;;  %v1892_v37 = vadd.f32 0.001143296, %v1891_v35 }
  0xf6   :  { %v3023_v42 = vpack.c.bf16 %v2966_v33, %v2966_v33  ;;  %v2504_v49 = vmul.f32 %v3377_v23, %v2503_v40  ;;  %v702_v51 = vmul.f32 %v3379_v46, %v3978_v12  ;;  %v710_v54 = vand.u32 2147483647, %v3978_v12  ;;  %v382_v40 = vpop.f32.mrf.mxu1 }
  0xf7   :  { %v1247_v55 = vadd.f32 0.18741608, %v1246_v44  ;;  %v1258_v56 = vadd.f32 0.4994258, %v1257_v47  ;;  %v712_v62 = vand.u32 2147483648, %v3978_v12  ;;  %v1893_v16 = vmul.f32 %v1892_v37, %v3980_v48 }
  0xf8   :  { %3081 = vst.msk [vmem:[%s5967_s3 + $0x7c] sm:$0xf] %vm3049_vm10, %v3023_v42  ;;  %v2505_v57 = vadd.f32 %v3377_v23, %v2504_v49  ;;  %v1883_v28 = vadd.f32 0.0036580483, %v1882_v50  ;;  %v703_v60 = vsub.f32 1.0, %v702_v51  ;;  %vm707_vm4 = vweird.f32 %v3379_v46 }
  0xf9   :  { %v1259_v61 = vmul.f32 %v1258_v56, %v3936_v21  ;;  %v4022_v41 = vmul.f32 0.70710677, %v3986_v39  ;;  %v1894_v45 = vadd.f32 0.014752088, %v1893_v16  ;;  %v4027_v1 = vmin.f32 %v2518_v22, 16.0  ;;  %vm708_vm5 = vmor %vm706_vm2, %vm707_vm4 }
  0xfa   :  { %v2509_v53 = vsel %vm4008_vm3, %v3377_v23, %v2505_v57  ;;  %v1884_v4 = vmul.f32 %v1883_v28, %v3980_v48  ;;  %v704_v2 = vmul.f32 %v3379_v46, %v703_v60  ;;  %v1248_v3 = vmul.f32 %v1247_v55, %v3936_v21 }
  0xfb   :  { %v2514_v6 = vsel %vm3993_vm0, %v2513_v31, %v2509_v53  ;;  %v4032_v13 = vadd.f32 1.0, %v1259_v61  ;;  %v1895_v14 = vmul.f32 %v1894_v45, %v3980_v48  ;;  %v2520_v19 = vmul.f32 2.1237322e-06, %v4027_v1 }
  0xfc   :  { %v2515_v5 = vmul.f32 %v2514_v6, %v2490_v43  ;;  %v1885_v15 = vadd.f32 0.05243302, %v1884_v4  ;;  %v690_v20 = vmul.f32 %v689_v36, %v3871_v63  ;;  %v705_v59 = vadd.f32 %v3379_v46, %v704_v2 }
  0xfd   :  { %v713_v23 = vor.u32 1.1754944e-38, %v712_v62  ;;  %3380 = vrcp.f32 %v4032_v13  ;;  %v1896_v38 = vadd.f32 0.112945676, %v1895_v14  ;;  %v718_v43 = vmul.f32 %v4022_v41, %v4022_v41 }
  0xfe   :  { %v3311_v17 = vclamps-f32 %v2515_v5, 1.0  ;;  %v1886_v21 = vmul.f32 %v1885_v15, %v3980_v48  ;;  %v709_v0 = vsel %vm708_vm5, %v3379_v46, %v705_v59  ;;  %vm711_vm6 = vcmp.eq.f32.partialorder %v710_v54, 8.507059e+37 }
  0xff   :  { %v2521_v18 = vadd.f32 0.00028619796, %v2520_v19  ;;  %v2531_v63 = vmul.f32 3.8918573e-05, %v4027_v1  ;;  %v714_v24 = vsel %vm711_vm6, %v713_v23, %v709_v0  ;;  %v1249_v30 = vadd.f32 1.1283791, %v1248_v3 }
 0x100   :  { %v2925_v26 = vadd.f32 1.0, %v3311_v17  ;;  %v4046_v31 = vmul.f32 0.5, %v3986_v39  ;;  %v715_v44 = vmul.f32 %v714_v24, %v690_v20  ;;  %v1897_v12 = vmul.f32 %v1896_v38, %v3980_v48 }
 0x101   :  { %v2522_v32 = vmul.f32 %v2521_v18, %v4027_v1  ;;  %v2532_v33 = vadd.f32 0.001143296, %v2531_v63  ;;  %v1270_v35 = vand.u32 2147483647, %v4032_v13  ;;  %v1887_v36 = vadd.f32 0.18741608, %v1886_v21 }
 0x102   :  { %v2982_v52 = vmul.f32 %v2925_v26, %v3887_v9  ;;  %v4052_v47 = vmin.f32 %v718_v43, 16.0  ;;  %v3266_v46 = vclamps-f32 %v715_v44, 1.0  ;;  %v1898_v42 = vadd.f32 0.4994258, %v1897_v12 }
 0x103   :  { %v3381_v22 = vpop.eup %3380  ;;  %v2523_v49 = vadd.f32 0.0036580483, %v2522_v32  ;;  %v2533_v39 = vmul.f32 %v2532_v33, %v4027_v1  ;;  %v1272_v11 = vand.u32 2147483648, %v4032_v13  ;;  %v383_v51 = vadd.f32 %v3628_v34, %v382_v40  ;;  %v422_v32 = vpop.f32.mrf.mxu2 }
 0x104   :  { %v3039_v50 = vpack.c.bf16 %v2982_v52, %v2982_v52  ;;  %v1262_v37 = vmul.f32 %v3381_v22, %v4032_v13  ;;  %v2880_v54 = vadd.f32 1.0, %v3266_v46  ;;  %v1899_v9 = vmul.f32 %v1898_v42, %v3980_v48 }
 0x105   :  { %v2524_v55 = vmul.f32 %v2523_v49, %v4027_v1  ;;  %v2534_v56 = vadd.f32 0.014752088, %v2533_v39  ;;  %vm1267_vm7 = vweird.f32 %v3381_v22  ;;  %v1888_v62 = vmul.f32 %v1887_v36, %v3980_v48 }
 0x106   :  { %3097 = vst.msk [vmem:[%s5967_s3 + $0xbc] sm:$0xf] %vm3049_vm10, %v3039_v50  ;;  %v1263_v57 = vsub.f32 1.0, %v1262_v37  ;;  %v720_v28 = vmul.f32 2.1237322e-06, %v4052_v47  ;;  %v2937_v16 = vmul.f32 %v2880_v54, %v3890_v10  ;;  %v4067_v34 = vadd.f32 1.0, %v1899_v9 }
 0x107   :  { %v2525_v60 = vadd.f32 0.05243302, %v2524_v55  ;;  %v2535_v61 = vmul.f32 %v2534_v56, %v4027_v1  ;;  %v731_v45 = vmul.f32 3.8918573e-05, %v4052_v47  ;;  %v4071_v6 = vmul.f32 0.70710677, %v383_v51 }
 0x108   :  { %v1264_v53 = vmul.f32 %v3381_v22, %v1263_v57  ;;  %v721_v4 = vadd.f32 0.00028619796, %v720_v28  ;;  %v2994_v2 = vpack.c.bf16 %v2937_v16, %v2937_v16  ;;  %v1250_v3 = vmul.f32 %v1249_v30, %v3911_v29  ;;  %v4105_v37 = vld [vmem:[%s5965_s2] ss:$0 sm:$0xff] }
 0x109   :  { %3382 = vrcp.f32 %v4067_v34  ;;  %v4076_v48 = vmul.f32 0.5, %v3968_v7  ;;  %vm1266_vm8 = vweird.f32 %v4032_v13  ;;  %vm1271_vm9 = vcmp.eq.f32.partialorder %v1270_v35, 8.507059e+37 }
 0x10a   :  { %v1265_v10 = vadd.f32 %v3381_v22, %v1264_v53  ;;  %v2536_v5 = vadd.f32 0.112945676, %v2535_v61  ;;  %3052 = vst.msk [vmem:[%s5967_s3 + $0x8] sm:$0xf] %vm3049_vm10, %v2994_v2  ;;  %vm1268_vm11 = vmor %vm1266_vm8, %vm1267_vm7  ;;  %v1273_v15 = vor.u32 1.1754944e-38, %v1272_v11  ;;  %v722_v29 = vmul.f32 %v721_v4, %v4052_v47 }
 0x10b   :  { %v732_v14 = vadd.f32 0.001143296, %v731_v45  ;;  %v1278_v7 = vmul.f32 %v4071_v6, %v4071_v6  ;;  %v1889_v20 = vadd.f32 1.1283791, %v1888_v62  ;;  %v2526_v13 = vmul.f32 %v2525_v60, %v4027_v1  ;;  %v462_v45 = vpop.f32.mrf.mxu3 }
 0x10c   :  { %v1269_v19 = vsel %vm1268_vm11, %v3381_v22, %v1265_v10  ;;  %v2537_v59 = vmul.f32 %v2536_v5, %v4027_v1  ;;  %v723_v17 = vadd.f32 0.0036580483, %v722_v29  ;;  %v1910_v0 = vand.u32 2147483647, %v4067_v34 }
 0x10d   :  { %v1274_v23 = vsel %vm1271_vm9, %v1273_v15, %v1269_v19  ;;  %v733_v21 = vmul.f32 %v732_v14, %v4052_v47  ;;  %v4090_v38 = vmin.f32 %v1278_v7, 16.0  ;;  %v4093_v63 = vmul.f32 0.5, %v383_v51 }
 0x10e   :  { %v1275_v43 = vmul.f32 %v1274_v23, %v1250_v3  ;;  %v2538_v18 = vadd.f32 0.4994258, %v2537_v59  ;;  %v724_v24 = vmul.f32 %v723_v17, %v4052_v47  ;;  %v1912_v52 = vand.u32 2147483648, %v4067_v34 }
 0x10f   :  { %v3383_v26 = vpop.eup %3382  ;;  %v734_v30 = vadd.f32 0.014752088, %v733_v21  ;;  %v1280_v44 = vmul.f32 2.1237322e-06, %v4090_v38  ;;  %v1291_v12 = vmul.f32 3.8918573e-05, %v4090_v38  ;;  %v4108_v11 = vadd.f32 %v4105_v37, %v422_v32 }
 0x110   :  { %v3280_v33 = vclamps-f32 %v1275_v43, 1.0  ;;  %v1902_v40 = vmul.f32 %v3383_v26, %v4067_v34  ;;  %v2527_v35 = vadd.f32 0.18741608, %v2526_v13  ;;  %v2539_v36 = vmul.f32 %v2538_v18, %v4027_v1 }
 0x111   :  { %v725_v22 = vadd.f32 0.05243302, %v724_v24  ;;  %v735_v46 = vmul.f32 %v734_v30, %v4052_v47  ;;  %v1281_v42 = vadd.f32 0.00028619796, %v1280_v44  ;;  %v1292_v50 = vadd.f32 0.001143296, %v1291_v12 }
 0x112   :  { %v2894_v49 = vadd.f32 1.0, %v3280_v33  ;;  %v1903_v39 = vsub.f32 1.0, %v1902_v40  ;;  %v2540_v51 = vadd.f32 1.0, %v2539_v36  ;;  %vm1907_vm12 = vweird.f32 %v3383_v26 }
 0x113   :  { %v726_v54 = vmul.f32 %v725_v22, %v4052_v47  ;;  %v736_v9 = vadd.f32 0.112945676, %v735_v46  ;;  %v1282_v55 = vmul.f32 %v1281_v42, %v4090_v38  ;;  %v1293_v62 = vmul.f32 %v1292_v50, %v4090_v38 }
 0x114   :  { %v2951_v56 = vmul.f32 %v2894_v49, %v3927_v58  ;;  %v1904_v57 = vmul.f32 %v3383_v26, %v1903_v39  ;;  %vm1906_vm13 = vweird.f32 %v4067_v34  ;;  %vm4115_vm14 = vcmp.eq.f32.partialorder %v1910_v0, 8.507059e+37 }
 0x115   :  { %v1913_v16 = vor.u32 1.1754944e-38, %v1912_v52  ;;  %3384 = vrcp.f32 %v2540_v51  ;;  %v2550_v53 = vand.u32 2147483647, %v2540_v51  ;;  %v737_v4 = vmul.f32 %v736_v9, %v4052_v47  ;;  %vm1908_vm15 = vmor %vm1906_vm13, %vm1907_vm12 }
 0x116   :  { %v3008_v60 = vpack.c.bf16 %v2951_v56, %v2951_v56  ;;  %v1905_v61 = vadd.f32 %v3383_v26, %v1904_v57  ;;  %v1890_v58 = vmul.f32 %v1889_v20, %v3951_v27  ;;  %v727_v2 = vadd.f32 0.18741608, %v726_v54  ;;  %v350_v56 = vpop.f32.mrf.mxu0 }
 0x117   :  { %v1283_v3 = vadd.f32 0.0036580483, %v1282_v55  ;;  %v1294_v10 = vadd.f32 0.014752088, %v1293_v62  ;;  %v2528_v5 = vmul.f32 %v2527_v35, %v4027_v1  ;;  %v738_v15 = vadd.f32 0.4994258, %v737_v4 }
 0x118   :  { %3066 = vst.msk [vmem:[%s5967_s3 + $0x40] sm:$0xf] %vm3049_vm10, %v3008_v60  ;;  %v1909_v34 = vsel %vm1908_vm15, %v3383_v26, %v1905_v61  ;;  %v4127_v29 = vmul.f32 0.70710677, %v4108_v11  ;;  %v4134_v19 = vadd.f32 %v4105_v37, %v462_v45  ;;  %v2552_v13 = vand.u32 2147483648, %v2540_v51 }
 0x119   :  { %v1914_v14 = vsel %vm4115_vm14, %v1913_v16, %v1909_v34  ;;  %v1284_v27 = vmul.f32 %v1283_v3, %v4090_v38  ;;  %v1295_v7 = vmul.f32 %v1294_v10, %v4090_v38  ;;  %v739_v59 = vmul.f32 %v738_v15, %v4052_v47 }
 0x11a   :  { %v1915_v20 = vmul.f32 %v1914_v14, %v1890_v58  ;;  %v1918_v1 = vmul.f32 %v4127_v29, %v4127_v29  ;;  %v728_v17 = vmul.f32 %v727_v2, %v4052_v47  ;;  %v4141_v0 = vmul.f32 0.70710677, %v4134_v19 }
 0x11b   :  { %v3385_v23 = vpop.eup %3384  ;;  %v1285_v21 = vadd.f32 0.05243302, %v1284_v27  ;;  %v1296_v43 = vadd.f32 0.112945676, %v1295_v7  ;;  %v2529_v26 = vadd.f32 1.1283791, %v2528_v5  ;;  %vm2546_vm0 = vweird.f32 %v2540_v51 }
 0x11c   :  { %v3296_v18 = vclamps-f32 %v1915_v20, 1.0  ;;  %v2542_v24 = vmul.f32 %v3385_v23, %v2540_v51  ;;  %v4143_v30 = vadd.f32 1.0, %v739_v59  ;;  %v4147_v32 = vmin.f32 %v1918_v1, 16.0 }
 0x11d   :  { %v1286_v44 = vmul.f32 %v1285_v21, %v4090_v38  ;;  %v1297_v12 = vmul.f32 %v1296_v43, %v4090_v38  ;;  %vm2547_vm1 = vweird.f32 %v3385_v23  ;;  %vm4149_vm2 = vcmp.eq.f32.partialorder %v2550_v53, 8.507059e+37 }
 0x11e   :  { %v2910_v33 = vadd.f32 1.0, %v3296_v18  ;;  %v2543_v40 = vsub.f32 1.0, %v2542_v24  ;;  %v2553_v52 = vor.u32 1.1754944e-38, %v2552_v13  ;;  %v729_v35 = vadd.f32 1.1283791, %v728_v17  ;;  %vm4159_vm3 = vmor %vm2546_vm0, %vm2547_vm1 }
 0x11f   :  { %3386 = vrcp.f32 %v4143_v30  ;;  %v2558_v36 = vmul.f32 %v4141_v0, %v4141_v0  ;;  %v1287_v42 = vadd.f32 0.18741608, %v1286_v44  ;;  %v1298_v49 = vadd.f32 0.4994258, %v1297_v12 }
 0x120   :  { %v2967_v22 = vmul.f32 %v2910_v33, %v3972_v8  ;;  %v2544_v46 = vmul.f32 %v3385_v23, %v2543_v40  ;;  %v2530_v39 = vmul.f32 %v2529_v26, %v3991_v25  ;;  %v750_v54 = vand.u32 2147483647, %v4143_v30 }
 0x121   :  { %v1920_v9 = vmul.f32 2.1237322e-06, %v4147_v32  ;;  %v1931_v55 = vmul.f32 3.8918573e-05, %v4147_v32  ;;  %v1288_v8 = vmul.f32 %v1287_v42, %v4090_v38  ;;  %v1299_v28 = vmul.f32 %v1298_v49, %v4090_v38  ;;  %v385_v38 = vpop.f32.mrf.mxu1 }
 0x122   :  { %v3024_v57 = vpack.c.bf16 %v2967_v22, %v2967_v22  ;;  %v2545_v62 = vadd.f32 %v3385_v23, %v2544_v46  ;;  %v752_v25 = vand.u32 2147483648, %v4143_v30  ;;  %v4169_v60 = vmin.f32 %v2558_v36, 16.0 }
 0x123   :  { %v1921_v51 = vadd.f32 0.00028619796, %v1920_v9  ;;  %v1932_v16 = vadd.f32 0.001143296, %v1931_v55  ;;  %v1289_v53 = vadd.f32 1.1283791, %v1288_v8  ;;  %v4180_v45 = vadd.f32 %v4105_v37, %v350_v56 }
 0x124   :  { %3082 = vst.msk [vmem:[%s5967_s3 + $0x80] sm:$0xf] %vm3049_vm10, %v3024_v57  ;;  %v2549_v61 = vsel %vm4159_vm3, %v3385_v23, %v2545_v62  ;;  %v4177_v4 = vadd.f32 1.0, %v1299_v28  ;;  %v2560_v34 = vmul.f32 2.1237322e-06, %v4169_v60  ;;  %v730_v15 = vmul.f32 %v729_v35, %v4022_v41 }
 0x125   :  { %v3387_v58 = vpop.eup %3386  ;;  %v2554_v2 = vsel %vm4149_vm2, %v2553_v52, %v2549_v61  ;;  %v1922_v3 = vmul.f32 %v1921_v51, %v4147_v32  ;;  %v1933_v10 = vmul.f32 %v1932_v16, %v4147_v32  ;;  %vm746_vm4 = vweird.f32 %v4143_v30 }
 0x126   :  { %v2555_v5 = vmul.f32 %v2554_v2, %v2530_v39  ;;  %v742_v14 = vmul.f32 %v3387_v58, %v4143_v30  ;;  %vm4190_vm5 = vcmp.eq.f32.partialorder %v750_v54, 8.507059e+37  ;;  %v753_v7 = vor.u32 1.1754944e-38, %v752_v25 }
 0x127   :  { %3388 = vrcp.f32 %v4177_v4  ;;  %v4196_v20 = vadd.f32 %v4105_v37, %v385_v38  ;;  %v1923_v1 = vadd.f32 0.0036580483, %v1922_v3  ;;  %v1934_v23 = vadd.f32 0.014752088, %v1933_v10 }
 0x128   :  { %v3312_v13 = vclamps-f32 %v2555_v5, 1.0  ;;  %v743_v59 = vsub.f32 1.0, %v742_v14  ;;  %vm747_vm6 = vweird.f32 %v3387_v58  ;;  %v4199_v41 = vmul.f32 %v1289_v53, %v4071_v6 }
 0x129   :  { %v2561_v17 = vadd.f32 0.00028619796, %v2560_v34  ;;  %v2571_v21 = vmul.f32 3.8918573e-05, %v4169_v60  ;;  %v1924_v26 = vmul.f32 %v1923_v1, %v4147_v32  ;;  %v1935_v24 = vmul.f32 %v1934_v23, %v4147_v32  ;;  %vm748_vm8 = vmor %vm746_vm4, %vm747_vm6 }
 0x12a   :  { %v2926_v43 = vadd.f32 1.0, %v3312_v13  ;;  %v744_v18 = vmul.f32 %v3387_v58, %v743_v59  ;;  %v1310_v44 = vand.u32 2147483647, %v4177_v4  ;;  %v4207_v40 = vmul.f32 0.70710677, %v4180_v45 }
 0x12b   :  { %v2562_v12 = vmul.f32 %v2561_v17, %v4169_v60  ;;  %v2572_v33 = vadd.f32 0.001143296, %v2571_v21  ;;  %vm1306_vm7 = vweird.f32 %v4177_v4  ;;  %v1925_v52 = vadd.f32 0.05243302, %v1924_v26 }
 0x12c   :  { %v2983_v6 = vmul.f32 %v2926_v43, %v4076_v48  ;;  %v745_v47 = vadd.f32 %v3387_v58, %v744_v18  ;;  %v1936_v35 = vadd.f32 0.112945676, %v1935_v24  ;;  %v1312_v22 = vand.u32 2147483648, %v4177_v4 }
 0x12d   :  { %v3389_v36 = vpop.eup %3388  ;;  %v2563_v46 = vadd.f32 0.0036580483, %v2562_v12  ;;  %v2573_v42 = vmul.f32 %v2572_v33, %v4169_v60  ;;  %v758_v49 = vmul.f32 %v4207_v40, %v4207_v40  ;;  %v4220_v54 = vmul.f32 0.70710677, %v4196_v20 }
 0x12e   :  { %v3040_v39 = vpack.c.bf16 %v2983_v6, %v2983_v6  ;;  %v749_v48 = vsel %vm748_vm8, %v3387_v58, %v745_v47  ;;  %v1302_v50 = vmul.f32 %v3389_v36, %v4177_v4  ;;  %v1926_v30 = vmul.f32 %v1925_v52, %v4147_v32 }
 0x12f   :  { %v754_v9 = vsel %vm4190_vm5, %v753_v7, %v749_v48  ;;  %v1937_v55 = vmul.f32 %v1936_v35, %v4147_v32  ;;  %v2564_v56 = vmul.f32 %v2563_v46, %v4169_v60  ;;  %v2574_v8 = vadd.f32 0.014752088, %v2573_v42 }
 0x130   :  { %3098 = vst.msk [vmem:[%s5967_s3 + $0xc0] sm:$0xf] %vm3049_vm10, %v3040_v39  ;;  %v755_v57 = vmul.f32 %v754_v9, %v730_v15  ;;  %v1303_v62 = vsub.f32 1.0, %v1302_v50  ;;  %v4231_v28 = vmin.f32 %v758_v49, 16.0  ;;  %vm1307_vm9 = vweird.f32 %v3389_v36  ;;  %v425_v39 = vpop.f32.mrf.mxu2 }
 0x131   :  { %v1927_v25 = vadd.f32 0.18741608, %v1926_v30  ;;  %v1938_v51 = vadd.f32 0.4994258, %v1937_v55  ;;  %v2565_v16 = vadd.f32 0.05243302, %v2564_v56  ;;  %v2575_v38 = vmul.f32 %v2574_v8, %v4169_v60  ;;  %vm1308_vm12 = vmor %vm1306_vm7, %vm1307_vm9 }
 0x132   :  { %v3267_v61 = vclamps-f32 %v755_v57, 1.0  ;;  %v1304_v53 = vmul.f32 %v3389_v36, %v1303_v62  ;;  %v760_v58 = vmul.f32 2.1237322e-06, %v4231_v28  ;;  %vm4235_vm11 = vcmp.eq.f32.partialorder %v1310_v44, 8.507059e+37 }
 0x133   :  { %v1928_v3 = vmul.f32 %v1927_v25, %v4147_v32  ;;  %v1939_v10 = vmul.f32 %v1938_v51, %v4147_v32  ;;  %v1318_v34 = vmul.f32 %v4220_v54, %v4220_v54  ;;  %v2576_v14 = vadd.f32 0.112945676, %v2575_v38  ;;  %v465_v25 = vpop.f32.mrf.mxu3 }
 0x134   :  { %v2881_v5 = vadd.f32 1.0, %v3267_v61  ;;  %v1305_v15 = vadd.f32 %v3389_v36, %v1304_v53  ;;  %v761_v27 = vadd.f32 0.00028619796, %v760_v58  ;;  %v1313_v7 = vor.u32 1.1754944e-38, %v1312_v22 }
 0x135   :  { %v4246_v13 = vadd.f32 1.0, %v1939_v10  ;;  %v2566_v59 = vmul.f32 %v2565_v16, %v4169_v60  ;;  %v771_v1 = vmul.f32 3.8918573e-05, %v4231_v28  ;;  %v2577_v17 = vmul.f32 %v2576_v14, %v4169_v60 }
 0x136   :  { %v2938_v32 = vmul.f32 %v2881_v5, %v4046_v31  ;;  %v1309_v23 = vsel %vm1308_vm12, %v3389_v36, %v1305_v15  ;;  %v762_v21 = vmul.f32 %v761_v27, %v4231_v28  ;;  %v4256_v4 = vmul.f32 0.5, %v4108_v11 }
 0x137   :  { %v1314_v43 = vsel %vm4235_vm11, %v1313_v7, %v1309_v23  ;;  %3390 = vrcp.f32 %v4246_v13  ;;  %v4260_v18 = vmul.f32 0.5, %v4134_v19  ;;  %v1929_v31 = vadd.f32 1.1283791, %v1928_v3 }
 0x138   :  { %v2995_v26 = vpack.c.bf16 %v2938_v32, %v2938_v32  ;;  %v1315_v24 = vmul.f32 %v1314_v43, %v4199_v41  ;;  %v4263_v44 = vmin.f32 %v1318_v34, 16.0  ;;  %v2578_v12 = vadd.f32 0.4994258, %v2577_v17 }
 0x139   :  { %v763_v33 = vadd.f32 0.0036580483, %v762_v21  ;;  %v772_v6 = vadd.f32 0.001143296, %v771_v1  ;;  %v2567_v47 = vadd.f32 0.18741608, %v2566_v59  ;;  %v1930_v56 = vmul.f32 %v1929_v31, %v4127_v29 }
 0x13a   :  { %3053 = vst.msk [vmem:[%s5967_s3 + $0xc] sm:$0xf] %vm3049_vm10, %v2995_v26  ;;  %v3281_v11 = vclamps-f32 %v1315_v24, 1.0  ;;  %v4270_v52 = vmul.f32 0.5, %v4180_v45  ;;  %v1950_v19 = vand.u32 2147483647, %v4246_v13  ;;  %v2579_v41 = vmul.f32 %v2578_v12, %v4169_v60 }
 0x13b   :  { %v764_v35 = vmul.f32 %v763_v33, %v4231_v28  ;;  %v773_v36 = vmul.f32 %v772_v6, %v4231_v28  ;;  %v4277_v46 = vmul.f32 0.5, %v4196_v20  ;;  %v1320_v42 = vmul.f32 2.1237322e-06, %v4263_v44 }
 0x13c   :  { %v2895_v22 = vadd.f32 1.0, %v3281_v11  ;;  %v1331_v49 = vmul.f32 3.8918573e-05, %v4263_v44  ;;  %v1952_v45 = vand.u32 2147483648, %v4246_v13  ;;  %v4282_v50 = vadd.f32 1.0, %v2579_v41 }
 0x13d   :  { %v3391_v48 = vpop.eup %3390  ;;  %v765_v9 = vadd.f32 0.05243302, %v764_v35  ;;  %v774_v30 = vadd.f32 0.014752088, %v773_v36  ;;  %v1321_v20 = vadd.f32 0.00028619796, %v1320_v42  ;;  %vm1946_vm13 = vweird.f32 %v4246_v13 }
 0x13e   :  { %v2952_v55 = vmul.f32 %v2895_v22, %v4093_v63  ;;  %v1942_v57 = vmul.f32 %v3391_v48, %v4246_v13  ;;  %v2568_v62 = vmul.f32 %v2567_v47, %v4169_v60  ;;  %3392 = vrcp.f32 %v4282_v50 }
 0x13f   :  { %v4291_v8 = vadd.f32 %v4105_v37, %v425_v39  ;;  %vm4293_vm14 = vcmp.eq.f32.partialorder %v1950_v19, 8.507059e+37  ;;  %v775_v63 = vmul.f32 %v774_v30, %v4231_v28  ;;  %v1953_v29 = vor.u32 1.1754944e-38, %v1952_v45 }
 0x140   :  { %v3009_v51 = vpack.c.bf16 %v2952_v55, %v2952_v55  ;;  %v1943_v16 = vsub.f32 1.0, %v1942_v57  ;;  %v766_v53 = vmul.f32 %v765_v9, %v4231_v28  ;;  %v1322_v38 = vmul.f32 %v1321_v20, %v4263_v44 }
 0x141   :  { %v1332_v60 = vadd.f32 0.001143296, %v1331_v49  ;;  %vm1947_vm15 = vweird.f32 %v3391_v48  ;;  %v776_v2 = vadd.f32 0.112945676, %v775_v63  ;;  %v4305_v3 = vadd.f32 %v4105_v37, %v465_v25  ;;  %v352_v25 = vpop.f32.mrf.mxu0 }
 0x142   :  { %3067 = vst.msk [vmem:[%s5967_s3 + $0x44] sm:$0xf] %vm3049_vm10, %v3009_v51  ;;  %v1944_v58 = vmul.f32 %v3391_v48, %v1943_v16  ;;  %v2569_v10 = vadd.f32 1.1283791, %v2568_v62  ;;  %v1323_v34 = vadd.f32 0.0036580483, %v1322_v38  ;;  %vm2586_vm0 = vweird.f32 %v4282_v50  ;;  %vm1948_vm1 = vmor %vm1946_vm13, %vm1947_vm15 }
 0x143   :  { %v1333_v5 = vmul.f32 %v1332_v60, %v4263_v44  ;;  %v4309_v15 = vmul.f32 0.70710677, %v4291_v8  ;;  %v2590_v27 = vand.u32 2147483647, %v4282_v50  ;;  %v777_v7 = vmul.f32 %v776_v2, %v4231_v28 }
 0x144   :  { %v1945_v14 = vadd.f32 %v3391_v48, %v1944_v58  ;;  %v3393_v59 = vpop.eup %3392  ;;  %v767_v1 = vadd.f32 0.18741608, %v766_v53  ;;  %v1324_v32 = vmul.f32 %v1323_v34, %v4263_v44  ;;  %v2592_v26 = vand.u32 2147483648, %v4282_v50 }
 0x145   :  { %v1334_v23 = vadd.f32 0.014752088, %v1333_v5  ;;  %v1958_v17 = vmul.f32 %v4309_v15, %v4309_v15  ;;  %v2582_v43 = vmul.f32 %v3393_v59, %v4282_v50  ;;  %v4322_v24 = vmul.f32 0.70710677, %v4305_v3 }
 0x146   :  { %v1949_v21 = vsel %vm1948_vm1, %v3391_v48, %v1945_v14  ;;  %v778_v13 = vadd.f32 0.4994258, %v777_v7  ;;  %v1325_v12 = vadd.f32 0.05243302, %v1324_v32  ;;  %vm2587_vm2 = vweird.f32 %v3393_v59 }
 0x147   :  { %v1954_v31 = vsel %vm4293_vm14, %v1953_v29, %v1949_v21  ;;  %v1335_v33 = vmul.f32 %v1334_v23, %v4263_v44  ;;  %v2583_v11 = vsub.f32 1.0, %v2582_v43  ;;  %v4327_v47 = vmin.f32 %v1958_v17, 16.0  ;;  %vm4336_vm3 = vmor %vm2586_vm0, %vm2587_vm2 }
 0x148   :  { %v1955_v6 = vmul.f32 %v1954_v31, %v1930_v56  ;;  %v768_v19 = vmul.f32 %v767_v1, %v4231_v28  ;;  %v779_v41 = vmul.f32 %v778_v13, %v4231_v28  ;;  %v1326_v35 = vmul.f32 %v1325_v12, %v4263_v44 }
 0x149   :  { %v1336_v36 = vadd.f32 0.112945676, %v1335_v33  ;;  %v2584_v42 = vmul.f32 %v3393_v59, %v2583_v11  ;;  %v1960_v49 = vmul.f32 2.1237322e-06, %v4327_v47  ;;  %v1971_v39 = vmul.f32 3.8918573e-05, %v4327_v47 }
 0x14a   :  { %v3297_v22 = vclamps-f32 %v1955_v6, 1.0  ;;  %v2593_v45 = vor.u32 1.1754944e-38, %v2592_v26  ;;  %v4340_v9 = vadd.f32 1.0, %v779_v41  ;;  %v2598_v30 = vmul.f32 %v4322_v24, %v4322_v24 }
 0x14b   :  { %v1337_v28 = vmul.f32 %v1336_v36, %v4263_v44  ;;  %v2585_v56 = vadd.f32 %v3393_v59, %v2584_v42  ;;  %vm2591_vm4 = vcmp.eq.f32.partialorder %v2590_v27, 8.507059e+37  ;;  %v1961_v57 = vadd.f32 0.00028619796, %v1960_v49 }
 0x14c   :  { %v2911_v55 = vadd.f32 1.0, %v3297_v22  ;;  %v2570_v20 = vmul.f32 %v2569_v10, %v4141_v0  ;;  %3394 = vrcp.f32 %v4340_v9  ;;  %v1327_v50 = vadd.f32 0.18741608, %v1326_v35 }
 0x14d   :  { %v1972_v62 = vadd.f32 0.001143296, %v1971_v39  ;;  %v2589_v16 = vsel %vm4336_vm3, %v3393_v59, %v2585_v56  ;;  %v769_v61 = vadd.f32 1.1283791, %v768_v19  ;;  %v1338_v63 = vadd.f32 0.4994258, %v1337_v28 }
 0x14e   :  { %v2968_v51 = vmul.f32 %v2911_v55, %v4256_v4  ;;  %v2594_v29 = vsel %vm2591_vm4, %v2593_v45, %v2589_v16  ;;  %v4351_v53 = vmul.f32 0.5, %v4291_v8  ;;  %v1962_v38 = vmul.f32 %v1961_v57, %v4327_v47 }
 0x14f   :  { %v4354_v60 = vmin.f32 %v2598_v30, 16.0  ;;  %v2595_v58 = vmul.f32 %v2594_v29, %v2570_v20  ;;  %v1339_v2 = vmul.f32 %v1338_v63, %v4263_v44  ;;  %v4358_v10 = vadd.f32 %v4105_v37, %v352_v25 }
 0x150   :  { %v3025_v0 = vpack.c.bf16 %v2968_v51, %v2968_v51  ;;  %v1328_v4 = vmul.f32 %v1327_v50, %v4263_v44  ;;  %v1963_v34 = vadd.f32 0.0036580483, %v1962_v38  ;;  %v1973_v5 = vmul.f32 %v1972_v62, %v4327_v47 }
 0x151   :  { %v2600_v14 = vmul.f32 2.1237322e-06, %v4354_v60  ;;  %v3313_v8 = vclamps-f32 %v2595_v58, 1.0  ;;  %v770_v27 = vmul.f32 %v769_v61, %v4207_v40  ;;  %v790_v7 = vand.u32 2147483647, %v4340_v9 }
 0x152   :  { %3083 = vst.msk [vmem:[%s5967_s3 + $0x84] sm:$0xf] %vm3049_vm10, %v3025_v0  ;;  %v4369_v59 = vadd.f32 1.0, %v1339_v2  ;;  %v3395_v1 = vpop.eup %3394  ;;  %v1964_v44 = vmul.f32 %v1963_v34, %v4327_v47  ;;  %v1974_v32 = vadd.f32 0.014752088, %v1973_v5  ;;  %v792_v26 = vand.u32 2147483648, %v4340_v9 }
 0x153   :  { %v2601_v23 = vadd.f32 0.00028619796, %v2600_v14  ;;  %v2611_v17 = vmul.f32 3.8918573e-05, %v4354_v60  ;;  %v2927_v21 = vadd.f32 1.0, %v3313_v8  ;;  %v782_v43 = vmul.f32 %v3395_v1, %v4340_v9  ;;  %v387_v14 = vpop.f32.mrf.mxu1 }
 0x154   :  { %3396 = vrcp.f32 %v4369_v59  ;;  %vm786_vm5 = vweird.f32 %v4340_v9  ;;  %v1329_v40 = vadd.f32 1.1283791, %v1328_v4  ;;  %v1965_v31 = vadd.f32 0.05243302, %v1964_v44 }
 0x155   :  { %v4378_v13 = vmul.f32 0.70710677, %v4358_v10  ;;  %v2984_v12 = vmul.f32 %v2927_v21, %v4260_v18  ;;  %v783_v33 = vsub.f32 1.0, %v782_v43  ;;  %v1975_v6 = vmul.f32 %v1974_v32, %v4327_v47  ;;  %v427_v32 = vpop.f32.mrf.mxu2 }
 0x156   :  { %v2602_v11 = vmul.f32 %v2601_v23, %v4354_v60  ;;  %vm787_vm6 = vweird.f32 %v3395_v1  ;;  %vm4383_vm7 = vcmp.eq.f32.partialorder %v790_v7, 8.507059e+37  ;;  %v1966_v41 = vmul.f32 %v1965_v31, %v4327_v47 }
 0x157   :  { %v2612_v35 = vadd.f32 0.001143296, %v2611_v17  ;;  %v3041_v36 = vpack.c.bf16 %v2984_v12, %v2984_v12  ;;  %v784_v22 = vmul.f32 %v3395_v1, %v783_v33  ;;  %v1976_v42 = vadd.f32 0.112945676, %v1975_v6  ;;  %vm788_vm9 = vmor %vm786_vm5, %vm787_vm6 }
 0x158   :  { %v2603_v49 = vadd.f32 0.0036580483, %v2602_v11  ;;  %v793_v39 = vor.u32 1.1754944e-38, %v792_v26  ;;  %v1330_v18 = vmul.f32 %v1329_v40, %v4220_v54  ;;  %v798_v45 = vmul.f32 %v4378_v13, %v4378_v13 }
 0x159   :  { %v2613_v48 = vmul.f32 %v2612_v35, %v4354_v60  ;;  %3099 = vst.msk [vmem:[%s5967_s3 + $0xc4] sm:$0xf] %vm3049_vm10, %v3041_v36  ;;  %v785_v30 = vadd.f32 %v3395_v1, %v784_v22  ;;  %vm1346_vm8 = vweird.f32 %v4369_v59  ;;  %v1977_v55 = vmul.f32 %v1976_v42, %v4327_v47 }
 0x15a   :  { %v3397_v28 = vpop.eup %3396  ;;  %v2604_v56 = vmul.f32 %v2603_v49, %v4354_v60  ;;  %v1350_v57 = vand.u32 2147483647, %v4369_v59  ;;  %v1967_v20 = vadd.f32 0.18741608, %v1966_v41  ;;  %v4404_v16 = vmin.f32 %v798_v45, 16.0 }
 0x15b   :  { %v1342_v54 = vmul.f32 %v3397_v28, %v4369_v59  ;;  %v2614_v50 = vadd.f32 0.014752088, %v2613_v48  ;;  %v789_v62 = vsel %vm788_vm9, %v3395_v1, %v785_v30  ;;  %v1978_v25 = vadd.f32 0.4994258, %v1977_v55 }
 0x15c   :  { %v2605_v51 = vadd.f32 0.05243302, %v2604_v56  ;;  %v794_v61 = vsel %vm4383_vm7, %v793_v39, %v789_v62  ;;  %v1352_v29 = vand.u32 2147483648, %v4369_v59  ;;  %v800_v2 = vmul.f32 2.1237322e-06, %v4404_v16 }
 0x15d   :  { %v1343_v63 = vsub.f32 1.0, %v1342_v54  ;;  %v2615_v9 = vmul.f32 %v2614_v50, %v4354_v60  ;;  %v795_v38 = vmul.f32 %v794_v61, %v770_v27  ;;  %v1979_v0 = vmul.f32 %v1978_v25, %v4327_v47 }
 0x15e   :  { %v2606_v58 = vmul.f32 %v2605_v51, %v4354_v60  ;;  %vm1347_vm11 = vweird.f32 %v3397_v28  ;;  %v811_v5 = vmul.f32 3.8918573e-05, %v4404_v16  ;;  %v1968_v7 = vmul.f32 %v1967_v20, %v4327_v47 }
 0x15f   :  { %v1344_v4 = vmul.f32 %v3397_v28, %v1343_v63  ;;  %v2616_v34 = vadd.f32 0.112945676, %v2615_v9  ;;  %v3268_v8 = vclamps-f32 %v795_v38, 1.0  ;;  %v4415_v1 = vadd.f32 1.0, %v1979_v0  ;;  %vm1348_vm12 = vmor %vm1346_vm8, %vm1347_vm11 }
 0x160   :  { %v801_v44 = vadd.f32 0.00028619796, %v800_v2  ;;  %v1353_v23 = vor.u32 1.1754944e-38, %v1352_v29  ;;  %v2607_v17 = vadd.f32 0.18741608, %v2606_v58  ;;  %v4422_v40 = vadd.f32 %v4105_v37, %v387_v14 }
 0x161   :  { %v1345_v27 = vadd.f32 %v3397_v28, %v1344_v4  ;;  %v2617_v21 = vmul.f32 %v2616_v34, %v4354_v60  ;;  %v2882_v43 = vadd.f32 1.0, %v3268_v8  ;;  %3398 = vrcp.f32 %v4415_v1 }
 0x162   :  { %v812_v26 = vadd.f32 0.001143296, %v811_v5  ;;  %vm1351_vm13 = vcmp.eq.f32.partialorder %v1350_v57, 8.507059e+37  ;;  %v4425_v12 = vadd.f32 %v4105_v37, %v427_v32  ;;  %v1969_v11 = vadd.f32 1.1283791, %v1968_v7 }
 0x163   :  { %v1349_v47 = vsel %vm1348_vm12, %v3397_v28, %v1345_v27  ;;  %v2618_v31 = vadd.f32 0.4994258, %v2617_v21  ;;  %v2939_v33 = vmul.f32 %v2882_v43, %v4270_v52  ;;  %v802_v19 = vmul.f32 %v801_v44, %v4404_v16 }
 0x164   :  { %v1354_v6 = vsel %vm1351_vm13, %v1353_v23, %v1349_v47  ;;  %v1990_v41 = vand.u32 2147483647, %v4415_v1  ;;  %v2608_v35 = vmul.f32 %v2607_v17, %v4354_v60  ;;  %v813_v49 = vmul.f32 %v812_v26, %v4404_v16 }
 0x165   :  { %v1355_v59 = vmul.f32 %v1354_v6, %v1330_v18  ;;  %v2619_v36 = vmul.f32 %v2618_v31, %v4354_v60  ;;  %v2996_v22 = vpack.c.bf16 %v2939_v33, %v2939_v33  ;;  %v803_v42 = vadd.f32 0.0036580483, %v802_v19 }
 0x166   :  { %v4434_v39 = vmul.f32 0.70710677, %v4422_v40  ;;  %v1992_v52 = vand.u32 2147483648, %v4415_v1  ;;  %v4440_v18 = vmul.f32 0.5, %v4358_v10  ;;  %v814_v30 = vadd.f32 0.014752088, %v813_v49 }
 0x167   :  { %v3282_v48 = vclamps-f32 %v1355_v59, 1.0  ;;  %v4437_v45 = vadd.f32 1.0, %v2619_v36  ;;  %v3399_v28 = vpop.eup %3398  ;;  %3054 = vst.msk [vmem:[%s5967_s3 + $0x10] sm:$0xf] %vm3049_vm10, %v2996_v22  ;;  %v804_v60 = vmul.f32 %v803_v42, %v4404_v16  ;;  %v4450_v56 = vmul.f32 0.70710677, %v4425_v12  ;;  %v467_v22 = vpop.f32.mrf.mxu3 }
 0x168   :  { %v1358_v55 = vmul.f32 %v4434_v39, %v4434_v39  ;;  %v1970_v57 = vmul.f32 %v1969_v11, %v4309_v15  ;;  %v1982_v10 = vmul.f32 %v3399_v28, %v4415_v1  ;;  %vm1986_vm14 = vweird.f32 %v4415_v1 }
 0x169   :  { %v2896_v54 = vadd.f32 1.0, %v3282_v48  ;;  %3400 = vrcp.f32 %v4437_v45  ;;  %vm4456_vm15 = vcmp.eq.f32.partialorder %v1990_v41, 8.507059e+37  ;;  %v2609_v50 = vadd.f32 1.1283791, %v2608_v35 }
 0x16a   :  { %v805_v62 = vadd.f32 0.05243302, %v804_v60  ;;  %v1983_v51 = vsub.f32 1.0, %v1982_v10  ;;  %v815_v61 = vmul.f32 %v814_v30, %v4404_v16  ;;  %v4462_v63 = vmin.f32 %v1358_v55, 16.0 }
 0x16b   :  { %v2953_v25 = vmul.f32 %v2896_v54, %v4277_v46  ;;  %vm1987_vm0 = vweird.f32 %v3399_v28  ;;  %v1993_v15 = vor.u32 1.1754944e-38, %v1992_v52  ;;  %v1998_v9 = vmul.f32 %v4450_v56, %v4450_v56 }
 0x16c   :  { %v806_v29 = vmul.f32 %v805_v62, %v4404_v16  ;;  %v1984_v0 = vmul.f32 %v3399_v28, %v1983_v51  ;;  %v816_v58 = vadd.f32 0.112945676, %v815_v61  ;;  %v1360_v2 = vmul.f32 2.1237322e-06, %v4462_v63  ;;  %vm1988_vm2 = vmor %vm1986_vm14, %vm1987_vm0 }
 0x16d   :  { %v3010_v38 = vpack.c.bf16 %v2953_v25, %v2953_v25  ;;  %v2610_v4 = vmul.f32 %v2609_v50, %v4322_v24  ;;  %vm2626_vm1 = vweird.f32 %v4437_v45  ;;  %v1371_v46 = vmul.f32 3.8918573e-05, %v4462_v63 }
 0x16e   :  { %v4471_v34 = vmin.f32 %v1998_v9, 16.0  ;;  %v1985_v14 = vadd.f32 %v3399_v28, %v1984_v0  ;;  %v2630_v8 = vand.u32 2147483647, %v4437_v45  ;;  %v817_v7 = vmul.f32 %v816_v58, %v4404_v16  ;;  %v355_v0 = vpop.f32.mrf.mxu0 }
 0x16f   :  { %v3401_v5 = vpop.eup %3400  ;;  %3068 = vst.msk [vmem:[%s5967_s3 + $0x48] sm:$0xf] %vm3049_vm10, %v3010_v38  ;;  %v1361_v44 = vadd.f32 0.00028619796, %v1360_v2  ;;  %v2632_v32 = vand.u32 2147483648, %v4437_v45  ;;  %v534_v10 = vmul.f32 0.5, %v4305_v3 }
 0x170   :  { %v2622_v24 = vmul.f32 %v3401_v5, %v4437_v45  ;;  %v807_v27 = vadd.f32 0.18741608, %v806_v29  ;;  %v1372_v23 = vadd.f32 0.001143296, %v1371_v46  ;;  %v1989_v17 = vsel %vm1988_vm2, %v3399_v28, %v1985_v14 }
 0x171   :  { %v818_v21 = vadd.f32 0.4994258, %v817_v7  ;;  %v1362_v43 = vmul.f32 %v1361_v44, %v4462_v63  ;;  %v2000_v26 = vmul.f32 2.1237322e-06, %v4471_v34  ;;  %v1994_v47 = vsel %vm4456_vm15, %v1993_v15, %v1989_v17 }
 0x172   :  { %v2623_v31 = vsub.f32 1.0, %v2622_v24  ;;  %vm2627_vm3 = vweird.f32 %v3401_v5  ;;  %v1373_v1 = vmul.f32 %v1372_v23, %v4462_v63  ;;  %v1995_v33 = vmul.f32 %v1994_v47, %v1970_v57 }
 0x173   :  { %v819_v6 = vmul.f32 %v818_v21, %v4404_v16  ;;  %v1363_v11 = vadd.f32 0.0036580483, %v1362_v43  ;;  %v2001_v19 = vadd.f32 0.00028619796, %v2000_v26  ;;  %v2633_v41 = vor.u32 1.1754944e-38, %v2632_v32  ;;  %vm4493_vm4 = vmor %vm2626_vm1, %vm2627_vm3 }
 0x174   :  { %v2624_v59 = vmul.f32 %v3401_v5, %v2623_v31  ;;  %v1374_v35 = vadd.f32 0.014752088, %v1373_v1  ;;  %v2011_v36 = vmul.f32 3.8918573e-05, %v4471_v34  ;;  %v3298_v42 = vclamps-f32 %v1995_v33, 1.0 }
 0x175   :  { %v4497_v48 = vadd.f32 1.0, %v819_v6  ;;  %v1364_v52 = vmul.f32 %v1363_v11, %v4462_v63  ;;  %v2002_v28 = vmul.f32 %v2001_v19, %v4471_v34  ;;  %vm2631_vm5 = vcmp.eq.f32.partialorder %v2630_v8, 8.507059e+37 }
 0x176   :  { %v2625_v60 = vadd.f32 %v3401_v5, %v2624_v59  ;;  %v808_v30 = vmul.f32 %v807_v27, %v4404_v16  ;;  %v1375_v55 = vmul.f32 %v1374_v35, %v4462_v63  ;;  %v2912_v54 = vadd.f32 1.0, %v3298_v42 }
 0x177   :  { %3402 = vrcp.f32 %v4497_v48  ;;  %v2012_v45 = vadd.f32 0.001143296, %v2011_v36  ;;  %v4505_v57 = vadd.f32 %v4105_v37, %v467_v22  ;;  %v1365_v50 = vadd.f32 0.05243302, %v1364_v52  ;;  %v390_v36 = vpop.f32.mrf.mxu1 }
 0x178   :  { %v2629_v20 = vsel %vm4493_vm4, %v3401_v5, %v2625_v60  ;;  %v1376_v62 = vadd.f32 0.112945676, %v1375_v55  ;;  %v2969_v25 = vmul.f32 %v2912_v54, %v4351_v53  ;;  %v4512_v16 = vmul.f32 0.5, %v4422_v40 }
 0x179   :  { %v2634_v51 = vsel %vm2631_vm5, %v2633_v41, %v2629_v20  ;;  %v2003_v61 = vadd.f32 0.0036580483, %v2002_v28  ;;  %v809_v29 = vadd.f32 1.1283791, %v808_v30  ;;  %v1366_v9 = vmul.f32 %v1365_v50, %v4462_v63 }
 0x17a   :  { %v2635_v15 = vmul.f32 %v2634_v51, %v2610_v4  ;;  %v1377_v38 = vmul.f32 %v1376_v62, %v4462_v63  ;;  %v3026_v3 = vpack.c.bf16 %v2969_v25, %v2969_v25  ;;  %v2013_v2 = vmul.f32 %v2012_v45, %v4471_v34 }
 0x17b   :  { %v2004_v58 = vmul.f32 %v2003_v61, %v4471_v34  ;;  %v4519_v46 = vmul.f32 0.70710677, %v4505_v57  ;;  %v1367_v5 = vadd.f32 0.18741608, %v1366_v9  ;;  %v4522_v14 = vmul.f32 0.5, %v4425_v12 }
 0x17c   :  { %v3314_v53 = vclamps-f32 %v2635_v15, 1.0  ;;  %v1378_v40 = vadd.f32 0.4994258, %v1377_v38  ;;  %3084 = vst.msk [vmem:[%s5967_s3 + $0x88] sm:$0xf] %vm3049_vm10, %v3026_v3  ;;  %v4531_v24 = vadd.f32 %v4105_v37, %v355_v0  ;;  %v832_v17 = vand.u32 2147483648, %v4497_v48 }
 0x17d   :  { %v3403_v4 = vpop.eup %3402  ;;  %v2005_v8 = vadd.f32 0.05243302, %v2004_v58  ;;  %v2014_v7 = vadd.f32 0.014752088, %v2013_v2  ;;  %v2638_v44 = vmul.f32 %v4519_v46, %v4519_v46  ;;  %v830_v12 = vand.u32 2147483647, %v4497_v48 }
 0x17e   :  { %v2928_v32 = vadd.f32 1.0, %v3314_v53  ;;  %v822_v27 = vmul.f32 %v3403_v4, %v4497_v48  ;;  %v1368_v23 = vmul.f32 %v1367_v5, %v4462_v63  ;;  %v1379_v21 = vmul.f32 %v1378_v40, %v4462_v63 }
 0x17f   :  { %v2006_v43 = vmul.f32 %v2005_v8, %v4471_v34  ;;  %v2015_v26 = vmul.f32 %v2014_v7, %v4471_v34  ;;  %v4540_v33 = vmin.f32 %v2638_v44, 16.0  ;;  %v810_v6 = vmul.f32 %v809_v29, %v4378_v13 }
 0x180   :  { %v2985_v47 = vmul.f32 %v2928_v32, %v534_v10  ;;  %v823_v31 = vsub.f32 1.0, %v822_v27  ;;  %v1369_v1 = vadd.f32 1.1283791, %v1368_v23  ;;  %v4543_v11 = vadd.f32 1.0, %v1379_v21 }
 0x181   :  { %v2016_v19 = vadd.f32 0.112945676, %v2015_v26  ;;  %v4546_v59 = vmul.f32 0.70710677, %v4531_v24  ;;  %vm827_vm6 = vweird.f32 %v3403_v4  ;;  %v2640_v63 = vmul.f32 2.1237322e-06, %v4540_v33 }
 0x182   :  { %v3042_v41 = vpack.c.bf16 %v2985_v47, %v2985_v47  ;;  %v824_v35 = vmul.f32 %v3403_v4, %v823_v31  ;;  %vm826_vm7 = vweird.f32 %v4497_v48  ;;  %vm4550_vm8 = vcmp.eq.f32.partialorder %v830_v12, 8.507059e+37 }
 0x183   :  { %v833_v42 = vor.u32 1.1754944e-38, %v832_v17  ;;  %3404 = vrcp.f32 %v4543_v11  ;;  %v2007_v49 = vadd.f32 0.18741608, %v2006_v43  ;;  %v2017_v52 = vmul.f32 %v2016_v19, %v4471_v34  ;;  %vm828_vm9 = vmor %vm826_vm7, %vm827_vm6 }
 0x184   :  { %3100 = vst.msk [vmem:[%s5967_s3 + $0xc8] sm:$0xf] %vm3049_vm10, %v3042_v41  ;;  %v825_v13 = vadd.f32 %v3403_v4, %v824_v35  ;;  %v2641_v28 = vadd.f32 0.00028619796, %v2640_v63  ;;  %v4561_v48 = vmul.f32 %v1369_v1, %v4434_v39  ;;  %v2651_v60 = vmul.f32 3.8918573e-05, %v4540_v33 }
 0x185   :  { %v838_v30 = vmul.f32 %v4546_v59, %v4546_v59  ;;  %v4567_v55 = vadd.f32 %v4105_v37, %v390_v36  ;;  %v1390_v45 = vand.u32 2147483647, %v4543_v11  ;;  %v2018_v10 = vadd.f32 0.4994258, %v2017_v52 }
 0x186   :  { %v829_v54 = vsel %vm828_vm9, %v3403_v4, %v825_v13  ;;  %v2642_v20 = vmul.f32 %v2641_v28, %v4540_v33  ;;  %v1392_v39 = vand.u32 2147483648, %v4543_v11  ;;  %v2652_v62 = vadd.f32 0.001143296, %v2651_v60  ;;  %v430_v28 = vpop.f32.mrf.mxu2 }
 0x187   :  { %v834_v50 = vsel %vm4550_vm8, %v833_v42, %v829_v54  ;;  %v4574_v25 = vmin.f32 %v838_v30, 16.0  ;;  %vm1386_vm11 = vweird.f32 %v4543_v11  ;;  %v2008_v37 = vmul.f32 %v2007_v49, %v4471_v34 }
 0x188   :  { %v835_v51 = vmul.f32 %v834_v50, %v810_v6  ;;  %v2019_v61 = vmul.f32 %v2018_v10, %v4471_v34  ;;  %v2643_v15 = vadd.f32 0.0036580483, %v2642_v20  ;;  %v2653_v9 = vmul.f32 %v2652_v62, %v4540_v33 }
 0x189   :  { %v3405_v29 = vpop.eup %3404  ;;  %v840_v38 = vmul.f32 2.1237322e-06, %v4574_v25  ;;  %v851_v0 = vmul.f32 3.8918573e-05, %v4574_v25  ;;  %v4583_v3 = vmul.f32 0.70710677, %v4567_v55 }
 0x18a   :  { %v3269_v58 = vclamps-f32 %v835_v51, 1.0  ;;  %v1382_v2 = vmul.f32 %v3405_v29, %v4543_v11  ;;  %vm4586_vm12 = vcmp.eq.f32.partialorder %v1390_v45, 8.507059e+37  ;;  %v4590_v5 = vadd.f32 1.0, %v2019_v61 }
 0x18b   :  { %v2644_v34 = vmul.f32 %v2643_v15, %v4540_v33  ;;  %v2654_v40 = vadd.f32 0.014752088, %v2653_v9  ;;  %v841_v4 = vadd.f32 0.00028619796, %v840_v38  ;;  %v852_v8 = vadd.f32 0.001143296, %v851_v0 }
 0x18c   :  { %v2883_v7 = vadd.f32 1.0, %v3269_v58  ;;  %v1383_v44 = vsub.f32 1.0, %v1382_v2  ;;  %v2009_v32 = vadd.f32 1.1283791, %v2008_v37  ;;  %3406 = vrcp.f32 %v4590_v5  ;;  %v4630_v37 = vld [vmem:[%s5965_s2] ss:$0 sm:$0xff] }
 0x18d   :  { %vm1387_vm13 = vweird.f32 %v3405_v29  ;;  %v2645_v27 = vadd.f32 0.05243302, %v2644_v34  ;;  %v2655_v12 = vmul.f32 %v2654_v40, %v4540_v33  ;;  %v1398_v23 = vmul.f32 %v4583_v3, %v4583_v3 }
 0x18e   :  { %v2940_v17 = vmul.f32 %v2883_v7, %v4440_v18  ;;  %v1384_v21 = vmul.f32 %v3405_v29, %v1383_v44  ;;  %v842_v43 = vmul.f32 %v841_v4, %v4574_v25  ;;  %v853_v26 = vmul.f32 %v852_v8, %v4574_v25  ;;  %vm1388_vm14 = vmor %vm1386_vm11, %vm1387_vm13  ;;  %v470_v4 = vpop.f32.mrf.mxu3 }
 0x18f   :  { %v1393_v47 = vor.u32 1.1754944e-38, %v1392_v39  ;;  %v2030_v31 = vand.u32 2147483647, %v4590_v5  ;;  %v2646_v1 = vmul.f32 %v2645_v27, %v4540_v33  ;;  %v2656_v6 = vadd.f32 0.112945676, %v2655_v12 }
 0x190   :  { %v2997_v19 = vpack.c.bf16 %v2940_v17, %v2940_v17  ;;  %v1385_v41 = vadd.f32 %v3405_v29, %v1384_v21  ;;  %v843_v35 = vadd.f32 0.0036580483, %v842_v43  ;;  %v854_v63 = vadd.f32 0.014752088, %v853_v26 }
 0x191   :  { %v2010_v18 = vmul.f32 %v2009_v32, %v4450_v56  ;;  %v2647_v36 = vadd.f32 0.18741608, %v2646_v1  ;;  %v2657_v22 = vmul.f32 %v2656_v6, %v4540_v33  ;;  %v4607_v42 = vmin.f32 %v1398_v23, 16.0 }
 0x192   :  { %v3407_v13 = vpop.eup %3406  ;;  %3055 = vst.msk [vmem:[%s5967_s3 + $0x14] sm:$0xf] %vm3049_vm10, %v2997_v19  ;;  %v1389_v49 = vsel %vm1388_vm14, %v3405_v29, %v1385_v41  ;;  %vm2026_vm15 = vweird.f32 %v4590_v5  ;;  %v844_v52 = vmul.f32 %v843_v35, %v4574_v25  ;;  %v855_v11 = vmul.f32 %v854_v63, %v4574_v25 }
 0x193   :  { %v1394_v56 = vsel %vm4586_vm12, %v1393_v47, %v1389_v49  ;;  %v2022_v60 = vmul.f32 %v3407_v13, %v4590_v5  ;;  %vm4619_vm0 = vcmp.eq.f32.partialorder %v2030_v31, 8.507059e+37  ;;  %v2032_v54 = vand.u32 2147483648, %v4590_v5 }
 0x194   :  { %v1395_v45 = vmul.f32 %v1394_v56, %v4561_v48  ;;  %v2658_v10 = vadd.f32 0.4994258, %v2657_v22  ;;  %v845_v20 = vadd.f32 0.05243302, %v844_v52  ;;  %v856_v50 = vadd.f32 0.112945676, %v855_v11 }
 0x195   :  { %v2023_v39 = vsub.f32 1.0, %v2022_v60  ;;  %v2648_v62 = vmul.f32 %v2647_v36, %v4540_v33  ;;  %v1400_v51 = vmul.f32 2.1237322e-06, %v4607_v42  ;;  %v4633_v61 = vadd.f32 %v4630_v37, %v430_v28 }
 0x196   :  { %v3283_v15 = vclamps-f32 %v1395_v45, 1.0  ;;  %v2659_v29 = vmul.f32 %v2658_v10, %v4540_v33  ;;  %v846_v48 = vmul.f32 %v845_v20, %v4574_v25  ;;  %v857_v9 = vmul.f32 %v856_v50, %v4574_v25 }
 0x197   :  { %v2024_v38 = vmul.f32 %v3407_v13, %v2023_v39  ;;  %vm2027_vm1 = vweird.f32 %v3407_v13  ;;  %v1401_v0 = vadd.f32 0.00028619796, %v1400_v51  ;;  %v1411_v58 = vmul.f32 3.8918573e-05, %v4607_v42 }
 0x198   :  { %v2897_v2 = vadd.f32 1.0, %v3283_v15  ;;  %v2660_v53 = vadd.f32 1.0, %v2659_v29  ;;  %v847_v34 = vadd.f32 0.18741608, %v846_v48  ;;  %v858_v40 = vadd.f32 0.4994258, %v857_v9  ;;  %vm2028_vm2 = vmor %vm2026_vm15, %vm2027_vm1 }
 0x199   :  { %v2025_v8 = vadd.f32 %v3407_v13, %v2024_v38  ;;  %v2033_v7 = vor.u32 1.1754944e-38, %v2032_v54  ;;  %v2649_v44 = vadd.f32 1.1283791, %v2648_v62  ;;  %v1402_v32 = vmul.f32 %v1401_v0, %v4607_v42  ;;  %v357_v0 = vpop.f32.mrf.mxu0 }
 0x19a   :  { %v2954_v33 = vmul.f32 %v2897_v2, %v4512_v16  ;;  %3408 = vrcp.f32 %v2660_v53  ;;  %v1412_v27 = vadd.f32 0.001143296, %v1411_v58  ;;  %v4644_v12 = vmul.f32 0.70710677, %v4633_v61 }
 0x19b   :  { %v2029_v23 = vsel %vm2028_vm2, %v3407_v13, %v2025_v8  ;;  %v848_v17 = vmul.f32 %v847_v34, %v4574_v25  ;;  %v859_v21 = vmul.f32 %v858_v40, %v4574_v25  ;;  %v4649_v43 = vadd.f32 %v4630_v37, %v470_v4 }
 0x19c   :  { %v3011_v26 = vpack.c.bf16 %v2954_v33, %v2954_v33  ;;  %v2034_v16 = vsel %vm4619_vm0, %v2033_v7, %v2029_v23  ;;  %v2670_v47 = vand.u32 2147483647, %v2660_v53  ;;  %v1403_v5 = vadd.f32 0.0036580483, %v1402_v32 }
 0x19d   :  { %v2035_v31 = vmul.f32 %v2034_v16, %v2010_v18  ;;  %v4654_v1 = vmul.f32 0.5, %v4505_v57  ;;  %v2672_v6 = vand.u32 2147483648, %v2660_v53  ;;  %v4656_v19 = vadd.f32 1.0, %v859_v21 }
 0x19e   :  { %3069 = vst.msk [vmem:[%s5967_s3 + $0x4c] sm:$0xf] %vm3049_vm10, %v3011_v26  ;;  %v2650_v25 = vmul.f32 %v2649_v44, %v4519_v46  ;;  %v1404_v41 = vmul.f32 %v1403_v5, %v4607_v42  ;;  %v1413_v35 = vmul.f32 %v1412_v27, %v4607_v42  ;;  %v2038_v63 = vmul.f32 %v4644_v12, %v4644_v12 }
 0x19f   :  { %v3299_v18 = vclamps-f32 %v2035_v31, 1.0  ;;  %vm2666_vm3 = vweird.f32 %v2660_v53  ;;  %v849_v57 = vadd.f32 1.1283791, %v848_v17  ;;  %3410 = vrcp.f32 %v4656_v19 }
 0x1a0   :  { %v3409_v36 = vpop.eup %3408  ;;  %vm4668_vm4 = vcmp.eq.f32.partialorder %v2670_v47, 8.507059e+37  ;;  %v1405_v13 = vadd.f32 0.05243302, %v1404_v41  ;;  %v4672_v49 = vmin.f32 %v2038_v63, 16.0  ;;  %v4675_v46 = vmul.f32 0.70710677, %v4649_v43 }
 0x1a1   :  { %v2913_v52 = vadd.f32 1.0, %v3299_v18  ;;  %v2662_v11 = vmul.f32 %v3409_v36, %v2660_v53  ;;  %v2673_v28 = vor.u32 1.1754944e-38, %v2672_v6  ;;  %v1414_v56 = vadd.f32 0.014752088, %v1413_v35 }
 0x1a2   :  { %vm2667_vm5 = vweird.f32 %v3409_v36  ;;  %v872_v60 = vand.u32 2147483648, %v4656_v19  ;;  %v1406_v30 = vmul.f32 %v1405_v13, %v4607_v42  ;;  %v2040_v54 = vmul.f32 2.1237322e-06, %v4672_v49 }
 0x1a3   :  { %v2970_v45 = vmul.f32 %v2913_v52, %v4522_v14  ;;  %v2663_v10 = vsub.f32 1.0, %v2662_v11  ;;  %v1415_v20 = vmul.f32 %v1414_v56, %v4607_v42  ;;  %v2051_v50 = vmul.f32 3.8918573e-05, %v4672_v49  ;;  %vm4689_vm7 = vmor %vm2666_vm3, %vm2667_vm5 }
 0x1a4   :  { %v850_v39 = vmul.f32 %v849_v57, %v4546_v59  ;;  %vm866_vm6 = vweird.f32 %v4656_v19  ;;  %v2041_v62 = vadd.f32 0.00028619796, %v2040_v54  ;;  %v2678_v51 = vmul.f32 %v4675_v46, %v4675_v46 }
 0x1a5   :  { %v3411_v15 = vpop.eup %3410  ;;  %v3027_v29 = vpack.c.bf16 %v2970_v45, %v2970_v45  ;;  %v2664_v48 = vmul.f32 %v3409_v36, %v2663_v10  ;;  %v1416_v9 = vadd.f32 0.112945676, %v1415_v20  ;;  %v2052_v38 = vadd.f32 0.001143296, %v2051_v50 }
 0x1a6   :  { %v862_v59 = vmul.f32 %v3411_v15, %v4656_v19  ;;  %v870_v58 = vand.u32 2147483647, %v4656_v19  ;;  %v1407_v2 = vadd.f32 0.18741608, %v1406_v30  ;;  %v2042_v34 = vmul.f32 %v2041_v62, %v4672_v49 }
 0x1a7   :  { %3085 = vst.msk [vmem:[%s5967_s3 + $0x8c] sm:$0xf] %vm3049_vm10, %v3027_v29  ;;  %v2665_v40 = vadd.f32 %v3409_v36, %v2664_v48  ;;  %v873_v4 = vor.u32 1.1754944e-38, %v872_v60  ;;  %v1417_v53 = vmul.f32 %v1416_v9, %v4607_v42  ;;  %v2053_v8 = vmul.f32 %v2052_v38, %v4672_v49 }
 0x1a8   :  { %v863_v7 = vsub.f32 1.0, %v862_v59  ;;  %v2043_v44 = vadd.f32 0.0036580483, %v2042_v34  ;;  %v4702_v32 = vmin.f32 %v2678_v51, 16.0  ;;  %v4705_v33 = vadd.f32 %v4630_v37, %v357_v0 }
 0x1a9   :  { %v2669_v27 = vsel %vm4689_vm7, %v3409_v36, %v2665_v40  ;;  %vm867_vm8 = vweird.f32 %v3411_v15  ;;  %v1418_v23 = vadd.f32 0.4994258, %v1417_v53  ;;  %v2054_v17 = vadd.f32 0.014752088, %v2053_v8 }
 0x1aa   :  { %v2674_v21 = vsel %vm4668_vm4, %v2673_v28, %v2669_v27  ;;  %v864_v26 = vmul.f32 %v3411_v15, %v863_v7  ;;  %v1408_v16 = vmul.f32 %v1407_v2, %v4607_v42  ;;  %v2044_v47 = vmul.f32 %v2043_v44, %v4672_v49  ;;  %vm868_vm9 = vmor %vm866_vm6, %vm867_vm8 }
 0x1ab   :  { %v2675_v5 = vmul.f32 %v2674_v21, %v2650_v25  ;;  %v1419_v31 = vmul.f32 %v1418_v23, %v4607_v42  ;;  %v2055_v6 = vmul.f32 %v2054_v17, %v4672_v49  ;;  %v2680_v41 = vmul.f32 2.1237322e-06, %v4702_v32  ;;  %v432_v21 = vpop.f32.mrf.mxu2 }
 0x1ac   :  { %v865_v35 = vadd.f32 %v3411_v15, %v864_v26  ;;  %v2045_v63 = vadd.f32 0.05243302, %v2044_v47  ;;  %v2691_v18 = vmul.f32 3.8918573e-05, %v4702_v32  ;;  %v4718_v57 = vmul.f32 0.70710677, %v4705_v33 }
 0x1ad   :  { %v3315_v36 = vclamps-f32 %v2675_v5, 1.0  ;;  %v4723_v22 = vadd.f32 1.0, %v1419_v31  ;;  %v2056_v25 = vadd.f32 0.112945676, %v2055_v6  ;;  %v2681_v42 = vadd.f32 0.00028619796, %v2680_v41 }
 0x1ae   :  { %v869_v13 = vsel %vm868_vm9, %v3411_v15, %v865_v35  ;;  %vm871_vm11 = vcmp.eq.f32.partialorder %v870_v58, 8.507059e+37  ;;  %v2046_v52 = vmul.f32 %v2045_v63, %v4672_v49  ;;  %v2692_v11 = vadd.f32 0.001143296, %v2691_v18  ;;  %v392_v58 = vpop.f32.mrf.mxu1 }
 0x1af   :  { %v2929_v28 = vadd.f32 1.0, %v3315_v36  ;;  %v490_v56 = vmul.f32 0.5, %v4531_v24  ;;  %v874_v60 = vsel %vm871_vm11, %v873_v4, %v869_v13  ;;  %3412 = vrcp.f32 %v4723_v22 }
 0x1b0   :  { %v875_v30 = vmul.f32 %v874_v60, %v850_v39  ;;  %v1409_v54 = vadd.f32 1.1283791, %v1408_v16  ;;  %v2047_v45 = vadd.f32 0.18741608, %v2046_v52  ;;  %v878_v19 = vmul.f32 %v4718_v57, %v4718_v57 }
 0x1b1   :  { %v2986_v10 = vmul.f32 %v2929_v28, %v4654_v1  ;;  %v2057_v20 = vmul.f32 %v2056_v25, %v4672_v49  ;;  %v2682_v50 = vmul.f32 %v2681_v42, %v4702_v32  ;;  %v2693_v62 = vmul.f32 %v2692_v11, %v4702_v32 }
 0x1b2   :  { %v3270_v51 = vclamps-f32 %v875_v30, 1.0  ;;  %v4735_v24 = vmul.f32 0.5, %v4567_v55  ;;  %v4738_v15 = vmul.f32 0.5, %v4633_v61  ;;  %v4741_v39 = vmul.f32 0.5, %v4649_v43 }
 0x1b3   :  { %v3043_v29 = vpack.c.bf16 %v2986_v10, %v2986_v10  ;;  %v2058_v48 = vadd.f32 0.4994258, %v2057_v20  ;;  %v2683_v9 = vadd.f32 0.0036580483, %v2682_v50  ;;  %v2694_v1 = vadd.f32 0.014752088, %v2693_v62 }
 0x1b4   :  { %v2884_v38 = vadd.f32 1.0, %v3270_v51  ;;  %v1410_v0 = vmul.f32 %v1409_v54, %v4583_v3  ;;  %v1430_v14 = vand.u32 2147483647, %v4723_v22  ;;  %v4745_v59 = vmin.f32 %v878_v19, 16.0 }
 0x1b5   :  { %v3413_v55 = vpop.eup %3412  ;;  %3101 = vst.msk [vmem:[%s5967_s3 + $0xcc] sm:$0xf] %vm3049_vm10, %v3043_v29  ;;  %v2048_v61 = vmul.f32 %v2047_v45, %v4672_v49  ;;  %v2059_v43 = vmul.f32 %v2058_v48, %v4672_v49  ;;  %v2684_v2 = vmul.f32 %v2683_v9, %v4702_v32  ;;  %v2695_v34 = vmul.f32 %v2694_v1, %v4702_v32 }
 0x1b6   :  { %v2941_v3 = vmul.f32 %v2884_v38, %v490_v56  ;;  %v1422_v40 = vmul.f32 %v3413_v55, %v4723_v22  ;;  %vm1426_vm12 = vweird.f32 %v4723_v22  ;;  %v1432_v4 = vand.u32 2147483648, %v4723_v22 }
 0x1b7   :  { %v4758_v53 = vadd.f32 1.0, %v2059_v43  ;;  %v2685_v8 = vadd.f32 0.05243302, %v2684_v2  ;;  %v2696_v7 = vadd.f32 0.112945676, %v2695_v34  ;;  %v4761_v44 = vadd.f32 %v4630_v37, %v392_v58 }
 0x1b8   :  { %v2998_v27 = vpack.c.bf16 %v2941_v3, %v2941_v3  ;;  %v1423_v49 = vsub.f32 1.0, %v1422_v40  ;;  %v880_v23 = vmul.f32 2.1237322e-06, %v4745_v59  ;;  %v891_v17 = vmul.f32 3.8918573e-05, %v4745_v59 }
 0x1b9   :  { %vm1427_vm13 = vweird.f32 %v3413_v55  ;;  %vm4765_vm14 = vcmp.eq.f32.partialorder %v1430_v14, 8.507059e+37  ;;  %v2049_v16 = vadd.f32 1.1283791, %v2048_v61  ;;  %3414 = vrcp.f32 %v4758_v53 }
 0x1ba   :  { %3056 = vst.msk [vmem:[%s5967_s3 + $0x18] sm:$0xf] %vm3049_vm10, %v2998_v27  ;;  %v1424_v47 = vmul.f32 %v3413_v55, %v1423_v49  ;;  %v2686_v5 = vmul.f32 %v2685_v8, %v4702_v32  ;;  %v2697_v31 = vmul.f32 %v2696_v7, %v4702_v32  ;;  %v881_v6 = vadd.f32 0.00028619796, %v880_v23  ;;  %vm1428_vm15 = vmor %vm1426_vm12, %vm1427_vm13 }
 0x1bb   :  { %v1433_v41 = vor.u32 1.1754944e-38, %v1432_v4  ;;  %v892_v35 = vadd.f32 0.001143296, %v891_v17  ;;  %v4777_v63 = vmul.f32 0.70710677, %v4761_v44  ;;  %v4780_v18 = vadd.f32 %v4630_v37, %v432_v21 }
 0x1bc   :  { %v1425_v36 = vadd.f32 %v3413_v55, %v1424_v47  ;;  %v2687_v25 = vadd.f32 0.18741608, %v2686_v5  ;;  %v2698_v42 = vadd.f32 0.4994258, %v2697_v31  ;;  %v882_v13 = vmul.f32 %v881_v6, %v4745_v59 }
 0x1bd   :  { %v2050_v52 = vmul.f32 %v2049_v16, %v4644_v12  ;;  %v2070_v11 = vand.u32 2147483647, %v4758_v53  ;;  %v893_v28 = vmul.f32 %v892_v35, %v4745_v59  ;;  %v1438_v56 = vmul.f32 %v4777_v63, %v4777_v63 }
 0x1be   :  { %v1429_v60 = vsel %vm1428_vm15, %v3413_v55, %v1425_v36  ;;  %v2688_v30 = vmul.f32 %v2687_v25, %v4702_v32  ;;  %v2699_v54 = vmul.f32 %v2698_v42, %v4702_v32  ;;  %v883_v45 = vadd.f32 0.0036580483, %v882_v13 }
 0x1bf   :  { %v3415_v19 = vpop.eup %3414  ;;  %v1434_v22 = vsel %vm4765_vm14, %v1433_v41, %v1429_v60  ;;  %v894_v10 = vadd.f32 0.014752088, %v893_v28  ;;  %v4795_v20 = vmin.f32 %v1438_v56, 16.0  ;;  %v4798_v12 = vmul.f32 0.70710677, %v4780_v18 }
 0x1c0   :  { %v1435_v50 = vmul.f32 %v1434_v22, %v1410_v0  ;;  %v2062_v62 = vmul.f32 %v3415_v19, %v4758_v53  ;;  %v2072_v51 = vand.u32 2147483648, %v4758_v53  ;;  %v2689_v29 = vadd.f32 1.1283791, %v2688_v30 }
 0x1c1   :  { %v2700_v48 = vadd.f32 1.0, %v2699_v54  ;;  %v884_v32 = vmul.f32 %v883_v45, %v4745_v59  ;;  %v895_v9 = vmul.f32 %v894_v10, %v4745_v59  ;;  %v1440_v1 = vmul.f32 2.1237322e-06, %v4795_v20  ;;  %v472_v45 = vpop.f32.mrf.mxu3 }
 0x1c2   :  { %v3284_v38 = vclamps-f32 %v1435_v50, 1.0  ;;  %v2063_v14 = vsub.f32 1.0, %v2062_v62  ;;  %vm2066_vm0 = vweird.f32 %v4758_v53  ;;  %v1451_v58 = vmul.f32 3.8918573e-05, %v4795_v20 }
 0x1c3   :  { %vm2067_vm1 = vweird.f32 %v3415_v19  ;;  %vm4807_vm2 = vcmp.eq.f32.partialorder %v2070_v11, 8.507059e+37  ;;  %3416 = vrcp.f32 %v2700_v48  ;;  %v2078_v55 = vmul.f32 %v4798_v12, %v4798_v12 }
 0x1c4   :  { %v2898_v61 = vadd.f32 1.0, %v3284_v38  ;;  %v2064_v43 = vmul.f32 %v3415_v19, %v2063_v14  ;;  %v885_v2 = vadd.f32 0.05243302, %v884_v32  ;;  %v896_v34 = vadd.f32 0.112945676, %v895_v9  ;;  %vm2068_vm3 = vmor %vm2066_vm0, %vm2067_vm1 }
 0x1c5   :  { %v2073_v3 = vor.u32 1.1754944e-38, %v2072_v51  ;;  %v4814_v40 = vmul.f32 %v2689_v29, %v4675_v46  ;;  %v1441_v4 = vadd.f32 0.00028619796, %v1440_v1  ;;  %v1452_v8 = vadd.f32 0.001143296, %v1451_v58 }
 0x1c6   :  { %v2955_v7 = vmul.f32 %v2898_v61, %v4735_v24  ;;  %v2065_v27 = vadd.f32 %v3415_v19, %v2064_v43  ;;  %v886_v49 = vmul.f32 %v885_v2, %v4745_v59  ;;  %v897_v23 = vmul.f32 %v896_v34, %v4745_v59 }
 0x1c7   :  { %vm2706_vm4 = vweird.f32 %v2700_v48  ;;  %v1442_v17 = vmul.f32 %v1441_v4, %v4795_v20  ;;  %v1453_v21 = vmul.f32 %v1452_v8, %v4795_v20  ;;  %v4824_v46 = vmin.f32 %v2078_v55, 16.0 }
 0x1c8   :  { %v3012_v26 = vpack.c.bf16 %v2955_v7, %v2955_v7  ;;  %v2069_v16 = vsel %vm2068_vm3, %v3415_v19, %v2065_v27  ;;  %v2710_v47 = vand.u32 2147483647, %v2700_v48  ;;  %v898_v24 = vadd.f32 0.4994258, %v897_v23  ;;  %v360_v27 = vpop.f32.mrf.mxu0 }
 0x1c9   :  { %v3417_v5 = vpop.eup %3416  ;;  %v2074_v31 = vsel %vm4807_vm2, %v2073_v3, %v2069_v16  ;;  %v1443_v6 = vadd.f32 0.0036580483, %v1442_v17  ;;  %v1454_v41 = vadd.f32 0.014752088, %v1453_v21  ;;  %v2080_v53 = vmul.f32 2.1237322e-06, %v4824_v46 }
 0x1ca   :  { %3070 = vst.msk [vmem:[%s5967_s3 + $0x50] sm:$0xf] %vm3049_vm10, %v3012_v26  ;;  %v2075_v35 = vmul.f32 %v2074_v31, %v2050_v52  ;;  %v2702_v36 = vmul.f32 %v3417_v5, %v2700_v48  ;;  %v2712_v25 = vand.u32 2147483648, %v2700_v48  ;;  %v887_v42 = vadd.f32 0.18741608, %v886_v49 }
 0x1cb   :  { %v899_v13 = vmul.f32 %v898_v24, %v4745_v59  ;;  %v1444_v11 = vmul.f32 %v1443_v6, %v4795_v20  ;;  %v1455_v28 = vmul.f32 %v1454_v41, %v4795_v20  ;;  %v2081_v56 = vadd.f32 0.00028619796, %v2080_v53  ;;  %v395_v41 = vpop.f32.mrf.mxu1 }
 0x1cc   :  { %v3300_v60 = vclamps-f32 %v2075_v35, 1.0  ;;  %v2703_v30 = vsub.f32 1.0, %v2702_v36  ;;  %vm2707_vm5 = vweird.f32 %v3417_v5  ;;  %v2091_v54 = vmul.f32 3.8918573e-05, %v4824_v46 }
 0x1cd   :  { %v4837_v19 = vadd.f32 1.0, %v899_v13  ;;  %v1445_v22 = vadd.f32 0.05243302, %v1444_v11  ;;  %v1456_v52 = vadd.f32 0.112945676, %v1455_v28  ;;  %v2082_v10 = vmul.f32 %v2081_v56, %v4824_v46  ;;  %vm4845_vm7 = vmor %vm2706_vm4, %vm2707_vm5 }
 0x1ce   :  { %v2914_v50 = vadd.f32 1.0, %v3300_v60  ;;  %v2704_v62 = vmul.f32 %v3417_v5, %v2703_v30  ;;  %vm4840_vm6 = vcmp.eq.f32.partialorder %v2710_v47, 8.507059e+37  ;;  %v2092_v29 = vadd.f32 0.001143296, %v2091_v54 }
 0x1cf   :  { %v2713_v9 = vor.u32 1.1754944e-38, %v2712_v25  ;;  %v888_v1 = vmul.f32 %v887_v42, %v4745_v59  ;;  %3418 = vrcp.f32 %v4837_v19  ;;  %v4852_v38 = vadd.f32 %v4630_v37, %v472_v45 }
 0x1d0   :  { %v2971_v14 = vmul.f32 %v2914_v50, %v4738_v15  ;;  %v2705_v58 = vadd.f32 %v3417_v5, %v2704_v62  ;;  %v1446_v0 = vmul.f32 %v1445_v22, %v4795_v20  ;;  %v1457_v55 = vmul.f32 %v1456_v52, %v4795_v20 }
 0x1d1   :  { %v4858_v48 = vmul.f32 0.5, %v4705_v33  ;;  %v4861_v61 = vmul.f32 0.5, %v4761_v44  ;;  %v2083_v43 = vadd.f32 0.0036580483, %v2082_v10  ;;  %v2093_v59 = vmul.f32 %v2092_v29, %v4824_v46 }
 0x1d2   :  { %v3028_v2 = vpack.c.bf16 %v2971_v14, %v2971_v14  ;;  %v2709_v34 = vsel %vm4845_vm7, %v3417_v5, %v2705_v58  ;;  %v1447_v3 = vadd.f32 0.18741608, %v1446_v0  ;;  %v1458_v15 = vadd.f32 0.4994258, %v1457_v55 }
 0x1d3   :  { %v2714_v4 = vsel %vm4840_vm6, %v2713_v9, %v2709_v34  ;;  %v889_v8 = vadd.f32 1.1283791, %v888_v1  ;;  %v2084_v7 = vmul.f32 %v2083_v43, %v4824_v46  ;;  %v2094_v33 = vadd.f32 0.014752088, %v2093_v59 }
 0x1d4   :  { %3086 = vst.msk [vmem:[%s5967_s3 + $0x90] sm:$0xf] %vm3049_vm10, %v3028_v2  ;;  %v2715_v44 = vmul.f32 %v2714_v4, %v4814_v40  ;;  %v1448_v49 = vmul.f32 %v1447_v3, %v4795_v20  ;;  %v1459_v23 = vmul.f32 %v1458_v15, %v4795_v20  ;;  %v4877_v17 = vmul.f32 0.70710677, %v4852_v38 }
 0x1d5   :  { %v3419_v21 = vpop.eup %3418  ;;  %v910_v26 = vand.u32 2147483647, %v4837_v19  ;;  %v912_v16 = vand.u32 2147483648, %v4837_v19  ;;  %v2085_v47 = vadd.f32 0.05243302, %v2084_v7  ;;  %v2095_v24 = vmul.f32 %v2094_v33, %v4824_v46 }
 0x1d6   :  { %v3316_v5 = vclamps-f32 %v2715_v44, 1.0  ;;  %v902_v31 = vmul.f32 %v3419_v21, %v4837_v19  ;;  %v1449_v6 = vadd.f32 1.1283791, %v1448_v49  ;;  %v4884_v40 = vadd.f32 %v4630_v37, %v360_v27 }
 0x1d7   :  { %v4886_v20 = vadd.f32 1.0, %v1459_v23  ;;  %v2086_v53 = vmul.f32 %v2085_v47, %v4824_v46  ;;  %v2096_v35 = vadd.f32 0.112945676, %v2095_v24  ;;  %v2718_v36 = vmul.f32 %v4877_v17, %v4877_v17 }
 0x1d8   :  { %v2930_v25 = vadd.f32 1.0, %v3316_v5  ;;  %v890_v42 = vmul.f32 %v889_v8, %v4718_v57  ;;  %v903_v13 = vsub.f32 1.0, %v902_v31  ;;  %vm906_vm8 = vweird.f32 %v4837_v19 }
 0x1d9   :  { %vm907_vm9 = vweird.f32 %v3419_v21  ;;  %vm4893_vm11 = vcmp.eq.f32.partialorder %v910_v26, 8.507059e+37  ;;  %3420 = vrcp.f32 %v4886_v20  ;;  %v4899_v28 = vadd.f32 %v4630_v37, %v395_v41 }
 0x1da   :  { %v2987_v56 = vmul.f32 %v2930_v25, %v4741_v39  ;;  %v904_v60 = vmul.f32 %v3419_v21, %v903_v13  ;;  %v2087_v30 = vadd.f32 0.18741608, %v2086_v53  ;;  %v2097_v54 = vmul.f32 %v2096_v35, %v4824_v46  ;;  %vm908_vm12 = vmor %vm906_vm8, %vm907_vm9 }
 0x1db   :  { %v913_v57 = vor.u32 1.1754944e-38, %v912_v16  ;;  %v4904_v45 = vmul.f32 %v1449_v6, %v4777_v63  ;;  %v4906_v22 = vmin.f32 %v2718_v36, 16.0  ;;  %v4909_v52 = vmul.f32 0.70710677, %v4884_v40 }
 0x1dc   :  { %v3044_v10 = vpack.c.bf16 %v2987_v56, %v2987_v56  ;;  %v905_v50 = vadd.f32 %v3419_v21, %v904_v60  ;;  %v2088_v62 = vmul.f32 %v2087_v30, %v4824_v46  ;;  %v2098_v51 = vadd.f32 0.4994258, %v2097_v54 }
 0x1dd   :  { %v1470_v39 = vand.u32 2147483647, %v4886_v20  ;;  %v2720_v29 = vmul.f32 2.1237322e-06, %v4906_v22  ;;  %v2731_v63 = vmul.f32 3.8918573e-05, %v4906_v22  ;;  %v918_v32 = vmul.f32 %v4909_v52, %v4909_v52 }
 0x1de   :  { %3102 = vst.msk [vmem:[%s5967_s3 + $0xd0] sm:$0xf] %vm3049_vm10, %v3044_v10  ;;  %v909_v9 = vsel %vm908_vm12, %v3419_v21, %v905_v50  ;;  %v1472_v1 = vand.u32 2147483648, %v4886_v20  ;;  %v2099_v19 = vmul.f32 %v2098_v51, %v4824_v46  ;;  %v4927_v14 = vmul.f32 0.70710677, %v4899_v28 }
 0x1df   :  { %v3421_v58 = vpop.eup %3420  ;;  %v914_v0 = vsel %vm4893_vm11, %v913_v57, %v909_v9  ;;  %v2721_v55 = vadd.f32 0.00028619796, %v2720_v29  ;;  %v2732_v43 = vadd.f32 0.001143296, %v2731_v63  ;;  %v4931_v59 = vmin.f32 %v918_v32, 16.0 }
 0x1e0   :  { %v915_v2 = vmul.f32 %v914_v0, %v890_v42  ;;  %v1462_v34 = vmul.f32 %v3421_v58, %v4886_v20  ;;  %vm1466_vm13 = vweird.f32 %v4886_v20  ;;  %v2089_v3 = vadd.f32 1.1283791, %v2088_v62 }
 0x1e1   :  { %v4935_v15 = vadd.f32 1.0, %v2099_v19  ;;  %v2722_v46 = vmul.f32 %v2721_v55, %v4906_v22  ;;  %v2733_v4 = vmul.f32 %v2732_v43, %v4906_v22  ;;  %v920_v8 = vmul.f32 2.1237322e-06, %v4931_v59 }
 0x1e2   :  { %v3271_v7 = vclamps-f32 %v915_v2, 1.0  ;;  %v1463_v33 = vsub.f32 1.0, %v1462_v34  ;;  %vm4940_vm14 = vcmp.eq.f32.partialorder %v1470_v39, 8.507059e+37  ;;  %v931_v44 = vmul.f32 3.8918573e-05, %v4931_v59 }
 0x1e3   :  { %vm1467_vm15 = vweird.f32 %v3421_v58  ;;  %v1473_v49 = vor.u32 1.1754944e-38, %v1472_v1  ;;  %3422 = vrcp.f32 %v4935_v15  ;;  %v1478_v23 = vmul.f32 %v4927_v14, %v4927_v14 }
 0x1e4   :  { %v2885_v21 = vadd.f32 1.0, %v3271_v7  ;;  %v1464_v26 = vmul.f32 %v3421_v58, %v1463_v33  ;;  %v2723_v16 = vadd.f32 0.0036580483, %v2722_v46  ;;  %v2734_v47 = vadd.f32 0.014752088, %v2733_v4  ;;  %vm1468_vm0 = vmor %vm1466_vm13, %vm1467_vm15 }
 0x1e5   :  { %v4949_v24 = vmul.f32 %v2089_v3, %v4798_v12  ;;  %v2110_v5 = vand.u32 2147483647, %v4935_v15  ;;  %v921_v31 = vadd.f32 0.00028619796, %v920_v8  ;;  %v932_v6 = vadd.f32 0.001143296, %v931_v44 }
 0x1e6   :  { %v2942_v41 = vmul.f32 %v2885_v21, %v4858_v48  ;;  %v1465_v53 = vadd.f32 %v3421_v58, %v1464_v26  ;;  %v2724_v35 = vmul.f32 %v2723_v16, %v4906_v22  ;;  %v2735_v36 = vmul.f32 %v2734_v47, %v4906_v22  ;;  %v435_v21 = vpop.f32.mrf.mxu2 }
 0x1e7   :  { %v2112_v25 = vand.u32 2147483648, %v4935_v15  ;;  %v922_v12 = vmul.f32 %v921_v31, %v4931_v59  ;;  %v933_v42 = vmul.f32 %v932_v6, %v4931_v59  ;;  %v4961_v13 = vmin.f32 %v1478_v23, 16.0 }
 0x1e8   :  { %v2999_v11 = vpack.c.bf16 %v2942_v41, %v2942_v41  ;;  %v1469_v56 = vsel %vm1468_vm0, %v3421_v58, %v1465_v53  ;;  %vm2106_vm1 = vweird.f32 %v4935_v15  ;;  %v2725_v48 = vadd.f32 0.05243302, %v2724_v35 }
 0x1e9   :  { %v2736_v60 = vadd.f32 0.112945676, %v2735_v36  ;;  %v3423_v30 = vpop.eup %3422  ;;  %v1474_v54 = vsel %vm4940_vm14, %v1473_v49, %v1469_v56  ;;  %v923_v20 = vadd.f32 0.0036580483, %v922_v12  ;;  %v934_v57 = vadd.f32 0.014752088, %v933_v42  ;;  %v475_v56 = vpop.f32.mrf.mxu3 }
 0x1ea   :  { %v1480_v10 = vmul.f32 2.1237322e-06, %v4961_v13  ;;  %3057 = vst.msk [vmem:[%s5967_s3 + $0x1c] sm:$0xf] %vm3049_vm10, %v2999_v11  ;;  %v1475_v50 = vmul.f32 %v1474_v54, %v4904_v45  ;;  %v2102_v62 = vmul.f32 %v3423_v30, %v4935_v15  ;;  %vm2107_vm2 = vweird.f32 %v3423_v30 }
 0x1eb   :  { %v2726_v51 = vmul.f32 %v2725_v48, %v4906_v22  ;;  %v2737_v39 = vmul.f32 %v2736_v60, %v4906_v22  ;;  %v924_v29 = vmul.f32 %v923_v20, %v4931_v59  ;;  %v935_v63 = vmul.f32 %v934_v57, %v4931_v59  ;;  %vm2108_vm3 = vmor %vm2106_vm1, %vm2107_vm2 }
 0x1ec   :  { %v1481_v32 = vadd.f32 0.00028619796, %v1480_v10  ;;  %v3285_v9 = vclamps-f32 %v1475_v50, 1.0  ;;  %v2103_v1 = vsub.f32 1.0, %v2102_v62  ;;  %v1491_v58 = vmul.f32 3.8918573e-05, %v4961_v13 }
 0x1ed   :  { %v2727_v19 = vadd.f32 0.18741608, %v2726_v51  ;;  %v2738_v0 = vadd.f32 0.4994258, %v2737_v39  ;;  %v925_v55 = vadd.f32 0.05243302, %v924_v29  ;;  %v4990_v35 = vadd.f32 %v4630_v37, %v435_v21 }
 0x1ee   :  { %v936_v45 = vadd.f32 0.112945676, %v935_v63  ;;  %v1482_v43 = vmul.f32 %v1481_v32, %v4961_v13  ;;  %v2899_v2 = vadd.f32 1.0, %v3285_v9  ;;  %v2104_v34 = vmul.f32 %v3423_v30, %v2103_v1 }
 0x1ef   :  { %v2728_v3 = vmul.f32 %v2727_v19, %v4906_v22  ;;  %v1492_v46 = vadd.f32 0.001143296, %v1491_v58  ;;  %v2739_v4 = vmul.f32 %v2738_v0, %v4906_v22  ;;  %v926_v8 = vmul.f32 %v925_v55, %v4931_v59 }
 0x1f0   :  { %v937_v7 = vmul.f32 %v936_v45, %v4931_v59  ;;  %v1483_v33 = vadd.f32 0.0036580483, %v1482_v43  ;;  %v2956_v27 = vmul.f32 %v2899_v2, %v4861_v61  ;;  %v2105_v44 = vadd.f32 %v3423_v30, %v2104_v34 }
 0x1f1   :  { %v2113_v49 = vor.u32 1.1754944e-38, %v2112_v25  ;;  %v1493_v23 = vmul.f32 %v1492_v46, %v4961_v13  ;;  %v2740_v26 = vadd.f32 1.0, %v2739_v4  ;;  %v927_v16 = vadd.f32 0.18741608, %v926_v8 }
 0x1f2   :  { %v938_v47 = vadd.f32 0.4994258, %v937_v7  ;;  %v1484_v22 = vmul.f32 %v1483_v33, %v4961_v13  ;;  %v3013_v31 = vpack.c.bf16 %v2956_v27, %v2956_v27  ;;  %v2109_v6 = vsel %vm2108_vm3, %v3423_v30, %v2105_v44  ;;  %v362_v44 = vpop.f32.mrf.mxu0 }
 0x1f3   :  { %vm2111_vm4 = vcmp.eq.f32.partialorder %v2110_v5, 8.507059e+37  ;;  %v1494_v41 = vadd.f32 0.014752088, %v1493_v23  ;;  %v2729_v61 = vadd.f32 1.1283791, %v2728_v3  ;;  %3424 = vrcp.f32 %v2740_v26 }
 0x1f4   :  { %v2114_v53 = vsel %vm2111_vm4, %v2113_v49, %v2109_v6  ;;  %3071 = vst.msk [vmem:[%s5967_s3 + $0x54] sm:$0xf] %vm3049_vm10, %v3013_v31  ;;  %v521_v15 = vmul.f32 0.5, %v4780_v18  ;;  %v939_v25 = vmul.f32 %v938_v47, %v4931_v59  ;;  %v5000_v5 = vmul.f32 0.5, %v4852_v38 }
 0x1f5   :  { %v2115_v36 = vmul.f32 %v2114_v53, %v4949_v24  ;;  %v928_v12 = vmul.f32 %v927_v16, %v4931_v59  ;;  %v1485_v42 = vadd.f32 0.05243302, %v1484_v22  ;;  %v1495_v11 = vmul.f32 %v1494_v41, %v4961_v13 }
 0x1f6   :  { %v2750_v60 = vand.u32 2147483647, %v2740_v26  ;;  %v5005_v30 = vmul.f32 0.5, %v4884_v40  ;;  %v5007_v54 = vadd.f32 1.0, %v939_v25  ;;  %v2730_v18 = vmul.f32 %v2729_v61, %v4877_v17 }
 0x1f7   :  { %v3301_v48 = vclamps-f32 %v2115_v36, 1.0  ;;  %v1486_v24 = vmul.f32 %v1485_v42, %v4961_v13  ;;  %v1496_v20 = vadd.f32 0.112945676, %v1495_v11  ;;  %v5012_v38 = vmul.f32 0.70710677, %v4990_v35 }
 0x1f8   :  { %vm2746_vm5 = vweird.f32 %v2740_v26  ;;  %3426 = vrcp.f32 %v5007_v54  ;;  %v5016_v57 = vadd.f32 %v4630_v37, %v475_v56  ;;  %v2752_v40 = vand.u32 2147483648, %v2740_v26 }
 0x1f9   :  { %v2915_v59 = vadd.f32 1.0, %v3301_v48  ;;  %v3425_v10 = vpop.eup %3424  ;;  %v929_v50 = vadd.f32 1.1283791, %v928_v12  ;;  %v1487_v62 = vadd.f32 0.18741608, %v1486_v24  ;;  %v1497_v51 = vmul.f32 %v1496_v20, %v4961_v13 }
 0x1fa   :  { %v2742_v39 = vmul.f32 %v3425_v10, %v2740_v26  ;;  %vm5019_vm6 = vcmp.eq.f32.partialorder %v2750_v60, 8.507059e+37  ;;  %v2118_v63 = vmul.f32 %v5012_v38, %v5012_v38  ;;  %vm2747_vm7 = vweird.f32 %v3425_v10  ;;  %v397_v26 = vpop.f32.mrf.mxu1 }
 0x1fb   :  { %v2972_v17 = vmul.f32 %v2915_v59, %v521_v15  ;;  %v950_v32 = vand.u32 2147483647, %v5007_v54  ;;  %v952_v9 = vand.u32 2147483648, %v5007_v54  ;;  %v1498_v1 = vadd.f32 0.4994258, %v1497_v51  ;;  %vm5045_vm8 = vmor %vm2746_vm5, %vm2747_vm7 }
 0x1fc   :  { %v2743_v58 = vsub.f32 1.0, %v2742_v39  ;;  %v5027_v0 = vmin.f32 %v2118_v63, 16.0  ;;  %v5030_v55 = vmul.f32 0.70710677, %v5016_v57  ;;  %v2753_v45 = vor.u32 1.1754944e-38, %v2752_v40 }
 0x1fd   :  { %v3029_v19 = vpack.c.bf16 %v2972_v17, %v2972_v17  ;;  %v930_v43 = vmul.f32 %v929_v50, %v4909_v52  ;;  %v1488_v2 = vmul.f32 %v1487_v62, %v4961_v13  ;;  %v1499_v34 = vmul.f32 %v1498_v1, %v4961_v13 }
 0x1fe   :  { %v3427_v3 = vpop.eup %3426  ;;  %v2744_v46 = vmul.f32 %v3425_v10, %v2743_v58  ;;  %v2120_v4 = vmul.f32 2.1237322e-06, %v5027_v0  ;;  %v2131_v8 = vmul.f32 3.8918573e-05, %v5027_v0  ;;  %v2758_v7 = vmul.f32 %v5030_v55, %v5030_v55 }
 0x1ff   :  { %3087 = vst.msk [vmem:[%s5967_s3 + $0x94] sm:$0xf] %vm3049_vm10, %v3029_v19  ;;  %v942_v13 = vmul.f32 %v3427_v3, %v5007_v54  ;;  %vm946_vm9 = vweird.f32 %v5007_v54  ;;  %vm5051_vm11 = vcmp.eq.f32.partialorder %v950_v32, 8.507059e+37  ;;  %v5055_v27 = vadd.f32 1.0, %v1499_v34 }
 0x200   :  { %v2745_v49 = vadd.f32 %v3425_v10, %v2744_v46  ;;  %v953_v23 = vor.u32 1.1754944e-38, %v952_v9  ;;  %v2121_v21 = vadd.f32 0.00028619796, %v2120_v4  ;;  %v2132_v16 = vadd.f32 0.001143296, %v2131_v8 }
 0x201   :  { %v943_v47 = vsub.f32 1.0, %v942_v13  ;;  %v1489_v22 = vadd.f32 1.1283791, %v1488_v2  ;;  %3428 = vrcp.f32 %v5055_v27  ;;  %v5058_v31 = vmin.f32 %v2758_v7, 16.0 }
 0x202   :  { %v2749_v6 = vsel %vm5045_vm8, %v3425_v10, %v2745_v49  ;;  %v2122_v41 = vmul.f32 %v2121_v21, %v5027_v0  ;;  %v2133_v53 = vmul.f32 %v2132_v16, %v5027_v0  ;;  %v5065_v61 = vadd.f32 %v4630_v37, %v362_v44 }
 0x203   :  { %v2754_v15 = vsel %vm5019_vm6, %v2753_v45, %v2749_v6  ;;  %v944_v36 = vmul.f32 %v3427_v3, %v943_v47  ;;  %vm947_vm12 = vweird.f32 %v3427_v3  ;;  %v5070_v25 = vadd.f32 %v4630_v37, %v397_v26 }
 0x204   :  { %v2755_v12 = vmul.f32 %v2754_v15, %v2730_v18  ;;  %v1510_v42 = vand.u32 2147483647, %v5055_v27  ;;  %v2123_v11 = vadd.f32 0.0036580483, %v2122_v41  ;;  %v2134_v56 = vadd.f32 0.014752088, %v2133_v53  ;;  %vm948_vm13 = vmor %vm946_vm9, %vm947_vm12 }
 0x205   :  { %v945_v48 = vadd.f32 %v3427_v3, %v944_v36  ;;  %v1490_v60 = vmul.f32 %v1489_v22, %v4927_v14  ;;  %v2760_v24 = vmul.f32 2.1237322e-06, %v5058_v31  ;;  %v2771_v20 = vmul.f32 3.8918573e-05, %v5058_v31 }
 0x206   :  { %v3317_v59 = vclamps-f32 %v2755_v12, 1.0  ;;  %vm1506_vm14 = vweird.f32 %v5055_v27  ;;  %v2124_v37 = vmul.f32 %v2123_v11, %v5027_v0  ;;  %v2135_v18 = vmul.f32 %v2134_v56, %v5027_v0 }
 0x207   :  { %v5082_v10 = vmul.f32 0.70710677, %v5065_v61  ;;  %v3429_v40 = vpop.eup %3428  ;;  %v949_v50 = vsel %vm948_vm13, %v3427_v3, %v945_v48  ;;  %v1512_v14 = vand.u32 2147483648, %v5055_v27  ;;  %v2761_v62 = vadd.f32 0.00028619796, %v2760_v24 }
 0x208   :  { %v2772_v51 = vadd.f32 0.001143296, %v2771_v20  ;;  %v2931_v17 = vadd.f32 1.0, %v3317_v59  ;;  %v954_v54 = vsel %vm5051_vm11, %v953_v23, %v949_v50  ;;  %v1502_v39 = vmul.f32 %v3429_v40, %v5055_v27 }
 0x209   :  { %vm1507_vm15 = vweird.f32 %v3429_v40  ;;  %vm5088_vm0 = vcmp.eq.f32.partialorder %v1510_v42, 8.507059e+37  ;;  %v955_v63 = vmul.f32 %v954_v54, %v930_v43  ;;  %v2125_v32 = vadd.f32 0.05243302, %v2124_v37 }
 0x20a   :  { %v2136_v9 = vadd.f32 0.112945676, %v2135_v18  ;;  %v2762_v1 = vmul.f32 %v2761_v62, %v5058_v31  ;;  %v2988_v19 = vmul.f32 %v2931_v17, %v5000_v5  ;;  %v1503_v58 = vsub.f32 1.0, %v1502_v39  ;;  %vm1508_vm1 = vmor %vm1506_vm14, %vm1507_vm15 }
 0x20b   :  { %v2773_v45 = vmul.f32 %v2772_v51, %v5058_v31  ;;  %v958_v2 = vmul.f32 %v5082_v10, %v5082_v10  ;;  %v3272_v34 = vclamps-f32 %v955_v63, 1.0  ;;  %v2126_v3 = vmul.f32 %v2125_v32, %v5027_v0  ;;  %v437_v51 = vpop.f32.mrf.mxu2 }
 0x20c   :  { %v2137_v46 = vmul.f32 %v2136_v9, %v5027_v0  ;;  %v2763_v4 = vadd.f32 0.0036580483, %v2762_v1  ;;  %v3045_v8 = vpack.c.bf16 %v2988_v19, %v2988_v19  ;;  %v1504_v43 = vmul.f32 %v3429_v40, %v1503_v58  ;;  %v5153_v19 = vld [vmem:[%s5965_s2] ss:$0 sm:$0xff] }
 0x20d   :  { %v2774_v7 = vadd.f32 0.014752088, %v2773_v45  ;;  %v5099_v52 = vmin.f32 %v958_v2, 16.0  ;;  %v2886_v13 = vadd.f32 1.0, %v3272_v34  ;;  %v2127_v33 = vadd.f32 0.18741608, %v2126_v3 }
 0x20e   :  { %v2138_v5 = vadd.f32 0.4994258, %v2137_v46  ;;  %v2764_v44 = vmul.f32 %v2763_v4, %v5058_v31  ;;  %3103 = vst.msk [vmem:[%s5967_s3 + $0xd4] sm:$0xf] %vm3049_vm10, %v3045_v8  ;;  %v1505_v49 = vadd.f32 %v3429_v40, %v1504_v43  ;;  %v1513_v47 = vor.u32 1.1754944e-38, %v1512_v14  ;;  %v477_v46 = vpop.f32.mrf.mxu3 }
 0x20f   :  { %v2775_v23 = vmul.f32 %v2774_v7, %v5058_v31  ;;  %v960_v21 = vmul.f32 2.1237322e-06, %v5099_v52  ;;  %v971_v16 = vmul.f32 3.8918573e-05, %v5099_v52  ;;  %v2943_v26 = vmul.f32 %v2886_v13, %v5005_v30 }
 0x210   :  { %v2139_v22 = vmul.f32 %v2138_v5, %v5027_v0  ;;  %v2765_v6 = vadd.f32 0.05243302, %v2764_v44  ;;  %v1509_v41 = vsel %vm1508_vm1, %v3429_v40, %v1505_v49  ;;  %v2128_v53 = vmul.f32 %v2127_v33, %v5027_v0 }
 0x211   :  { %v2776_v15 = vadd.f32 0.112945676, %v2775_v23  ;;  %v961_v36 = vadd.f32 0.00028619796, %v960_v21  ;;  %v3000_v12 = vpack.c.bf16 %v2943_v26, %v2943_v26  ;;  %v1514_v42 = vsel %vm5088_vm0, %v1513_v47, %v1509_v41 }
 0x212   :  { %v5117_v11 = vadd.f32 1.0, %v2139_v22  ;;  %v972_v30 = vadd.f32 0.001143296, %v971_v16  ;;  %v1515_v56 = vmul.f32 %v1514_v42, %v1490_v60  ;;  %v2766_v27 = vmul.f32 %v2765_v6, %v5058_v31  ;;  %v365_v22 = vpop.f32.mrf.mxu0 }
 0x213   :  { %v2777_v48 = vmul.f32 %v2776_v15, %v5058_v31  ;;  %v962_v24 = vmul.f32 %v961_v36, %v5099_v52  ;;  %3058 = vst.msk [vmem:[%s5967_s3 + $0x20] sm:$0xf] %vm3049_vm10, %v3000_v12  ;;  %v506_v0 = vmul.f32 0.5, %v4899_v28  ;;  %v5128_v20 = vmul.f32 0.5, %v4990_v35 }
 0x214   :  { %3430 = vrcp.f32 %v5117_v11  ;;  %v3286_v59 = vclamps-f32 %v1515_v56, 1.0  ;;  %v5132_v60 = vmul.f32 0.5, %v5016_v57  ;;  %v2767_v37 = vadd.f32 0.18741608, %v2766_v27 }
 0x215   :  { %v2778_v18 = vadd.f32 0.4994258, %v2777_v48  ;;  %v2129_v40 = vadd.f32 1.1283791, %v2128_v53  ;;  %v963_v50 = vadd.f32 0.0036580483, %v962_v24  ;;  %v973_v14 = vmul.f32 %v972_v30, %v5099_v52 }
 0x216   :  { %v5136_v62 = vmul.f32 0.70710677, %v5070_v25  ;;  %v2900_v28 = vadd.f32 1.0, %v3286_v59  ;;  %v2150_v35 = vand.u32 2147483647, %v5117_v11  ;;  %v2152_v17 = vand.u32 2147483648, %v5117_v11 }
 0x217   :  { %v2779_v54 = vmul.f32 %v2778_v18, %v5058_v31  ;;  %v2768_v57 = vmul.f32 %v2767_v37, %v5058_v31  ;;  %v964_v39 = vmul.f32 %v963_v50, %v5099_v52  ;;  %v974_v29 = vadd.f32 0.014752088, %v973_v14 }
 0x218   :  { %v1518_v63 = vmul.f32 %v5136_v62, %v5136_v62  ;;  %v2957_v32 = vmul.f32 %v2900_v28, %v506_v0  ;;  %v5148_v1 = vmul.f32 0.5, %v5065_v61  ;;  %v438_v58 = vadd.f32 %v5153_v19, %v437_v51 }
 0x219   :  { %v5145_v9 = vadd.f32 1.0, %v2779_v54  ;;  %v965_v45 = vadd.f32 0.05243302, %v964_v39  ;;  %v975_v2 = vmul.f32 %v974_v29, %v5099_v52  ;;  %v5158_v34 = vmul.f32 0.5, %v5070_v25 }
 0x21a   :  { %v3431_v31 = vpop.eup %3430  ;;  %v5160_v3 = vmin.f32 %v1518_v63, 16.0  ;;  %v3014_v4 = vpack.c.bf16 %v2957_v32, %v2957_v32  ;;  %v2130_v61 = vmul.f32 %v2129_v40, %v5012_v38  ;;  %vm2146_vm2 = vweird.f32 %v5117_v11 }
 0x21b   :  { %v2142_v8 = vmul.f32 %v3431_v31, %v5117_v11  ;;  %vm5165_vm3 = vcmp.eq.f32.partialorder %v2150_v35, 8.507059e+37  ;;  %v2153_v7 = vor.u32 1.1754944e-38, %v2152_v17  ;;  %v2769_v13 = vadd.f32 1.1283791, %v2768_v57 }
 0x21c   :  { %3432 = vrcp.f32 %v5145_v9  ;;  %3072 = vst.msk [vmem:[%s5967_s3 + $0x58] sm:$0xf] %vm3049_vm10, %v3014_v4  ;;  %v976_v33 = vadd.f32 0.112945676, %v975_v2  ;;  %v5174_v38 = vmul.f32 0.5, %v438_v58  ;;  %v5177_v5 = vadd.f32 %v5153_v19, %v477_v46 }
 0x21d   :  { %v2143_v25 = vsub.f32 1.0, %v2142_v8  ;;  %vm2147_vm4 = vweird.f32 %v3431_v31  ;;  %v966_v44 = vmul.f32 %v965_v45, %v5099_v52  ;;  %v1520_v49 = vmul.f32 2.1237322e-06, %v5160_v3 }
 0x21e   :  { %v1531_v23 = vmul.f32 3.8918573e-05, %v5160_v3  ;;  %v2790_v16 = vand.u32 2147483647, %v5145_v9  ;;  %v977_v26 = vmul.f32 %v976_v33, %v5099_v52  ;;  %v5184_v47 = vmul.f32 0.70710677, %v438_v58  ;;  %vm2148_vm6 = vmor %vm2146_vm2, %vm2147_vm4 }
 0x21f   :  { %v2144_v21 = vmul.f32 %v3431_v31, %v2143_v25  ;;  %v2770_v6 = vmul.f32 %v2769_v13, %v5030_v55  ;;  %vm2786_vm5 = vweird.f32 %v5145_v9  ;;  %v1521_v41 = vadd.f32 0.00028619796, %v1520_v49 }
 0x220   :  { %v1532_v53 = vadd.f32 0.001143296, %v1531_v23  ;;  %v2792_v36 = vand.u32 2147483648, %v5145_v9  ;;  %v978_v12 = vadd.f32 0.4994258, %v977_v26  ;;  %v2158_v42 = vmul.f32 %v5184_v47, %v5184_v47 }
 0x221   :  { %v2145_v15 = vadd.f32 %v3431_v31, %v2144_v21  ;;  %v967_v56 = vadd.f32 0.18741608, %v966_v44  ;;  %v1522_v27 = vmul.f32 %v1521_v41, %v5160_v3  ;;  %v5197_v48 = vadd.f32 %v5153_v19, %v365_v22  ;;  %v5236_v44 = vpop.f32.mrf.mxu3 }
 0x222   :  { %v3433_v30 = vpop.eup %3432  ;;  %v1533_v55 = vmul.f32 %v1532_v53, %v5160_v3  ;;  %vm5200_vm7 = vcmp.eq.f32.partialorder %v2790_v16, 8.507059e+37  ;;  %v5205_v37 = vmul.f32 0.70710677, %v5177_v5  ;;  %v979_v18 = vmul.f32 %v978_v12, %v5099_v52 }
 0x223   :  { %v2149_v24 = vsel %vm2148_vm6, %v3431_v31, %v2145_v15  ;;  %v2782_v0 = vmul.f32 %v3433_v30, %v5145_v9  ;;  %v1523_v40 = vadd.f32 0.0036580483, %v1522_v27  ;;  %vm2787_vm8 = vweird.f32 %v3433_v30 }
 0x224   :  { %v2154_v11 = vsel %vm5165_vm3, %v2153_v7, %v2149_v24  ;;  %v1534_v50 = vadd.f32 0.014752088, %v1533_v55  ;;  %v5210_v28 = vmin.f32 %v2158_v42, 16.0  ;;  %v968_v35 = vmul.f32 %v967_v56, %v5099_v52  ;;  %vm5221_vm9 = vmor %vm2786_vm5, %vm2787_vm8 }
 0x225   :  { %v2155_v14 = vmul.f32 %v2154_v11, %v2130_v61  ;;  %v2783_v51 = vsub.f32 1.0, %v2782_v0  ;;  %v5213_v17 = vadd.f32 1.0, %v979_v18  ;;  %v1524_v54 = vmul.f32 %v1523_v40, %v5160_v3 }
 0x226   :  { %v1535_v57 = vmul.f32 %v1534_v50, %v5160_v3  ;;  %v2160_v63 = vmul.f32 2.1237322e-06, %v5210_v28  ;;  %v2171_v32 = vmul.f32 3.8918573e-05, %v5210_v28  ;;  %v2793_v31 = vor.u32 1.1754944e-38, %v2792_v36 }
 0x227   :  { %v3302_v39 = vclamps-f32 %v2155_v14, 1.0  ;;  %v2784_v29 = vmul.f32 %v3433_v30, %v2783_v51  ;;  %3434 = vrcp.f32 %v5213_v17  ;;  %v2798_v52 = vmul.f32 %v5205_v37, %v5205_v37 }
 0x228   :  { %v5229_v45 = vmul.f32 0.70710677, %v5197_v48  ;;  %v1525_v4 = vadd.f32 0.05243302, %v1524_v54  ;;  %v1536_v61 = vadd.f32 0.112945676, %v1535_v57  ;;  %vm986_vm12 = vweird.f32 %v5213_v17 }
 0x229   :  { %v2916_v2 = vadd.f32 1.0, %v3302_v39  ;;  %v2785_v46 = vadd.f32 %v3433_v30, %v2784_v29  ;;  %v969_v8 = vadd.f32 1.1283791, %v968_v35  ;;  %v2161_v43 = vadd.f32 0.00028619796, %v2160_v63  ;;  %v482_v29 = vpop.f32.mrf.mxu3 }
 0x22a   :  { %v2172_v9 = vadd.f32 0.001143296, %v2171_v32  ;;  %v1526_v25 = vmul.f32 %v1525_v4, %v5160_v3  ;;  %v1537_v33 = vmul.f32 %v1536_v61, %v5160_v3  ;;  %v5242_v16 = vmin.f32 %v2798_v52, 16.0 }
 0x22b   :  { %v2973_v7 = vmul.f32 %v2916_v2, %v5128_v20  ;;  %v2789_v13 = vsel %vm5221_vm9, %v3433_v30, %v2785_v46  ;;  %v2162_v23 = vmul.f32 %v2161_v43, %v5210_v28  ;;  %v970_v15 = vmul.f32 %v969_v8, %v5082_v10 }
 0x22c   :  { %v2794_v49 = vsel %vm5200_vm7, %v2793_v31, %v2789_v13  ;;  %v2173_v21 = vmul.f32 %v2172_v9, %v5210_v28  ;;  %v1527_v22 = vadd.f32 0.18741608, %v1526_v25  ;;  %v1538_v41 = vadd.f32 0.4994258, %v1537_v33 }
 0x22d   :  { %v3030_v26 = vpack.c.bf16 %v2973_v7, %v2973_v7  ;;  %v2795_v20 = vmul.f32 %v2794_v49, %v2770_v6  ;;  %v3435_v53 = vpop.eup %3434  ;;  %v2163_v36 = vadd.f32 0.0036580483, %v2162_v23  ;;  %v2800_v42 = vmul.f32 2.1237322e-06, %v5242_v16 }
 0x22e   :  { %v2174_v12 = vadd.f32 0.014752088, %v2173_v21  ;;  %v982_v56 = vmul.f32 %v3435_v53, %v5213_v17  ;;  %v990_v27 = vand.u32 2147483647, %v5213_v17  ;;  %v992_v6 = vand.u32 2147483648, %v5213_v17  ;;  %v400_v17 = vpop.f32.mrf.mxu1 }
 0x22f   :  { %3088 = vst.msk [vmem:[%s5967_s3 + $0x98] sm:$0xf] %vm3049_vm10, %v3030_v26  ;;  %v3318_v30 = vclamps-f32 %v2795_v20, 1.0  ;;  %v1539_v55 = vmul.f32 %v1538_v41, %v5160_v3  ;;  %v2164_v10 = vmul.f32 %v2163_v36, %v5210_v28  ;;  %v2801_v0 = vadd.f32 0.00028619796, %v2800_v42 }
 0x230   :  { %v2175_v24 = vmul.f32 %v2174_v12, %v5210_v28  ;;  %v983_v11 = vsub.f32 1.0, %v982_v56  ;;  %v1528_v18 = vmul.f32 %v1527_v22, %v5160_v3  ;;  %v2811_v40 = vmul.f32 3.8918573e-05, %v5242_v16 }
 0x231   :  { %v2932_v59 = vadd.f32 1.0, %v3318_v30  ;;  %v5258_v50 = vadd.f32 1.0, %v1539_v55  ;;  %v2165_v14 = vadd.f32 0.05243302, %v2164_v10  ;;  %v2802_v35 = vmul.f32 %v2801_v0, %v5242_v16  ;;  %v440_v30 = vpop.f32.mrf.mxu2 }
 0x232   :  { %v2176_v51 = vadd.f32 0.112945676, %v2175_v24  ;;  %v984_v57 = vmul.f32 %v3435_v53, %v983_v11  ;;  %vm987_vm11 = vweird.f32 %v3435_v53  ;;  %v2812_v39 = vadd.f32 0.001143296, %v2811_v40 }
 0x233   :  { %v2989_v54 = vmul.f32 %v2932_v59, %v5132_v60  ;;  %v993_v63 = vor.u32 1.1754944e-38, %v992_v6  ;;  %3436 = vrcp.f32 %v5258_v50  ;;  %v998_v3 = vmul.f32 %v5229_v45, %v5229_v45  ;;  %vm988_vm13 = vmor %vm986_vm12, %vm987_vm11 }
 0x234   :  { %v985_v58 = vadd.f32 %v3435_v53, %v984_v57  ;;  %v2166_v31 = vmul.f32 %v2165_v14, %v5210_v28  ;;  %v2177_v52 = vmul.f32 %v2176_v51, %v5210_v28  ;;  %v1529_v60 = vadd.f32 1.1283791, %v1528_v18 }
 0x235   :  { %v3046_v32 = vpack.c.bf16 %v2989_v54, %v2989_v54  ;;  %v1550_v2 = vand.u32 2147483647, %v5258_v50  ;;  %v2803_v46 = vadd.f32 0.0036580483, %v2802_v35  ;;  %v2813_v4 = vmul.f32 %v2812_v39, %v5242_v16 }
 0x236   :  { %v989_v61 = vsel %vm988_vm13, %v3435_v53, %v985_v58  ;;  %vm991_vm14 = vcmp.eq.f32.partialorder %v990_v27, 8.507059e+37  ;;  %v1552_v8 = vand.u32 2147483648, %v5258_v50  ;;  %v2178_v43 = vadd.f32 0.4994258, %v2177_v52 }
 0x237   :  { %3104 = vst.msk [vmem:[%s5967_s3 + $0xd8] sm:$0xf] %vm3049_vm10, %v3046_v32  ;;  %v994_v9 = vsel %vm991_vm14, %v993_v63, %v989_v61  ;;  %v2167_v7 = vadd.f32 0.18741608, %v2166_v31  ;;  %v2804_v13 = vmul.f32 %v2803_v46, %v5242_v16  ;;  %v2814_v25 = vadd.f32 0.014752088, %v2813_v4 }
 0x238   :  { %v995_v33 = vmul.f32 %v994_v9, %v970_v15  ;;  %v2179_v49 = vmul.f32 %v2178_v43, %v5210_v28  ;;  %v5277_v23 = vmin.f32 %v998_v3, 16.0  ;;  %v5280_v21 = vadd.f32 %v5153_v19, %v400_v17 }
 0x239   :  { %v3437_v26 = vpop.eup %3436  ;;  %v1530_v20 = vmul.f32 %v1529_v60, %v5136_v62  ;;  %v5284_v22 = vmul.f32 0.5, %v5177_v5  ;;  %v2805_v41 = vadd.f32 0.05243302, %v2804_v13  ;;  %v2815_v53 = vmul.f32 %v2814_v25, %v5242_v16 }
 0x23a   :  { %v3273_v36 = vclamps-f32 %v995_v33, 1.0  ;;  %v1542_v12 = vmul.f32 %v3437_v26, %v5258_v50  ;;  %vm5288_vm15 = vcmp.eq.f32.partialorder %v1550_v2, 8.507059e+37  ;;  %v1553_v42 = vor.u32 1.1754944e-38, %v1552_v8 }
 0x23b   :  { %v2168_v56 = vmul.f32 %v2167_v7, %v5210_v28  ;;  %v5293_v27 = vadd.f32 1.0, %v2179_v49  ;;  %v2816_v62 = vadd.f32 0.112945676, %v2815_v53  ;;  %v1000_v5 = vmul.f32 2.1237322e-06, %v5277_v23 }
 0x23c   :  { %v2887_v6 = vadd.f32 1.0, %v3273_v36  ;;  %v1543_v55 = vsub.f32 1.0, %v1542_v12  ;;  %v2806_v10 = vmul.f32 %v2805_v41, %v5242_v16  ;;  %v1011_v24 = vmul.f32 3.8918573e-05, %v5277_v23 }
 0x23d   :  { %3438 = vrcp.f32 %v5293_v27  ;;  %v5300_v0 = vmul.f32 0.5, %v5197_v48  ;;  %v5303_v59 = vmul.f32 0.70710677, %v5280_v21  ;;  %v5306_v28 = vadd.f32 %v5153_v19, %v440_v30 }
 0x23e   :  { %v2944_v11 = vmul.f32 %v2887_v6, %v5148_v1  ;;  %v1544_v18 = vmul.f32 %v3437_v26, %v1543_v55  ;;  %vm1547_vm0 = vweird.f32 %v3437_v26  ;;  %v2817_v40 = vmul.f32 %v2816_v62, %v5242_v16 }
 0x23f   :  { %vm1546_vm1 = vweird.f32 %v5258_v50  ;;  %v2169_v14 = vadd.f32 1.1283791, %v2168_v56  ;;  %v1001_v51 = vadd.f32 0.00028619796, %v1000_v5  ;;  %v1012_v35 = vadd.f32 0.001143296, %v1011_v24 }
 0x240   :  { %v3001_v54 = vpack.c.bf16 %v2944_v11, %v2944_v11  ;;  %v1545_v48 = vadd.f32 %v3437_v26, %v1544_v18  ;;  %v2807_v57 = vadd.f32 0.18741608, %v2806_v10  ;;  %v2818_v39 = vadd.f32 0.4994258, %v2817_v40  ;;  %vm1548_vm2 = vmor %vm1546_vm1, %vm1547_vm0 }
 0x241   :  { %v2190_v29 = vand.u32 2147483647, %v5293_v27  ;;  %v1002_v63 = vmul.f32 %v1001_v51, %v5277_v23  ;;  %v1013_v1 = vmul.f32 %v1012_v35, %v5277_v23  ;;  %v1558_v3 = vmul.f32 %v5303_v59, %v5303_v59 }
 0x242   :  { %3059 = vst.msk [vmem:[%s5967_s3 + $0x24] sm:$0xf] %vm3049_vm10, %v3001_v54  ;;  %v1549_v50 = vsel %vm1548_vm2, %v3437_v26, %v1545_v48  ;;  %v2192_v32 = vand.u32 2147483648, %v5293_v27  ;;  %v2819_v58 = vmul.f32 %v2818_v39, %v5242_v16  ;;  %v5323_v31 = vmul.f32 0.70710677, %v5306_v28 }
 0x243   :  { %v3439_v52 = vpop.eup %3438  ;;  %v1554_v60 = vsel %vm5288_vm15, %v1553_v42, %v1549_v50  ;;  %v1003_v2 = vadd.f32 0.0036580483, %v1002_v63  ;;  %v1014_v46 = vadd.f32 0.014752088, %v1013_v1  ;;  %v5327_v4 = vmin.f32 %v1558_v3, 16.0 }
 0x244   :  { %v1555_v17 = vmul.f32 %v1554_v60, %v1530_v20  ;;  %v2170_v61 = vmul.f32 %v2169_v14, %v5184_v47  ;;  %v2182_v8 = vmul.f32 %v3439_v52, %v5293_v27  ;;  %v2808_v43 = vmul.f32 %v2807_v57, %v5242_v16 }
 0x245   :  { %v2820_v9 = vadd.f32 1.0, %v2819_v58  ;;  %v1004_v7 = vmul.f32 %v1003_v2, %v5277_v23  ;;  %v1015_v13 = vmul.f32 %v1014_v46, %v5277_v23  ;;  %v1560_v25 = vmul.f32 2.1237322e-06, %v5327_v4 }
 0x246   :  { %v3287_v33 = vclamps-f32 %v1555_v17, 1.0  ;;  %v2183_v49 = vsub.f32 1.0, %v2182_v8  ;;  %vm5335_vm3 = vcmp.eq.f32.partialorder %v2190_v29, 8.507059e+37  ;;  %v1571_v20 = vmul.f32 3.8918573e-05, %v5327_v4 }
 0x247   :  { %vm2187_vm4 = vweird.f32 %v3439_v52  ;;  %v2193_v47 = vor.u32 1.1754944e-38, %v2192_v32  ;;  %3440 = vrcp.f32 %v2820_v9  ;;  %v2198_v16 = vmul.f32 %v5323_v31, %v5323_v31 }
 0x248   :  { %v2901_v41 = vadd.f32 1.0, %v3287_v33  ;;  %v2184_v53 = vmul.f32 %v3439_v52, %v2183_v49  ;;  %v1005_v36 = vadd.f32 0.05243302, %v1004_v7  ;;  %v1016_v12 = vadd.f32 0.112945676, %v1015_v13 }
 0x249   :  { %vm2186_vm5 = vweird.f32 %v5293_v27  ;;  %v2809_v15 = vadd.f32 1.1283791, %v2808_v43  ;;  %v1561_v42 = vadd.f32 0.00028619796, %v1560_v25  ;;  %v1572_v30 = vadd.f32 0.001143296, %v1571_v20 }
 0x24a   :  { %v2958_v56 = vmul.f32 %v2901_v41, %v5158_v34  ;;  %v2185_v62 = vadd.f32 %v3439_v52, %v2184_v53  ;;  %v1006_v5 = vmul.f32 %v1005_v36, %v5277_v23  ;;  %v1017_v6 = vmul.f32 %v1016_v12, %v5277_v23  ;;  %vm2188_vm6 = vmor %vm2186_vm5, %vm2187_vm4 }
 0x24b   :  { %vm2826_vm7 = vweird.f32 %v2820_v9  ;;  %v1562_v55 = vmul.f32 %v1561_v42, %v5327_v4  ;;  %v1573_v10 = vmul.f32 %v1572_v30, %v5327_v4  ;;  %v5349_v24 = vmin.f32 %v2198_v16, 16.0 }
 0x24c   :  { %v3015_v27 = vpack.c.bf16 %v2958_v56, %v2958_v56  ;;  %v2189_v11 = vsel %vm2188_vm6, %v3439_v52, %v2185_v62  ;;  %v2830_v18 = vand.u32 2147483647, %v2820_v9  ;;  %v1018_v40 = vadd.f32 0.4994258, %v1017_v6 }
 0x24d   :  { %v3441_v14 = vpop.eup %3440  ;;  %v2194_v34 = vsel %vm5335_vm3, %v2193_v47, %v2189_v11  ;;  %v1563_v51 = vadd.f32 0.0036580483, %v1562_v55  ;;  %v1574_v35 = vadd.f32 0.014752088, %v1573_v10  ;;  %v2200_v54 = vmul.f32 2.1237322e-06, %v5349_v24 }
 0x24e   :  { %3073 = vst.msk [vmem:[%s5967_s3 + $0x5c] sm:$0xf] %vm3049_vm10, %v3015_v27  ;;  %v2195_v48 = vmul.f32 %v2194_v34, %v2170_v61  ;;  %v2822_v57 = vmul.f32 %v3441_v14, %v2820_v9  ;;  %v2832_v39 = vand.u32 2147483648, %v2820_v9  ;;  %v1007_v29 = vadd.f32 0.18741608, %v1006_v5 }
 0x24f   :  { %v1019_v63 = vmul.f32 %v1018_v40, %v5277_v23  ;;  %v1564_v1 = vmul.f32 %v1563_v51, %v5327_v4  ;;  %v1575_v3 = vmul.f32 %v1574_v35, %v5327_v4  ;;  %v2201_v50 = vadd.f32 0.00028619796, %v2200_v54  ;;  %v402_v35 = vpop.f32.mrf.mxu1 }
 0x250   :  { %v3303_v32 = vclamps-f32 %v2195_v48, 1.0  ;;  %v2823_v58 = vsub.f32 1.0, %v2822_v57  ;;  %vm2827_vm8 = vweird.f32 %v3441_v14  ;;  %v2211_v52 = vmul.f32 3.8918573e-05, %v5349_v24 }
 0x251   :  { %v5362_v60 = vadd.f32 1.0, %v1019_v63  ;;  %v1565_v2 = vadd.f32 0.05243302, %v1564_v1  ;;  %v1576_v46 = vadd.f32 0.112945676, %v1575_v3  ;;  %v2202_v17 = vmul.f32 %v2201_v50, %v5349_v24  ;;  %vm5370_vm11 = vmor %vm2826_vm7, %vm2827_vm8 }
 0x252   :  { %v2917_v61 = vadd.f32 1.0, %v3303_v32  ;;  %v2824_v8 = vmul.f32 %v3441_v14, %v2823_v58  ;;  %vm5365_vm9 = vcmp.eq.f32.partialorder %v2830_v18, 8.507059e+37  ;;  %v2212_v7 = vadd.f32 0.001143296, %v2211_v52 }
 0x253   :  { %v2833_v25 = vor.u32 1.1754944e-38, %v2832_v39  ;;  %v1008_v33 = vmul.f32 %v1007_v29, %v5277_v23  ;;  %3442 = vrcp.f32 %v5362_v60  ;;  %v5378_v49 = vadd.f32 %v5153_v19, %v5236_v44 }
 0x254   :  { %v2974_v26 = vmul.f32 %v2917_v61, %v5174_v38  ;;  %v2825_v20 = vadd.f32 %v3441_v14, %v2824_v8  ;;  %v1566_v47 = vmul.f32 %v1565_v2, %v5327_v4  ;;  %v1577_v9 = vmul.f32 %v1576_v46, %v5327_v4 }
 0x255   :  { %v2810_v16 = vmul.f32 %v2809_v15, %v5205_v37  ;;  %v5385_v41 = vmul.f32 0.5, %v5280_v21  ;;  %v2203_v53 = vadd.f32 0.0036580483, %v2202_v17  ;;  %v2213_v23 = vmul.f32 %v2212_v7, %v5349_v24  ;;  %v367_v37 = vpop.f32.mrf.mxu0 }
 0x256   :  { %v3031_v36 = vpack.c.bf16 %v2974_v26, %v2974_v26  ;;  %v2829_v44 = vsel %vm5370_vm11, %v3441_v14, %v2825_v20  ;;  %v1567_v12 = vadd.f32 0.18741608, %v1566_v47  ;;  %v1578_v42 = vadd.f32 0.4994258, %v1577_v9 }
 0x257   :  { %v2834_v38 = vsel %vm5365_vm9, %v2833_v25, %v2829_v44  ;;  %v1009_v30 = vadd.f32 1.1283791, %v1008_v33  ;;  %v2204_v56 = vmul.f32 %v2203_v53, %v5349_v24  ;;  %v2214_v62 = vadd.f32 0.014752088, %v2213_v23 }
 0x258   :  { %3089 = vst.msk [vmem:[%s5967_s3 + $0x9c] sm:$0xf] %vm3049_vm10, %v3031_v36  ;;  %v2835_v21 = vmul.f32 %v2834_v38, %v2810_v16  ;;  %v1568_v15 = vmul.f32 %v1567_v12, %v5327_v4  ;;  %v1579_v5 = vmul.f32 %v1578_v42, %v5327_v4  ;;  %v5400_v6 = vmul.f32 0.70710677, %v5378_v49 }
 0x259   :  { %v3443_v55 = vpop.eup %3442  ;;  %v1030_v10 = vand.u32 2147483647, %v5362_v60  ;;  %v1032_v27 = vand.u32 2147483648, %v5362_v60  ;;  %v2205_v11 = vadd.f32 0.05243302, %v2204_v56  ;;  %v2215_v18 = vmul.f32 %v2214_v62, %v5349_v24 }
 0x25a   :  { %v3319_v40 = vclamps-f32 %v2835_v21, 1.0  ;;  %v1022_v14 = vmul.f32 %v3443_v55, %v5362_v60  ;;  %v1569_v34 = vadd.f32 1.1283791, %v1568_v15  ;;  %v5407_v51 = vadd.f32 %v5153_v19, %v367_v37 }
 0x25b   :  { %v5409_v4 = vadd.f32 1.0, %v1579_v5  ;;  %v2206_v54 = vmul.f32 %v2205_v11, %v5349_v24  ;;  %v2216_v48 = vadd.f32 0.112945676, %v2215_v18  ;;  %v2838_v57 = vmul.f32 %v5400_v6, %v5400_v6 }
 0x25c   :  { %v2933_v39 = vadd.f32 1.0, %v3319_v40  ;;  %v1010_v29 = vmul.f32 %v1009_v30, %v5229_v45  ;;  %v1023_v63 = vsub.f32 1.0, %v1022_v14  ;;  %vm1026_vm12 = vweird.f32 %v5362_v60 }
 0x25d   :  { %vm1027_vm13 = vweird.f32 %v3443_v55  ;;  %vm5416_vm14 = vcmp.eq.f32.partialorder %v1030_v10, 8.507059e+37  ;;  %3444 = vrcp.f32 %v5409_v4  ;;  %v5422_v3 = vadd.f32 %v5153_v19, %v402_v35 }
 0x25e   :  { %v2990_v50 = vmul.f32 %v2933_v39, %v5284_v22  ;;  %v1024_v32 = vmul.f32 %v3443_v55, %v1023_v63  ;;  %v2207_v58 = vadd.f32 0.18741608, %v2206_v54  ;;  %v2217_v52 = vmul.f32 %v2216_v48, %v5349_v24  ;;  %vm1028_vm15 = vmor %vm1026_vm12, %vm1027_vm13 }
 0x25f   :  { %v1033_v45 = vor.u32 1.1754944e-38, %v1032_v27  ;;  %v5427_v2 = vmul.f32 %v1569_v34, %v5303_v59  ;;  %v5429_v46 = vmin.f32 %v2838_v57, 16.0  ;;  %v5432_v17 = vmul.f32 0.70710677, %v5407_v51 }
 0x260   :  { %v3047_v61 = vpack.c.bf16 %v2990_v50, %v2990_v50  ;;  %v1025_v8 = vadd.f32 %v3443_v55, %v1024_v32  ;;  %v2208_v43 = vmul.f32 %v2207_v58, %v5349_v24  ;;  %v2218_v7 = vadd.f32 0.4994258, %v2217_v52 }
 0x261   :  { %v1590_v22 = vand.u32 2147483647, %v5409_v4  ;;  %v2840_v13 = vmul.f32 2.1237322e-06, %v5429_v46  ;;  %v2851_v59 = vmul.f32 3.8918573e-05, %v5429_v46  ;;  %v1038_v25 = vmul.f32 %v5432_v17, %v5432_v17 }
 0x262   :  { %3105 = vst.msk [vmem:[%s5967_s3 + $0xdc] sm:$0xf] %vm3049_vm10, %v3047_v61  ;;  %v1029_v33 = vsel %vm1028_vm15, %v3443_v55, %v1025_v8  ;;  %v1592_v26 = vand.u32 2147483648, %v5409_v4  ;;  %v2219_v60 = vmul.f32 %v2218_v7, %v5349_v24  ;;  %v5450_v20 = vmul.f32 0.70710677, %v5422_v3 }
 0x263   :  { %v3445_v47 = vpop.eup %3444  ;;  %v1034_v9 = vsel %vm5416_vm14, %v1033_v45, %v1029_v33  ;;  %v2841_v16 = vadd.f32 0.00028619796, %v2840_v13  ;;  %v2852_v53 = vadd.f32 0.001143296, %v2851_v59  ;;  %v5454_v23 = vmin.f32 %v1038_v25, 16.0 }
 0x264   :  { %v1035_v36 = vmul.f32 %v1034_v9, %v1010_v29  ;;  %v1582_v44 = vmul.f32 %v3445_v47, %v5409_v4  ;;  %vm1586_vm0 = vweird.f32 %v5409_v4  ;;  %v2209_v12 = vadd.f32 1.1283791, %v2208_v43 }
 0x265   :  { %v5458_v42 = vadd.f32 1.0, %v2219_v60  ;;  %v2842_v24 = vmul.f32 %v2841_v16, %v5429_v46  ;;  %v2853_v38 = vmul.f32 %v2852_v53, %v5429_v46  ;;  %v1040_v30 = vmul.f32 2.1237322e-06, %v5454_v23 }
 0x266   :  { %v3274_v56 = vclamps-f32 %v1035_v36, 1.0  ;;  %v1583_v62 = vsub.f32 1.0, %v1582_v44  ;;  %vm5463_vm1 = vcmp.eq.f32.partialorder %v1590_v22, 8.507059e+37  ;;  %v1051_v21 = vmul.f32 3.8918573e-05, %v5454_v23 }
 0x267   :  { %vm1587_vm2 = vweird.f32 %v3445_v47  ;;  %v1593_v15 = vor.u32 1.1754944e-38, %v1592_v26  ;;  %3446 = vrcp.f32 %v5458_v42  ;;  %v1598_v5 = vmul.f32 %v5450_v20, %v5450_v20 }
 0x268   :  { %v2888_v55 = vadd.f32 1.0, %v3274_v56  ;;  %v1584_v10 = vmul.f32 %v3445_v47, %v1583_v62  ;;  %v2843_v27 = vadd.f32 0.0036580483, %v2842_v24  ;;  %v2854_v11 = vadd.f32 0.014752088, %v2853_v38  ;;  %vm1588_vm3 = vmor %vm1586_vm0, %vm1587_vm2 }
 0x269   :  { %v5472_v18 = vmul.f32 %v2209_v12, %v5323_v31  ;;  %v2232_v40 = vand.u32 2147483648, %v5458_v42  ;;  %v1041_v14 = vadd.f32 0.00028619796, %v1040_v30  ;;  %v1052_v34 = vadd.f32 0.001143296, %v1051_v21 }
 0x26a   :  { %v2945_v35 = vmul.f32 %v2888_v55, %v5300_v0  ;;  %v1585_v54 = vadd.f32 %v3445_v47, %v1584_v10  ;;  %v2844_v48 = vmul.f32 %v2843_v27, %v5429_v46  ;;  %v2855_v57 = vmul.f32 %v2854_v11, %v5429_v46  ;;  %v442_v55 = vpop.f32.mrf.mxu2 }
 0x26b   :  { %v2230_v39 = vand.u32 2147483647, %v5458_v42  ;;  %v1042_v31 = vmul.f32 %v1041_v14, %v5454_v23  ;;  %v1053_v29 = vmul.f32 %v1052_v34, %v5454_v23  ;;  %v5484_v63 = vmin.f32 %v1598_v5, 16.0 }
 0x26c   :  { %v3002_v1 = vpack.c.bf16 %v2945_v35, %v2945_v35  ;;  %v1589_v50 = vsel %vm1588_vm3, %v3445_v47, %v1585_v54  ;;  %vm2226_vm4 = vweird.f32 %v5458_v42  ;;  %v2845_v0 = vadd.f32 0.05243302, %v2844_v48 }
 0x26d   :  { %v2856_v32 = vadd.f32 0.112945676, %v2855_v57  ;;  %v3447_v58 = vpop.eup %3446  ;;  %v1594_v52 = vsel %vm5463_vm1, %v1593_v15, %v1589_v50  ;;  %v1043_v4 = vadd.f32 0.0036580483, %v1042_v31  ;;  %v1054_v45 = vadd.f32 0.014752088, %v1053_v29 }
 0x26e   :  { %v1600_v61 = vmul.f32 2.1237322e-06, %v5484_v63  ;;  %3060 = vst.msk [vmem:[%s5967_s3 + $0x28] sm:$0xf] %vm3049_vm10, %v3002_v1  ;;  %v1595_v8 = vmul.f32 %v1594_v52, %v5427_v2  ;;  %v2222_v43 = vmul.f32 %v3447_v58, %v5458_v42  ;;  %v2233_v7 = vor.u32 1.1754944e-38, %v2232_v40 }
 0x26f   :  { %v2846_v22 = vmul.f32 %v2845_v0, %v5429_v46  ;;  %v2857_v13 = vmul.f32 %v2856_v32, %v5429_v46  ;;  %v1044_v59 = vmul.f32 %v1043_v4, %v5454_v23  ;;  %v1055_v25 = vmul.f32 %v1054_v45, %v5454_v23 }
 0x270   :  { %v1601_v33 = vadd.f32 0.00028619796, %v1600_v61  ;;  %v3288_v26 = vclamps-f32 %v1595_v8, 1.0  ;;  %v2223_v60 = vsub.f32 1.0, %v2222_v43  ;;  %v1611_v9 = vmul.f32 3.8918573e-05, %v5484_v63 }
 0x271   :  { %v2847_v47 = vadd.f32 0.18741608, %v2846_v22  ;;  %v2858_v16 = vadd.f32 0.4994258, %v2857_v13  ;;  %v1045_v53 = vadd.f32 0.05243302, %v1044_v59  ;;  %vm2227_vm5 = vweird.f32 %v3447_v58 }
 0x272   :  { %v1056_v2 = vadd.f32 0.112945676, %v1055_v25  ;;  %v1602_v36 = vmul.f32 %v1601_v33, %v5484_v63  ;;  %v2902_v44 = vadd.f32 1.0, %v3288_v26  ;;  %v2224_v12 = vmul.f32 %v3447_v58, %v2223_v60  ;;  %vm2228_vm6 = vmor %vm2226_vm4, %vm2227_vm5 }
 0x273   :  { %v1612_v24 = vadd.f32 0.001143296, %v1611_v9  ;;  %v2859_v38 = vmul.f32 %v2858_v16, %v5429_v46  ;;  %v1046_v30 = vmul.f32 %v1045_v53, %v5454_v23  ;;  %v2848_v15 = vmul.f32 %v2847_v47, %v5429_v46 }
 0x274   :  { %v1057_v56 = vmul.f32 %v1056_v2, %v5454_v23  ;;  %v1603_v62 = vadd.f32 0.0036580483, %v1602_v36  ;;  %v2959_v37 = vmul.f32 %v2902_v44, %v5385_v41  ;;  %v2225_v21 = vadd.f32 %v3447_v58, %v2224_v12 }
 0x275   :  { %v1613_v5 = vmul.f32 %v1612_v24, %v5484_v63  ;;  %v2860_v10 = vadd.f32 1.0, %v2859_v38  ;;  %v1047_v27 = vadd.f32 0.18741608, %v1046_v30  ;;  %vm2231_vm7 = vcmp.eq.f32.partialorder %v2230_v39, 8.507059e+37  ;;  %v405_v30 = vpop.f32.mrf.mxu1 }
 0x276   :  { %v1058_v11 = vadd.f32 0.4994258, %v1057_v56  ;;  %v1604_v40 = vmul.f32 %v1603_v62, %v5484_v63  ;;  %v3016_v14 = vpack.c.bf16 %v2959_v37, %v2959_v37  ;;  %v2229_v34 = vsel %vm2228_vm6, %v3447_v58, %v2225_v21 }
 0x277   :  { %v1614_v35 = vadd.f32 0.014752088, %v1613_v5  ;;  %v2234_v54 = vsel %vm2231_vm7, %v2233_v7, %v2229_v34  ;;  %3448 = vrcp.f32 %v2860_v10  ;;  %v5512_v41 = vadd.f32 %v5153_v19, %v442_v55 }
 0x278   :  { %3074 = vst.msk [vmem:[%s5967_s3 + $0x60] sm:$0xf] %vm3049_vm10, %v3016_v14  ;;  %v524_v46 = vmul.f32 0.5, %v5306_v28  ;;  %v2235_v42 = vmul.f32 %v2234_v54, %v5472_v18  ;;  %v2849_v48 = vadd.f32 1.1283791, %v2848_v15  ;;  %v1059_v57 = vmul.f32 %v1058_v11, %v5454_v23  ;;  %v370_v28 = vpop.f32.mrf.mxu0  ;;  %v445_v15 = vpop.f32.mrf.mxu2 }
 0x279   :  { %v5522_v39 = vmul.f32 0.5, %v5378_v49  ;;  %v1048_v31 = vmul.f32 %v1047_v27, %v5454_v23  ;;  %v1605_v29 = vadd.f32 0.05243302, %v1604_v40  ;;  %v1615_v1 = vmul.f32 %v1614_v35, %v5484_v63 }
 0x27a   :  { %v3304_v50 = vclamps-f32 %v2235_v42, 1.0  ;;  %v2870_v0 = vand.u32 2147483647, %v2860_v10  ;;  %v5527_v32 = vmul.f32 0.5, %v5407_v51  ;;  %v5529_v58 = vadd.f32 1.0, %v1059_v57 }
 0x27b   :  { %v2872_v18 = vand.u32 2147483648, %v2860_v10  ;;  %v1606_v52 = vmul.f32 %v1605_v29, %v5484_v63  ;;  %v1616_v4 = vadd.f32 0.112945676, %v1615_v1  ;;  %v5533_v49 = vmul.f32 0.70710677, %v5512_v41 }
 0x27c   :  { %v2918_v45 = vadd.f32 1.0, %v3304_v50  ;;  %v2850_v23 = vmul.f32 %v2849_v48, %v5400_v6  ;;  %vm2866_vm8 = vweird.f32 %v2860_v10  ;;  %3450 = vrcp.f32 %v5529_v58 }
 0x27d   :  { %v3449_v61 = vpop.eup %3448  ;;  %v1049_v8 = vadd.f32 1.1283791, %v1048_v31  ;;  %v1607_v51 = vadd.f32 0.18741608, %v1606_v52  ;;  %v1617_v43 = vmul.f32 %v1616_v4, %v5484_v63  ;;  %v5539_v7 = vadd.f32 %v5153_v19, %v370_v28 }
 0x27e   :  { %v2975_v22 = vmul.f32 %v2918_v45, %v524_v46  ;;  %v2862_v13 = vmul.f32 %v3449_v61, %v2860_v10  ;;  %vm5541_vm9 = vcmp.eq.f32.partialorder %v2870_v0, 8.507059e+37  ;;  %v2238_v6 = vmul.f32 %v5533_v49, %v5533_v49 }
 0x27f   :  { %v2873_v25 = vor.u32 1.1754944e-38, %v2872_v18  ;;  %v1070_v33 = vand.u32 2147483647, %v5529_v58  ;;  %v1608_v26 = vmul.f32 %v1607_v51, %v5484_v63  ;;  %v1618_v60 = vadd.f32 0.4994258, %v1617_v43 }
 0x280   :  { %v3032_v47 = vpack.c.bf16 %v2975_v22, %v2975_v22  ;;  %v2863_v9 = vsub.f32 1.0, %v2862_v13  ;;  %vm2867_vm11 = vweird.f32 %v3449_v61  ;;  %v5549_v16 = vmin.f32 %v2238_v6, 16.0 }
 0x281   :  { %v1050_v53 = vmul.f32 %v1049_v8, %v5432_v17  ;;  %v1072_v2 = vand.u32 2147483648, %v5529_v58  ;;  %v1619_v36 = vmul.f32 %v1618_v60, %v5484_v63  ;;  %v5555_v44 = vmul.f32 0.70710677, %v5539_v7  ;;  %vm5565_vm13 = vmor %vm2866_vm8, %vm2867_vm11 }
 0x282   :  { %v3451_v12 = vpop.eup %3450  ;;  %3090 = vst.msk [vmem:[%s5967_s3 + $0xa0] sm:$0xf] %vm3049_vm10, %v3032_v47  ;;  %v2864_v24 = vmul.f32 %v3449_v61, %v2863_v9  ;;  %vm1066_vm12 = vweird.f32 %v5529_v58  ;;  %v2240_v38 = vmul.f32 2.1237322e-06, %v5549_v16  ;;  %v2251_v17 = vmul.f32 3.8918573e-05, %v5549_v16 }
 0x283   :  { %v1062_v56 = vmul.f32 %v3451_v12, %v5529_v58  ;;  %vm5570_vm14 = vcmp.eq.f32.partialorder %v1070_v33, 8.507059e+37  ;;  %v1609_v37 = vadd.f32 1.1283791, %v1608_v26  ;;  %v5574_v21 = vadd.f32 1.0, %v1619_v36 }
 0x284   :  { %v2865_v5 = vadd.f32 %v3449_v61, %v2864_v24  ;;  %v2241_v55 = vadd.f32 0.00028619796, %v2240_v38  ;;  %v2252_v27 = vadd.f32 0.001143296, %v2251_v17  ;;  %v1078_v10 = vmul.f32 %v5555_v44, %v5555_v44 }
 0x285   :  { %v1063_v11 = vsub.f32 1.0, %v1062_v56  ;;  %v1073_v40 = vor.u32 1.1754944e-38, %v1072_v2  ;;  %3452 = vrcp.f32 %v5574_v21  ;;  %v5580_v14 = vadd.f32 %v5153_v19, %v405_v30 }
 0x286   :  { %v2869_v34 = vsel %vm5565_vm13, %v3449_v61, %v2865_v5  ;;  %v2242_v35 = vmul.f32 %v2241_v55, %v5549_v16  ;;  %v2253_v54 = vmul.f32 %v2252_v27, %v5549_v16  ;;  %v5587_v46 = vadd.f32 %v5153_v19, %v445_v15 }
 0x287   :  { %v2874_v42 = vsel %vm5541_vm9, %v2873_v25, %v2869_v34  ;;  %v1064_v48 = vmul.f32 %v3451_v12, %v1063_v11  ;;  %vm1067_vm15 = vweird.f32 %v3451_v12  ;;  %v5591_v57 = vmin.f32 %v1078_v10, 16.0 }
 0x288   :  { %v2875_v31 = vmul.f32 %v2874_v42, %v2850_v23  ;;  %v1610_v29 = vmul.f32 %v1609_v37, %v5450_v20  ;;  %v2243_v1 = vadd.f32 0.0036580483, %v2242_v35  ;;  %v2254_v50 = vadd.f32 0.014752088, %v2253_v54  ;;  %vm1068_vm0 = vmor %vm1066_vm12, %vm1067_vm15 }
 0x289   :  { %v1065_v0 = vadd.f32 %v3451_v12, %v1064_v48  ;;  %v1630_v28 = vand.u32 2147483647, %v5574_v21  ;;  %v1080_v18 = vmul.f32 2.1237322e-06, %v5591_v57  ;;  %v1091_v19 = vmul.f32 3.8918573e-05, %v5591_v57 }
 0x28a   :  { %v3320_v52 = vclamps-f32 %v2875_v31, 1.0  ;;  %vm1626_vm1 = vweird.f32 %v5574_v21  ;;  %v2244_v4 = vmul.f32 %v2243_v1, %v5549_v16  ;;  %v2255_v45 = vmul.f32 %v2254_v50, %v5549_v16 }
 0x28b   :  { %v5603_v20 = vmul.f32 0.70710677, %v5580_v14  ;;  %v3453_v23 = vpop.eup %3452  ;;  %v1069_v61 = vsel %vm1068_vm0, %v3451_v12, %v1065_v0  ;;  %v1632_v8 = vand.u32 2147483648, %v5574_v21  ;;  %v1081_v51 = vadd.f32 0.00028619796, %v1080_v18 }
 0x28c   :  { %v1092_v43 = vadd.f32 0.001143296, %v1091_v19  ;;  %v2934_v22 = vadd.f32 1.0, %v3320_v52  ;;  %v1074_v58 = vsel %vm5570_vm14, %v1073_v40, %v1069_v61  ;;  %v1622_v13 = vmul.f32 %v3453_v23, %v5574_v21 }
 0x28d   :  { %vm1627_vm2 = vweird.f32 %v3453_v23  ;;  %v1075_v59 = vmul.f32 %v1074_v58, %v1050_v53  ;;  %v2245_v6 = vadd.f32 0.05243302, %v2244_v4  ;;  %v2256_v25 = vadd.f32 0.112945676, %v2255_v45 }
 0x28e   :  { %v1082_v33 = vmul.f32 %v1081_v51, %v5591_v57  ;;  %v2991_v26 = vmul.f32 %v2934_v22, %v5522_v39  ;;  %v1623_v60 = vsub.f32 1.0, %v1622_v13  ;;  %v1093_v47 = vmul.f32 %v1092_v43, %v5591_v57  ;;  %vm1628_vm4 = vmor %vm1626_vm1, %vm1627_vm2  ;;  %v372_v13 = vpop.f32.mrf.mxu0 }
 0x28f   :  { %v1638_v9 = vmul.f32 %v5603_v20, %v5603_v20  ;;  %v3275_v2 = vclamps-f32 %v1075_v59, 1.0  ;;  %v2246_v36 = vmul.f32 %v2245_v6, %v5549_v16  ;;  %v2257_v12 = vmul.f32 %v2256_v25, %v5549_v16 }
 0x290   :  { %v1083_v24 = vadd.f32 0.0036580483, %v1082_v33  ;;  %v3048_v38 = vpack.c.bf16 %v2991_v26, %v2991_v26  ;;  %v1624_v53 = vmul.f32 %v3453_v23, %v1623_v60  ;;  %v1094_v17 = vadd.f32 0.014752088, %v1093_v47  ;;  %v407_v26 = vpop.f32.mrf.mxu1 }
 0x291   :  { %v5616_v30 = vmin.f32 %v1638_v9, 16.0  ;;  %v2889_v63 = vadd.f32 1.0, %v3275_v2  ;;  %vm5618_vm3 = vcmp.eq.f32.partialorder %v1630_v28, 8.507059e+37  ;;  %v2258_v56 = vadd.f32 0.4994258, %v2257_v12 }
 0x292   :  { %v1084_v62 = vmul.f32 %v1083_v24, %v5591_v57  ;;  %3106 = vst.msk [vmem:[%s5967_s3 + $0xe0] sm:$0xf] %vm3049_vm10, %v3048_v38  ;;  %v1625_v37 = vadd.f32 %v3453_v23, %v1624_v53  ;;  %v1095_v15 = vmul.f32 %v1094_v17, %v5591_v57  ;;  %v1633_v10 = vor.u32 1.1754944e-38, %v1632_v8  ;;  %v5663_v24 = vld [vmem:[%s5965_s2] ss:$0 sm:$0xff] }
 0x293   :  { %v1640_v5 = vmul.f32 2.1237322e-06, %v5616_v30  ;;  %v1651_v55 = vmul.f32 3.8918573e-05, %v5616_v30  ;;  %v2946_v27 = vmul.f32 %v2889_v63, %v5527_v32  ;;  %v2259_v11 = vmul.f32 %v2258_v56, %v5549_v16 }
 0x294   :  { %v1085_v40 = vadd.f32 0.05243302, %v1084_v62  ;;  %v1629_v34 = vsel %vm1628_vm4, %v3453_v23, %v1625_v37  ;;  %v2247_v35 = vadd.f32 0.18741608, %v2246_v36  ;;  %v1096_v54 = vadd.f32 0.112945676, %v1095_v15 }
 0x295   :  { %v1641_v42 = vadd.f32 0.00028619796, %v1640_v5  ;;  %v3003_v48 = vpack.c.bf16 %v2946_v27, %v2946_v27  ;;  %v1634_v31 = vsel %vm5618_vm3, %v1633_v10, %v1629_v34  ;;  %v2260_v1 = vadd.f32 1.0, %v2259_v11 }
 0x296   :  { %v1652_v50 = vadd.f32 0.001143296, %v1651_v55  ;;  %v1635_v0 = vmul.f32 %v1634_v31, %v1610_v29  ;;  %v1086_v32 = vmul.f32 %v1085_v40, %v5591_v57  ;;  %v1097_v21 = vmul.f32 %v1096_v54, %v5591_v57 }
 0x297   :  { %v1642_v28 = vmul.f32 %v1641_v42, %v5616_v30  ;;  %3061 = vst.msk [vmem:[%s5967_s3 + $0x2c] sm:$0xf] %vm3049_vm10, %v3003_v48  ;;  %3454 = vrcp.f32 %v2260_v1  ;;  %v2248_v19 = vmul.f32 %v2247_v35, %v5549_v16  ;;  %v5647_v23 = vmul.f32 0.70710677, %v5587_v46 }
 0x298   :  { %v3289_v18 = vclamps-f32 %v1635_v0, 1.0  ;;  %v1098_v52 = vadd.f32 0.4994258, %v1097_v21  ;;  %v1087_v4 = vadd.f32 0.18741608, %v1086_v32  ;;  %v1653_v29 = vmul.f32 %v1652_v50, %v5616_v30 }
 0x299   :  { %v1643_v45 = vadd.f32 0.0036580483, %v1642_v28  ;;  %v509_v61 = vmul.f32 0.5, %v5422_v3  ;;  %v2270_v43 = vand.u32 2147483647, %v2260_v1  ;;  %v2278_v16 = vmul.f32 %v5647_v23, %v5647_v23 }
 0x29a   :  { %v2903_v8 = vadd.f32 1.0, %v3289_v18  ;;  %v1099_v51 = vmul.f32 %v1098_v52, %v5591_v57  ;;  %v1654_v58 = vadd.f32 0.014752088, %v1653_v29  ;;  %v2249_v6 = vadd.f32 1.1283791, %v2248_v19 }
 0x29b   :  { %v1644_v22 = vmul.f32 %v1643_v45, %v5616_v30  ;;  %v2272_v25 = vand.u32 2147483648, %v2260_v1  ;;  %v1088_v3 = vmul.f32 %v1087_v4, %v5591_v57  ;;  %v5658_v2 = vmin.f32 %v2278_v16, 16.0 }
 0x29c   :  { %v2960_v59 = vmul.f32 %v2903_v8, %v509_v61  ;;  %v5654_v33 = vadd.f32 1.0, %v1099_v51  ;;  %v1655_v9 = vmul.f32 %v1654_v58, %v5616_v30  ;;  %v5666_v38 = vadd.f32 %v5663_v24, %v372_v13 }
 0x29d   :  { %v3455_v60 = vpop.eup %3454  ;;  %v1645_v47 = vadd.f32 0.05243302, %v1644_v22  ;;  %vm5668_vm5 = vcmp.eq.f32.partialorder %v2270_v43, 8.507059e+37  ;;  %v5674_v57 = vadd.f32 %v5663_v24, %v407_v26  ;;  %v2273_v63 = vor.u32 1.1754944e-38, %v2272_v25 }
 0x29e   :  { %v3017_v36 = vpack.c.bf16 %v2960_v59, %v2960_v59  ;;  %v2262_v12 = vmul.f32 %v3455_v60, %v2260_v1  ;;  %3456 = vrcp.f32 %v5654_v33  ;;  %v1656_v56 = vadd.f32 0.112945676, %v1655_v9 }
 0x29f   :  { %v1646_v39 = vmul.f32 %v1645_v47, %v5616_v30  ;;  %v2250_v62 = vmul.f32 %v2249_v6, %v5533_v49  ;;  %v1089_v37 = vadd.f32 1.1283791, %v1088_v3  ;;  %v2280_v15 = vmul.f32 2.1237322e-06, %v5658_v2 }
 0x2a0   :  { %3075 = vst.msk [vmem:[%s5967_s3 + $0x64] sm:$0xf] %vm3049_vm10, %v3017_v36  ;;  %v2263_v17 = vsub.f32 1.0, %v2262_v12  ;;  %v2291_v5 = vmul.f32 3.8918573e-05, %v5658_v2  ;;  %vm2267_vm6 = vweird.f32 %v3455_v60  ;;  %v1657_v27 = vmul.f32 %v1656_v56, %v5616_v30 }
 0x2a1   :  { %v5686_v10 = vmul.f32 0.70710677, %v5666_v38  ;;  %vm2266_vm7 = vweird.f32 %v2260_v1  ;;  %v2281_v11 = vadd.f32 0.00028619796, %v2280_v15  ;;  %v5689_v34 = vmul.f32 0.70710677, %v5674_v57 }
 0x2a2   :  { %v2264_v55 = vmul.f32 %v3455_v60, %v2263_v17  ;;  %v2292_v40 = vadd.f32 0.001143296, %v2291_v5  ;;  %v1647_v49 = vadd.f32 0.18741608, %v1646_v39  ;;  %v1658_v54 = vadd.f32 0.4994258, %v1657_v27  ;;  %vm2268_vm8 = vmor %vm2266_vm7, %vm2267_vm6 }
 0x2a3   :  { %v1118_v42 = vmul.f32 %v5686_v10, %v5686_v10  ;;  %vm1106_vm9 = vweird.f32 %v5654_v33  ;;  %v1110_v31 = vand.u32 2147483647, %v5654_v33  ;;  %v2282_v50 = vmul.f32 %v2281_v11, %v5658_v2 }
 0x2a4   :  { %v2265_v35 = vadd.f32 %v3455_v60, %v2264_v55  ;;  %v3457_v48 = vpop.eup %3456  ;;  %v2293_v1 = vmul.f32 %v2292_v40, %v5658_v2  ;;  %v1112_v21 = vand.u32 2147483648, %v5654_v33  ;;  %v1678_v28 = vmul.f32 %v5689_v34, %v5689_v34 }
 0x2a5   :  { %v1102_v32 = vmul.f32 %v3457_v48, %v5654_v33  ;;  %v1659_v19 = vmul.f32 %v1658_v54, %v5616_v30  ;;  %v2283_v52 = vadd.f32 0.0036580483, %v2282_v50  ;;  %v1648_v61 = vmul.f32 %v1647_v49, %v5616_v30 }
 0x2a6   :  { %v2269_v0 = vsel %vm2268_vm8, %v3455_v60, %v2265_v35  ;;  %v2294_v4 = vadd.f32 0.014752088, %v2293_v1  ;;  %v5705_v8 = vmin.f32 %v1118_v42, 16.0  ;;  %vm1107_vm11 = vweird.f32 %v3457_v48 }
 0x2a7   :  { %v2274_v18 = vsel %vm5668_vm5, %v2273_v63, %v2269_v0  ;;  %v1103_v29 = vsub.f32 1.0, %v1102_v32  ;;  %v5707_v51 = vadd.f32 1.0, %v1659_v19  ;;  %v2284_v43 = vmul.f32 %v2283_v52, %v5658_v2  ;;  %vm1108_vm12 = vmor %vm1106_vm9, %vm1107_vm11 }
 0x2a8   :  { %v2275_v45 = vmul.f32 %v2274_v18, %v2250_v62  ;;  %v2295_v22 = vmul.f32 %v2294_v4, %v5658_v2  ;;  %v1120_v13 = vmul.f32 2.1237322e-06, %v5705_v8  ;;  %v1131_v59 = vmul.f32 3.8918573e-05, %v5705_v8  ;;  %v447_v18 = vpop.f32.mrf.mxu2 }
 0x2a9   :  { %v1104_v16 = vmul.f32 %v3457_v48, %v1103_v29  ;;  %v525_v6 = vmul.f32 0.5, %v5512_v41  ;;  %v1090_v25 = vmul.f32 %v1089_v37, %v5555_v44  ;;  %3458 = vrcp.f32 %v5707_v51 }
 0x2aa   :  { %v3305_v58 = vclamps-f32 %v2275_v45, 1.0  ;;  %v5716_v30 = vmin.f32 %v1678_v28, 16.0  ;;  %v2285_v3 = vadd.f32 0.05243302, %v2284_v43  ;;  %v2296_v47 = vadd.f32 0.112945676, %v2295_v22  ;;  %v410_v43 = vpop.f32.mrf.mxu1 }
 0x2ab   :  { %v1105_v60 = vadd.f32 %v3457_v48, %v1104_v16  ;;  %vm1111_vm13 = vcmp.eq.f32.partialorder %v1110_v31, 8.507059e+37  ;;  %v1113_v9 = vor.u32 1.1754944e-38, %v1112_v21  ;;  %v1121_v36 = vadd.f32 0.00028619796, %v1120_v13 }
 0x2ac   :  { %v2919_v26 = vadd.f32 1.0, %v3305_v58  ;;  %v1132_v12 = vadd.f32 0.001143296, %v1131_v59  ;;  %v1649_v17 = vadd.f32 1.1283791, %v1648_v61  ;;  %v2297_v44 = vmul.f32 %v2296_v47, %v5658_v2 }
 0x2ad   :  { %v1109_v41 = vsel %vm1108_vm12, %v3457_v48, %v1105_v60  ;;  %v1122_v39 = vmul.f32 %v1121_v36, %v5705_v8  ;;  %v1680_v62 = vmul.f32 2.1237322e-06, %v5716_v30  ;;  %v2286_v33 = vmul.f32 %v2285_v3, %v5658_v2 }
 0x2ae   :  { %v2976_v53 = vmul.f32 %v2919_v26, %v525_v6  ;;  %v1114_v63 = vsel %vm1111_vm13, %v1113_v9, %v1109_v41  ;;  %v1133_v56 = vmul.f32 %v1132_v12, %v5705_v8  ;;  %v2298_v5 = vadd.f32 0.4994258, %v2297_v44 }
 0x2af   :  { %v1115_v15 = vmul.f32 %v1114_v63, %v1090_v25  ;;  %v3459_v55 = vpop.eup %3458  ;;  %v1123_v27 = vadd.f32 0.0036580483, %v1122_v39  ;;  %v1681_v40 = vadd.f32 0.00028619796, %v1680_v62  ;;  %v496_v35 = vmul.f32 0.5, %v5539_v7 }
 0x2b0   :  { %v3033_v37 = vpack.c.bf16 %v2976_v53, %v2976_v53  ;;  %v1134_v11 = vadd.f32 0.014752088, %v1133_v56  ;;  %v1662_v54 = vmul.f32 %v3459_v55, %v5707_v51  ;;  %v1670_v42 = vand.u32 2147483647, %v5707_v51 }
 0x2b1   :  { %v3276_v49 = vclamps-f32 %v1115_v15, 1.0  ;;  %v2299_v48 = vmul.f32 %v2298_v5, %v5658_v2  ;;  %v1124_v31 = vmul.f32 %v1123_v27, %v5705_v8  ;;  %v1682_v1 = vmul.f32 %v1681_v40, %v5716_v30 }
 0x2b2   :  { %3091 = vst.msk [vmem:[%s5967_s3 + $0xa4] sm:$0xf] %vm3049_vm10, %v3033_v37  ;;  %v1135_v50 = vmul.f32 %v1134_v11, %v5705_v8  ;;  %v1663_v32 = vsub.f32 1.0, %v1662_v54  ;;  %v2287_v21 = vadd.f32 0.18741608, %v2286_v33  ;;  %v1672_v7 = vand.u32 2147483648, %v5707_v51 }
 0x2b3   :  { %v2890_v0 = vadd.f32 1.0, %v3276_v49  ;;  %v1691_v28 = vmul.f32 3.8918573e-05, %v5716_v30  ;;  %v5739_v19 = vadd.f32 1.0, %v2299_v48  ;;  %v1125_v52 = vadd.f32 0.05243302, %v1124_v31 }
 0x2b4   :  { %v1136_v4 = vadd.f32 0.112945676, %v1135_v50  ;;  %v1664_v29 = vmul.f32 %v3459_v55, %v1663_v32  ;;  %vm1667_vm14 = vweird.f32 %v3459_v55  ;;  %v1683_v61 = vadd.f32 0.0036580483, %v1682_v1 }
 0x2b5   :  { %v2947_v45 = vmul.f32 %v2890_v0, %v496_v35  ;;  %v1650_v22 = vmul.f32 %v1649_v17, %v5603_v20  ;;  %vm1666_vm15 = vweird.f32 %v5707_v51  ;;  %3460 = vrcp.f32 %v5739_v19 }
 0x2b6   :  { %v5745_v58 = vadd.f32 %v5663_v24, %v447_v18  ;;  %v1665_v13 = vadd.f32 %v3459_v55, %v1664_v29  ;;  %v1126_v59 = vmul.f32 %v1125_v52, %v5705_v8  ;;  %v1137_v6 = vmul.f32 %v1136_v4, %v5705_v8  ;;  %vm1668_vm0 = vmor %vm1666_vm15, %vm1667_vm14 }
 0x2b7   :  { %v3004_v16 = vpack.c.bf16 %v2947_v45, %v2947_v45  ;;  %v1673_v25 = vor.u32 1.1754944e-38, %v1672_v7  ;;  %v1684_v26 = vmul.f32 %v1683_v61, %v5716_v30  ;;  %v1692_v60 = vadd.f32 0.001143296, %v1691_v28 }
 0x2b8   :  { %v5751_v20 = vadd.f32 %v5663_v24, %v410_v43  ;;  %v1669_v51 = vsel %vm1668_vm0, %v3459_v55, %v1665_v13  ;;  %vm1671_vm1 = vcmp.eq.f32.partialorder %v1670_v42, 8.507059e+37  ;;  %v2288_v3 = vmul.f32 %v2287_v21, %v5658_v2  ;;  %v450_v55 = vpop.f32.mrf.mxu2 }
 0x2b9   :  { %3062 = vst.msk [vmem:[%s5967_s3 + $0x30] sm:$0xf] %vm3049_vm10, %v3004_v16  ;;  %v1138_v47 = vadd.f32 0.4994258, %v1137_v6  ;;  %v1674_v9 = vsel %vm1671_vm1, %v1673_v25, %v1669_v51  ;;  %v1127_v36 = vadd.f32 0.18741608, %v1126_v59  ;;  %v1693_v12 = vmul.f32 %v1692_v60, %v5716_v30 }
 0x2ba   :  { %v5760_v53 = vmul.f32 0.70710677, %v5745_v58  ;;  %v510_v41 = vmul.f32 0.5, %v5580_v14  ;;  %v1675_v17 = vmul.f32 %v1674_v9, %v1650_v22  ;;  %v1685_v63 = vadd.f32 0.05243302, %v1684_v26 }
 0x2bb   :  { %v1139_v44 = vmul.f32 %v1138_v47, %v5705_v8  ;;  %v3461_v39 = vpop.eup %3460  ;;  %v2310_v56 = vand.u32 2147483647, %v5739_v19  ;;  %v1694_v62 = vadd.f32 0.014752088, %v1693_v12  ;;  %v5768_v37 = vmul.f32 0.70710677, %v5751_v20 }
 0x2bc   :  { %v2318_v2 = vmul.f32 %v5760_v53, %v5760_v53  ;;  %v3290_v15 = vclamps-f32 %v1675_v17, 1.0  ;;  %v5771_v33 = vmul.f32 0.5, %v5587_v46  ;;  %v2289_v5 = vadd.f32 1.1283791, %v2288_v3 }
 0x2bd   :  { %v2302_v14 = vmul.f32 %v3461_v39, %v5739_v19  ;;  %v1128_v27 = vmul.f32 %v1127_v36, %v5705_v8  ;;  %v5775_v11 = vadd.f32 1.0, %v1139_v44  ;;  %v1695_v40 = vmul.f32 %v1694_v62, %v5716_v30 }
 0x2be   :  { %v5778_v35 = vmin.f32 %v2318_v2, 16.0  ;;  %v2904_v49 = vadd.f32 1.0, %v3290_v15  ;;  %v2312_v42 = vand.u32 2147483648, %v5739_v19  ;;  %v1686_v48 = vmul.f32 %v1685_v63, %v5716_v30 }
 0x2bf   :  { %v2303_v54 = vsub.f32 1.0, %v2302_v14  ;;  %vm5782_vm2 = vcmp.eq.f32.partialorder %v2310_v56, 8.507059e+37  ;;  %3462 = vrcp.f32 %v5775_v11  ;;  %v1718_v8 = vmul.f32 %v5768_v37, %v5768_v37 }
 0x2c0   :  { %v5790_v31 = vadd.f32 %v5663_v24, %v450_v55  ;;  %v2961_v50 = vmul.f32 %v2904_v49, %v510_v41  ;;  %vm2307_vm3 = vweird.f32 %v3461_v39  ;;  %v1696_v0 = vadd.f32 0.112945676, %v1695_v40 }
 0x2c1   :  { %v2304_v1 = vmul.f32 %v3461_v39, %v2303_v54  ;;  %vm2306_vm4 = vweird.f32 %v5739_v19  ;;  %v1129_v32 = vadd.f32 1.1283791, %v1128_v27  ;;  %v2320_v21 = vmul.f32 2.1237322e-06, %v5778_v35 }
 0x2c2   :  { %v2331_v28 = vmul.f32 3.8918573e-05, %v5778_v35  ;;  %v3018_v18 = vpack.c.bf16 %v2961_v50, %v2961_v50  ;;  %v1687_v52 = vadd.f32 0.18741608, %v1686_v48  ;;  %v1697_v4 = vmul.f32 %v1696_v0, %v5716_v30  ;;  %vm2308_vm5 = vmor %vm2306_vm4, %vm2307_vm3 }
 0x2c3   :  { %v2305_v7 = vadd.f32 %v3461_v39, %v2304_v1  ;;  %v2313_v45 = vor.u32 1.1754944e-38, %v2312_v42  ;;  %v2321_v29 = vadd.f32 0.00028619796, %v2320_v21  ;;  %v5796_v43 = vmin.f32 %v1718_v8, 16.0 }
 0x2c4   :  { %v2332_v61 = vadd.f32 0.001143296, %v2331_v28  ;;  %3076 = vst.msk [vmem:[%s5967_s3 + $0x68] sm:$0xf] %vm3049_vm10, %v3018_v18  ;;  %v2290_v19 = vmul.f32 %v2289_v5, %v5647_v23  ;;  %v1698_v16 = vadd.f32 0.4994258, %v1697_v4  ;;  %vm1146_vm7 = vweird.f32 %v5775_v11 }
 0x2c5   :  { %v2309_v22 = vsel %vm2308_vm5, %v3461_v39, %v2305_v7  ;;  %v5804_v13 = vmul.f32 0.70710677, %v5790_v31  ;;  %v3463_v59 = vpop.eup %3462  ;;  %v2322_v25 = vmul.f32 %v2321_v29, %v5778_v35  ;;  %v1720_v60 = vmul.f32 2.1237322e-06, %v5796_v43 }
 0x2c6   :  { %v2314_v6 = vsel %vm5782_vm2, %v2313_v45, %v2309_v22  ;;  %v2333_v26 = vmul.f32 %v2332_v61, %v5778_v35  ;;  %v1142_v3 = vmul.f32 %v3463_v59, %v5775_v11  ;;  %v1150_v23 = vand.u32 2147483647, %v5775_v11 }
 0x2c7   :  { %v2315_v51 = vmul.f32 %v2314_v6, %v2290_v19  ;;  %v1699_v47 = vmul.f32 %v1698_v16, %v5716_v30  ;;  %v2323_v9 = vadd.f32 0.0036580483, %v2322_v25  ;;  %v1721_v12 = vadd.f32 0.00028619796, %v1720_v60 }
 0x2c8   :  { %v2334_v36 = vadd.f32 0.014752088, %v2333_v26  ;;  %v2358_v41 = vmul.f32 %v5804_v13, %v5804_v13  ;;  %v1143_v44 = vsub.f32 1.0, %v1142_v3  ;;  %v1152_v63 = vand.u32 2147483648, %v5775_v11 }
 0x2c9   :  { %v3306_v17 = vclamps-f32 %v2315_v51, 1.0  ;;  %v5817_v39 = vadd.f32 1.0, %v1699_v47  ;;  %vm1147_vm6 = vweird.f32 %v3463_v59  ;;  %v2324_v56 = vmul.f32 %v2323_v9, %v5778_v35 }
 0x2ca   :  { %v2335_v62 = vmul.f32 %v2334_v36, %v5778_v35  ;;  %v1731_v2 = vmul.f32 3.8918573e-05, %v5796_v43  ;;  %v1144_v5 = vmul.f32 %v3463_v59, %v1143_v44  ;;  %v1722_v14 = vmul.f32 %v1721_v12, %v5796_v43  ;;  %vm1148_vm8 = vmor %vm1146_vm7, %vm1147_vm6 }
 0x2cb   :  { %v2920_v15 = vadd.f32 1.0, %v3306_v17  ;;  %3464 = vrcp.f32 %v5817_v39  ;;  %v1688_v55 = vmul.f32 %v1687_v52, %v5716_v30  ;;  %v5826_v27 = vmin.f32 %v2358_v41, 16.0  ;;  %v412_v30 = vpop.f32.mrf.mxu1  ;;  %v452_v41 = vpop.f32.mrf.mxu2 }
 0x2cc   :  { %v1145_v49 = vadd.f32 %v3463_v59, %v1144_v5  ;;  %v2325_v54 = vadd.f32 0.05243302, %v2324_v56  ;;  %v2336_v42 = vadd.f32 0.112945676, %v2335_v62  ;;  %v1130_v48 = vmul.f32 %v1129_v32, %v5686_v10 }
 0x2cd   :  { %v2977_v40 = vmul.f32 %v2920_v15, %v5771_v33  ;;  %vm1151_vm9 = vcmp.eq.f32.partialorder %v1150_v23, 8.507059e+37  ;;  %v1153_v46 = vor.u32 1.1754944e-38, %v1152_v63  ;;  %v1732_v8 = vadd.f32 0.001143296, %v1731_v2 }
 0x2ce   :  { %v1149_v1 = vsel %vm1148_vm8, %v3463_v59, %v1145_v49  ;;  %v2337_v11 = vmul.f32 %v2336_v42, %v5778_v35  ;;  %v1723_v0 = vadd.f32 0.0036580483, %v1722_v14  ;;  %v497_v21 = vmul.f32 0.5, %v5666_v38 }
 0x2cf   :  { %v3034_v50 = vpack.c.bf16 %v2977_v40, %v2977_v40  ;;  %v1154_v28 = vsel %vm1151_vm9, %v1153_v46, %v1149_v1  ;;  %v1733_v33 = vmul.f32 %v1732_v8, %v5796_v43  ;;  %v2360_v18 = vmul.f32 2.1237322e-06, %v5826_v27 }
 0x2d0   :  { %v1155_v10 = vmul.f32 %v1154_v28, %v1130_v48  ;;  %v1689_v32 = vadd.f32 1.1283791, %v1688_v55  ;;  %v2326_v52 = vmul.f32 %v2325_v54, %v5778_v35  ;;  %v2338_v4 = vadd.f32 0.4994258, %v2337_v11 }
 0x2d1   :  { %v3465_v7 = vpop.eup %3464  ;;  %3092 = vst.msk [vmem:[%s5967_s3 + $0xa8] sm:$0xf] %vm3049_vm10, %v3034_v50  ;;  %v1710_v38 = vand.u32 2147483647, %v5817_v39  ;;  %v1734_v29 = vadd.f32 0.014752088, %v1733_v33  ;;  %v5843_v61 = vadd.f32 %v5663_v24, %v412_v30  ;;  %v1724_v16 = vmul.f32 %v1723_v0, %v5796_v43 }
 0x2d2   :  { %v1702_v45 = vmul.f32 %v3465_v7, %v5817_v39  ;;  %v3277_v19 = vclamps-f32 %v1155_v10, 1.0  ;;  %v2339_v22 = vmul.f32 %v2338_v4, %v5778_v35  ;;  %v2361_v59 = vadd.f32 0.00028619796, %v2360_v18 }
 0x2d3   :  { %v1712_v25 = vand.u32 2147483648, %v5817_v39  ;;  %v1735_v26 = vmul.f32 %v1734_v29, %v5796_v43  ;;  %v2371_v60 = vmul.f32 3.8918573e-05, %v5826_v27  ;;  %vm1707_vm11 = vweird.f32 %v3465_v7 }
 0x2d4   :  { %v1703_v6 = vsub.f32 1.0, %v1702_v45  ;;  %v2891_v51 = vadd.f32 1.0, %v3277_v19  ;;  %v2327_v3 = vadd.f32 0.18741608, %v2326_v52  ;;  %v5850_v23 = vadd.f32 1.0, %v2339_v22 }
 0x2d5   :  { %v1736_v9 = vadd.f32 0.112945676, %v1735_v26  ;;  %v2362_v36 = vmul.f32 %v2361_v59, %v5826_v27  ;;  %v2372_v12 = vadd.f32 0.001143296, %v2371_v60  ;;  %v1690_v44 = vmul.f32 %v1689_v32, %v5689_v34 }
 0x2d6   :  { %v1704_v47 = vmul.f32 %v3465_v7, %v1703_v6  ;;  %v2948_v17 = vmul.f32 %v2891_v51, %v497_v21  ;;  %3466 = vrcp.f32 %v5850_v23  ;;  %v1725_v63 = vadd.f32 0.05243302, %v1724_v16 }
 0x2d7   :  { %vm1706_vm12 = vweird.f32 %v5817_v39  ;;  %vm1711_vm13 = vcmp.eq.f32.partialorder %v1710_v38, 8.507059e+37  ;;  %v1737_v62 = vmul.f32 %v1736_v9, %v5796_v43  ;;  %v1713_v15 = vor.u32 1.1754944e-38, %v1712_v25 }
 0x2d8   :  { %v1705_v56 = vadd.f32 %v3465_v7, %v1704_v47  ;;  %v3005_v2 = vpack.c.bf16 %v2948_v17, %v2948_v17  ;;  %vm1708_vm14 = vmor %vm1706_vm12, %vm1707_vm11  ;;  %v2373_v5 = vmul.f32 %v2372_v12, %v5826_v27  ;;  %v5860_v14 = vadd.f32 %v5663_v24, %v452_v41 }
 0x2d9   :  { %v2328_v34 = vmul.f32 %v2327_v3, %v5778_v35  ;;  %v1738_v40 = vadd.f32 0.4994258, %v1737_v62  ;;  %v2363_v49 = vadd.f32 0.0036580483, %v2362_v36  ;;  %v1726_v54 = vmul.f32 %v1725_v63, %v5796_v43 }
 0x2da   :  { %v1709_v55 = vsel %vm1708_vm14, %v3465_v7, %v1705_v56  ;;  %3063 = vst.msk [vmem:[%s5967_s3 + $0x34] sm:$0xf] %vm3049_vm10, %v3005_v2  ;;  %v2374_v42 = vadd.f32 0.014752088, %v2373_v5  ;;  %v5869_v48 = vmul.f32 0.70710677, %v5843_v61  ;;  %vm2346_vm0 = vweird.f32 %v5850_v23 }
 0x2db   :  { %v1714_v39 = vsel %vm1711_vm13, %v1713_v15, %v1709_v55  ;;  %v1739_v24 = vmul.f32 %v1738_v40, %v5796_v43  ;;  %v511_v35 = vmul.f32 0.5, %v5674_v57  ;;  %v5877_v11 = vmul.f32 0.70710677, %v5860_v14 }
 0x2dc   :  { %v1715_v46 = vmul.f32 %v1714_v39, %v1690_v44  ;;  %v3467_v8 = vpop.eup %3466  ;;  %v2375_v50 = vmul.f32 %v2374_v42, %v5826_v27  ;;  %v1758_v1 = vmul.f32 %v5869_v48, %v5869_v48  ;;  %v2329_v30 = vadd.f32 1.1283791, %v2328_v34 }
 0x2dd   :  { %v2342_v21 = vmul.f32 %v3467_v8, %v5850_v23  ;;  %v5880_v28 = vadd.f32 1.0, %v1739_v24  ;;  %v1727_v33 = vadd.f32 0.18741608, %v1726_v54  ;;  %v2364_v18 = vmul.f32 %v2363_v49, %v5826_v27 }
 0x2de   :  { %v3291_v0 = vclamps-f32 %v1715_v46, 1.0  ;;  %v2376_v7 = vadd.f32 0.112945676, %v2375_v50  ;;  %v5883_v10 = vmin.f32 %v1758_v1, 16.0  ;;  %v2350_v52 = vand.u32 2147483647, %v5850_v23 }
 0x2df   :  { %v2343_v32 = vsub.f32 1.0, %v2342_v21  ;;  %3468 = vrcp.f32 %v5880_v28  ;;  %vm2347_vm15 = vweird.f32 %v3467_v8  ;;  %v2352_v4 = vand.u32 2147483648, %v5850_v23 }
 0x2e0   :  { %v2905_v57 = vadd.f32 1.0, %v3291_v0  ;;  %v2377_v45 = vmul.f32 %v2376_v7, %v5826_v27  ;;  %v2398_v38 = vmul.f32 %v5877_v11, %v5877_v11  ;;  %v1760_v22 = vmul.f32 2.1237322e-06, %v5883_v10  ;;  %vm2348_vm1 = vmor %vm2346_vm0, %vm2347_vm15 }
 0x2e1   :  { %v2344_v19 = vmul.f32 %v3467_v8, %v2343_v32  ;;  %v1771_v16 = vmul.f32 3.8918573e-05, %v5883_v10  ;;  %v1728_v59 = vmul.f32 %v1727_v33, %v5796_v43  ;;  %v2365_v6 = vadd.f32 0.05243302, %v2364_v18 }
 0x2e2   :  { %v2962_v29 = vmul.f32 %v2905_v57, %v511_v35  ;;  %v2378_v25 = vadd.f32 0.4994258, %v2377_v45  ;;  %v1761_v51 = vadd.f32 0.00028619796, %v1760_v22  ;;  %v2330_v47 = vmul.f32 %v2329_v30, %v5760_v53 }
 0x2e3   :  { %v2345_v60 = vadd.f32 %v3467_v8, %v2344_v19  ;;  %v1772_v3 = vadd.f32 0.001143296, %v1771_v16  ;;  %v2353_v9 = vor.u32 1.1754944e-38, %v2352_v4  ;;  %v5898_v12 = vmin.f32 %v2398_v38, 16.0 }
 0x2e4   :  { %v3019_v26 = vpack.c.bf16 %v2962_v29, %v2962_v29  ;;  %v2379_v36 = vmul.f32 %v2378_v25, %v5826_v27  ;;  %vm2351_vm2 = vcmp.eq.f32.partialorder %v2350_v52, 8.507059e+37  ;;  %v1762_v23 = vmul.f32 %v1761_v51, %v5883_v10 }
 0x2e5   :  { %v3469_v41 = vpop.eup %3468  ;;  %v2349_v43 = vsel %vm2348_vm1, %v3467_v8, %v2345_v60  ;;  %v1773_v17 = vmul.f32 %v1772_v3, %v5883_v10  ;;  %v1729_v44 = vadd.f32 1.1283791, %v1728_v59  ;;  %v2366_v56 = vmul.f32 %v2365_v6, %v5826_v27 }
 0x2e6   :  { %3077 = vst.msk [vmem:[%s5967_s3 + $0x6c] sm:$0xf] %vm3049_vm10, %v3019_v26  ;;  %v2354_v53 = vsel %vm2351_vm2, %v2353_v9, %v2349_v43  ;;  %v1742_v63 = vmul.f32 %v3469_v41, %v5880_v28  ;;  %v5908_v2 = vadd.f32 1.0, %v2379_v36  ;;  %v1763_v15 = vadd.f32 0.0036580483, %v1762_v23 }
 0x2e7   :  { %v2355_v62 = vmul.f32 %v2354_v53, %v2330_v47  ;;  %v1774_v5 = vadd.f32 0.014752088, %v1773_v17  ;;  %v2400_v34 = vmul.f32 2.1237322e-06, %v5898_v12  ;;  %v2411_v40 = vmul.f32 3.8918573e-05, %v5898_v12 }
 0x2e8   :  { %v1743_v55 = vsub.f32 1.0, %v1742_v63  ;;  %v1750_v39 = vand.u32 2147483647, %v5880_v28  ;;  %v1752_v54 = vand.u32 2147483648, %v5880_v28  ;;  %3470 = vrcp.f32 %v5908_v2 }
 0x2e9   :  { %v3307_v49 = vclamps-f32 %v2355_v62, 1.0  ;;  %vm1747_vm3 = vweird.f32 %v3469_v41  ;;  %v2367_v46 = vadd.f32 0.18741608, %v2366_v56  ;;  %v1775_v24 = vmul.f32 %v1774_v5, %v5883_v10 }
 0x2ea   :  { %v1744_v42 = vmul.f32 %v3469_v41, %v1743_v55  ;;  %v527_v8 = vmul.f32 0.5, %v5745_v58  ;;  %v2401_v50 = vadd.f32 0.00028619796, %v2400_v34  ;;  %v2412_v1 = vadd.f32 0.001143296, %v2411_v40 }
 0x2eb   :  { %v2921_v35 = vadd.f32 1.0, %v3307_v49  ;;  %vm1746_vm4 = vweird.f32 %v5880_v28  ;;  %v1764_v30 = vmul.f32 %v1763_v15, %v5883_v10  ;;  %v1776_v21 = vadd.f32 0.112945676, %v1775_v24 }
 0x2ec   :  { %v1745_v0 = vadd.f32 %v3469_v41, %v1744_v42  ;;  %vm1748_vm5 = vmor %vm1746_vm4, %vm1747_vm3  ;;  %v1753_v18 = vor.u32 1.1754944e-38, %v1752_v54  ;;  %v2402_v7 = vmul.f32 %v2401_v50, %v5898_v12  ;;  %v2413_v57 = vmul.f32 %v2412_v1, %v5898_v12 }
 0x2ed   :  { %v2978_v33 = vmul.f32 %v2921_v35, %v527_v8  ;;  %v1730_v32 = vmul.f32 %v1729_v44, %v5768_v37  ;;  %vm1751_vm6 = vcmp.eq.f32.partialorder %v1750_v39, 8.507059e+37  ;;  %v1777_v58 = vmul.f32 %v1776_v21, %v5883_v10 }
 0x2ee   :  { %v1749_v52 = vsel %vm1748_vm5, %v3469_v41, %v1745_v0  ;;  %v3471_v4 = vpop.eup %3470  ;;  %v2368_v28 = vmul.f32 %v2367_v46, %v5826_v27  ;;  %v2414_v29 = vadd.f32 0.014752088, %v2413_v57  ;;  %v1765_v16 = vadd.f32 0.05243302, %v1764_v30 }
 0x2ef   :  { %v3035_v45 = vpack.c.bf16 %v2978_v33, %v2978_v33  ;;  %v1754_v38 = vsel %vm1751_vm6, %v1753_v18, %v1749_v52  ;;  %v2382_v22 = vmul.f32 %v3471_v4, %v5908_v2  ;;  %v1778_v37 = vadd.f32 0.4994258, %v1777_v58 }
 0x2f0   :  { %v1755_v19 = vmul.f32 %v1754_v38, %v1730_v32  ;;  %v2403_v59 = vadd.f32 0.0036580483, %v2402_v7  ;;  %v2415_v6 = vmul.f32 %v2414_v29, %v5898_v12  ;;  %v512_v25 = vmul.f32 0.5, %v5751_v20 }
 0x2f1   :  { %3093 = vst.msk [vmem:[%s5967_s3 + $0xac] sm:$0xf] %vm3049_vm10, %v3035_v45  ;;  %v2383_v60 = vsub.f32 1.0, %v2382_v22  ;;  %v2369_v51 = vadd.f32 1.1283791, %v2368_v28  ;;  %v2392_v27 = vand.u32 2147483648, %v5908_v2  ;;  %v1779_v3 = vmul.f32 %v1778_v37, %v5883_v10 }
 0x2f2   :  { %v3292_v26 = vclamps-f32 %v1755_v19, 1.0  ;;  %v2416_v47 = vadd.f32 0.112945676, %v2415_v6  ;;  %vm2387_vm7 = vweird.f32 %v3471_v4  ;;  %v2390_v41 = vand.u32 2147483647, %v5908_v2 }
 0x2f3   :  { %v2384_v36 = vmul.f32 %v3471_v4, %v2383_v60  ;;  %v1766_v43 = vmul.f32 %v1765_v16, %v5883_v10  ;;  %v1780_v23 = vadd.f32 1.0, %v1779_v3  ;;  %v2404_v17 = vmul.f32 %v2403_v59, %v5898_v12 }
 0x2f4   :  { %v2906_v9 = vadd.f32 1.0, %v3292_v26  ;;  %v2417_v20 = vmul.f32 %v2416_v47, %v5898_v12  ;;  %vm2386_vm8 = vweird.f32 %v5908_v2  ;;  %v2370_v63 = vmul.f32 %v2369_v51, %v5804_v13 }
 0x2f5   :  { %v2385_v44 = vadd.f32 %v3471_v4, %v2384_v36  ;;  %vm2388_vm9 = vmor %vm2386_vm8, %vm2387_vm7  ;;  %v2393_v56 = vor.u32 1.1754944e-38, %v2392_v27  ;;  %3472 = vrcp.f32 %v1780_v23  ;;  %vm2391_vm11 = vcmp.eq.f32.partialorder %v2390_v41, 8.507059e+37 }
 0x2f6   :  { %v2963_v53 = vmul.f32 %v2906_v9, %v512_v25  ;;  %v2418_v5 = vadd.f32 0.4994258, %v2417_v20  ;;  %v1767_v34 = vadd.f32 0.18741608, %v1766_v43  ;;  %v2405_v40 = vadd.f32 0.05243302, %v2404_v17 }
 0x2f7   :  { %v2389_v15 = vsel %vm2388_vm9, %v3471_v4, %v2385_v44  ;;  %v528_v24 = vmul.f32 0.5, %v5790_v31  ;;  %v1792_v30 = vand.u32 2147483648, %v1780_v23  ;;  %v1790_v7 = vand.u32 2147483647, %v1780_v23 }
 0x2f8   :  { %v3020_v62 = vpack.c.bf16 %v2963_v53, %v2963_v53  ;;  %v2394_v55 = vsel %vm2391_vm11, %v2393_v56, %v2389_v15  ;;  %v2419_v2 = vmul.f32 %v2418_v5, %v5898_v12  ;;  %v1768_v42 = vmul.f32 %v1767_v34, %v5883_v10 }
 0x2f9   :  { %v2395_v49 = vmul.f32 %v2394_v55, %v2370_v63  ;;  %v2406_v46 = vmul.f32 %v2405_v40, %v5898_v12  ;;  %vm1786_vm13 = vweird.f32 %v1780_v23  ;;  %v1793_v57 = vor.u32 1.1754944e-38, %v1792_v30 }
 0x2fa   :  { %3078 = vst.msk [vmem:[%s5967_s3 + $0x70] sm:$0xf] %vm3049_vm10, %v3020_v62  ;;  %v2420_v13 = vadd.f32 1.0, %v2419_v2  ;;  %v1769_v0 = vadd.f32 1.1283791, %v1768_v42  ;;  %vm1791_vm15 = vcmp.eq.f32.partialorder %v1790_v7, 8.507059e+37 }
 0x2fb   :  { %v3308_v39 = vclamps-f32 %v2395_v49, 1.0  ;;  %v3473_v54 = vpop.eup %3472  ;;  %v2407_v21 = vadd.f32 0.18741608, %v2406_v46  ;;  %v513_v59 = vmul.f32 0.5, %v5843_v61  ;;  %v529_v61 = vmul.f32 0.5, %v5860_v14 }
 0x2fc   :  { %v1782_v35 = vmul.f32 %v3473_v54, %v1780_v23  ;;  %3474 = vrcp.f32 %v2420_v13  ;;  %vm1787_vm12 = vweird.f32 %v3473_v54  ;;  %v1770_v52 = vmul.f32 %v1769_v0, %v5869_v48 }
 0x2fd   :  { %v2922_v8 = vadd.f32 1.0, %v3308_v39  ;;  %vm1788_vm14 = vmor %vm1786_vm13, %vm1787_vm12  ;;  %v2408_v32 = vmul.f32 %v2407_v21, %v5898_v12  ;;  %v2432_v19 = vand.u32 2147483648, %v2420_v13  ;;  %v2430_v37 = vand.u32 2147483647, %v2420_v13 }
 0x2fe   :  { %v1783_v1 = vsub.f32 1.0, %v1782_v35  ;;  %vm2426_vm1 = vweird.f32 %v2420_v13 }
 0x2ff   :  { %v2979_v50 = vmul.f32 %v2922_v8, %v528_v24  ;;  %v2409_v29 = vadd.f32 1.1283791, %v2408_v32  ;;  %v2433_v12 = vor.u32 1.1754944e-38, %v2432_v19  ;;  %vm2431_vm3 = vcmp.eq.f32.partialorder %v2430_v37, 8.507059e+37 }
 0x300   :  { %v1784_v18 = vmul.f32 %v3473_v54, %v1783_v1 }
 0x301   :  { %v3036_v33 = vpack.c.bf16 %v2979_v50, %v2979_v50  ;;  %v2410_v26 = vmul.f32 %v2409_v29, %v5877_v11 }
 0x302   :  { %v1785_v10 = vadd.f32 %v3473_v54, %v1784_v18  ;;  %v3475_v31 = vpop.eup %3474 }
 0x303   :  { %3094 = vst.msk [vmem:[%s5967_s3 + $0xb0] sm:$0xf] %vm3049_vm10, %v3036_v33  ;;  %v2422_v4 = vmul.f32 %v3475_v31, %v2420_v13  ;;  %vm2427_vm0 = vweird.f32 %v3475_v31 }
 0x304   :  { %v1789_v58 = vsel %vm1788_vm14, %v3473_v54, %v1785_v10  ;;  %vm2428_vm2 = vmor %vm2426_vm1, %vm2427_vm0 }
 0x305   :  { %v1794_v45 = vsel %vm1791_vm15, %v1793_v57, %v1789_v58  ;;  %v2423_v28 = vsub.f32 1.0, %v2422_v4 }
 0x306   :  { %v1795_v38 = vmul.f32 %v1794_v45, %v1770_v52 }
 0x307   :  { %v2424_v16 = vmul.f32 %v3475_v31, %v2423_v28 }
 0x308   :  { %v3293_v22 = vclamps-f32 %v1795_v38, 1.0 }
 0x309   :  { %v2425_v25 = vadd.f32 %v3475_v31, %v2424_v16 }
 0x30a   :  { %v2907_v6 = vadd.f32 1.0, %v3293_v22 }
 0x30b   :  { %v2429_v60 = vsel %vm2428_vm2, %v3475_v31, %v2425_v25 }
 0x30c   :  { %v2964_v48 = vmul.f32 %v2907_v6, %v513_v59  ;;  %v2434_v51 = vsel %vm2431_vm3, %v2433_v12, %v2429_v60 }
 0x30d   :  { %v2435_v3 = vmul.f32 %v2434_v51, %v2410_v26 }
 0x30e   :  { %v3021_v27 = vpack.c.bf16 %v2964_v48, %v2964_v48 }
 0x30f   :  { %v3309_v47 = vclamps-f32 %v2435_v3, 1.0 }
 0x310   :  { %3079 = vst.msk [vmem:[%s5967_s3 + $0x74] sm:$0xf] %vm3049_vm10, %v3021_v27 }
 0x311   :  { %v2923_v9 = vadd.f32 1.0, %v3309_v47 }
 0x313   :  { %v2980_v36 = vmul.f32 %v2923_v9, %v529_v61 }
 0x315   :  { %v3037_v41 = vpack.c.bf16 %v2980_v36, %v2980_v36 }
 0x317   :  { %3095 = vst.msk [vmem:[%s5967_s3 + $0xb4] sm:$0xf] %vm3049_vm10, %v3037_v41 }

// kernel: discriminator_forward.5
= control target key start
LH: loop header
LB: loop body
LE: loop exit
PB: predicated region body
PF: predicated region fallthrough
CT: control target
= control target key end

     0   :  { %vm1116_vm0 = vcmask 1040384   ;;  %s3076_s1 = inlined_call_operand.vmem [shape: bf16[1024,128], index: 1, kind: input, shape index: {}]   ;;  %s3077_s2 = inlined_call_operand.vmem [shape: f32[1,128], index: 2, kind: input, shape index: {}]   ;;  %s3078_s0 = inlined_call_operand.vmem [shape: bf16[72,1024], index: 0, kind: input, shape index: {}]   ;;  %s3079_s3 = inlined_call_operand.vmem [shape: f32[1,128], index: 3, kind: input, shape index: {}]   ;;  %s3080_s4 = inlined_call_operand.vmem [shape: f32[1,128], index: 4, kind: input, shape index: {}]   ;;  %s3081_s5 = inlined_call_operand.vmem [shape: bf16[72,128], index: 5, kind: output, shape index: {}]  }
   0x1   :  { %v2028_v0 = vld [vmem:[%s3076_s1 + $0x38] sm:$0xff]  ;;  %v2027_v4 = vld [vmem:[%s3076_s1 + $0x30] sm:$0xff]  ;;  %v2026_v8 = vld [vmem:[%s3076_s1 + $0x28] sm:$0xff] }
   0x2   :  { %v2036_v1 = vld [vmem:[%s3076_s1 + $0x78] sm:$0xff]  ;;  %760 = vmatpush.bf16.msra.mxu0 %v2028_v0  ;;  %v2035_v5 = vld [vmem:[%s3076_s1 + $0x70] sm:$0xff]  ;;  %v2034_v9 = vld [vmem:[%s3076_s1 + $0x68] sm:$0xff] }
   0x3   :  { %v2044_v2 = vld [vmem:[%s3076_s1 + $0xb8] sm:$0xff]  ;;  %793 = vmatpush.bf16.msra.mxu1 %v2036_v1  ;;  %v2043_v6 = vld [vmem:[%s3076_s1 + $0xb0] sm:$0xff]  ;;  %v2042_v10 = vld [vmem:[%s3076_s1 + $0xa8] sm:$0xff] }
   0x4   :  { %v2052_v3 = vld [vmem:[%s3076_s1 + $0xf8] sm:$0xff]  ;;  %826 = vmatpush.bf16.msra.mxu2 %v2044_v2  ;;  %v2051_v7 = vld [vmem:[%s3076_s1 + $0xf0] sm:$0xff]  ;;  %v2050_v11 = vld [vmem:[%s3076_s1 + $0xe8] sm:$0xff] }
   0x5   :  { %859 = vmatpush.bf16.msra.mxu3 %v2052_v3  ;;  %v2025_v12 = vld [vmem:[%s3076_s1 + $0x20] sm:$0xff]  ;;  %v2024_v16 = vld [vmem:[%s3076_s1 + $0x18] sm:$0xff]  ;;  %v2023_v20 = vld [vmem:[%s3076_s1 + $0x10] sm:$0xff] }
   0x6   :  { %761 = vmatpush.bf16.msra.mxu0 %v2027_v4  ;;  %v2033_v13 = vld [vmem:[%s3076_s1 + $0x60] sm:$0xff]  ;;  %v2032_v17 = vld [vmem:[%s3076_s1 + $0x58] sm:$0xff]  ;;  %v2031_v21 = vld [vmem:[%s3076_s1 + $0x50] sm:$0xff] }
   0x7   :  { %794 = vmatpush.bf16.msra.mxu1 %v2035_v5  ;;  %v2041_v14 = vld [vmem:[%s3076_s1 + $0xa0] sm:$0xff]  ;;  %v2040_v18 = vld [vmem:[%s3076_s1 + $0x98] sm:$0xff]  ;;  %v2039_v22 = vld [vmem:[%s3076_s1 + $0x90] sm:$0xff] }
   0x8   :  { %827 = vmatpush.bf16.msra.mxu2 %v2043_v6  ;;  %v2049_v15 = vld [vmem:[%s3076_s1 + $0xe0] sm:$0xff]  ;;  %v2048_v19 = vld [vmem:[%s3076_s1 + $0xd8] sm:$0xff]  ;;  %v2047_v23 = vld [vmem:[%s3076_s1 + $0xd0] sm:$0xff] }
   0x9   :  { %860 = vmatpush.bf16.msra.mxu3 %v2051_v7  ;;  %v2022_v24 = vld [vmem:[%s3076_s1 + $0x8] sm:$0xff]  ;;  %v2021_v28 = vld [vmem:[%s3076_s1] sm:$0xff]  ;;  %v2076_v40 = vld [vmem:[%s3076_s1 + $0x1b8] sm:$0xff] }
   0xa   :  { %762 = vmatpush.bf16.msra.mxu0 %v2026_v8  ;;  %v2030_v25 = vld [vmem:[%s3076_s1 + $0x48] sm:$0xff]  ;;  %v2029_v29 = vld [vmem:[%s3076_s1 + $0x40] sm:$0xff]  ;;  %v2060_v41 = vld [vmem:[%s3076_s1 + $0x138] sm:$0xff] }
   0xb   :  { %795 = vmatpush.bf16.msra.mxu1 %v2034_v9  ;;  %v2038_v26 = vld [vmem:[%s3076_s1 + $0x88] sm:$0xff]  ;;  %v2037_v30 = vld [vmem:[%s3076_s1 + $0x80] sm:$0xff]  ;;  %v2084_v46 = vld [vmem:[%s3076_s1 + $0x1f8] sm:$0xff] }
   0xc   :  { %828 = vmatpush.bf16.msra.mxu2 %v2042_v10  ;;  %v2046_v27 = vld [vmem:[%s3076_s1 + $0xc8] sm:$0xff]  ;;  %v2045_v31 = vld [vmem:[%s3076_s1 + $0xc0] sm:$0xff]  ;;  %v2068_v47 = vld [vmem:[%s3076_s1 + $0x178] sm:$0xff] }
   0xd   :  { %861 = vmatpush.bf16.msra.mxu3 %v2050_v11  ;;  %v1598_v32 = vld [vmem:[%s3078_s0] sm:$0xf]  ;;  %v1989_v34 = vld [vmem:[%s3078_s0 + $0x4] sm:$0xf]  ;;  %v1606_v36 = vld [vmem:[%s3078_s0 + $0x8] sm:$0xf] }
   0xe   :  { %763 = vmatpush.bf16.msra.mxu0 %v2025_v12  ;;  %v1993_v33 = vld [vmem:[%s3078_s0 + $0x1c] sm:$0xf0]  ;;  %v1600_v35 = vld [vmem:[%s3078_s0 + $0x20] sm:$0xf0]  ;;  %v1994_v37 = vld [vmem:[%s3078_s0 + $0x24] sm:$0xf0] }
   0xf   :  { %796 = vmatpush.bf16.msra.mxu1 %v2033_v13  ;;  %v1990_v38 = vld [vmem:[%s3078_s0 + $0xc] sm:$0xf]  ;;  %v1599_v42 = vor.u32 %v1993_v33, %v1598_v32  ;;  %v1603_v43 = vor.u32 %v1989_v34, %v1600_v35  ;;  %v1607_v44 = vor.u32 %v1994_v37, %v1606_v36  ;;  %v2075_v48 = vld [vmem:[%s3076_s1 + $0x1b0] sm:$0xff]  ;;  %v1630_v56 = vld [vmem:[%s3078_s0 + $0x40] sm:$0xf] }
  0x10   :  { %829 = vmatpush.bf16.msra.mxu2 %v2041_v14  ;;  %v1608_v39 = vld [vmem:[%s3078_s0 + $0x28] sm:$0xf0]  ;;  %v2059_v49 = vld [vmem:[%s3076_s1 + $0x130] sm:$0xff]  ;;  %v2073_v57 = vld [vmem:[%s3076_s1 + $0x1a0] sm:$0xff] }
  0x11   :  { %862 = vmatpush.bf16.msra.mxu3 %v2049_v15  ;;  %v1611_v45 = vor.u32 %v1990_v38, %v1608_v39  ;;  %v2083_v50 = vld [vmem:[%s3076_s1 + $0x1f0] sm:$0xff]  ;;  %v2074_v52 = vld [vmem:[%s3076_s1 + $0x1a8] sm:$0xff]  ;;  %v2057_v58 = vld [vmem:[%s3076_s1 + $0x120] sm:$0xff] }
  0x12   :  { %764 = vmatpush.bf16.msra.mxu0 %v2024_v16  ;;  %v2067_v51 = vld [vmem:[%s3076_s1 + $0x170] sm:$0xff]  ;;  %v2058_v53 = vld [vmem:[%s3076_s1 + $0x128] sm:$0xff]  ;;  %v2001_v59 = vld [vmem:[%s3078_s0 + $0x5c] sm:$0xf0] }
  0x13   :  { %797 = vmatpush.bf16.msra.mxu1 %v2032_v17  ;;  %v2082_v54 = vld [vmem:[%s3076_s1 + $0x1e8] sm:$0xff]  ;;  %v1997_v60 = vld [vmem:[%s3078_s0 + $0x44] sm:$0xf]  ;;  %v2072_v4 = vld [vmem:[%s3076_s1 + $0x198] sm:$0xff]  ;;  %v1631_v6 = vor.u32 %v2001_v59, %v1630_v56 }
  0x14   :  { %830 = vmatpush.bf16.msra.mxu2 %v2040_v18  ;;  %v2066_v55 = vld [vmem:[%s3076_s1 + $0x168] sm:$0xff]  ;;  %v1632_v61 = vld [vmem:[%s3078_s0 + $0x60] sm:$0xf0]  ;;  %v2056_v5 = vld [vmem:[%s3076_s1 + $0x118] sm:$0xff] }
  0x15   :  { %863 = vmatpush.bf16.msra.mxu3 %v2048_v19  ;;  %v1638_v62 = vld [vmem:[%s3078_s0 + $0x48] sm:$0xf]  ;;  %v1998_v0 = vld [vmem:[%s3078_s0 + $0x4c] sm:$0xf]  ;;  %v2081_v2 = vld [vmem:[%s3076_s1 + $0x1e0] sm:$0xff]  ;;  %v1635_v7 = vor.u32 %v1997_v60, %v1632_v61 }
  0x16   :  { %765 = vmatpush.bf16.msra.mxu0 %v2023_v20  ;;  %v2002_v63 = vld [vmem:[%s3078_s0 + $0x64] sm:$0xf0]  ;;  %v1640_v1 = vld [vmem:[%s3078_s0 + $0x68] sm:$0xf0]  ;;  %v2065_v3 = vld [vmem:[%s3076_s1 + $0x160] sm:$0xff] }
  0x17   :  { %798 = vmatpush.bf16.msra.mxu1 %v2031_v21  ;;  %v1639_v8 = vor.u32 %v2002_v63, %v1638_v62  ;;  %v1643_v9 = vor.u32 %v1998_v0, %v1640_v1  ;;  %v2080_v10 = vld [vmem:[%s3076_s1 + $0x1d8] sm:$0xff]  ;;  %v2071_v12 = vld [vmem:[%s3076_s1 + $0x190] sm:$0xff]  ;;  %v2070_v16 = vld [vmem:[%s3076_s1 + $0x188] sm:$0xff] }
  0x18   :  { %831 = vmatpush.bf16.msra.mxu2 %v2039_v22  ;;  %v2064_v11 = vld [vmem:[%s3076_s1 + $0x158] sm:$0xff]  ;;  %v2055_v13 = vld [vmem:[%s3076_s1 + $0x110] sm:$0xff]  ;;  %v2054_v17 = vld [vmem:[%s3076_s1 + $0x108] sm:$0xff] }
  0x19   :  { %864 = vmatpush.bf16.msra.mxu3 %v2047_v23  ;;  %v2079_v14 = vld [vmem:[%s3076_s1 + $0x1d0] sm:$0xff]  ;;  %v2078_v18 = vld [vmem:[%s3076_s1 + $0x1c8] sm:$0xff]  ;;  %v1662_v19 = vld [vmem:[%s3078_s0 + $0x80] sm:$0xf] }
  0x1a   :  { %766 = vmatpush.bf16.msra.mxu0 %v2022_v24  ;;  %v2063_v15 = vld [vmem:[%s3076_s1 + $0x150] sm:$0xff]  ;;  %v2009_v20 = vld [vmem:[%s3078_s0 + $0x9c] sm:$0xf0]  ;;  %v2005_v21 = vld [vmem:[%s3078_s0 + $0x84] sm:$0xf] }
  0x1b   :  { %799 = vmatpush.bf16.msra.mxu1 %v2030_v25  ;;  %v1664_v22 = vld [vmem:[%s3078_s0 + $0xa0] sm:$0xf0]  ;;  %v1670_v23 = vld [vmem:[%s3078_s0 + $0x88] sm:$0xf]  ;;  %v2006_v25 = vld [vmem:[%s3078_s0 + $0x8c] sm:$0xf] }
  0x1c   :  { %832 = vmatpush.bf16.msra.mxu2 %v2038_v26  ;;  %v2010_v24 = vld [vmem:[%s3078_s0 + $0xa4] sm:$0xf0]  ;;  %v1672_v26 = vld [vmem:[%s3078_s0 + $0xa8] sm:$0xf0]  ;;  %v2069_v32 = vld [vmem:[%s3076_s1 + $0x180] sm:$0xff] }
  0x1d   :  { %865 = vmatpush.bf16.msra.mxu3 %v2046_v27  ;;  %v1663_v27 = vor.u32 %v2009_v20, %v1662_v19  ;;  %v2053_v33 = vld [vmem:[%s3076_s1 + $0x100] sm:$0xff]  ;;  %v1995_v59 = vld [vmem:[%s3078_s0 + $0x2c] sm:$0xf0]  ;;  %v1991_v60 = vld [vmem:[%s3078_s0 + $0x14] sm:$0xf] }
  0x1e   :  { %767 = vmatpush.bf16.msra.mxu0 %v2021_v28  ;;  %v1667_v28 = vor.u32 %v2005_v21, %v1664_v22  ;;  %v2077_v34 = vld [vmem:[%s3076_s1 + $0x1c0] sm:$0xff]  ;;  %v1616_v61 = vld [vmem:[%s3078_s0 + $0x30] sm:$0xf0]  ;;  %v1622_v62 = vld [vmem:[%s3078_s0 + $0x18] sm:$0xf] }
  0x1f   :  { %800 = vmatpush.bf16.msra.mxu1 %v2029_v29  ;;  %v1671_v29 = vor.u32 %v2010_v24, %v1670_v23  ;;  %v2061_v35 = vld [vmem:[%s3076_s1 + $0x140] sm:$0xff]  ;;  %v1996_v63 = vld [vmem:[%s3078_s0 + $0x34] sm:$0xf0]  ;;  %v1992_v0 = vld [vmem:[%s3078_s0 + $0x1c] sm:$0xf] }
  0x20   :  { %833 = vmatpush.bf16.msra.mxu2 %v2037_v30  ;;  %v1675_v30 = vor.u32 %v2006_v25, %v1672_v26  ;;  %v1694_v36 = vld [vmem:[%s3078_s0 + $0xc0] sm:$0xf]  ;;  %v2013_v38 = vld [vmem:[%s3078_s0 + $0xc4] sm:$0xf]  ;;  %v1624_v1 = vld [vmem:[%s3078_s0 + $0x38] sm:$0xf0] }
  0x21   :  { %866 = vmatpush.bf16.msra.mxu3 %v2045_v31  ;;  %768 = vmatmul.bf16.vlgmr.msra.gmra.mxu0 %v1599_v42  ;;  %v2062_v31 = vld [vmem:[%s3076_s1 + $0x148] sm:$0xff]  ;;  %v2017_v37 = vld [vmem:[%s3078_s0 + $0xdc] sm:$0xf0]  ;;  %v1696_v39 = vld [vmem:[%s3078_s0 + $0xe0] sm:$0xf0] }
  0x22   :  { %892 = vmatpush.bf16.msrb.mxu0 %v2060_v41  ;;  %801 = vmatmul.bf16.vlgmr.msra.gmra.mxu1 %v1603_v43  ;;  %v2018_v41 = vld [vmem:[%s3078_s0 + $0xe4] sm:$0xf0]  ;;  %v2014_v42 = vld [vmem:[%s3078_s0 + $0xcc] sm:$0xf]  ;;  %v2011_v19 = vld [vmem:[%s3078_s0 + $0xac] sm:$0xf0] }
  0x23   :  { %834 = vmatmul.bf16.vlgmr.msra.gmra.mxu2 %v1607_v44  ;;  %925 = vmatpush.bf16.msrb.mxu1 %v2068_v47  ;;  %v1704_v43 = vld [vmem:[%s3078_s0 + $0xe8] sm:$0xf0]  ;;  %v1695_v44 = vor.u32 %v2017_v37, %v1694_v36  ;;  %v2007_v20 = vld [vmem:[%s3078_s0 + $0x94] sm:$0xf]  ;;  %v1686_v22 = vld [vmem:[%s3078_s0 + $0x98] sm:$0xf] }
  0x24   :  { %958 = vmatpush.bf16.msrb.mxu2 %v2076_v40  ;;  %867 = vmatmul.bf16.vlgmr.msra.gmra.mxu3 %v1611_v45  ;;  %v1702_v40 = vld [vmem:[%s3078_s0 + $0xc8] sm:$0xf]  ;;  %v1699_v45 = vor.u32 %v2013_v38, %v1696_v39  ;;  %v1707_v47 = vor.u32 %v2014_v42, %v1704_v43  ;;  %v1680_v21 = vld [vmem:[%s3078_s0 + $0xb0] sm:$0xf0]  ;;  %v2012_v23 = vld [vmem:[%s3078_s0 + $0xb4] sm:$0xf0] }
  0x25   :  { %991 = vmatpush.bf16.msrb.mxu3 %v2084_v46  ;;  %v1703_v46 = vor.u32 %v2018_v41, %v1702_v40  ;;  %v2008_v24 = vld [vmem:[%s3078_s0 + $0x9c] sm:$0xf]  ;;  %v2020_v36 = vld [vmem:[%s3078_s0 + $0xf4] sm:$0xf0] }
  0x26   :  { %893 = vmatpush.bf16.msrb.mxu0 %v2059_v49  ;;  %v53_v49 = vld [vmem:[%s3078_s0 + $0x108] sm:$0xff]  ;;  %v1688_v25 = vld [vmem:[%s3078_s0 + $0xb8] sm:$0xf0] }
  0x27   :  { %926 = vmatpush.bf16.msrb.mxu1 %v2067_v51  ;;  %v2016_v37 = vld [vmem:[%s3078_s0 + $0xdc] sm:$0xf] }
  0x28   :  { %959 = vmatpush.bf16.msrb.mxu2 %v2075_v48  ;;  %v52_v48 = vld [vmem:[%s3078_s0 + $0x100] sm:$0xff]  ;;  %v1720_v38 = vld [vmem:[%s3078_s0 + $0xf8] sm:$0xf0] }
  0x29   :  { %992 = vmatpush.bf16.msrb.mxu3 %v2083_v50  ;;  %v288_v50 = vunpack.c.l.b16 %v52_v48  ;;  %v289_v51 = vunpack.c.h.b16 %v52_v48 }
  0x2a   :  { %894 = vmatpush.bf16.msrb.mxu0 %v2058_v53  ;;  %v291_v53 = vunpack.c.h.b16 %v53_v49 }
  0x2b   :  { %927 = vmatpush.bf16.msrb.mxu1 %v2066_v55  ;;  %v329_v55 = vpack.c.b16 %v289_v51, %v289_v51 }
  0x2c   :  { %960 = vmatpush.bf16.msrb.mxu2 %v2074_v52  ;;  %v290_v52 = vunpack.c.l.b16 %v53_v49 }
  0x2d   :  { %993 = vmatpush.bf16.msrb.mxu3 %v2082_v54  ;;  %v328_v54 = vpack.c.b16 %v288_v50, %v288_v50 }
  0x2e   :  { %895 = vmatpush.bf16.msrb.mxu0 %v2057_v58  ;;  %v330_v56 = vpack.c.b16 %v290_v52, %v290_v52  ;;  %v1614_v58 = vld [vmem:[%s3078_s0 + $0x10] sm:$0xf] }
  0x2f   :  { %928 = vmatpush.bf16.msrb.mxu1 %v2065_v3  ;;  %v1619_v3 = vor.u32 %v1991_v60, %v1616_v61  ;;  %v54_v52 = vld [vmem:[%s3078_s0 + $0x110] sm:$0xff] }
  0x30   :  { %961 = vmatpush.bf16.msrb.mxu2 %v2073_v57  ;;  %v331_v57 = vpack.c.b16 %v291_v53, %v291_v53 }
  0x31   :  { %994 = vmatpush.bf16.msrb.mxu3 %v2081_v2  ;;  %773 = vmatmul.bf16.gmra.mxu0 %v1631_v6  ;;  %v1615_v2 = vor.u32 %v1995_v59, %v1614_v58  ;;  %v1646_v6 = vld [vmem:[%s3078_s0 + $0x50] sm:$0xf]  ;;  %v293_v58 = vunpack.c.h.b16 %v54_v52 }
  0x32   :  { %896 = vmatpush.bf16.msrb.mxu0 %v2056_v5  ;;  %806 = vmatmul.bf16.gmra.mxu1 %v1635_v7  ;;  %v1627_v5 = vor.u32 %v1992_v0, %v1624_v1  ;;  %v2003_v7 = vld [vmem:[%s3078_s0 + $0x6c] sm:$0xf0] }
  0x33   :  { %839 = vmatmul.bf16.gmra.mxu2 %v1639_v8  ;;  %929 = vmatpush.bf16.msrb.mxu1 %v2064_v11  ;;  %v1999_v8 = vld [vmem:[%s3078_s0 + $0x54] sm:$0xf]  ;;  %v2004_v11 = vld [vmem:[%s3078_s0 + $0x74] sm:$0xf0]  ;;  %v333_v0 = vpack.c.b16 %v293_v58, %v293_v58 }
  0x34   :  { %962 = vmatpush.bf16.msrb.mxu2 %v2072_v4  ;;  %872 = vmatmul.bf16.gmra.mxu3 %v1643_v9  ;;  %v1623_v4 = vor.u32 %v1996_v63, %v1622_v62  ;;  %v1648_v9 = vld [vmem:[%s3078_s0 + $0x70] sm:$0xf0] }
  0x35   :  { %995 = vmatpush.bf16.msrb.mxu3 %v2080_v10  ;;  %v1654_v10 = vld [vmem:[%s3078_s0 + $0x58] sm:$0xf] }
  0x36   :  { %897 = vmatpush.bf16.msrb.mxu0 %v2055_v13  ;;  %v1656_v13 = vld [vmem:[%s3078_s0 + $0x78] sm:$0xf0] }
  0x37   :  { %930 = vmatpush.bf16.msrb.mxu1 %v2063_v15  ;;  %v1651_v15 = vor.u32 %v1999_v8, %v1648_v9 }
  0x38   :  { %963 = vmatpush.bf16.msrb.mxu2 %v2071_v12  ;;  %v2000_v12 = vld [vmem:[%s3078_s0 + $0x5c] sm:$0xf] }
  0x39   :  { %996 = vmatpush.bf16.msrb.mxu3 %v2079_v14  ;;  %v1647_v14 = vor.u32 %v2003_v7, %v1646_v6 }
  0x3a   :  { %898 = vmatpush.bf16.msrb.mxu0 %v2054_v17  ;;  %v1659_v17 = vor.u32 %v2000_v12, %v1656_v13 }
  0x3b   :  { %931 = vmatpush.bf16.msrb.mxu1 %v2062_v31  ;;  %v1710_v31 = vld [vmem:[%s3078_s0 + $0xd0] sm:$0xf] }
  0x3c   :  { %964 = vmatpush.bf16.msrb.mxu2 %v2070_v16  ;;  %v1655_v16 = vor.u32 %v2004_v11, %v1654_v10 }
  0x3d   :  { %997 = vmatpush.bf16.msrb.mxu3 %v2078_v18  ;;  %v1678_v18 = vld [vmem:[%s3078_s0 + $0x90] sm:$0xf] }
  0x3e   :  { %899 = vmatpush.bf16.msrb.mxu0 %v2053_v33  ;;  %v1679_v26 = vor.u32 %v2011_v19, %v1678_v18  ;;  %v2015_v33 = vld [vmem:[%s3078_s0 + $0xd4] sm:$0xf] }
  0x3f   :  { %932 = vmatpush.bf16.msrb.mxu1 %v2061_v35  ;;  %v1718_v35 = vld [vmem:[%s3078_s0 + $0xd8] sm:$0xf] }
  0x40   :  { %965 = vmatpush.bf16.msrb.mxu2 %v2069_v32  ;;  %v2019_v32 = vld [vmem:[%s3078_s0 + $0xec] sm:$0xf0]  ;;  %v1719_v43 = vor.u32 %v2020_v36, %v1718_v35 }
  0x41   :  { %778 = vmatmul.bf16.gmra.mxu0 %v1663_v27  ;;  %998 = vmatpush.bf16.msrb.mxu3 %v2077_v34  ;;  %v1683_v27 = vor.u32 %v2007_v20, %v1680_v21  ;;  %v1712_v34 = vld [vmem:[%s3078_s0 + $0xf0] sm:$0xf0]  ;;  %v1711_v39 = vor.u32 %v2019_v32, %v1710_v31 }
  0x42   :  { %811 = vmatmul.bf16.gmra.mxu1 %v1667_v28  ;;  %v1687_v28 = vor.u32 %v2012_v23, %v1686_v22  ;;  %v1715_v40 = vor.u32 %v2015_v33, %v1712_v34 }
  0x43   :  { %844 = vmatmul.bf16.gmra.mxu2 %v1671_v29  ;;  %v1691_v29 = vor.u32 %v2008_v24, %v1688_v25 }
  0x44   :  { %877 = vmatmul.bf16.gmra.mxu3 %v1675_v30  ;;  %v2530_v30 = vld [vmem:[%s3077_s2] ss:$0 sm:$0xff] }
  0x51   :  { %783 = vmatmul.bf16.gmra.mxu0 %v1695_v44  ;;  %v1723_v44 = vor.u32 %v2016_v37, %v1720_v38 }
  0x52   :  { %816 = vmatmul.bf16.gmra.mxu1 %v1699_v45 }
  0x53   :  { %849 = vmatmul.bf16.gmra.mxu2 %v1703_v46 }
  0x54   :  { %882 = vmatmul.bf16.gmra.mxu3 %v1707_v47 }
  0x61   :  { %788 = vmatmul.bf16.gmra.mxu0 %v328_v54  ;;  %v55_v54 = vld [vmem:[%s3078_s0 + $0x118] sm:$0xff] }
  0x62   :  { %821 = vmatmul.bf16.gmra.mxu1 %v329_v55  ;;  %v294_v59 = vunpack.c.l.b16 %v55_v54  ;;  %v295_v60 = vunpack.c.h.b16 %v55_v54 }
  0x63   :  { %854 = vmatmul.bf16.gmra.mxu2 %v330_v56 }
  0x64   :  { %887 = vmatmul.bf16.gmra.mxu3 %v331_v57  ;;  %v292_v57 = vunpack.c.l.b16 %v54_v52 }
  0x66   :  { %v332_v63 = vpack.c.b16 %v292_v57, %v292_v57 }
  0x71   :  { %900 = vmatmul.bf16.vlgmr.msrb.gmra.mxu0 %v1615_v2 }
  0x72   :  { %933 = vmatmul.bf16.vlgmr.msrb.gmra.mxu1 %v1619_v3 }
  0x73   :  { %966 = vmatmul.bf16.vlgmr.msrb.gmra.mxu2 %v1623_v4  ;;  %v334_v4 = vpack.c.b16 %v294_v59, %v294_v59 }
  0x74   :  { %999 = vmatmul.bf16.vlgmr.msrb.gmra.mxu3 %v1627_v5  ;;  %v335_v5 = vpack.c.b16 %v295_v60, %v295_v60 }
  0x81   :  { %905 = vmatmul.bf16.gmra.mxu0 %v1647_v14 }
  0x82   :  { %938 = vmatmul.bf16.gmra.mxu1 %v1651_v15 }
  0x83   :  { %971 = vmatmul.bf16.gmra.mxu2 %v1655_v16 }
  0x84   :  { %1004 = vmatmul.bf16.gmra.mxu3 %v1659_v17 }
  0x91   :  { %910 = vmatmul.bf16.gmra.mxu0 %v1679_v26 }
  0x92   :  { %943 = vmatmul.bf16.gmra.mxu1 %v1683_v27 }
  0x93   :  { %976 = vmatmul.bf16.gmra.mxu2 %v1687_v28 }
  0x94   :  { %1009 = vmatmul.bf16.gmra.mxu3 %v1691_v29 }
  0x9e   :  { %v769_v41 = vpop.f32.mrf.mxu0 }
  0x9f   :  { %v802_v42 = vpop.f32.mrf.mxu1  ;;  %v770_v45 = vadd.f32 %v2530_v30, %v769_v41 }
  0xa1   :  { %v803_v46 = vadd.f32 %v802_v42, %v770_v45  ;;  %915 = vmatmul.bf16.gmra.mxu0 %v1711_v39 }
  0xa2   :  { %948 = vmatmul.bf16.gmra.mxu1 %v1715_v40 }
  0xa3   :  { %981 = vmatmul.bf16.gmra.mxu2 %v1719_v43 }
  0xa4   :  { %1014 = vmatmul.bf16.gmra.mxu3 %v1723_v44 }
  0xa6   :  { %v835_v47 = vpop.f32.mrf.mxu2  ;;  %v771_v50 = vpop.f32.mrf.mxu0 }
  0xa7   :  { %v868_v48 = vpop.f32.mrf.mxu3  ;;  %v836_v49 = vadd.f32 %v835_v47, %v803_v46  ;;  %v804_v51 = vpop.f32.mrf.mxu1  ;;  %v772_v53 = vadd.f32 %v2530_v30, %v771_v50 }
  0xa9   :  { %v2564_v55 = vadd.f32 %v868_v48, %v836_v49  ;;  %v805_v56 = vadd.f32 %v804_v51, %v772_v53 }
  0xae   :  { %v837_v61 = vpop.f32.mrf.mxu2  ;;  %v774_v2 = vpop.f32.mrf.mxu0 }
  0xaf   :  { %v870_v62 = vpop.f32.mrf.mxu3  ;;  %v838_v1 = vadd.f32 %v837_v61, %v805_v56  ;;  %v807_v3 = vpop.f32.mrf.mxu1  ;;  %v775_v6 = vadd.f32 %v2530_v30, %v774_v2 }
  0xb1   :  { %v2567_v7 = vadd.f32 %v870_v62, %v838_v1  ;;  %v808_v8 = vadd.f32 %v807_v3, %v775_v6  ;;  %920 = vmatmul.bf16.gmra.mxu0 %v332_v63 }
  0xb2   :  { %953 = vmatmul.bf16.gmra.mxu1 %v333_v0 }
  0xb3   :  { %986 = vmatmul.bf16.gmra.mxu2 %v334_v4 }
  0xb4   :  { %1019 = vmatmul.bf16.gmra.mxu3 %v335_v5 }
  0xb6   :  { %v840_v9 = vpop.f32.mrf.mxu2  ;;  %v776_v12 = vpop.f32.mrf.mxu0 }
  0xb7   :  { %v873_v10 = vpop.f32.mrf.mxu3  ;;  %v841_v11 = vadd.f32 %v840_v9, %v808_v8  ;;  %v809_v13 = vpop.f32.mrf.mxu1  ;;  %v777_v14 = vadd.f32 %v2530_v30, %v776_v12 }
  0xb9   :  { %v2570_v15 = vadd.f32 %v873_v10, %v841_v11  ;;  %v810_v16 = vadd.f32 %v809_v13, %v777_v14 }
  0xbe   :  { %v842_v17 = vpop.f32.mrf.mxu2  ;;  %v779_v20 = vpop.f32.mrf.mxu0 }
  0xbf   :  { %v875_v18 = vpop.f32.mrf.mxu3  ;;  %v843_v19 = vadd.f32 %v842_v17, %v810_v16  ;;  %v812_v21 = vpop.f32.mrf.mxu1  ;;  %v780_v22 = vadd.f32 %v2530_v30, %v779_v20 }
  0xc1   :  { %v2573_v23 = vadd.f32 %v875_v18, %v843_v19  ;;  %v813_v24 = vadd.f32 %v812_v21, %v780_v22 }
  0xc6   :  { %v845_v25 = vpop.f32.mrf.mxu2  ;;  %v781_v28 = vpop.f32.mrf.mxu0 }
  0xc7   :  { %v878_v26 = vpop.f32.mrf.mxu3  ;;  %v846_v27 = vadd.f32 %v845_v25, %v813_v24  ;;  %v814_v29 = vpop.f32.mrf.mxu1  ;;  %v782_v31 = vadd.f32 %v2530_v30, %v781_v28 }
  0xc9   :  { %v2576_v32 = vadd.f32 %v878_v26, %v846_v27  ;;  %v815_v33 = vadd.f32 %v814_v29, %v782_v31  ;;  %v2130_v27 = vmov 0.0  }
  0xca   :  { %1077 = vst [vmem:[#allocation3] sm:$0x3] %v2130_v27 }
  0xce   :  { %v847_v34 = vpop.f32.mrf.mxu2  ;;  %v784_v37 = vpop.f32.mrf.mxu0 }
  0xcf   :  { %v880_v35 = vpop.f32.mrf.mxu3  ;;  %v848_v36 = vadd.f32 %v847_v34, %v815_v33  ;;  %v817_v38 = vpop.f32.mrf.mxu1  ;;  %v785_v39 = vadd.f32 %v2530_v30, %v784_v37 }
  0xd1   :  { %v2579_v40 = vadd.f32 %v880_v35, %v848_v36  ;;  %v818_v41 = vadd.f32 %v817_v38, %v785_v39 }
  0xd6   :  { %v850_v42 = vpop.f32.mrf.mxu2  ;;  %v786_v45 = vpop.f32.mrf.mxu0 }
  0xd7   :  { %v883_v43 = vpop.f32.mrf.mxu3  ;;  %v851_v44 = vadd.f32 %v850_v42, %v818_v41  ;;  %v819_v46 = vpop.f32.mrf.mxu1  ;;  %v787_v47 = vadd.f32 %v2530_v30, %v786_v45 }
  0xd9   :  { %v2582_v48 = vadd.f32 %v883_v43, %v851_v44  ;;  %v820_v49 = vadd.f32 %v819_v46, %v787_v47 }
  0xde   :  { %v852_v50 = vpop.f32.mrf.mxu2  ;;  %v789_v53 = vpop.f32.mrf.mxu0 }
  0xdf   :  { %v885_v51 = vpop.f32.mrf.mxu3  ;;  %v853_v52 = vadd.f32 %v852_v50, %v820_v49  ;;  %v822_v54 = vpop.f32.mrf.mxu1  ;;  %v790_v56 = vadd.f32 %v2530_v30, %v789_v53 }
  0xe1   :  { %v2585_v57 = vadd.f32 %v885_v51, %v853_v52  ;;  %v823_v58 = vadd.f32 %v822_v54, %v790_v56 }
  0xe6   :  { %v855_v59 = vpop.f32.mrf.mxu2  ;;  %v791_v62 = vpop.f32.mrf.mxu0 }
  0xe7   :  { %v888_v60 = vpop.f32.mrf.mxu3  ;;  %v856_v61 = vadd.f32 %v855_v59, %v823_v58  ;;  %v824_v63 = vpop.f32.mrf.mxu1 }
  0xe9   :  { %v2587_v0 = vadd.f32 %v888_v60, %v856_v61 }
  0xee   :  { %v857_v1 = vpop.f32.mrf.mxu2  ;;  %v901_v3 = vpop.f32.mrf.mxu0 }
  0xef   :  { %v890_v2 = vpop.f32.mrf.mxu3  ;;  %v934_v4 = vpop.f32.mrf.mxu1  ;;  %v902_v29 = vadd.f32 %v901_v3, %v2564_v55 }
  0xf1   :  { %v935_v39 = vadd.f32 %v934_v4, %v902_v29 }
  0xf6   :  { %v967_v5 = vpop.f32.mrf.mxu2  ;;  %v903_v8 = vpop.f32.mrf.mxu0 }
  0xf7   :  { %v1000_v6 = vpop.f32.mrf.mxu3  ;;  %v936_v9 = vpop.f32.mrf.mxu1  ;;  %v904_v28 = vadd.f32 %v903_v8, %v2567_v7  ;;  %v968_v44 = vadd.f32 %v967_v5, %v935_v39 }
  0xf9   :  { %v937_v37 = vadd.f32 %v936_v9, %v904_v28  ;;  %v2598_v53 = vadd.f32 %v1000_v6, %v968_v44 }
  0xfe   :  { %v969_v10 = vpop.f32.mrf.mxu2  ;;  %v906_v11 = vpop.f32.mrf.mxu0 }
  0xff   :  { %v1002_v30 = vpop.f32.mrf.mxu3  ;;  %v939_v12 = vpop.f32.mrf.mxu1  ;;  %v907_v31 = vadd.f32 %v906_v11, %v2570_v15  ;;  %v970_v41 = vadd.f32 %v969_v10, %v937_v37 }
 0x101   :  { %v940_v42 = vadd.f32 %v939_v12, %v907_v31  ;;  %v2595_v55 = vadd.f32 %v1002_v30, %v970_v41 }
 0x103   :  { %v1079_v63 = vadd.f32 %v2595_v55, %v2598_v53 }
 0x106   :  { %v972_v13 = vpop.f32.mrf.mxu2  ;;  %v908_v16 = vpop.f32.mrf.mxu0 }
 0x107   :  { %v1005_v14 = vpop.f32.mrf.mxu3  ;;  %v941_v17 = vpop.f32.mrf.mxu1  ;;  %v909_v38 = vadd.f32 %v908_v16, %v2573_v23  ;;  %v973_v45 = vadd.f32 %v972_v13, %v940_v42 }
 0x109   :  { %v942_v46 = vadd.f32 %v941_v17, %v909_v38  ;;  %v2600_v54 = vadd.f32 %v1005_v14, %v973_v45 }
 0x10b   :  { %v1095_v62 = vmul.f32 %v2600_v54, %v2600_v54  ;;  %v1080_v6 = vadd.f32 %v1079_v63, %v2600_v54 }
 0x10e   :  { %v974_v18 = vpop.f32.mrf.mxu2  ;;  %v911_v20 = vpop.f32.mrf.mxu0 }
 0x10f   :  { %v1007_v19 = vpop.f32.mrf.mxu3  ;;  %v944_v21 = vpop.f32.mrf.mxu1  ;;  %v912_v43 = vadd.f32 %v911_v20, %v2576_v32  ;;  %v975_v49 = vadd.f32 %v974_v18, %v942_v46 }
 0x111   :  { %v945_v50 = vadd.f32 %v944_v21, %v912_v43  ;;  %v2605_v59 = vadd.f32 %v1007_v19, %v975_v49 }
 0x113   :  { %v1096_v8 = vmul.f32 %v2605_v59, %v2605_v59  ;;  %v1081_v13 = vadd.f32 %v1080_v6, %v2605_v59 }
 0x116   :  { %v977_v22 = vpop.f32.mrf.mxu2  ;;  %v913_v25 = vpop.f32.mrf.mxu0 }
 0x117   :  { %v1010_v24 = vpop.f32.mrf.mxu3  ;;  %v946_v26 = vpop.f32.mrf.mxu1  ;;  %v914_v7 = vadd.f32 %v913_v25, %v2579_v40  ;;  %v978_v32 = vadd.f32 %v977_v22, %v945_v50  ;;  %v1094_v40 = vmul.f32 %v2595_v55, %v2595_v55 }
 0x119   :  { %v947_v56 = vadd.f32 %v946_v26, %v914_v7  ;;  %v2613_v1 = vadd.f32 %v1010_v24, %v978_v32 }
 0x11b   :  { %v1097_v14 = vmul.f32 %v2613_v1, %v2613_v1  ;;  %v1082_v19 = vadd.f32 %v1081_v13, %v2613_v1 }
 0x11e   :  { %v979_v33 = vpop.f32.mrf.mxu2  ;;  %v916_v35 = vpop.f32.mrf.mxu0 }
 0x11f   :  { %v1012_v34 = vpop.f32.mrf.mxu3  ;;  %v949_v36 = vpop.f32.mrf.mxu1  ;;  %v917_v51 = vadd.f32 %v916_v35, %v2582_v48  ;;  %v980_v60 = vadd.f32 %v979_v33, %v947_v56  ;;  %v1093_v48 = vmul.f32 %v2598_v53, %v2598_v53  ;;  %v1078_v56 = vld [vmem:[#allocation3] sm:$0x3] }
 0x121   :  { %v950_v61 = vadd.f32 %v949_v36, %v917_v51  ;;  %v1102_v3 = vadd.f32 %v1094_v40, %v1093_v48  ;;  %v2618_v9 = vadd.f32 %v1012_v34, %v980_v60 }
 0x123   :  { %v1103_v12 = vadd.f32 %v1102_v3, %v1095_v62  ;;  %v1098_v20 = vmul.f32 %v2618_v9, %v2618_v9  ;;  %v1083_v24 = vadd.f32 %v1082_v19, %v2618_v9 }
 0x125   :  { %v1104_v18 = vadd.f32 %v1103_v12, %v1096_v8 }
 0x126   :  { %v982_v15 = vpop.f32.mrf.mxu2  ;;  %v918_v52 = vpop.f32.mrf.mxu0 }
 0x127   :  { %v1015_v47 = vpop.f32.mrf.mxu3  ;;  %v951_v23 = vpop.f32.mrf.mxu1  ;;  %v919_v58 = vadd.f32 %v918_v52, %v2585_v57  ;;  %v983_v2 = vadd.f32 %v982_v15, %v950_v61  ;;  %v1105_v22 = vadd.f32 %v1104_v18, %v1097_v14 }
 0x129   :  { %v952_v57 = vadd.f32 %v951_v23, %v919_v58  ;;  %v2623_v16 = vadd.f32 %v1015_v47, %v983_v2  ;;  %v1106_v29 = vadd.f32 %v1105_v22, %v1098_v20 }
 0x12b   :  { %v1099_v25 = vmul.f32 %v2623_v16, %v2623_v16 }
 0x12d   :  { %v1107_v36 = vadd.f32 %v1106_v29, %v1099_v25 }
 0x12e   :  { %v984_v4 = vpop.f32.mrf.mxu2  ;;  %v921_v30 = vpop.f32.mrf.mxu0 }
 0x12f   :  { %v1017_v5 = vpop.f32.mrf.mxu3  ;;  %v985_v10 = vadd.f32 %v984_v4, %v952_v57  ;;  %v954_v11 = vpop.f32.mrf.mxu1  ;;  %v922_v17 = vadd.f32 %v921_v30, %v2587_v0  ;;  %v1084_v0 = vadd.f32 %v1083_v24, %v2623_v16 }
 0x131   :  { %v2629_v21 = vadd.f32 %v1017_v5, %v985_v10  ;;  %v955_v26 = vadd.f32 %v954_v11, %v922_v17  ;;  %v1129_v11 = vld [vmem:[%s3079_s3] sm:$0x1] }
 0x132   :  { %v1142_v17 = vld [vmem:[%s3080_s4] sm:$0x1] }
 0x133   :  { %v1100_v31 = vmul.f32 %v2629_v21, %v2629_v21  ;;  %v1085_v37 = vadd.f32 %v1084_v0, %v2629_v21 }
 0x135   :  { %v1108_v39 = vadd.f32 %v1107_v36, %v1100_v31 }
 0x136   :  { %v987_v27 = vpop.f32.mrf.mxu2  ;;  %v923_v34 = vpop.f32.mrf.mxu0 }
 0x137   :  { %v1020_v28 = vpop.f32.mrf.mxu3  ;;  %v988_v33 = vadd.f32 %v987_v27, %v955_v26  ;;  %v956_v35 = vpop.f32.mrf.mxu1 }
 0x139   :  { %v2638_v38 = vadd.f32 %v1020_v28, %v988_v33 }
 0x13b   :  { %v1086_v41 = vadd.f32 %v1085_v37, %v2638_v38  ;;  %v1101_v42 = vmul.f32 %v2638_v38, %v2638_v38 }
 0x13d   :  { %v1087_v43 = vrot.slane %v1086_v41, 4  ;;  %v1109_v44 = vadd.f32 %v1108_v39, %v1101_v42 }
 0x13e   :  { %v989_v45 = vpop.f32.mrf.mxu2 }
 0x13f   :  { %v1022_v46 = vpop.f32.mrf.mxu3  ;;  %v1088_v7 = vadd.f32 %v1087_v43, %v1086_v41  ;;  %v1110_v15 = vrot.slane %v1109_v44, 4 }
 0x141   :  { %v1089_v47 = vrot.slane %v1088_v7, 2  ;;  %v1111_v49 = vadd.f32 %v1110_v15, %v1109_v44 }
 0x143   :  { %v1090_v50 = vadd.f32 %v1089_v47, %v1088_v7  ;;  %v1112_v51 = vrot.slane %v1111_v49, 2 }
 0x145   :  { %v1091_v52 = vrot.slane %v1090_v50, 1  ;;  %v1113_v23 = vadd.f32 %v1112_v51, %v1111_v49 }
 0x147   :  { %v1114_v32 = vrot.slane %v1113_v23, 1  ;;  %v1092_v58 = vadd.f32 %v1091_v52, %v1090_v50 }
 0x149   :  { %v1115_v40 = vadd.f32 %v1114_v32, %v1113_v23 }
 0x14b   :  { %v1117_v60 = vsel %vm1116_vm0, %v1092_v58, %v1115_v40 }
 0x14c   :  { %v1118_v61 = vadd.f32 %v1117_v60, %v1078_v56 }
 0x14e   :  { %1119 = vst [vmem:[#allocation3] sm:$0x3] %v1118_v61 }
 0x155   :  { %v1123_v48 = vld [vmem:[#allocation3] sm:$0x1]  ;;  %v1125_v62 = vld [vmem:[#allocation3 + $0x1] sm:$0x1] }
 0x156   :  { %v1124_v63 = vmul.f32 0.013888889, %v1123_v48  ;;  %v1126_v2 = vmul.f32 0.013888889, %v1125_v62 }
 0x158   :  { %v1127_v57 = vmul.f32 %v1124_v63, %v1124_v63 }
 0x15a   :  { %v1128_v3 = vsub.f32 %v1126_v2, %v1127_v57 }
 0x15c   :  { %v1130_v4 = vadd.f32 1e-05, %v1128_v3 }
 0x15e   :  { %2110 = vrsqrt.f32 %v1130_v4  ;;  %vm1137_vm2 = vweird.f32 %v1130_v4 }
 0x164   :  { %v2111_v5 = vpop.eup %2110 }
 0x165   :  { %v1132_v6 = vmul.f32 %v2111_v5, %v1130_v4  ;;  %vm1138_vm1 = vweird.f32 %v2111_v5 }
 0x166   :  { %vm1139_vm3 = vmor %vm1137_vm2, %vm1138_vm1 }
 0x167   :  { %v1133_v8 = vmul.f32 %v2111_v5, %v1132_v6 }
 0x169   :  { %v1134_v10 = vmul.f32 0.5, %v1133_v8 }
 0x16b   :  { %v1135_v30 = vsub.f32 1.5, %v1134_v10 }
 0x16d   :  { %v1136_v12 = vmul.f32 %v2111_v5, %v1135_v30 }
 0x16f   :  { %v1140_v13 = vsel %vm1139_vm3, %v2111_v5, %v1136_v12 }
 0x170   :  { %v1141_v14 = vmul.f32 %v1140_v13, %v1129_v11 }
 0x172   :  { %v1143_v18 = vmul.f32 %v1141_v14, %v1124_v63  ;;  %v2649_v19 = vperm.slane %v1141_v14, 0 }
 0x174   :  { %v1144_v20 = vsub.f32 %v1142_v17, %v1143_v18  ;;  %v1157_v22 = vmul.f32 %v2649_v19, %v2598_v53  ;;  %v1158_v24 = vmul.f32 %v2649_v19, %v2595_v55  ;;  %v1159_v26 = vmul.f32 %v2649_v19, %v2600_v54 }
 0x175   :  { %v1160_v27 = vmul.f32 %v2649_v19, %v2605_v59  ;;  %v1161_v15 = vmul.f32 %v2649_v19, %v2613_v1  ;;  %v1162_v51 = vmul.f32 %v2649_v19, %v2618_v9  ;;  %v1163_v18 = vmul.f32 %v2649_v19, %v2623_v16 }
 0x176   :  { %v2655_v25 = vperm.slane %v1144_v20, 0  ;;  %v1165_v16 = vmul.f32 %v2649_v19, %v2638_v38 }
 0x178   :  { %v2662_v28 = vadd.f32 %v2655_v25, %v1157_v22  ;;  %v2665_v29 = vadd.f32 %v2655_v25, %v1158_v24  ;;  %v2668_v0 = vadd.f32 %v2655_v25, %v1159_v26  ;;  %v2671_v53 = vadd.f32 %v2655_v25, %v1160_v27 }
 0x179   :  { %v1173_v3 = vadd.f32 %v2655_v25, %v1161_v15  ;;  %v1174_v15 = vadd.f32 %v2655_v25, %v1162_v51 }
 0x17a   :  { %v2674_v55 = vmul.f32 0.70710677, %v2662_v28  ;;  %v2677_v54 = vmul.f32 0.70710677, %v2665_v29  ;;  %v2680_v59 = vmul.f32 0.70710677, %v2668_v0 }
 0x17b   :  { %v2683_v31 = vmul.f32 0.70710677, %v2671_v53  ;;  %v2729_v26 = vmul.f32 0.70710677, %v1173_v3 }
 0x17c   :  { %v1196_v33 = vmul.f32 %v2674_v55, %v2674_v55  ;;  %v1236_v34 = vmul.f32 %v2677_v54, %v2677_v54  ;;  %v1276_v35 = vmul.f32 %v2680_v59, %v2680_v59 }
 0x17d   :  { %v1316_v36 = vmul.f32 %v2683_v31, %v2683_v31 }
 0x17e   :  { %v2693_v37 = vmin.f32 %v1196_v33, 16.0  ;;  %v2695_v39 = vmin.f32 %v1236_v34, 16.0  ;;  %v2697_v41 = vmin.f32 %v1276_v35, 16.0 }
 0x17f   :  { %v2701_v44 = vmin.f32 %v1316_v36, 16.0 }
 0x180   :  { %v1198_v42 = vmul.f32 2.1237322e-06, %v2693_v37  ;;  %v1209_v43 = vmul.f32 3.8918573e-05, %v2693_v37  ;;  %v1238_v45 = vmul.f32 2.1237322e-06, %v2695_v39 }
 0x181   :  { %v1249_v46 = vmul.f32 3.8918573e-05, %v2695_v39  ;;  %v1278_v7 = vmul.f32 2.1237322e-06, %v2697_v41  ;;  %v1289_v50 = vmul.f32 3.8918573e-05, %v2697_v41 }
 0x182   :  { %v1199_v47 = vadd.f32 0.00028619796, %v1198_v42  ;;  %v1210_v49 = vadd.f32 0.001143296, %v1209_v43  ;;  %v1239_v52 = vadd.f32 0.00028619796, %v1238_v45  ;;  %v1164_v45 = vmul.f32 %v2649_v19, %v2629_v21 }
 0x183   :  { %v1250_v23 = vadd.f32 0.001143296, %v1249_v46  ;;  %v1279_v32 = vadd.f32 0.00028619796, %v1278_v7  ;;  %v1290_v40 = vadd.f32 0.001143296, %v1289_v50  ;;  %v1356_v21 = vmul.f32 %v2729_v26, %v2729_v26 }
 0x184   :  { %v1200_v56 = vmul.f32 %v1199_v47, %v2693_v37  ;;  %v1211_v58 = vmul.f32 %v1210_v49, %v2693_v37  ;;  %v1318_v60 = vmul.f32 2.1237322e-06, %v2701_v44  ;;  %v1240_v61 = vmul.f32 %v1239_v52, %v2695_v39 }
 0x185   :  { %v1251_v1 = vmul.f32 %v1250_v23, %v2695_v39  ;;  %v1280_v48 = vmul.f32 %v1279_v32, %v2697_v41  ;;  %v1329_v62 = vmul.f32 3.8918573e-05, %v2701_v44  ;;  %v1291_v2 = vmul.f32 %v1290_v40, %v2697_v41 }
 0x186   :  { %v1201_v63 = vadd.f32 0.0036580483, %v1200_v56  ;;  %v1212_v9 = vadd.f32 0.014752088, %v1211_v58  ;;  %v1319_v57 = vadd.f32 0.00028619796, %v1318_v60  ;;  %v2749_v58 = vadd.f32 %v2655_v25, %v1163_v18 }
 0x187   :  { %v1241_v4 = vadd.f32 0.0036580483, %v1240_v61  ;;  %v1252_v5 = vadd.f32 0.014752088, %v1251_v1  ;;  %v1281_v6 = vadd.f32 0.0036580483, %v1280_v48  ;;  %v2752_v40 = vadd.f32 %v2655_v25, %v1164_v45 }
 0x188   :  { %v1202_v8 = vmul.f32 %v1201_v63, %v2693_v37  ;;  %v1213_v10 = vmul.f32 %v1212_v9, %v2693_v37  ;;  %v1292_v30 = vadd.f32 0.014752088, %v1291_v2  ;;  %v1320_v11 = vmul.f32 %v1319_v57, %v2701_v44 }
 0x189   :  { %v1242_v12 = vmul.f32 %v1241_v4, %v2695_v39  ;;  %v1253_v13 = vmul.f32 %v1252_v5, %v2695_v39  ;;  %v1282_v14 = vmul.f32 %v1281_v6, %v2697_v41  ;;  %v1330_v17 = vadd.f32 0.001143296, %v1329_v62 }
 0x18a   :  { %v1203_v20 = vadd.f32 0.05243302, %v1202_v8  ;;  %v1214_v22 = vadd.f32 0.112945676, %v1213_v10  ;;  %v1293_v24 = vmul.f32 %v1292_v30, %v2697_v41  ;;  %v1321_v33 = vadd.f32 0.0036580483, %v1320_v11 }
 0x18b   :  { %v1254_v27 = vadd.f32 0.112945676, %v1253_v13  ;;  %v1331_v34 = vmul.f32 %v1330_v17, %v2701_v44  ;;  %v1243_v36 = vadd.f32 0.05243302, %v1242_v12  ;;  %v1283_v42 = vadd.f32 0.05243302, %v1282_v14 }
 0x18c   :  { %v1215_v35 = vmul.f32 %v1214_v22, %v2693_v37  ;;  %v1294_v43 = vadd.f32 0.112945676, %v1293_v24  ;;  %v1204_v47 = vmul.f32 %v1203_v20, %v2693_v37  ;;  %v1322_v23 = vmul.f32 %v1321_v33, %v2701_v44 }
 0x18d   :  { %v1255_v46 = vmul.f32 %v1254_v27, %v2695_v39  ;;  %v1332_v7 = vadd.f32 0.014752088, %v1331_v34  ;;  %v1244_v19 = vmul.f32 %v1243_v36, %v2695_v39  ;;  %v1284_v56 = vmul.f32 %v1283_v42, %v2697_v41 }
 0x18e   :  { %v1216_v49 = vadd.f32 0.4994258, %v1215_v35  ;;  %v1295_v50 = vmul.f32 %v1294_v43, %v2697_v41  ;;  %v2756_v1 = vadd.f32 %v2655_v25, %v1165_v16  ;;  %v2758_v48 = vmul.f32 0.70710677, %v1174_v15 }
 0x18f   :  { %v1256_v52 = vadd.f32 0.4994258, %v1255_v46  ;;  %v1333_v32 = vmul.f32 %v1332_v7, %v2701_v44  ;;  %v1205_v62 = vadd.f32 0.18741608, %v1204_v47  ;;  %v1323_v57 = vadd.f32 0.05243302, %v1322_v23 }
 0x190   :  { %v1217_v38 = vmul.f32 %v1216_v49, %v2693_v37  ;;  %v1296_v51 = vadd.f32 0.4994258, %v1295_v50  ;;  %v1245_v5 = vadd.f32 0.18741608, %v1244_v19  ;;  %v1285_v6 = vadd.f32 0.18741608, %v1284_v56 }
 0x191   :  { %v1257_v60 = vmul.f32 %v1256_v52, %v2695_v39  ;;  %v1334_v61 = vadd.f32 0.112945676, %v1333_v32  ;;  %v2767_v8 = vmin.f32 %v1356_v21, 16.0  ;;  %v2770_v25 = vmul.f32 0.5, %v2662_v28 }
 0x192   :  { %v2760_v63 = vadd.f32 1.0, %v1217_v38  ;;  %v1297_v2 = vmul.f32 %v1296_v51, %v2697_v41  ;;  %v2773_v10 = vmul.f32 0.5, %v2665_v29  ;;  %v2776_v30 = vmul.f32 0.5, %v2668_v0 }
 0x193   :  { %v2762_v9 = vadd.f32 1.0, %v1257_v60  ;;  %v1335_v4 = vmul.f32 %v1334_v61, %v2701_v44  ;;  %v2780_v11 = vmul.f32 0.5, %v2671_v53  ;;  %v2782_v12 = vmul.f32 0.5, %v1173_v3 }
 0x194   :  { %2112 = vrcp.f32 %v2760_v63  ;;  %v2785_v13 = vmul.f32 0.70710677, %v2749_v58  ;;  %v1396_v28 = vmul.f32 %v2758_v48, %v2758_v48  ;;  %v1206_v14 = vmul.f32 %v1205_v62, %v2693_v37 }
 0x195   :  { %2114 = vrcp.f32 %v2762_v9  ;;  %v2790_v29 = vadd.f32 1.0, %v1297_v2  ;;  %v1324_v0 = vmul.f32 %v1323_v57, %v2701_v44  ;;  %v1336_v17 = vadd.f32 0.4994258, %v1335_v4 }
 0x196   :  { %v1246_v18 = vmul.f32 %v1245_v5, %v2695_v39  ;;  %v1286_v53 = vmul.f32 %v1285_v6, %v2697_v41  ;;  %v1358_v3 = vmul.f32 2.1237322e-06, %v2767_v8  ;;  %v1369_v20 = vmul.f32 3.8918573e-05, %v2767_v8 }
 0x197   :  { %v2797_v22 = vmul.f32 0.5, %v1174_v15  ;;  %v2800_v24 = vmul.f32 0.70710677, %v2752_v40  ;;  %v2803_v37 = vmul.f32 0.70710677, %v2756_v1  ;;  %2116 = vrcp.f32 %v2790_v29 }
 0x198   :  { %v1337_v39 = vmul.f32 %v1336_v17, %v2701_v44  ;;  %v1359_v33 = vadd.f32 0.00028619796, %v1358_v3  ;;  %v1370_v41 = vadd.f32 0.001143296, %v1369_v20  ;;  %v2809_v34 = vmin.f32 %v1396_v28, 16.0 }
 0x199   :  { %v1207_v36 = vadd.f32 1.1283791, %v1206_v14  ;;  %v1325_v43 = vadd.f32 0.18741608, %v1324_v0  ;;  %v1436_v45 = vmul.f32 %v2785_v13, %v2785_v13  ;;  %v1247_v16 = vadd.f32 1.1283791, %v1246_v18 }
 0x19a   :  { %v2806_v27 = vpop.eup %2112  ;;  %v1287_v7 = vadd.f32 1.1283791, %v1286_v53  ;;  %v2819_v15 = vadd.f32 1.0, %v1337_v39  ;;  %v1228_v49 = vand.u32 2147483647, %v2760_v63  ;;  %v1360_v50 = vmul.f32 %v1359_v33, %v2767_v8 }
 0x19b   :  { %v2811_v35 = vpop.eup %2114  ;;  %v1220_v42 = vmul.f32 %v2806_v27, %v2760_v63  ;;  %v1371_v52 = vmul.f32 %v1370_v41, %v2767_v8  ;;  %v1230_v23 = vand.u32 2147483648, %v2760_v63  ;;  %v1398_v21 = vmul.f32 2.1237322e-06, %v2809_v34 }
 0x19c   :  { %v1260_v46 = vmul.f32 %v2811_v35, %v2762_v9  ;;  %2118 = vrcp.f32 %v2819_v15  ;;  %v2830_v19 = vmul.f32 %v1207_v36, %v2674_v55  ;;  %vm1224_vm4 = vweird.f32 %v2760_v63 }
 0x19d   :  { %v1221_v47 = vsub.f32 1.0, %v1220_v42  ;;  %v2827_v38 = vpop.eup %2116  ;;  %v1268_v56 = vand.u32 2147483647, %v2762_v9  ;;  %v1372_v51 = vadd.f32 0.014752088, %v1371_v52  ;;  %v2836_v61 = vmul.f32 %v1247_v16, %v2677_v54 }
 0x19e   :  { %v1261_v32 = vsub.f32 1.0, %v1260_v46  ;;  %vm1264_vm5 = vweird.f32 %v2762_v9  ;;  %v1300_v62 = vmul.f32 %v2827_v38, %v2790_v29  ;;  %v1270_v55 = vand.u32 2147483648, %v2762_v9 }
 0x19f   :  { %v1222_v60 = vmul.f32 %v2806_v27, %v1221_v47  ;;  %v1361_v57 = vadd.f32 0.0036580483, %v1360_v50  ;;  %v1373_v4 = vmul.f32 %v1372_v51, %v2767_v8  ;;  %vm2844_vm6 = vcmp.eq.f32.partialorder %v1228_v49, 8.507059e+37 }
 0x1a0   :  { %v1262_v2 = vmul.f32 %v2811_v35, %v1261_v32  ;;  %v1231_v6 = vor.u32 1.1754944e-38, %v1230_v23  ;;  %v2849_v54 = vmul.f32 %v1287_v7, %v2680_v59  ;;  %v1326_v28 = vmul.f32 %v1325_v43, %v2701_v44 }
 0x1a1   :  { %v1399_v14 = vadd.f32 0.00028619796, %v1398_v21  ;;  %vm2852_vm7 = vcmp.eq.f32.partialorder %v1268_v56, 8.507059e+37  ;;  %v1310_v17 = vand.u32 2147483648, %v2790_v29  ;;  %v1374_v18 = vadd.f32 0.112945676, %v1373_v4 }
 0x1a2   :  { %v1409_v53 = vmul.f32 3.8918573e-05, %v2809_v34  ;;  %v2858_v3 = vpop.eup %2118  ;;  %v1223_v20 = vadd.f32 %v2806_v27, %v1222_v60  ;;  %vm1225_vm8 = vweird.f32 %v2806_v27  ;;  %v1301_v59 = vsub.f32 1.0, %v1300_v62 }
 0x1a3   :  { %v1400_v39 = vmul.f32 %v1399_v14, %v2809_v34  ;;  %v1263_v44 = vadd.f32 %v2811_v35, %v1262_v2  ;;  %vm1265_vm9 = vweird.f32 %v2811_v35  ;;  %v1340_v33 = vmul.f32 %v2858_v3, %v2819_v15  ;;  %vm2874_vm10 = vmor %vm1224_vm4, %vm1225_vm8 }
 0x1a4   :  { %v1362_v41 = vmul.f32 %v1361_v57, %v2767_v8  ;;  %v1271_v36 = vor.u32 1.1754944e-38, %v1270_v55  ;;  %v1308_v42 = vand.u32 2147483647, %v2790_v29  ;;  %v1375_v43 = vmul.f32 %v1374_v18, %v2767_v8  ;;  %vm2884_vm12 = vmor %vm1264_vm5, %vm1265_vm9 }
 0x1a5   :  { %v2870_v16 = vmin.f32 %v1436_v45, 16.0  ;;  %vm1304_vm11 = vweird.f32 %v2790_v29  ;;  %v1327_v7 = vadd.f32 1.1283791, %v1326_v28  ;;  %v1401_v47 = vadd.f32 0.0036580483, %v1400_v39 }
 0x1a6   :  { %v1410_v49 = vadd.f32 0.001143296, %v1409_v53  ;;  %v1227_v50 = vsel %vm2874_vm10, %v2806_v27, %v1223_v20  ;;  %v1302_v63 = vmul.f32 %v2827_v38, %v1301_v59  ;;  %v1311_v52 = vor.u32 1.1754944e-38, %v1310_v17 }
 0x1a7   :  { %v1376_v23 = vadd.f32 0.4994258, %v1375_v43  ;;  %v1267_v32 = vsel %vm2884_vm12, %v2811_v35, %v1263_v44  ;;  %v1341_v21 = vsub.f32 1.0, %v1340_v33  ;;  %v1363_v56 = vadd.f32 0.05243302, %v1362_v41 }
 0x1a8   :  { %v1411_v51 = vmul.f32 %v1410_v49, %v2809_v34  ;;  %vm1305_vm13 = vweird.f32 %v2827_v38  ;;  %v1350_v9 = vand.u32 2147483648, %v2819_v15  ;;  %v1438_v60 = vmul.f32 2.1237322e-06, %v2870_v16 }
 0x1a9   :  { %v1377_v27 = vmul.f32 %v1376_v23, %v2767_v8  ;;  %v1232_v62 = vsel %vm2844_vm6, %v1231_v6, %v1227_v50  ;;  %v1402_v2 = vmul.f32 %v1401_v47, %v2809_v34  ;;  %v1449_v35 = vmul.f32 3.8918573e-05, %v2870_v16  ;;  %vm2929_vm0 = vmor %vm1304_vm11, %vm1305_vm13 }
 0x1aa   :  { %v1412_v55 = vadd.f32 0.014752088, %v1411_v51  ;;  %v1272_v57 = vsel %vm2852_vm7, %v1271_v36, %v1267_v32  ;;  %v1303_v4 = vadd.f32 %v2827_v38, %v1302_v63  ;;  %vm2904_vm14 = vcmp.eq.f32.partialorder %v1308_v42, 8.507059e+37 }
 0x1ab   :  { %v2908_v14 = vadd.f32 1.0, %v1377_v27  ;;  %v1439_v17 = vadd.f32 0.00028619796, %v1438_v60  ;;  %v1342_v5 = vmul.f32 %v2858_v3, %v1341_v21  ;;  %v1364_v6 = vmul.f32 %v1363_v56, %v2767_v8 }
 0x1ac   :  { %v1413_v18 = vmul.f32 %v1412_v55, %v2809_v34  ;;  %v1450_v53 = vadd.f32 0.001143296, %v1449_v35  ;;  %v2914_v20 = vmul.f32 %v1327_v7, %v2683_v31  ;;  %vm1344_vm15 = vweird.f32 %v2819_v15 }
 0x1ad   :  { %v1348_v0 = vand.u32 2147483647, %v2819_v15  ;;  %2120 = vrcp.f32 %v2908_v14  ;;  %v2920_v59 = vmul.f32 %v1232_v62, %v2830_v19  ;;  %v2923_v39 = vmul.f32 %v1272_v57, %v2836_v61 }
 0x1ae   :  { %v1351_v44 = vor.u32 1.1754944e-38, %v1350_v9  ;;  %v1403_v33 = vadd.f32 0.05243302, %v1402_v2  ;;  %v1414_v41 = vadd.f32 0.112945676, %v1413_v18  ;;  %v1440_v36 = vmul.f32 %v1439_v17, %v2870_v16 }
 0x1af   :  { %v1451_v42 = vmul.f32 %v1450_v53, %v2870_v16  ;;  %v1476_v19 = vmul.f32 %v2800_v24, %v2800_v24  ;;  %v1307_v61 = vsel %vm2929_vm0, %v2827_v38, %v1303_v4  ;;  %v1343_v43 = vadd.f32 %v2858_v3, %v1342_v5 }
 0x1b0   :  { %vm1345_vm1 = vweird.f32 %v2858_v3  ;;  %v1365_v29 = vadd.f32 0.18741608, %v1364_v6  ;;  %v1415_v46 = vmul.f32 %v1414_v41, %v2809_v34  ;;  %v1441_v7 = vadd.f32 0.0036580483, %v1440_v36 }
 0x1b1   :  { %v1452_v47 = vadd.f32 0.014752088, %v1451_v42  ;;  %v2943_v49 = vmin.f32 %v1476_v19, 16.0  ;;  %v1980_v50 = vclamps-f32 %v2920_v59, 1.0  ;;  %v1981_v45 = vclamps-f32 %v2923_v39, 1.0  ;;  %vm2963_vm3 = vmor %vm1344_vm15, %vm1345_vm1 }
 0x1b2   :  { %vm2947_vm2 = vcmp.eq.f32.partialorder %v1348_v0, 8.507059e+37  ;;  %v1404_v38 = vmul.f32 %v1403_v33, %v2809_v34  ;;  %v1516_v23 = vmul.f32 %v2803_v37, %v2803_v37  ;;  %v1416_v21 = vadd.f32 0.4994258, %v1415_v46 }
 0x1b3   :  { %v2121_v32 = vpop.eup %2120  ;;  %v1442_v56 = vmul.f32 %v1441_v7, %v2870_v16  ;;  %v1453_v51 = vmul.f32 %v1452_v47, %v2870_v16  ;;  %v1478_v9 = vmul.f32 2.1237322e-06, %v2943_v49  ;;  %v1312_v27 = vsel %vm2904_vm14, %v1311_v52, %v1307_v61 }
 0x1b4   :  { %v1366_v62 = vmul.f32 %v1365_v29, %v2767_v8  ;;  %v1380_v2 = vmul.f32 %v2121_v32, %v2908_v14  ;;  %v1489_v55 = vmul.f32 3.8918573e-05, %v2943_v49  ;;  %v1347_v35 = vsel %vm2963_vm3, %v2858_v3, %v1343_v43 }
 0x1b5   :  { %v1417_v52 = vmul.f32 %v1416_v21, %v2809_v34  ;;  %v1443_v57 = vadd.f32 0.05243302, %v1442_v56  ;;  %v1454_v4 = vadd.f32 0.112945676, %v1453_v51  ;;  %v1479_v15 = vadd.f32 0.00028619796, %v1478_v9 }
 0x1b6   :  { %v1381_v28 = vsub.f32 1.0, %v1380_v2  ;;  %v1490_v17 = vadd.f32 0.001143296, %v1489_v55  ;;  %v2974_v5 = vmin.f32 %v1516_v23, 16.0  ;;  %vm1384_vm4 = vweird.f32 %v2908_v14 }
 0x1b7   :  { %v1405_v8 = vadd.f32 0.18741608, %v1404_v38  ;;  %v2977_v6 = vadd.f32 1.0, %v1417_v52  ;;  %v1455_v18 = vmul.f32 %v1454_v4, %v2870_v16  ;;  %vm1385_vm5 = vweird.f32 %v2121_v32 }
 0x1b8   :  { %v1382_v53 = vmul.f32 %v2121_v32, %v1381_v28  ;;  %v1491_v3 = vmul.f32 %v1490_v17, %v2943_v49  ;;  %v1518_v0 = vmul.f32 2.1237322e-06, %v2974_v5  ;;  %v1390_v33 = vand.u32 2147483648, %v2908_v14  ;;  %vm2993_vm6 = vmor %vm1384_vm4, %vm1385_vm5 }
 0x1b9   :  { %2122 = vrcp.f32 %v2977_v6  ;;  %v1444_v31 = vmul.f32 %v1443_v57, %v2870_v16  ;;  %v1529_v41 = vmul.f32 3.8918573e-05, %v2974_v5  ;;  %v1388_v42 = vand.u32 2147483647, %v2908_v14 }
 0x1ba   :  { %v1383_v36 = vadd.f32 %v2121_v32, %v1382_v53  ;;  %v1456_v19 = vadd.f32 0.4994258, %v1455_v18  ;;  %v1480_v61 = vmul.f32 %v1479_v15, %v2943_v49  ;;  %v1313_v43 = vmul.f32 %v1312_v27, %v2849_v54 }
 0x1bb   :  { %v1352_v29 = vsel %vm2947_vm2, %v1351_v44, %v1347_v35  ;;  %v1406_v7 = vmul.f32 %v1405_v8, %v2809_v34  ;;  %v1492_v47 = vadd.f32 0.014752088, %v1491_v3  ;;  %v1367_v38 = vadd.f32 1.1283791, %v1366_v62 }
 0x1bc   :  { %v1387_v23 = vsel %vm2993_vm6, %v2121_v32, %v1383_v36  ;;  %v1457_v21 = vmul.f32 %v1456_v19, %v2870_v16  ;;  %v1519_v56 = vadd.f32 0.00028619796, %v1518_v0  ;;  %v1391_v54 = vor.u32 1.1754944e-38, %v1390_v33 }
 0x1bd   :  { %v1445_v51 = vadd.f32 0.18741608, %v1444_v31  ;;  %v1493_v44 = vmul.f32 %v1492_v47, %v2943_v49  ;;  %v1530_v63 = vadd.f32 0.001143296, %v1529_v41  ;;  %v1353_v14 = vmul.f32 %v1352_v29, %v2914_v20 }
 0x1be   :  { %vm1389_vm7 = vcmp.eq.f32.partialorder %v1388_v42, 8.507059e+37  ;;  %v3003_v9 = vadd.f32 1.0, %v1457_v21  ;;  %v1481_v27 = vadd.f32 0.0036580483, %v1480_v61  ;;  %v1407_v62 = vadd.f32 1.1283791, %v1406_v7 }
 0x1bf   :  { %v2123_v34 = vpop.eup %2122  ;;  %v1392_v60 = vsel %vm1389_vm7, %v1391_v54, %v1387_v23  ;;  %v1494_v2 = vadd.f32 0.112945676, %v1493_v44  ;;  %v1531_v32 = vmul.f32 %v1530_v63, %v2974_v5  ;;  %v1982_v55 = vclamps-f32 %v1313_v43, 1.0 }
 0x1c0   :  { %v1368_v35 = vmul.f32 %v1367_v38, %v2729_v26  ;;  %v1420_v52 = vmul.f32 %v2123_v34, %v2977_v6  ;;  %v1520_v57 = vmul.f32 %v1519_v56, %v2974_v5  ;;  %v1428_v4 = vand.u32 2147483647, %v2977_v6 }
 0x1c1   :  { %v1430_v20 = vand.u32 2147483648, %v2977_v6  ;;  %v1446_v28 = vmul.f32 %v1445_v51, %v2870_v16  ;;  %2124 = vrcp.f32 %v3003_v9  ;;  %v1482_v8 = vmul.f32 %v1481_v27, %v2943_v49 }
 0x1c2   :  { %v1393_v15 = vmul.f32 %v1392_v60, %v1368_v35  ;;  %v1421_v17 = vsub.f32 1.0, %v1420_v52  ;;  %v1495_v18 = vmul.f32 %v1494_v2, %v2943_v49  ;;  %v1983_v53 = vclamps-f32 %v1353_v14, 1.0 }
 0x1c3   :  { %v1408_v26 = vmul.f32 %v1407_v62, %v2758_v48  ;;  %vm1424_vm8 = vweird.f32 %v2977_v6  ;;  %v1532_v3 = vadd.f32 0.014752088, %v1531_v32  ;;  %vm1425_vm9 = vweird.f32 %v2123_v34 }
 0x1c4   :  { %v1422_v0 = vmul.f32 %v2123_v34, %v1421_v17  ;;  %v1496_v33 = vadd.f32 0.4994258, %v1495_v18  ;;  %v1521_v31 = vadd.f32 0.0036580483, %v1520_v57  ;;  %vm3017_vm10 = vcmp.eq.f32.partialorder %v1428_v4, 8.507059e+37  ;;  %vm1426_vm11 = vmor %vm1424_vm8, %vm1425_vm9 }
 0x1c5   :  { %v1431_v41 = vor.u32 1.1754944e-38, %v1430_v20  ;;  %v1447_v36 = vadd.f32 1.1283791, %v1446_v28  ;;  %v1533_v42 = vmul.f32 %v1532_v3, %v2974_v5  ;;  %v1984_v19 = vclamps-f32 %v1393_v15, 1.0 }
 0x1c6   :  { %v1423_v61 = vadd.f32 %v2123_v34, %v1422_v0  ;;  %v1483_v43 = vadd.f32 0.05243302, %v1482_v8  ;;  %v1497_v48 = vmul.f32 %v1496_v33, %v2943_v49  ;;  %v1468_v46 = vand.u32 2147483647, %v3003_v9 }
 0x1c7   :  { %v2125_v29 = vpop.eup %2124  ;;  %v1534_v7 = vadd.f32 0.112945676, %v1533_v42  ;;  %v1556_v47 = vadd.f32 1.0, %v1980_v50  ;;  %v1557_v38 = vadd.f32 1.0, %v1981_v45  ;;  %v1522_v56 = vmul.f32 %v1521_v31, %v2974_v5 }
 0x1c8   :  { %v1427_v23 = vsel %vm1426_vm11, %v2123_v34, %v1423_v61  ;;  %v1460_v21 = vmul.f32 %v2125_v29, %v3003_v9  ;;  %v1558_v54 = vadd.f32 1.0, %v1982_v55  ;;  %v3034_v6 = vadd.f32 1.0, %v1497_v48 }
 0x1c9   :  { %v1432_v51 = vsel %vm3017_vm10, %v1431_v41, %v1427_v23  ;;  %v1535_v44 = vmul.f32 %v1534_v7, %v2974_v5  ;;  %v1559_v63 = vadd.f32 1.0, %v1983_v53  ;;  %v1470_v50 = vand.u32 2147483648, %v3003_v9 }
 0x1ca   :  { %v1433_v14 = vmul.f32 %v1432_v51, %v1408_v26  ;;  %v1461_v59 = vsub.f32 1.0, %v1460_v21  ;;  %v1484_v39 = vmul.f32 %v1483_v43, %v2943_v49  ;;  %2126 = vrcp.f32 %v3034_v6 }
 0x1cb   :  { %v1560_v45 = vadd.f32 1.0, %v1984_v19  ;;  %v1565_v27 = vmul.f32 %v1556_v47, %v2770_v25  ;;  %v1566_v34 = vmul.f32 %v1557_v38, %v2773_v10  ;;  %vm1465_vm12 = vweird.f32 %v2125_v29 }
 0x1cc   :  { %v1985_v60 = vclamps-f32 %v1433_v14, 1.0  ;;  %v1462_v62 = vmul.f32 %v2125_v29, %v1461_v59  ;;  %v1536_v2 = vadd.f32 0.4994258, %v1535_v44  ;;  %vm1464_vm13 = vweird.f32 %v3003_v9 }
 0x1cd   :  { %v1523_v32 = vadd.f32 0.05243302, %v1522_v56  ;;  %v1567_v55 = vmul.f32 %v1558_v54, %v2776_v30  ;;  %v1568_v35 = vmul.f32 %v1559_v63, %v2780_v11  ;;  %v1485_v57 = vadd.f32 0.18741608, %v1484_v39  ;;  %vm1466_vm14 = vmor %vm1464_vm13, %vm1465_vm12 }
 0x1ce   :  { %v1463_v52 = vadd.f32 %v2125_v29, %v1462_v62  ;;  %v1537_v4 = vmul.f32 %v1536_v2, %v2974_v5  ;;  %v1561_v20 = vadd.f32 1.0, %v1985_v60  ;;  %v1471_v25 = vor.u32 1.1754944e-38, %v1470_v50 }
 0x1cf   :  { %v1569_v10 = vmul.f32 %v1560_v45, %v2782_v12  ;;  %v2088_v28 = vpack.c.bf16 %v1566_v34, %v1565_v27  ;;  %v2093_v15 = vpack.c.bf16 %v1568_v35, %v1567_v55  ;;  %vm1469_vm15 = vcmp.eq.f32.partialorder %v1468_v46, 8.507059e+37 }
 0x1d0   :  { %v1467_v17 = vsel %vm1466_vm14, %v2125_v29, %v1463_v52  ;;  %v1538_v8 = vadd.f32 1.0, %v1537_v4  ;;  %v1570_v9 = vmul.f32 %v1561_v20, %v2797_v22  ;;  %v2127_v18 = vpop.eup %2126  ;;  %v1524_v11 = vmul.f32 %v1523_v32, %v2974_v5 }
 0x1d1   :  { %v1472_v30 = vsel %vm1469_vm15, %v1471_v25, %v1467_v17  ;;  %2089 = vst [vmem:[%s3081_s5] sm:$0xff] %v2088_v28   ;;  %v1448_v53 = vmul.f32 %v1447_v36, %v2785_v13  ;;  %v1486_v26 = vmul.f32 %v1485_v57, %v2943_v49  ;;  %v1500_v12 = vmul.f32 %v2127_v18, %v3034_v6 }
 0x1d2   :  { %2128 = vrcp.f32 %v1538_v8  ;;  %2105 = vst [vmem:[%s3081_s5 + $0x8] sm:$0xff] %v2093_v15   ;;  %v2098_v22 = vpack.c.bf16 %v1570_v9, %v1569_v10  ;;  %v1510_v33 = vand.u32 2147483648, %v3034_v6  ;;  %v1525_v31 = vadd.f32 0.18741608, %v1524_v11 }
 0x1d3   :  { %v1473_v3 = vmul.f32 %v1472_v30, %v1448_v53  ;;  %v1501_v0 = vsub.f32 1.0, %v1500_v12  ;;  %v1487_v13 = vadd.f32 1.1283791, %v1486_v26  ;;  %vm1505_vm0 = vweird.f32 %v2127_v18 }
 0x1d4   :  { %2106 = vst [vmem:[%s3081_s5 + $0x10] sm:$0xff] %v2098_v22   ;;  %v1508_v49 = vand.u32 2147483647, %v3034_v6  ;;  %vm1504_vm1 = vweird.f32 %v3034_v6  ;;  %v1511_v19 = vor.u32 1.1754944e-38, %v1510_v33  ;;  %v1526_v61 = vmul.f32 %v1525_v31, %v2974_v5 }
 0x1d5   :  { %v1502_v16 = vmul.f32 %v2127_v18, %v1501_v0  ;;  %v1986_v36 = vclamps-f32 %v1473_v3, 1.0  ;;  %vm1506_vm2 = vmor %vm1504_vm1, %vm1505_vm0  ;;  %v1488_v48 = vmul.f32 %v1487_v13, %v2800_v24  ;;  %v1550_v38 = vand.u32 2147483648, %v1538_v8 }
 0x1d6   :  { %vm1509_vm3 = vcmp.eq.f32.partialorder %v1508_v49, 8.507059e+37  ;;  %v1527_v21 = vadd.f32 1.1283791, %v1526_v61  ;;  %v1548_v54 = vand.u32 2147483647, %v1538_v8  ;;  %v1184_v51 = vmul.f32 0.5, %v2749_v58 }
 0x1d7   :  { %v1503_v42 = vadd.f32 %v2127_v18, %v1502_v16  ;;  %v1562_v23 = vadd.f32 1.0, %v1986_v36  ;;  %vm1544_vm5 = vweird.f32 %v1538_v8  ;;  %v1185_v5 = vmul.f32 0.5, %v2752_v40 }
 0x1d8   :  { %v2129_v41 = vpop.eup %2128  ;;  %v1551_v24 = vor.u32 1.1754944e-38, %v1550_v38  ;;  %v1528_v59 = vmul.f32 %v1527_v21, %v2803_v37  ;;  %vm1549_vm7 = vcmp.eq.f32.partialorder %v1548_v54, 8.507059e+37  ;;  %v1186_v58 = vmul.f32 0.5, %v2756_v1 }
 0x1d9   :  { %v1540_v43 = vmul.f32 %v2129_v41, %v1538_v8  ;;  %v1507_v29 = vsel %vm1506_vm2, %v2127_v18, %v1503_v42  ;;  %vm1545_vm4 = vweird.f32 %v2129_v41  ;;  %v1571_v14 = vmul.f32 %v1562_v23, %v1184_v51 }
 0x1da   :  { %v1512_v46 = vsel %vm1509_vm3, %v1511_v19, %v1507_v29  ;;  %vm1546_vm6 = vmor %vm1544_vm5, %vm1545_vm4 }
 0x1db   :  { %v1541_v7 = vsub.f32 1.0, %v1540_v43  ;;  %v1513_v47 = vmul.f32 %v1512_v46, %v1488_v48 }
 0x1dd   :  { %v1542_v56 = vmul.f32 %v2129_v41, %v1541_v7  ;;  %v1987_v6 = vclamps-f32 %v1513_v47, 1.0 }
 0x1df   :  { %v1543_v44 = vadd.f32 %v2129_v41, %v1542_v56  ;;  %v1563_v63 = vadd.f32 1.0, %v1987_v6 }
 0x1e1   :  { %v1547_v50 = vsel %vm1546_vm6, %v2129_v41, %v1543_v44  ;;  %v1572_v45 = vmul.f32 %v1563_v63, %v1185_v5 }
 0x1e2   :  { %v1552_v39 = vsel %vm1549_vm7, %v1551_v24, %v1547_v50 }
 0x1e3   :  { %v1553_v27 = vmul.f32 %v1552_v39, %v1528_v59  ;;  %v2103_v34 = vpack.c.bf16 %v1572_v45, %v1571_v14 }
 0x1e5   :  { %v1988_v60 = vclamps-f32 %v1553_v27, 1.0  ;;  %2107 = vst [vmem:[%s3081_s5 + $0x18] sm:$0xff] %v2103_v34  }
 0x1e7   :  { %v1564_v40 = vadd.f32 1.0, %v1988_v60 }
 0x1e9   :  { %v1573_v62 = vmul.f32 %v1564_v40, %v1186_v58 }
 0x1eb   :  { %v1582_v2 = vpack.c.bf16 %v1573_v62, %v1573_v62 }
 0x1ed   :  { %1591 = vst [vmem:[%s3081_s5 + $0x20] sm:$0xf] %v1582_v2 }

// kernel: discriminator_forward.7
= control target key start
LH: loop header
LB: loop body
LE: loop exit
PB: predicated region body
PF: predicated region fallthrough
CT: control target
= control target key end

     0   :  { %vm87_vm3 = vcmask 7168   ;;  %s140_s0 = inlined_call_operand.vmem [shape: bf16[8,1024], index: 0, kind: input, shape index: {}]   ;;  %s141_s1 = inlined_call_operand.vmem [shape: f32[1,1024], index: 1, kind: input, shape index: {}]   ;;  %s142_s2 = inlined_call_operand.<no memory space> [shape: f32[1,1], index: 2, kind: input, shape index: {}]   ;;  %s143_s3 = inlined_call_operand.vmem [shape: f32[8,1], index: 3, kind: output, shape index: {}]  }
   0x1   :  { %v16_v0 = vld [vmem:[%s140_s0] sm:$0xff]  ;;  %v17_v1 = vld [vmem:[%s140_s0 + $0x8] sm:$0xff]  ;;  %v8_v2 = vstv %s142_s2  ;;  %v18_v3 = vld [vmem:[%s140_s0 + $0x10] sm:$0xff] }
   0x2   :  { %v20_v4 = vunpack.c.l.bf16 %v16_v0  ;;  %v21_v5 = vunpack.c.h.bf16 %v16_v0  ;;  %v22_v6 = vunpack.c.l.bf16 %v17_v1  ;;  %v28_v7 = vld [vmem:[%s141_s1] sm:$0xff]  ;;  %9 = vst [vmem:[#allocation2] sm:$0x1] %v8_v2  ;;  %v23_v8 = vunpack.c.h.bf16 %v17_v1  ;;  %v19_v18 = vld [vmem:[%s140_s0 + $0x18] sm:$0xff] }
   0x3   :  { %v30_v9 = vperm.slane %v28_v7, 0  ;;  %v31_v10 = vperm.slane %v28_v7, 1  ;;  %v32_v11 = vperm.slane %v28_v7, 2  ;;  %v33_v12 = vperm.slane %v28_v7, 3 }
   0x4   :  { %v24_v13 = vunpack.c.l.bf16 %v18_v3  ;;  %v34_v14 = vperm.slane %v28_v7, 4  ;;  %v25_v19 = vunpack.c.h.bf16 %v18_v3  ;;  %v35_v20 = vperm.slane %v28_v7, 5 }
   0x5   :  { %v46_v15 = vmul.f32 %v30_v9, %v20_v4  ;;  %v47_v16 = vmul.f32 %v31_v10, %v21_v5  ;;  %v48_v17 = vmul.f32 %v32_v11, %v22_v6  ;;  %v49_v21 = vmul.f32 %v33_v12, %v23_v8 }
   0x6   :  { %v26_v23 = vunpack.c.l.bf16 %v19_v18  ;;  %v36_v24 = vperm.slane %v28_v7, 6  ;;  %v50_v25 = vmul.f32 %v34_v14, %v24_v13  ;;  %v27_v27 = vunpack.c.h.bf16 %v19_v18 }
   0x7   :  { %v54_v22 = vadd.f32 %v47_v16, %v46_v15  ;;  %v37_v28 = vperm.slane %v28_v7, 7  ;;  %v51_v29 = vmul.f32 %v35_v20, %v25_v19 }
   0x8   :  { %v52_v31 = vmul.f32 %v36_v24, %v26_v23 }
   0x9   :  { %v55_v26 = vadd.f32 %v54_v22, %v48_v17  ;;  %v53_v33 = vmul.f32 %v37_v28, %v27_v27  ;;  %v94_v37 = vld [vmem:[#allocation2] ss:$0 sm:$0xff] }
   0xb   :  { %v56_v30 = vadd.f32 %v55_v26, %v49_v21 }
   0xd   :  { %v57_v32 = vadd.f32 %v56_v30, %v50_v25 }
   0xf   :  { %v58_v34 = vadd.f32 %v57_v32, %v51_v29 }
  0x11   :  { %v59_v35 = vadd.f32 %v58_v34, %v52_v31 }
  0x13   :  { %v60_v36 = vadd.f32 %v59_v35, %v53_v33 }
  0x15   :  { %61 = vadd.xlane.f32.xlu0 %v60_v36 }
  0x88   :  { %v62_v38 = vpop.xlane.xlu0 %61 }
  0x89   :  { %v67_v39 = vadd.f32 %v94_v37, %v62_v38 }
  0x8b   :  { %v93_v40 = vmul.f32 -1.442695, %v67_v39 }
  0x8d   :  { %95 = vpow2.f32 %v93_v40 }
  0x93   :  { %v96_v41 = vpop.eup %95 }
  0x94   :  { %v71_v42 = vadd.f32 1.0, %v96_v41 }
  0x96   :  { %97 = vrcp.f32 %v71_v42  ;;  %v83_v46 = vand.u32 2147483648, %v71_v42  ;;  %v81_v48 = vand.u32 2147483647, %v71_v42  ;;  %vm77_vm1 = vweird.f32 %v71_v42 }
  0x98   :  { %v84_v50 = vor.u32 1.1754944e-38, %v83_v46  ;;  %vm82_vm4 = vcmp.eq.f32.partialorder %v81_v48, 8.507059e+37 }
  0x9c   :  { %v98_v43 = vpop.eup %97 }
  0x9d   :  { %v73_v44 = vmul.f32 %v98_v43, %v71_v42  ;;  %vm78_vm0 = vweird.f32 %v98_v43 }
  0x9e   :  { %vm79_vm2 = vmor %vm77_vm1, %vm78_vm0 }
  0x9f   :  { %v74_v45 = vsub.f32 1.0, %v73_v44 }
  0xa1   :  { %v75_v47 = vmul.f32 %v98_v43, %v74_v45 }
  0xa3   :  { %v76_v49 = vadd.f32 %v98_v43, %v75_v47 }
  0xa5   :  { %v80_v51 = vsel %vm79_vm2, %v98_v43, %v76_v49 }
  0xa6   :  { %v85_v52 = vsel %vm82_vm4, %v84_v50, %v80_v51 }
  0xa7   :  { %88 = vst.msk [vmem:[%s143_s3] sm:$0xff] %vm87_vm3, %v85_v52 }

// kernel: discriminator_forward.6
= control target key start
LH: loop header
LB: loop body
LE: loop exit
PB: predicated region body
PF: predicated region fallthrough
CT: control target
= control target key end

     0   :  { %vm2089_vm0 = vcmask 1040384   ;;  %vm2095_vm1 = vcmask 1041408   ;;  %s5229_s1 = inlined_call_operand.vmem [shape: bf16[2048,256], index: 1, kind: input, shape index: {}]   ;;  %s5230_s0 = inlined_call_operand.vmem [shape: bf16[8,2048], index: 0, kind: input, shape index: {}]   ;;  %s5231_s2 = inlined_call_operand.vmem [shape: f32[1,256], index: 2, kind: input, shape index: {}]   ;;  %s5232_s3 = inlined_call_operand.vmem [shape: f32[1,256], index: 3, kind: input, shape index: {}]   ;;  %s5233_s4 = inlined_call_operand.vmem [shape: f32[1,256], index: 4, kind: input, shape index: {}]   ;;  %s5234_s5 = inlined_call_operand.vmem [shape: bf16[8,256], index: 5, kind: output, shape index: {}]  }
   0x1   :  { %v2296_v0 = vld [vmem:[%s5229_s1 + $0x70] sm:$0xf]  ;;  %v3279_v1 = vld [vmem:[%s5229_s1 + $0x74] sm:$0xf0]  ;;  %v2288_v11 = vld [vmem:[%s5229_s1 + $0x60] sm:$0xf] }
   0x2   :  { %v2360_v2 = vld [vmem:[%s5229_s1 + $0xf0] sm:$0xf]  ;;  %v2297_v3 = vor.u32 %v3279_v1, %v2296_v0  ;;  %v3295_v4 = vld [vmem:[%s5229_s1 + $0xf4] sm:$0xf0]  ;;  %v3277_v13 = vld [vmem:[%s5229_s1 + $0x64] sm:$0xf0] }
   0x3   :  { %v2424_v5 = vld [vmem:[%s5229_s1 + $0x170] sm:$0xf]  ;;  %v3311_v6 = vld [vmem:[%s5229_s1 + $0x174] sm:$0xf0]  ;;  %v2361_v7 = vor.u32 %v3295_v4, %v2360_v2  ;;  %v2352_v14 = vld [vmem:[%s5229_s1 + $0xe0] sm:$0xf]  ;;  %v2289_v16 = vor.u32 %v3277_v13, %v2288_v11 }
   0x4   :  { %v2425_v8 = vor.u32 %v3311_v6, %v2424_v5  ;;  %v2488_v9 = vld [vmem:[%s5229_s1 + $0x1f0] sm:$0xf]  ;;  %v3327_v10 = vld [vmem:[%s5229_s1 + $0x1f4] sm:$0xf0]  ;;  %1626 = vmatpush.bf16.msra.mxu0 %v2297_v3  ;;  %v3293_v15 = vld [vmem:[%s5229_s1 + $0xe4] sm:$0xf0] }
   0x5   :  { %v2489_v12 = vor.u32 %v3327_v10, %v2488_v9  ;;  %1639 = vmatpush.bf16.msra.mxu1 %v2361_v7  ;;  %v2353_v17 = vor.u32 %v3293_v15, %v2352_v14  ;;  %v2416_v18 = vld [vmem:[%s5229_s1 + $0x160] sm:$0xf]  ;;  %v3309_v19 = vld [vmem:[%s5229_s1 + $0x164] sm:$0xf0]  ;;  %v2280_v23 = vld [vmem:[%s5229_s1 + $0x50] sm:$0xf] }
   0x6   :  { %1652 = vmatpush.bf16.msra.mxu2 %v2425_v8  ;;  %v2480_v20 = vld [vmem:[%s5229_s1 + $0x1e0] sm:$0xf]  ;;  %v2417_v21 = vor.u32 %v3309_v19, %v2416_v18  ;;  %v3325_v22 = vld [vmem:[%s5229_s1 + $0x1e4] sm:$0xf0]  ;;  %v3275_v24 = vld [vmem:[%s5229_s1 + $0x54] sm:$0xf0] }
   0x7   :  { %1665 = vmatpush.bf16.msra.mxu3 %v2489_v12  ;;  %v2481_v25 = vor.u32 %v3325_v22, %v2480_v20  ;;  %v2344_v26 = vld [vmem:[%s5229_s1 + $0xd0] sm:$0xf]  ;;  %v3291_v27 = vld [vmem:[%s5229_s1 + $0xd4] sm:$0xf0]  ;;  %v2281_v29 = vor.u32 %v3275_v24, %v2280_v23  ;;  %v2272_v35 = vld [vmem:[%s5229_s1 + $0x40] sm:$0xf] }
   0x8   :  { %v2408_v28 = vld [vmem:[%s5229_s1 + $0x150] sm:$0xf]  ;;  %1627 = vmatpush.bf16.msra.mxu0 %v2289_v16  ;;  %v3307_v30 = vld [vmem:[%s5229_s1 + $0x154] sm:$0xf0]  ;;  %v2345_v33 = vor.u32 %v3291_v27, %v2344_v26  ;;  %v3273_v36 = vld [vmem:[%s5229_s1 + $0x44] sm:$0xf0] }
   0x9   :  { %v2472_v31 = vld [vmem:[%s5229_s1 + $0x1d0] sm:$0xf]  ;;  %v3323_v32 = vld [vmem:[%s5229_s1 + $0x1d4] sm:$0xf0]  ;;  %1640 = vmatpush.bf16.msra.mxu1 %v2353_v17  ;;  %v2409_v34 = vor.u32 %v3307_v30, %v2408_v28  ;;  %v2336_v37 = vld [vmem:[%s5229_s1 + $0xc0] sm:$0xf]  ;;  %v2273_v44 = vor.u32 %v3273_v36, %v2272_v35 }
   0xa   :  { %1653 = vmatpush.bf16.msra.mxu2 %v2417_v21  ;;  %v2473_v38 = vor.u32 %v3323_v32, %v2472_v31  ;;  %v3289_v39 = vld [vmem:[%s5229_s1 + $0xc4] sm:$0xf0]  ;;  %v2400_v40 = vld [vmem:[%s5229_s1 + $0x140] sm:$0xf]  ;;  %v2264_v47 = vld [vmem:[%s5229_s1 + $0x30] sm:$0xf] }
   0xb   :  { %1666 = vmatpush.bf16.msra.mxu3 %v2481_v25  ;;  %v3305_v41 = vld [vmem:[%s5229_s1 + $0x144] sm:$0xf0]  ;;  %v2464_v42 = vld [vmem:[%s5229_s1 + $0x1c0] sm:$0xf]  ;;  %v2337_v45 = vor.u32 %v3289_v39, %v2336_v37  ;;  %v3271_v48 = vld [vmem:[%s5229_s1 + $0x34] sm:$0xf0] }
   0xc   :  { %v3321_v43 = vld [vmem:[%s5229_s1 + $0x1c4] sm:$0xf0]  ;;  %1628 = vmatpush.bf16.msra.mxu0 %v2281_v29  ;;  %v2401_v46 = vor.u32 %v3305_v41, %v2400_v40  ;;  %v2328_v49 = vld [vmem:[%s5229_s1 + $0xb0] sm:$0xf]  ;;  %v3287_v51 = vld [vmem:[%s5229_s1 + $0xb4] sm:$0xf0]  ;;  %v2265_v56 = vor.u32 %v3271_v48, %v2264_v47 }
   0xd   :  { %1641 = vmatpush.bf16.msra.mxu1 %v2345_v33  ;;  %v2465_v50 = vor.u32 %v3321_v43, %v2464_v42  ;;  %v2392_v52 = vld [vmem:[%s5229_s1 + $0x130] sm:$0xf]  ;;  %v3303_v53 = vld [vmem:[%s5229_s1 + $0x134] sm:$0xf0]  ;;  %v2329_v57 = vor.u32 %v3287_v51, %v2328_v49  ;;  %v2256_v59 = vld [vmem:[%s5229_s1 + $0x20] sm:$0xf] }
   0xe   :  { %1654 = vmatpush.bf16.msra.mxu2 %v2409_v34  ;;  %v2456_v54 = vld [vmem:[%s5229_s1 + $0x1b0] sm:$0xf]  ;;  %v3319_v55 = vld [vmem:[%s5229_s1 + $0x1b4] sm:$0xf0]  ;;  %v2393_v58 = vor.u32 %v3303_v53, %v2392_v52  ;;  %v3269_v60 = vld [vmem:[%s5229_s1 + $0x24] sm:$0xf0] }
   0xf   :  { %1667 = vmatpush.bf16.msra.mxu3 %v2473_v38  ;;  %v2320_v61 = vld [vmem:[%s5229_s1 + $0xa0] sm:$0xf]  ;;  %v2457_v62 = vor.u32 %v3319_v55, %v2456_v54  ;;  %v3285_v63 = vld [vmem:[%s5229_s1 + $0xa4] sm:$0xf0]  ;;  %v2257_v4 = vor.u32 %v3269_v60, %v2256_v59  ;;  %v2248_v7 = vld [vmem:[%s5229_s1 + $0x10] sm:$0xf] }
  0x10   :  { %1629 = vmatpush.bf16.msra.mxu0 %v2273_v44  ;;  %v2384_v0 = vld [vmem:[%s5229_s1 + $0x120] sm:$0xf]  ;;  %v3301_v1 = vld [vmem:[%s5229_s1 + $0x124] sm:$0xf0]  ;;  %v2321_v5 = vor.u32 %v3285_v63, %v2320_v61  ;;  %v3267_v8 = vld [vmem:[%s5229_s1 + $0x14] sm:$0xf0] }
  0x11   :  { %1642 = vmatpush.bf16.msra.mxu1 %v2337_v45  ;;  %v2448_v2 = vld [vmem:[%s5229_s1 + $0x1a0] sm:$0xf]  ;;  %v3317_v3 = vld [vmem:[%s5229_s1 + $0x1a4] sm:$0xf0]  ;;  %v2385_v6 = vor.u32 %v3301_v1, %v2384_v0  ;;  %v2312_v9 = vld [vmem:[%s5229_s1 + $0x90] sm:$0xf]  ;;  %v2249_v16 = vor.u32 %v3267_v8, %v2248_v7 }
  0x12   :  { %1655 = vmatpush.bf16.msra.mxu2 %v2401_v46  ;;  %v2449_v10 = vor.u32 %v3317_v3, %v2448_v2  ;;  %v3283_v11 = vld [vmem:[%s5229_s1 + $0x94] sm:$0xf0]  ;;  %v2376_v12 = vld [vmem:[%s5229_s1 + $0x110] sm:$0xf]  ;;  %v2240_v17 = vld [vmem:[%s5229_s1] sm:$0xf] }
  0x13   :  { %1668 = vmatpush.bf16.msra.mxu3 %v2465_v50  ;;  %v3299_v13 = vld [vmem:[%s5229_s1 + $0x114] sm:$0xf0]  ;;  %v2440_v14 = vld [vmem:[%s5229_s1 + $0x190] sm:$0xf]  ;;  %v3265_v18 = vld [vmem:[%s5229_s1 + $0x4] sm:$0xf0]  ;;  %v2313_v19 = vor.u32 %v3283_v11, %v2312_v9 }
  0x14   :  { %1630 = vmatpush.bf16.msra.mxu0 %v2265_v56  ;;  %v3315_v15 = vld [vmem:[%s5229_s1 + $0x194] sm:$0xf0]  ;;  %v2377_v20 = vor.u32 %v3299_v13, %v2376_v12  ;;  %v2304_v21 = vld [vmem:[%s5229_s1 + $0x80] sm:$0xf]  ;;  %v3281_v22 = vld [vmem:[%s5229_s1 + $0x84] sm:$0xf0]  ;;  %v2241_v31 = vor.u32 %v3265_v18, %v2240_v17 }
  0x15   :  { %1643 = vmatpush.bf16.msra.mxu1 %v2329_v57  ;;  %v2368_v23 = vld [vmem:[%s5229_s1 + $0x100] sm:$0xf]  ;;  %v2441_v24 = vor.u32 %v3315_v15, %v2440_v14  ;;  %v3297_v25 = vld [vmem:[%s5229_s1 + $0x104] sm:$0xf0]  ;;  %v2552_v28 = vld [vmem:[%s5229_s1 + $0x270] sm:$0xf]  ;;  %v2305_v35 = vor.u32 %v3281_v22, %v2304_v21 }
  0x16   :  { %1656 = vmatpush.bf16.msra.mxu2 %v2393_v58  ;;  %v2432_v26 = vld [vmem:[%s5229_s1 + $0x180] sm:$0xf]  ;;  %v3313_v27 = vld [vmem:[%s5229_s1 + $0x184] sm:$0xf0]  ;;  %v3343_v29 = vld [vmem:[%s5229_s1 + $0x274] sm:$0xf0]  ;;  %v2369_v36 = vor.u32 %v3297_v25, %v2368_v23 }
  0x17   :  { %1669 = vmatpush.bf16.msra.mxu3 %v2457_v62  ;;  %v2616_v30 = vld [vmem:[%s5229_s1 + $0x2f0] sm:$0xf]  ;;  %v3359_v32 = vld [vmem:[%s5229_s1 + $0x2f4] sm:$0xf0]  ;;  %v2433_v39 = vor.u32 %v3313_v27, %v2432_v26  ;;  %v2553_v40 = vor.u32 %v3343_v29, %v2552_v28  ;;  %v2544_v43 = vld [vmem:[%s5229_s1 + $0x260] sm:$0xf] }
  0x18   :  { %1631 = vmatpush.bf16.msra.mxu0 %v2257_v4  ;;  %v2680_v33 = vld [vmem:[%s5229_s1 + $0x370] sm:$0xf]  ;;  %v3375_v34 = vld [vmem:[%s5229_s1 + $0x374] sm:$0xf0]  ;;  %v2617_v41 = vor.u32 %v3359_v32, %v2616_v30  ;;  %v3341_v44 = vld [vmem:[%s5229_s1 + $0x264] sm:$0xf0] }
  0x19   :  { %1644 = vmatpush.bf16.msra.mxu1 %v2321_v5  ;;  %v2744_v37 = vld [vmem:[%s5229_s1 + $0x3f0] sm:$0xf]  ;;  %v3391_v38 = vld [vmem:[%s5229_s1 + $0x3f4] sm:$0xf0]  ;;  %v2681_v42 = vor.u32 %v3375_v34, %v2680_v33  ;;  %v2608_v45 = vld [vmem:[%s5229_s1 + $0x2e0] sm:$0xf]  ;;  %v2545_v52 = vor.u32 %v3341_v44, %v2544_v43 }
  0x1a   :  { %1657 = vmatpush.bf16.msra.mxu2 %v2385_v6  ;;  %v2745_v46 = vor.u32 %v3391_v38, %v2744_v37  ;;  %v3357_v47 = vld [vmem:[%s5229_s1 + $0x2e4] sm:$0xf0]  ;;  %v2672_v48 = vld [vmem:[%s5229_s1 + $0x360] sm:$0xf]  ;;  %v2536_v53 = vld [vmem:[%s5229_s1 + $0x250] sm:$0xf] }
  0x1b   :  { %1670 = vmatpush.bf16.msra.mxu3 %v2449_v10  ;;  %v3373_v49 = vld [vmem:[%s5229_s1 + $0x364] sm:$0xf0]  ;;  %v2736_v50 = vld [vmem:[%s5229_s1 + $0x3e0] sm:$0xf]  ;;  %v2609_v54 = vor.u32 %v3357_v47, %v2608_v45  ;;  %v3339_v56 = vld [vmem:[%s5229_s1 + $0x254] sm:$0xf0] }
  0x1c   :  { %1632 = vmatpush.bf16.msra.mxu0 %v2249_v16  ;;  %v3389_v51 = vld [vmem:[%s5229_s1 + $0x3e4] sm:$0xf0]  ;;  %v2673_v55 = vor.u32 %v3373_v49, %v2672_v48  ;;  %v2600_v57 = vld [vmem:[%s5229_s1 + $0x2d0] sm:$0xf]  ;;  %v3355_v58 = vld [vmem:[%s5229_s1 + $0x2d4] sm:$0xf0]  ;;  %v2537_v0 = vor.u32 %v3339_v56, %v2536_v53 }
  0x1d   :  { %1645 = vmatpush.bf16.msra.mxu1 %v2313_v19  ;;  %v2737_v59 = vor.u32 %v3389_v51, %v2736_v50  ;;  %v2664_v60 = vld [vmem:[%s5229_s1 + $0x350] sm:$0xf]  ;;  %v3371_v61 = vld [vmem:[%s5229_s1 + $0x354] sm:$0xf0]  ;;  %v2601_v1 = vor.u32 %v3355_v58, %v2600_v57  ;;  %v21_v2 = vld [vmem:[%s5230_s0 + $0x8] sm:$0xff] }
  0x1e   :  { %1658 = vmatpush.bf16.msra.mxu2 %v2377_v20  ;;  %v2728_v62 = vld [vmem:[%s5229_s1 + $0x3d0] sm:$0xf]  ;;  %v3387_v63 = vld [vmem:[%s5229_s1 + $0x3d4] sm:$0xf0]  ;;  %v20_v3 = vld [vmem:[%s5230_s0] sm:$0xff]  ;;  %v2665_v4 = vor.u32 %v3371_v61, %v2664_v60  ;;  %v300_v8 = vunpack.c.l.b16 %v21_v2  ;;  %v301_v10 = vunpack.c.h.b16 %v21_v2 }
  0x1f   :  { %1671 = vmatpush.bf16.msra.mxu3 %v2441_v24  ;;  %v2528_v5 = vld [vmem:[%s5229_s1 + $0x240] sm:$0xf]  ;;  %v3337_v6 = vld [vmem:[%s5229_s1 + $0x244] sm:$0xf0]  ;;  %v298_v9 = vunpack.c.l.b16 %v20_v3  ;;  %v2729_v11 = vor.u32 %v3387_v63, %v2728_v62  ;;  %v299_v15 = vunpack.c.h.b16 %v20_v3  ;;  %v2520_v25 = vld [vmem:[%s5229_s1 + $0x230] sm:$0xf] }
  0x20   :  { %1633 = vmatpush.bf16.msra.mxu0 %v2241_v31  ;;  %v2592_v7 = vld [vmem:[%s5229_s1 + $0x2c0] sm:$0xf]  ;;  %v3353_v12 = vld [vmem:[%s5229_s1 + $0x2c4] sm:$0xf0]  ;;  %v3852_v18 = vpack.c.b16 %v300_v8, %v300_v8  ;;  %v3856_v20 = vpack.c.b16 %v301_v10, %v301_v10  ;;  %v2529_v21 = vor.u32 %v3337_v6, %v2528_v5  ;;  %v3335_v26 = vld [vmem:[%s5229_s1 + $0x234] sm:$0xf0] }
  0x21   :  { %1646 = vmatpush.bf16.msra.mxu1 %v2305_v35  ;;  %v2656_v13 = vld [vmem:[%s5229_s1 + $0x340] sm:$0xf]  ;;  %v3369_v14 = vld [vmem:[%s5229_s1 + $0x344] sm:$0xf0]  ;;  %v3854_v19 = vpack.c.b16 %v298_v9, %v298_v9  ;;  %v3858_v22 = vpack.c.b16 %v299_v15, %v299_v15  ;;  %v2593_v23 = vor.u32 %v3353_v12, %v2592_v7  ;;  %v2584_v27 = vld [vmem:[%s5229_s1 + $0x2b0] sm:$0xf]  ;;  %v2521_v34 = vor.u32 %v3335_v26, %v2520_v25 }
  0x22   :  { %1659 = vmatpush.bf16.msra.mxu2 %v2369_v36  ;;  %v2720_v16 = vld [vmem:[%s5229_s1 + $0x3c0] sm:$0xf]  ;;  %v3385_v17 = vld [vmem:[%s5229_s1 + $0x3c4] sm:$0xf0]  ;;  %v2657_v24 = vor.u32 %v3369_v14, %v2656_v13  ;;  %v3351_v29 = vld [vmem:[%s5229_s1 + $0x2b4] sm:$0xf0] }
  0x23   :  { %1672 = vmatpush.bf16.msra.mxu3 %v2433_v39  ;;  %v2721_v28 = vor.u32 %v3385_v17, %v2720_v16  ;;  %v2648_v30 = vld [vmem:[%s5229_s1 + $0x330] sm:$0xf]  ;;  %v3367_v31 = vld [vmem:[%s5229_s1 + $0x334] sm:$0xf0]  ;;  %1634 = vmatmul.bf16.vlgmr.msra.gmra.mxu0 %v3854_v19  ;;  %v2585_v35 = vor.u32 %v3351_v29, %v2584_v27  ;;  %v2512_v37 = vld [vmem:[%s5229_s1 + $0x220] sm:$0xf] }
  0x24   :  { %1678 = vmatpush.bf16.msrb.mxu0 %v2553_v40  ;;  %v2712_v32 = vld [vmem:[%s5229_s1 + $0x3b0] sm:$0xf]  ;;  %v3383_v33 = vld [vmem:[%s5229_s1 + $0x3b4] sm:$0xf0]  ;;  %1647 = vmatmul.bf16.vlgmr.msra.gmra.mxu1 %v3858_v22  ;;  %v2649_v36 = vor.u32 %v3367_v31, %v2648_v30  ;;  %v3333_v38 = vld [vmem:[%s5229_s1 + $0x224] sm:$0xf0] }
  0x25   :  { %1691 = vmatpush.bf16.msrb.mxu1 %v2617_v41  ;;  %1660 = vmatmul.bf16.vlgmr.msra.gmra.mxu2 %v3852_v18  ;;  %v2576_v39 = vld [vmem:[%s5229_s1 + $0x2a0] sm:$0xf]  ;;  %v2713_v40 = vor.u32 %v3383_v33, %v2712_v32  ;;  %v3349_v41 = vld [vmem:[%s5229_s1 + $0x2a4] sm:$0xf0]  ;;  %v2504_v49 = vld [vmem:[%s5229_s1 + $0x210] sm:$0xf] }
  0x26   :  { %1704 = vmatpush.bf16.msrb.mxu2 %v2681_v42  ;;  %1673 = vmatmul.bf16.vlgmr.msra.gmra.mxu3 %v3856_v20  ;;  %v2640_v42 = vld [vmem:[%s5229_s1 + $0x320] sm:$0xf]  ;;  %v3365_v43 = vld [vmem:[%s5229_s1 + $0x324] sm:$0xf0]  ;;  %v2577_v47 = vor.u32 %v3349_v41, %v2576_v39  ;;  %v3331_v50 = vld [vmem:[%s5229_s1 + $0x214] sm:$0xf0] }
  0x27   :  { %1717 = vmatpush.bf16.msrb.mxu3 %v2745_v46  ;;  %v2704_v44 = vld [vmem:[%s5229_s1 + $0x3a0] sm:$0xf]  ;;  %v3381_v45 = vld [vmem:[%s5229_s1 + $0x3a4] sm:$0xf0]  ;;  %v2513_v46 = vor.u32 %v3333_v38, %v2512_v37  ;;  %v2641_v48 = vor.u32 %v3365_v43, %v2640_v42  ;;  %v2568_v51 = vld [vmem:[%s5229_s1 + $0x290] sm:$0xf] }
  0x28   :  { %1679 = vmatpush.bf16.msrb.mxu0 %v2545_v52  ;;  %v2705_v52 = vor.u32 %v3381_v45, %v2704_v44  ;;  %v3347_v53 = vld [vmem:[%s5229_s1 + $0x294] sm:$0xf0]  ;;  %v2696_v56 = vld [vmem:[%s5229_s1 + $0x390] sm:$0xf]  ;;  %v2496_v58 = vld [vmem:[%s5229_s1 + $0x200] sm:$0xf] }
  0x29   :  { %1692 = vmatpush.bf16.msrb.mxu1 %v2609_v54  ;;  %v2632_v54 = vld [vmem:[%s5229_s1 + $0x310] sm:$0xf]  ;;  %v3379_v57 = vld [vmem:[%s5229_s1 + $0x394] sm:$0xf0]  ;;  %v3329_v60 = vld [vmem:[%s5229_s1 + $0x204] sm:$0xf0]  ;;  %v2569_v63 = vor.u32 %v3347_v53, %v2568_v51 }
  0x2a   :  { %1705 = vmatpush.bf16.msrb.mxu2 %v2673_v55  ;;  %v3363_v55 = vld [vmem:[%s5229_s1 + $0x314] sm:$0xf0]  ;;  %v2560_v61 = vld [vmem:[%s5229_s1 + $0x280] sm:$0xf]  ;;  %v3345_v62 = vld [vmem:[%s5229_s1 + $0x284] sm:$0xf0] }
  0x2b   :  { %1718 = vmatpush.bf16.msrb.mxu3 %v2737_v59  ;;  %v2505_v59 = vor.u32 %v3331_v50, %v2504_v49  ;;  %v3361_v2 = vld [vmem:[%s5229_s1 + $0x304] sm:$0xf0]  ;;  %v23_v3 = vld [vmem:[%s5230_s0 + $0x18] sm:$0xff]  ;;  %v2688_v5 = vld [vmem:[%s5229_s1 + $0x380] sm:$0xf]  ;;  %v2561_v16 = vor.u32 %v3345_v62, %v2560_v61 }
  0x2c   :  { %1680 = vmatpush.bf16.msrb.mxu0 %v2537_v0  ;;  %v2633_v0 = vor.u32 %v3363_v55, %v2632_v54  ;;  %v3377_v6 = vld [vmem:[%s5229_s1 + $0x384] sm:$0xf0]  ;;  %v22_v7 = vld [vmem:[%s5230_s0 + $0x10] sm:$0xff]  ;;  %v3407_v9 = vld [vmem:[%s5229_s1 + $0x474] sm:$0xf0]  ;;  %v304_v15 = vunpack.c.l.b16 %v23_v3  ;;  %v305_v25 = vunpack.c.h.b16 %v23_v3 }
  0x2d   :  { %1693 = vmatpush.bf16.msrb.mxu1 %v2601_v1  ;;  %v2624_v1 = vld [vmem:[%s5229_s1 + $0x300] sm:$0xf]  ;;  %v2808_v8 = vld [vmem:[%s5229_s1 + $0x470] sm:$0xf]  ;;  %v3423_v12 = vld [vmem:[%s5229_s1 + $0x4f4] sm:$0xf0]  ;;  %v2689_v26 = vor.u32 %v3377_v6, %v2688_v5 }
  0x2e   :  { %1706 = vmatpush.bf16.msrb.mxu2 %v2665_v4  ;;  %v2697_v4 = vor.u32 %v3379_v57, %v2696_v56  ;;  %v2872_v10 = vld [vmem:[%s5229_s1 + $0x4f0] sm:$0xf]  ;;  %v3439_v14 = vld [vmem:[%s5229_s1 + $0x574] sm:$0xf0]  ;;  %v2625_v17 = vor.u32 %v3361_v2, %v2624_v1  ;;  %v2809_v27 = vor.u32 %v3407_v9, %v2808_v8  ;;  %v2800_v31 = vld [vmem:[%s5229_s1 + $0x460] sm:$0xf]  ;;  %v4008_v38 = vpack.c.b16 %v304_v15, %v304_v15 }
  0x2f   :  { %1719 = vmatpush.bf16.msrb.mxu3 %v2729_v11  ;;  %v2497_v11 = vor.u32 %v3329_v60, %v2496_v58  ;;  %v2936_v13 = vld [vmem:[%s5229_s1 + $0x570] sm:$0xf]  ;;  %v2873_v29 = vor.u32 %v3423_v12, %v2872_v10  ;;  %v3405_v32 = vld [vmem:[%s5229_s1 + $0x464] sm:$0xf0]  ;;  %v2864_v33 = vld [vmem:[%s5229_s1 + $0x4e0] sm:$0xf]  ;;  %v4018_v42 = vpack.c.b16 %v305_v25, %v305_v25 }
  0x30   :  { %1681 = vmatpush.bf16.msrb.mxu0 %v2529_v21  ;;  %v3000_v21 = vld [vmem:[%s5229_s1 + $0x5f0] sm:$0xf]  ;;  %v2937_v30 = vor.u32 %v3439_v14, %v2936_v13  ;;  %v3437_v37 = vld [vmem:[%s5229_s1 + $0x564] sm:$0xf0]  ;;  %v2992_v39 = vld [vmem:[%s5229_s1 + $0x5e0] sm:$0xf]  ;;  %v2801_v43 = vor.u32 %v3405_v32, %v2800_v31 }
  0x31   :  { %1694 = vmatpush.bf16.msrb.mxu1 %v2593_v23  ;;  %v3455_v23 = vld [vmem:[%s5229_s1 + $0x5f4] sm:$0xf0]  ;;  %v2856_v49 = vld [vmem:[%s5229_s1 + $0x4d0] sm:$0xf]  ;;  %v3401_v60 = vld [vmem:[%s5229_s1 + $0x444] sm:$0xf0] }
  0x32   :  { %1707 = vmatpush.bf16.msrb.mxu2 %v2657_v24  ;;  %v302_v24 = vunpack.c.l.b16 %v22_v7  ;;  %v3419_v51 = vld [vmem:[%s5229_s1 + $0x4d4] sm:$0xf0]  ;;  %v2984_v54 = vld [vmem:[%s5229_s1 + $0x5d0] sm:$0xf]  ;;  %v2848_v61 = vld [vmem:[%s5229_s1 + $0x4c0] sm:$0xf] }
  0x33   :  { %1720 = vmatpush.bf16.msrb.mxu3 %v2721_v28  ;;  %v303_v28 = vunpack.c.h.b16 %v22_v7  ;;  %v3435_v53 = vld [vmem:[%s5229_s1 + $0x554] sm:$0xf0]  ;;  %v2857_v57 = vor.u32 %v3419_v51, %v2856_v49  ;;  %v3433_v1 = vld [vmem:[%s5229_s1 + $0x544] sm:$0xf0]  ;;  %v2976_v2 = vld [vmem:[%s5229_s1 + $0x5c0] sm:$0xf] }
  0x34   :  { %1682 = vmatpush.bf16.msrb.mxu0 %v2521_v34  ;;  %v3001_v34 = vor.u32 %v3455_v23, %v3000_v21  ;;  %v4016_v41 = vpack.c.b16 %v302_v24, %v302_v24  ;;  %v3451_v55 = vld [vmem:[%s5229_s1 + $0x5d4] sm:$0xf0]  ;;  %v3449_v3 = vld [vmem:[%s5229_s1 + $0x5c4] sm:$0xf0]  ;;  %v2776_v7 = vld [vmem:[%s5229_s1 + $0x430] sm:$0xf] }
  0x35   :  { %1695 = vmatpush.bf16.msrb.mxu1 %v2585_v35  ;;  %v3421_v35 = vld [vmem:[%s5229_s1 + $0x4e4] sm:$0xf0]  ;;  %v4020_v44 = vpack.c.b16 %v303_v28, %v303_v28  ;;  %v2985_v62 = vor.u32 %v3451_v55, %v2984_v54  ;;  %v3399_v8 = vld [vmem:[%s5229_s1 + $0x434] sm:$0xf0]  ;;  %v2840_v9 = vld [vmem:[%s5229_s1 + $0x4b0] sm:$0xf]  ;;  %v2977_v10 = vor.u32 %v3449_v3, %v2976_v2 }
  0x36   :  { %1708 = vmatpush.bf16.msrb.mxu2 %v2649_v36  ;;  %v2928_v36 = vld [vmem:[%s5229_s1 + $0x560] sm:$0xf]  ;;  %v2865_v45 = vor.u32 %v3421_v35, %v2864_v33  ;;  %v2904_v12 = vld [vmem:[%s5229_s1 + $0x530] sm:$0xf]  ;;  %v3431_v13 = vld [vmem:[%s5229_s1 + $0x534] sm:$0xf0] }
  0x37   :  { %1721 = vmatpush.bf16.msrb.mxu3 %v2713_v40  ;;  %v3453_v40 = vld [vmem:[%s5229_s1 + $0x5e4] sm:$0xf0]  ;;  %v2968_v14 = vld [vmem:[%s5229_s1 + $0x5b0] sm:$0xf]  ;;  %v3447_v15 = vld [vmem:[%s5229_s1 + $0x5b4] sm:$0xf0]  ;;  %v2905_v21 = vor.u32 %v3431_v13, %v2904_v12 }
  0x38   :  { %1683 = vmatpush.bf16.msrb.mxu0 %v2513_v46  ;;  %v2929_v46 = vor.u32 %v3437_v37, %v2928_v36  ;;  %v2993_v50 = vor.u32 %v3453_v40, %v2992_v39  ;;  %v2768_v23 = vld [vmem:[%s5229_s1 + $0x420] sm:$0xf]  ;;  %v3397_v24 = vld [vmem:[%s5229_s1 + $0x424] sm:$0xf0]  ;;  %v2760_v35 = vld [vmem:[%s5229_s1 + $0x410] sm:$0xf] }
  0x39   :  { %1696 = vmatpush.bf16.msrb.mxu1 %v2577_v47  ;;  %v2792_v47 = vld [vmem:[%s5229_s1 + $0x450] sm:$0xf]  ;;  %v2832_v25 = vld [vmem:[%s5229_s1 + $0x4a0] sm:$0xf]  ;;  %v3445_v31 = vld [vmem:[%s5229_s1 + $0x5a4] sm:$0xf0]  ;;  %v2769_v32 = vor.u32 %v3397_v24, %v2768_v23 }
  0x3a   :  { %1709 = vmatpush.bf16.msrb.mxu2 %v2641_v48  ;;  %v3403_v48 = vld [vmem:[%s5229_s1 + $0x454] sm:$0xf0]  ;;  %v2896_v28 = vld [vmem:[%s5229_s1 + $0x520] sm:$0xf]  ;;  %v2824_v37 = vld [vmem:[%s5229_s1 + $0x490] sm:$0xf] }
  0x3b   :  { %1722 = vmatpush.bf16.msrb.mxu3 %v2705_v52  ;;  %v2920_v52 = vld [vmem:[%s5229_s1 + $0x550] sm:$0xf]  ;;  %v2793_v56 = vor.u32 %v3403_v48, %v2792_v47  ;;  %v3395_v36 = vld [vmem:[%s5229_s1 + $0x414] sm:$0xf0]  ;;  %v2752_v48 = vld [vmem:[%s5229_s1 + $0x400] sm:$0xf] }
  0x3c   :  { %1684 = vmatpush.bf16.msrb.mxu0 %v2505_v59  ;;  %v2921_v58 = vor.u32 %v3435_v53, %v2920_v52  ;;  %v2784_v59 = vld [vmem:[%s5229_s1 + $0x440] sm:$0xf]  ;;  %v3411_v40 = vld [vmem:[%s5229_s1 + $0x494] sm:$0xf0]  ;;  %v2761_v49 = vor.u32 %v3395_v36, %v2760_v35  ;;  %v3409_v52 = vld [vmem:[%s5229_s1 + $0x484] sm:$0xf0] }
  0x3d   :  { %1697 = vmatpush.bf16.msrb.mxu1 %v2569_v63  ;;  %v3417_v63 = vld [vmem:[%s5229_s1 + $0x4c4] sm:$0xf0]  ;;  %v3443_v47 = vld [vmem:[%s5229_s1 + $0x594] sm:$0xf0]  ;;  %v2816_v51 = vld [vmem:[%s5229_s1 + $0x480] sm:$0xf]  ;;  %v2825_v53 = vor.u32 %v3411_v40, %v2824_v37 }
  0x3e   :  { %1710 = vmatpush.bf16.msrb.mxu2 %v2633_v0  ;;  %v2912_v0 = vld [vmem:[%s5229_s1 + $0x540] sm:$0xf]  ;;  %v2849_v5 = vor.u32 %v3417_v63, %v2848_v61  ;;  %v25_v61 = vld [vmem:[%s5230_s0 + $0x28] sm:$0xff]  ;;  %v3471_v63 = vld [vmem:[%s5229_s1 + $0x674] sm:$0xf0] }
  0x3f   :  { %1723 = vmatpush.bf16.msrb.mxu3 %v2697_v4  ;;  %v2785_v4 = vor.u32 %v3401_v60, %v2784_v59  ;;  %v2913_v6 = vor.u32 %v3433_v1, %v2912_v0  ;;  %v2880_v55 = vld [vmem:[%s5229_s1 + $0x500] sm:$0xf]  ;;  %v3441_v60 = vld [vmem:[%s5229_s1 + $0x584] sm:$0xf0]  ;;  %v3128_v0 = vld [vmem:[%s5229_s1 + $0x6f0] sm:$0xf] }
  0x40   :  { %1685 = vmatpush.bf16.msrb.mxu0 %v2497_v11  ;;  %v3415_v11 = vld [vmem:[%s5229_s1 + $0x4b4] sm:$0xf0]  ;;  %v2944_v59 = vld [vmem:[%s5229_s1 + $0x580] sm:$0xf]  ;;  %v3192_v3 = vld [vmem:[%s5229_s1 + $0x770] sm:$0xf] }
  0x41   :  { %1698 = vmatpush.bf16.msrb.mxu1 %v2561_v16  ;;  %v2777_v16 = vor.u32 %v3399_v8, %v2776_v7  ;;  %v3487_v2 = vld [vmem:[%s5229_s1 + $0x6f4] sm:$0xf0]  ;;  %v3256_v8 = vld [vmem:[%s5229_s1 + $0x7f0] sm:$0xf]  ;;  %v2945_v12 = vor.u32 %v3441_v60, %v2944_v59  ;;  %v3120_v23 = vld [vmem:[%s5229_s1 + $0x6e0] sm:$0xf] }
  0x42   :  { %1711 = vmatpush.bf16.msrb.mxu2 %v2625_v17  ;;  %v2841_v17 = vor.u32 %v3415_v11, %v2840_v9  ;;  %v3519_v9 = vld [vmem:[%s5229_s1 + $0x7f4] sm:$0xf0]  ;;  %v3048_v37 = vld [vmem:[%s5229_s1 + $0x650] sm:$0xf]  ;;  %v3497_v59 = vld [vmem:[%s5229_s1 + $0x744] sm:$0xf0] }
  0x43   :  { %1724 = vmatpush.bf16.msrb.mxu3 %v2689_v26  ;;  %1686 = vmatmul.bf16.vlgmr.msrb.gmra.mxu0 %v4016_v41  ;;  %v2969_v26 = vor.u32 %v3447_v15, %v2968_v14  ;;  %v309_v14 = vunpack.c.h.b16 %v25_v61  ;;  %v3129_v15 = vor.u32 %v3487_v2, %v3128_v0  ;;  %v3257_v24 = vor.u32 %v3519_v9, %v3256_v8  ;;  %v3112_v40 = vld [vmem:[%s5229_s1 + $0x6d0] sm:$0xf]  ;;  %v3232_v60 = vld [vmem:[%s5229_s1 + $0x7c0] sm:$0xf]  ;;  %v3463_v2 = vld [vmem:[%s5229_s1 + $0x634] sm:$0xf0] }
  0x44   :  { %1730 = vmatpush.bf16.msra.mxu0 %v2809_v27  ;;  %1699 = vmatmul.bf16.vlgmr.msrb.gmra.mxu1 %v4020_v44  ;;  %v3413_v27 = vld [vmem:[%s5229_s1 + $0x4a4] sm:$0xf0]  ;;  %v3224_v8 = vld [vmem:[%s5229_s1 + $0x7b0] sm:$0xf]  ;;  %v3511_v9 = vld [vmem:[%s5229_s1 + $0x7b4] sm:$0xf0] }
  0x45   :  { %1743 = vmatpush.bf16.msra.mxu1 %v2873_v29  ;;  %1712 = vmatmul.bf16.vlgmr.msrb.gmra.mxu2 %v4008_v38  ;;  %v3429_v29 = vld [vmem:[%s5229_s1 + $0x524] sm:$0xf0]  ;;  %v2833_v33 = vor.u32 %v3413_v27, %v2832_v25  ;;  %v3184_v27 = vld [vmem:[%s5229_s1 + $0x760] sm:$0xf] }
  0x46   :  { %1756 = vmatpush.bf16.msra.mxu2 %v2937_v30  ;;  %1725 = vmatmul.bf16.vlgmr.msrb.gmra.mxu3 %v4018_v42  ;;  %v2960_v30 = vld [vmem:[%s5229_s1 + $0x5a0] sm:$0xf] }
  0x47   :  { %1769 = vmatpush.bf16.msra.mxu3 %v3001_v34  ;;  %v2897_v34 = vor.u32 %v3429_v29, %v2896_v28  ;;  %v2961_v39 = vor.u32 %v3445_v31, %v2960_v30  ;;  %v3501_v28 = vld [vmem:[%s5229_s1 + $0x764] sm:$0xf0]  ;;  %v3248_v31 = vld [vmem:[%s5229_s1 + $0x7e0] sm:$0xf] }
  0x48   :  { %1731 = vmatpush.bf16.msra.mxu0 %v2801_v43  ;;  %v2888_v43 = vld [vmem:[%s5229_s1 + $0x510] sm:$0xf]  ;;  %v3185_v36 = vor.u32 %v3501_v28, %v3184_v27 }
  0x49   :  { %1744 = vmatpush.bf16.msra.mxu1 %v2865_v45  ;;  %v3427_v45 = vld [vmem:[%s5229_s1 + $0x514] sm:$0xf0] }
  0x4a   :  { %1757 = vmatpush.bf16.msra.mxu2 %v2929_v46  ;;  %v2952_v46 = vld [vmem:[%s5229_s1 + $0x590] sm:$0xf]  ;;  %v2889_v54 = vor.u32 %v3427_v45, %v2888_v43  ;;  %v3483_v45 = vld [vmem:[%s5229_s1 + $0x6d4] sm:$0xf0] }
  0x4b   :  { %1770 = vmatpush.bf16.msra.mxu3 %v2993_v50  ;;  %v3393_v50 = vld [vmem:[%s5229_s1 + $0x404] sm:$0xf0] }
  0x4c   :  { %1732 = vmatpush.bf16.msra.mxu0 %v2793_v56  ;;  %v3425_v56 = vld [vmem:[%s5229_s1 + $0x504] sm:$0xf0]  ;;  %v2753_v1 = vor.u32 %v3393_v50, %v2752_v48  ;;  %v3240_v48 = vld [vmem:[%s5229_s1 + $0x7d0] sm:$0xf] }
  0x4d   :  { %1745 = vmatpush.bf16.msra.mxu1 %v2857_v57  ;;  %v24_v57 = vld [vmem:[%s5230_s0 + $0x20] sm:$0xff]  ;;  %v2881_v7 = vor.u32 %v3425_v56, %v2880_v55 }
  0x4e   :  { %1758 = vmatpush.bf16.msra.mxu2 %v2921_v58  ;;  %v2953_v58 = vor.u32 %v3443_v47, %v2952_v46  ;;  %v307_v11 = vunpack.c.h.b16 %v24_v57  ;;  %v3176_v46 = vld [vmem:[%s5229_s1 + $0x750] sm:$0xf]  ;;  %v3499_v47 = vld [vmem:[%s5229_s1 + $0x754] sm:$0xf0]  ;;  %v3104_v55 = vld [vmem:[%s5229_s1 + $0x6c0] sm:$0xf] }
  0x4f   :  { %1771 = vmatpush.bf16.msra.mxu3 %v2985_v62  ;;  %v3064_v62 = vld [vmem:[%s5229_s1 + $0x670] sm:$0xf] }
  0x50   :  { %1733 = vmatpush.bf16.msra.mxu0 %v2785_v4  ;;  %v3503_v4 = vld [vmem:[%s5229_s1 + $0x774] sm:$0xf0]  ;;  %v3065_v13 = vor.u32 %v3471_v63, %v3064_v62  ;;  %v4222_v30 = vpack.c.b16 %v307_v11, %v307_v11 }
  0x51   :  { %1746 = vmatpush.bf16.msra.mxu1 %v2849_v5  ;;  %v306_v5 = vunpack.c.l.b16 %v24_v57  ;;  %v3481_v57 = vld [vmem:[%s5229_s1 + $0x6c4] sm:$0xf0] }
  0x52   :  { %1759 = vmatpush.bf16.msra.mxu2 %v2913_v6  ;;  %v2817_v6 = vor.u32 %v3409_v52, %v2816_v51  ;;  %v3113_v51 = vor.u32 %v3483_v45, %v3112_v40  ;;  %v3177_v52 = vor.u32 %v3499_v47, %v3176_v46  ;;  %v3105_v63 = vor.u32 %v3481_v57, %v3104_v55  ;;  %v3491_v40 = vld [vmem:[%s5229_s1 + $0x714] sm:$0xf0]  ;;  %v3008_v46 = vld [vmem:[%s5229_s1 + $0x600] sm:$0xf]  ;;  %v26_v55 = vld [vmem:[%s5230_s0 + $0x30] sm:$0xff] }
  0x53   :  { %1772 = vmatpush.bf16.msra.mxu3 %v2977_v10  ;;  %v308_v10 = vunpack.c.l.b16 %v25_v61  ;;  %v4209_v25 = vpack.c.b16 %v306_v5, %v306_v5  ;;  %v3513_v61 = vld [vmem:[%s5229_s1 + $0x7c4] sm:$0xf0]  ;;  %v3479_v5 = vld [vmem:[%s5229_s1 + $0x6b4] sm:$0xf0]  ;;  %v3200_v57 = vld [vmem:[%s5229_s1 + $0x780] sm:$0xf] }
  0x54   :  { %1734 = vmatpush.bf16.msra.mxu0 %v2777_v16  ;;  %v3193_v16 = vor.u32 %v3503_v4, %v3192_v3  ;;  %v3096_v3 = vld [vmem:[%s5229_s1 + $0x6b0] sm:$0xf]  ;;  %v3233_v4 = vor.u32 %v3513_v61, %v3232_v60  ;;  %v3507_v45 = vld [vmem:[%s5229_s1 + $0x794] sm:$0xf0]  ;;  %v3278_v60 = vld [vmem:[%s5229_s1 + $0x74] sm:$0xf] }
  0x55   :  { %1747 = vmatpush.bf16.msra.mxu1 %v2841_v17  ;;  %v3056_v17 = vld [vmem:[%s5229_s1 + $0x660] sm:$0xf]  ;;  %v4220_v29 = vpack.c.b16 %v308_v10, %v308_v10  ;;  %v3097_v11 = vor.u32 %v3479_v5, %v3096_v3  ;;  %v2298_v61 = vld [vmem:[%s5229_s1 + $0x78] sm:$0xf0]  ;;  %v310_v3 = vunpack.c.l.b16 %v26_v55 }
  0x56   :  { %1760 = vmatpush.bf16.msra.mxu2 %v2905_v21  ;;  %v3469_v21 = vld [vmem:[%s5229_s1 + $0x664] sm:$0xf0] }
  0x57   :  { %1773 = vmatpush.bf16.msra.mxu3 %v2969_v26  ;;  %v3485_v26 = vld [vmem:[%s5229_s1 + $0x6e4] sm:$0xf0] }
  0x58   :  { %1735 = vmatpush.bf16.msra.mxu0 %v2769_v32  ;;  %v3517_v32 = vld [vmem:[%s5229_s1 + $0x7e4] sm:$0xf0]  ;;  %v3121_v35 = vor.u32 %v3485_v26, %v3120_v23 }
  0x59   :  { %1748 = vmatpush.bf16.msra.mxu1 %v2833_v33  ;;  %v4230_v33 = vpack.c.b16 %v309_v14, %v309_v14  ;;  %v3249_v43 = vor.u32 %v3517_v32, %v3248_v31  ;;  %v3461_v14 = vld [vmem:[%s5229_s1 + $0x624] sm:$0xf0]  ;;  %v3016_v32 = vld [vmem:[%s5229_s1 + $0x610] sm:$0xf] }
  0x5a   :  { %1761 = vmatpush.bf16.msra.mxu2 %v2897_v34  ;;  %v3057_v34 = vor.u32 %v3469_v21, %v3056_v17  ;;  %v3477_v17 = vld [vmem:[%s5229_s1 + $0x6a4] sm:$0xf0]  ;;  %v3152_v21 = vld [vmem:[%s5229_s1 + $0x720] sm:$0xf] }
  0x5b   :  { %1774 = vmatpush.bf16.msra.mxu3 %v2961_v39  ;;  %v3467_v39 = vld [vmem:[%s5229_s1 + $0x654] sm:$0xf0]  ;;  %v3493_v23 = vld [vmem:[%s5229_s1 + $0x724] sm:$0xf0] }
  0x5c   :  { %1736 = vmatpush.bf16.msra.mxu0 %v2761_v49  ;;  %v3515_v49 = vld [vmem:[%s5229_s1 + $0x7d4] sm:$0xf0]  ;;  %v3049_v50 = vor.u32 %v3467_v39, %v3048_v37  ;;  %v3509_v26 = vld [vmem:[%s5229_s1 + $0x7a4] sm:$0xf0]  ;;  %v3153_v31 = vor.u32 %v3493_v23, %v3152_v21  ;;  %v3144_v39 = vld [vmem:[%s5229_s1 + $0x710] sm:$0xf]  ;;  %v4419_v23 = vpack.c.b16 %v310_v3, %v310_v3 }
  0x5d   :  { %1749 = vmatpush.bf16.msra.mxu1 %v2825_v53  ;;  %v3040_v53 = vld [vmem:[%s5229_s1 + $0x640] sm:$0xf]  ;;  %v3241_v56 = vor.u32 %v3515_v49, %v3240_v48  ;;  %v3475_v37 = vld [vmem:[%s5229_s1 + $0x694] sm:$0xf0]  ;;  %v3457_v48 = vld [vmem:[%s5229_s1 + $0x604] sm:$0xf0] }
  0x5e   :  { %1762 = vmatpush.bf16.msra.mxu2 %v2889_v54  ;;  %v3465_v54 = vld [vmem:[%s5229_s1 + $0x644] sm:$0xf0]  ;;  %v3072_v49 = vld [vmem:[%s5229_s1 + $0x680] sm:$0xf]  ;;  %v3270_v3 = vld [vmem:[%s5229_s1 + $0x34] sm:$0xf] }
  0x5f   :  { %1775 = vmatpush.bf16.msra.mxu3 %v2953_v58  ;;  %v3168_v58 = vld [vmem:[%s5229_s1 + $0x740] sm:$0xf]  ;;  %v3041_v62 = vor.u32 %v3465_v54, %v3040_v53  ;;  %v3489_v54 = vld [vmem:[%s5229_s1 + $0x704] sm:$0xf0] }
  0x60   :  { %1737 = vmatpush.bf16.msra.mxu0 %v2753_v1  ;;  %v3169_v0 = vor.u32 %v3497_v59, %v3168_v58  ;;  %v3032_v1 = vld [vmem:[%s5229_s1 + $0x630] sm:$0xf]  ;;  %v3136_v53 = vld [vmem:[%s5229_s1 + $0x700] sm:$0xf]  ;;  %v3505_v58 = vld [vmem:[%s5229_s1 + $0x784] sm:$0xf0] }
  0x61   :  { %1750 = vmatpush.bf16.msra.mxu1 %v2817_v6  ;;  %v3160_v6 = vld [vmem:[%s5229_s1 + $0x730] sm:$0xf]  ;;  %v3033_v10 = vor.u32 %v3463_v2, %v3032_v1  ;;  %v27_v59 = vld [vmem:[%s5230_s0 + $0x38] sm:$0xff]  ;;  %v3310_v1 = vld [vmem:[%s5229_s1 + $0x174] sm:$0xf]  ;;  %v3137_v5 = vor.u32 %v3489_v54, %v3136_v53 }
  0x62   :  { %1763 = vmatpush.bf16.msra.mxu2 %v2881_v7  ;;  %v3495_v7 = vld [vmem:[%s5229_s1 + $0x734] sm:$0xf0]  ;;  %v2426_v2 = vld [vmem:[%s5229_s1 + $0x178] sm:$0xf0] }
  0x63   :  { %1776 = vmatpush.bf16.msra.mxu3 %v2945_v12  ;;  %1738 = vmatmul.bf16.vlgmr.msra.gmra.mxu0 %v4209_v25  ;;  %v3161_v12 = vor.u32 %v3495_v7, %v3160_v6  ;;  %v3326_v6 = vld [vmem:[%s5229_s1 + $0x1f4] sm:$0xf]  ;;  %v2490_v7 = vld [vmem:[%s5229_s1 + $0x1f8] sm:$0xf0] }
  0x64   :  { %1782 = vmatpush.bf16.msrb.mxu0 %v3065_v13  ;;  %1751 = vmatmul.bf16.vlgmr.msra.gmra.mxu1 %v4222_v30  ;;  %v3024_v13 = vld [vmem:[%s5229_s1 + $0x620] sm:$0xf]  ;;  %v2493_v21 = vor.u32 %v3326_v6, %v2490_v7  ;;  %v2330_v7 = vld [vmem:[%s5229_s1 + $0xb8] sm:$0xf0] }
  0x65   :  { %1795 = vmatpush.bf16.msrb.mxu1 %v3129_v15  ;;  %1764 = vmatmul.bf16.vlgmr.msra.gmra.mxu2 %v4220_v29  ;;  %v3088_v15 = vld [vmem:[%s5229_s1 + $0x6a0] sm:$0xf]  ;;  %v3025_v27 = vor.u32 %v3461_v14, %v3024_v13  ;;  %v2429_v14 = vor.u32 %v3310_v1, %v2426_v2 }
  0x66   :  { %1808 = vmatpush.bf16.msrb.mxu2 %v3193_v16  ;;  %1777 = vmatmul.bf16.vlgmr.msra.gmra.mxu3 %v4230_v33  ;;  %v3225_v16 = vor.u32 %v3511_v9, %v3224_v8  ;;  %v3089_v28 = vor.u32 %v3477_v17, %v3088_v15  ;;  %v312_v8 = vunpack.c.l.b16 %v27_v59  ;;  %v311_v9 = vunpack.c.h.b16 %v26_v55  ;;  %v3276_v15 = vld [vmem:[%s5229_s1 + $0x64] sm:$0xf] }
  0x67   :  { %1821 = vmatpush.bf16.msrb.mxu3 %v3257_v24  ;;  %v3216_v24 = vld [vmem:[%s5229_s1 + $0x7a0] sm:$0xf]  ;;  %v3292_v17 = vld [vmem:[%s5229_s1 + $0xe4] sm:$0xf] }
  0x68   :  { %1783 = vmatpush.bf16.msrb.mxu0 %v3057_v34  ;;  %v3459_v34 = vld [vmem:[%s5229_s1 + $0x614] sm:$0xf0]  ;;  %v3272_v55 = vld [vmem:[%s5229_s1 + $0x44] sm:$0xf] }
  0x69   :  { %1796 = vmatpush.bf16.msrb.mxu1 %v3121_v35  ;;  %v3080_v35 = vld [vmem:[%s5229_s1 + $0x690] sm:$0xf]  ;;  %v3017_v47 = vor.u32 %v3459_v34, %v3016_v32  ;;  %v3324_v32 = vld [vmem:[%s5229_s1 + $0x1e4] sm:$0xf]  ;;  %v2482_v34 = vld [vmem:[%s5229_s1 + $0x1e8] sm:$0xf0] }
  0x6a   :  { %1809 = vmatpush.bf16.msrb.mxu2 %v3185_v36  ;;  %v3217_v36 = vor.u32 %v3509_v26, %v3216_v24  ;;  %v2354_v24 = vld [vmem:[%s5229_s1 + $0xe8] sm:$0xf0]  ;;  %v3308_v26 = vld [vmem:[%s5229_s1 + $0x164] sm:$0xf] }
  0x6b   :  { %1822 = vmatpush.bf16.msrb.mxu3 %v3249_v43  ;;  %v3208_v43 = vld [vmem:[%s5229_s1 + $0x790] sm:$0xf] }
  0x6c   :  { %1784 = vmatpush.bf16.msrb.mxu0 %v3049_v50  ;;  %v3473_v50 = vld [vmem:[%s5229_s1 + $0x684] sm:$0xf0] }
  0x6d   :  { %1797 = vmatpush.bf16.msrb.mxu1 %v3113_v51  ;;  %v3081_v51 = vor.u32 %v3475_v37, %v3080_v35  ;;  %v2357_v37 = vor.u32 %v3292_v17, %v2354_v24  ;;  %v3284_v17 = vld [vmem:[%s5229_s1 + $0xa4] sm:$0xf]  ;;  %v2322_v24 = vld [vmem:[%s5229_s1 + $0xa8] sm:$0xf0] }
  0x6e   :  { %1810 = vmatpush.bf16.msrb.mxu2 %v3177_v52  ;;  %v3145_v52 = vor.u32 %v3491_v40, %v3144_v39  ;;  %v3274_v40 = vld [vmem:[%s5229_s1 + $0x54] sm:$0xf] }
  0x6f   :  { %1823 = vmatpush.bf16.msrb.mxu3 %v3241_v56  ;;  %v3209_v56 = vor.u32 %v3507_v45, %v3208_v43  ;;  %v2282_v43 = vld [vmem:[%s5229_s1 + $0x58] sm:$0xf0]  ;;  %v3290_v45 = vld [vmem:[%s5229_s1 + $0xd4] sm:$0xf] }
  0x70   :  { %1785 = vmatpush.bf16.msrb.mxu0 %v3041_v62  ;;  %v3294_v62 = vld [vmem:[%s5229_s1 + $0xf4] sm:$0xf] }
  0x71   :  { %1798 = vmatpush.bf16.msrb.mxu1 %v3105_v63  ;;  %v3009_v63 = vor.u32 %v3457_v48, %v3008_v46  ;;  %v2485_v46 = vor.u32 %v3324_v32, %v2482_v34  ;;  %v3306_v48 = vld [vmem:[%s5229_s1 + $0x154] sm:$0xf]  ;;  %v3316_v32 = vld [vmem:[%s5229_s1 + $0x1a4] sm:$0xf]  ;;  %v2450_v34 = vld [vmem:[%s5229_s1 + $0x1a8] sm:$0xf0] }
  0x72   :  { %1811 = vmatpush.bf16.msrb.mxu2 %v3169_v0  ;;  %v2362_v0 = vld [vmem:[%s5229_s1 + $0xf8] sm:$0xf0] }
  0x73   :  { %1824 = vmatpush.bf16.msrb.mxu3 %v3233_v4  ;;  %v3073_v4 = vor.u32 %v3473_v50, %v3072_v49  ;;  %v2365_v13 = vor.u32 %v3294_v62, %v2362_v0  ;;  %v2410_v49 = vld [vmem:[%s5229_s1 + $0x158] sm:$0xf0]  ;;  %v3322_v50 = vld [vmem:[%s5229_s1 + $0x1d4] sm:$0xf]  ;;  %v3320_v62 = vld [vmem:[%s5229_s1 + $0x1c4] sm:$0xf] }
  0x74   :  { %1786 = vmatpush.bf16.msrb.mxu0 %v3033_v10  ;;  %v3201_v10 = vor.u32 %v3505_v58, %v3200_v57  ;;  %v2413_v54 = vor.u32 %v3306_v48, %v2410_v49  ;;  %v3288_v57 = vld [vmem:[%s5229_s1 + $0xc4] sm:$0xf]  ;;  %v3298_v48 = vld [vmem:[%s5229_s1 + $0x114] sm:$0xf]  ;;  %v2378_v49 = vld [vmem:[%s5229_s1 + $0x118] sm:$0xf0] }
  0x75   :  { %1799 = vmatpush.bf16.msrb.mxu1 %v3097_v11  ;;  %v2301_v11 = vor.u32 %v3278_v60, %v2298_v61  ;;  %v3304_v60 = vld [vmem:[%s5229_s1 + $0x144] sm:$0xf]  ;;  %v2402_v61 = vld [vmem:[%s5229_s1 + $0x148] sm:$0xf0] }
  0x76   :  { %1812 = vmatpush.bf16.msrb.mxu2 %v3161_v12  ;;  %v313_v12 = vunpack.c.h.b16 %v27_v59  ;;  %v2338_v59 = vld [vmem:[%s5229_s1 + $0xc8] sm:$0xf0]  ;;  %v2405_v2 = vor.u32 %v3304_v60, %v2402_v61 }
  0x77   :  { %1825 = vmatpush.bf16.msrb.mxu3 %v3225_v16  ;;  %v2290_v16 = vld [vmem:[%s5229_s1 + $0x68] sm:$0xf0]  ;;  %v2341_v1 = vor.u32 %v3288_v57, %v2338_v59  ;;  %v3280_v57 = vld [vmem:[%s5229_s1 + $0x84] sm:$0xf] }
  0x78   :  { %1787 = vmatpush.bf16.msrb.mxu0 %v3025_v27  ;;  %v2418_v27 = vld [vmem:[%s5229_s1 + $0x168] sm:$0xf0]  ;;  %v4440_v35 = vpack.c.b16 %v313_v12, %v313_v12  ;;  %v3296_v59 = vld [vmem:[%s5229_s1 + $0x104] sm:$0xf] }
  0x79   :  { %1800 = vmatpush.bf16.msrb.mxu1 %v3089_v28  ;;  %v4430_v28 = vpack.c.b16 %v312_v8, %v312_v8  ;;  %v2421_v39 = vor.u32 %v3308_v26, %v2418_v27  ;;  %v3302_v8 = vld [vmem:[%s5229_s1 + $0x134] sm:$0xf]  ;;  %v3300_v26 = vld [vmem:[%s5229_s1 + $0x124] sm:$0xf]  ;;  %v2386_v27 = vld [vmem:[%s5229_s1 + $0x128] sm:$0xf0] }
  0x7a   :  { %1813 = vmatpush.bf16.msrb.mxu2 %v3153_v31  ;;  %v4432_v31 = vpack.c.b16 %v311_v9, %v311_v9  ;;  %v2394_v9 = vld [vmem:[%s5229_s1 + $0x138] sm:$0xf0]  ;;  %v2370_v61 = vld [vmem:[%s5229_s1 + $0x108] sm:$0xf0] }
  0x7b   :  { %1826 = vmatpush.bf16.msrb.mxu3 %v3217_v36  ;;  %v2293_v36 = vor.u32 %v3276_v15, %v2290_v16  ;;  %v3268_v15 = vld [vmem:[%s5229_s1 + $0x24] sm:$0xf]  ;;  %v2258_v16 = vld [vmem:[%s5229_s1 + $0x28] sm:$0xf0] }
  0x7c   :  { %1788 = vmatpush.bf16.msrb.mxu0 %v3017_v47  ;;  %v2346_v47 = vld [vmem:[%s5229_s1 + $0xd8] sm:$0xf0] }
  0x7d   :  { %1801 = vmatpush.bf16.msrb.mxu1 %v3081_v51  ;;  %v2474_v51 = vld [vmem:[%s5229_s1 + $0x1d8] sm:$0xf0]  ;;  %v2349_v53 = vor.u32 %v3290_v45, %v2346_v47  ;;  %v3282_v45 = vld [vmem:[%s5229_s1 + $0x94] sm:$0xf] }
  0x7e   :  { %1814 = vmatpush.bf16.msrb.mxu2 %v3145_v52  ;;  %v2285_v52 = vor.u32 %v3274_v40, %v2282_v43  ;;  %v2477_v58 = vor.u32 %v3322_v50, %v2474_v51  ;;  %v3266_v40 = vld [vmem:[%s5229_s1 + $0x14] sm:$0xf]  ;;  %v2250_v43 = vld [vmem:[%s5229_s1 + $0x18] sm:$0xf0] }
  0x7f   :  { %1827 = vmatpush.bf16.msrb.mxu3 %v3209_v56  ;;  %v2274_v56 = vld [vmem:[%s5229_s1 + $0x48] sm:$0xf0]  ;;  %v2314_v47 = vld [vmem:[%s5229_s1 + $0x98] sm:$0xf0]  ;;  %v3314_v50 = vld [vmem:[%s5229_s1 + $0x194] sm:$0xf] }
  0x80   :  { %1789 = vmatpush.bf16.msrb.mxu0 %v3009_v63  ;;  %v2466_v63 = vld [vmem:[%s5229_s1 + $0x1c8] sm:$0xf0]  ;;  %v2277_v0 = vor.u32 %v3272_v55, %v2274_v56  ;;  %v2442_v51 = vld [vmem:[%s5229_s1 + $0x198] sm:$0xf0]  ;;  %v2317_v55 = vor.u32 %v3282_v45, %v2314_v47  ;;  %v2381_v56 = vor.u32 %v3298_v48, %v2378_v49  ;;  %v3354_v45 = vld [vmem:[%s5229_s1 + $0x2d4] sm:$0xf] }
  0x81   :  { %1802 = vmatpush.bf16.msrb.mxu1 %v3073_v4  ;;  %v2266_v4 = vld [vmem:[%s5229_s1 + $0x38] sm:$0xf0]  ;;  %v2469_v6 = vor.u32 %v3320_v62, %v2466_v63  ;;  %v2445_v60 = vor.u32 %v3314_v50, %v2442_v51  ;;  %v3312_v62 = vld [vmem:[%s5229_s1 + $0x184] sm:$0xf]  ;;  %v2434_v63 = vld [vmem:[%s5229_s1 + $0x188] sm:$0xf0] }
  0x82   :  { %1815 = vmatpush.bf16.msrb.mxu2 %v3137_v5  ;;  %v3286_v5 = vld [vmem:[%s5229_s1 + $0xb4] sm:$0xf]  ;;  %v2269_v12 = vor.u32 %v3270_v3, %v2266_v4  ;;  %v2618_v4 = vld [vmem:[%s5229_s1 + $0x2f8] sm:$0xf0] }
  0x83   :  { %1828 = vmatpush.bf16.msrb.mxu3 %v3201_v10  ;;  %1790 = vmatmul.bf16.vlgmr.msrb.gmra.mxu0 %v4419_v23  ;;  %v3318_v10 = vld [vmem:[%s5229_s1 + $0x1b4] sm:$0xf]  ;;  %v2602_v47 = vld [vmem:[%s5229_s1 + $0x2d8] sm:$0xf0] }
  0x84   :  { %1834 = vmatpush.bf16.msra.mxu0 %v2301_v11  ;;  %1803 = vmatmul.bf16.vlgmr.msrb.gmra.mxu1 %v4432_v31  ;;  %v2458_v11 = vld [vmem:[%s5229_s1 + $0x1b8] sm:$0xf0]  ;;  %v3370_v48 = vld [vmem:[%s5229_s1 + $0x354] sm:$0xf] }
  0x85   :  { %1847 = vmatpush.bf16.msra.mxu1 %v2365_v13  ;;  %1816 = vmatmul.bf16.vlgmr.msrb.gmra.mxu2 %v4430_v28  ;;  %v2333_v13 = vor.u32 %v3286_v5, %v2330_v7  ;;  %v3374_v5 = vld [vmem:[%s5229_s1 + $0x374] sm:$0xf]  ;;  %v2666_v49 = vld [vmem:[%s5229_s1 + $0x358] sm:$0xf0] }
  0x86   :  { %1860 = vmatpush.bf16.msra.mxu2 %v2429_v14  ;;  %1829 = vmatmul.bf16.vlgmr.msrb.gmra.mxu3 %v4440_v35  ;;  %v2397_v14 = vor.u32 %v3302_v8, %v2394_v9  ;;  %v2373_v8 = vor.u32 %v3296_v59, %v2370_v61  ;;  %v3390_v9 = vld [vmem:[%s5229_s1 + $0x3f4] sm:$0xf]  ;;  %v2730_v51 = vld [vmem:[%s5229_s1 + $0x3d8] sm:$0xf0]  ;;  %v2722_v59 = vld [vmem:[%s5229_s1 + $0x3c8] sm:$0xf0] }
  0x87   :  { %1873 = vmatpush.bf16.msra.mxu3 %v2493_v21  ;;  %v2461_v21 = vor.u32 %v3318_v10, %v2458_v11  ;;  %v2746_v10 = vld [vmem:[%s5229_s1 + $0x3f8] sm:$0xf0]  ;;  %v2437_v11 = vor.u32 %v3312_v62, %v2434_v63  ;;  %v3386_v50 = vld [vmem:[%s5229_s1 + $0x3d4] sm:$0xf] }
  0x88   :  { %1835 = vmatpush.bf16.msra.mxu0 %v2293_v36  ;;  %v2261_v36 = vor.u32 %v3268_v15, %v2258_v16  ;;  %v3340_v15 = vld [vmem:[%s5229_s1 + $0x264] sm:$0xf]  ;;  %v2546_v16 = vld [vmem:[%s5229_s1 + $0x268] sm:$0xf0]  ;;  %v3334_v61 = vld [vmem:[%s5229_s1 + $0x234] sm:$0xf] }
  0x89   :  { %1848 = vmatpush.bf16.msra.mxu1 %v2357_v37  ;;  %v2325_v37 = vor.u32 %v3284_v17, %v2322_v24  ;;  %v3356_v17 = vld [vmem:[%s5229_s1 + $0x2e4] sm:$0xf]  ;;  %v2610_v24 = vld [vmem:[%s5229_s1 + $0x2e8] sm:$0xf0] }
  0x8a   :  { %1861 = vmatpush.bf16.msra.mxu2 %v2421_v39  ;;  %v2389_v39 = vor.u32 %v3300_v26, %v2386_v27  ;;  %v3372_v26 = vld [vmem:[%s5229_s1 + $0x364] sm:$0xf]  ;;  %v2674_v27 = vld [vmem:[%s5229_s1 + $0x368] sm:$0xf0] }
  0x8b   :  { %1874 = vmatpush.bf16.msra.mxu3 %v2485_v46  ;;  %v2453_v46 = vor.u32 %v3316_v32, %v2450_v34  ;;  %v3388_v32 = vld [vmem:[%s5229_s1 + $0x3e4] sm:$0xf]  ;;  %v2738_v34 = vld [vmem:[%s5229_s1 + $0x3e8] sm:$0xf0] }
  0x8c   :  { %1836 = vmatpush.bf16.msra.mxu0 %v2285_v52  ;;  %v2253_v52 = vor.u32 %v3266_v40, %v2250_v43  ;;  %v3338_v40 = vld [vmem:[%s5229_s1 + $0x254] sm:$0xf]  ;;  %v2538_v43 = vld [vmem:[%s5229_s1 + $0x258] sm:$0xf0] }
  0x8d   :  { %1849 = vmatpush.bf16.msra.mxu1 %v2349_v53  ;;  %v3264_v53 = vld [vmem:[%s5229_s1 + $0x4] sm:$0xf] }
  0x8e   :  { %1862 = vmatpush.bf16.msra.mxu2 %v2413_v54  ;;  %v2242_v54 = vld [vmem:[%s5229_s1 + $0x8] sm:$0xf0] }
  0x8f   :  { %1875 = vmatpush.bf16.msra.mxu3 %v2477_v58  ;;  %v2306_v58 = vld [vmem:[%s5229_s1 + $0x88] sm:$0xf0]  ;;  %v2245_v3 = vor.u32 %v3264_v53, %v2242_v54  ;;  %v2605_v53 = vor.u32 %v3354_v45, %v2602_v47  ;;  %v3336_v54 = vld [vmem:[%s5229_s1 + $0x244] sm:$0xf] }
  0x90   :  { %1837 = vmatpush.bf16.msra.mxu0 %v2277_v0  ;;  %v3342_v0 = vld [vmem:[%s5229_s1 + $0x274] sm:$0xf]  ;;  %v2309_v7 = vor.u32 %v3280_v57, %v2306_v58  ;;  %v2658_v57 = vld [vmem:[%s5229_s1 + $0x348] sm:$0xf0]  ;;  %v3384_v58 = vld [vmem:[%s5229_s1 + $0x3c4] sm:$0xf] }
  0x91   :  { %1850 = vmatpush.bf16.msra.mxu1 %v2341_v1  ;;  %v2554_v1 = vld [vmem:[%s5229_s1 + $0x278] sm:$0xf0] }
  0x92   :  { %1863 = vmatpush.bf16.msra.mxu2 %v2405_v2  ;;  %v3358_v2 = vld [vmem:[%s5229_s1 + $0x2f4] sm:$0xf] }
  0x93   :  { %1876 = vmatpush.bf16.msra.mxu3 %v2469_v6  ;;  %v2682_v6 = vld [vmem:[%s5229_s1 + $0x378] sm:$0xf0] }
  0x94   :  { %1838 = vmatpush.bf16.msra.mxu0 %v2269_v12  ;;  %v2557_v12 = vor.u32 %v3342_v0, %v2554_v1  ;;  %v2522_v0 = vld [vmem:[%s5229_s1 + $0x238] sm:$0xf0]  ;;  %v3350_v1 = vld [vmem:[%s5229_s1 + $0x2b4] sm:$0xf] }
  0x95   :  { %1851 = vmatpush.bf16.msra.mxu1 %v2333_v13  ;;  %v2621_v13 = vor.u32 %v3358_v2, %v2618_v4  ;;  %v2586_v2 = vld [vmem:[%s5229_s1 + $0x2b8] sm:$0xf0]  ;;  %v3366_v4 = vld [vmem:[%s5229_s1 + $0x334] sm:$0xf] }
  0x96   :  { %1864 = vmatpush.bf16.msra.mxu2 %v2397_v14  ;;  %v2685_v14 = vor.u32 %v3374_v5, %v2682_v6  ;;  %v2650_v5 = vld [vmem:[%s5229_s1 + $0x338] sm:$0xf0]  ;;  %v4711_v6 = vld [vmem:[%s5231_s2] sm:$0x3] }
  0x97   :  { %1877 = vmatpush.bf16.msra.mxu3 %v2461_v21  ;;  %v2749_v21 = vor.u32 %v3390_v9, %v2746_v10  ;;  %v2525_v9 = vor.u32 %v3334_v61, %v2522_v0  ;;  %v3332_v10 = vld [vmem:[%s5229_s1 + $0x224] sm:$0xf] }
  0x98   :  { %1839 = vmatpush.bf16.msra.mxu0 %v2261_v36  ;;  %v2549_v36 = vor.u32 %v3340_v15, %v2546_v16  ;;  %v286_v15 = vperm.slane %v4711_v6, 0  ;;  %v3376_v61 = vld [vmem:[%s5229_s1 + $0x384] sm:$0xf] }
  0x99   :  { %1852 = vmatpush.bf16.msra.mxu1 %v2325_v37  ;;  %v2613_v37 = vor.u32 %v3356_v17, %v2610_v24  ;;  %v2578_v17 = vld [vmem:[%s5229_s1 + $0x2a8] sm:$0xf0] }
  0x9a   :  { %1865 = vmatpush.bf16.msra.mxu2 %v2389_v39  ;;  %v2677_v39 = vor.u32 %v3372_v26, %v2674_v27  ;;  %v2642_v24 = vld [vmem:[%s5229_s1 + $0x328] sm:$0xf0]  ;;  %v3380_v26 = vld [vmem:[%s5229_s1 + $0x3a4] sm:$0xf] }
  0x9b   :  { %1878 = vmatpush.bf16.msra.mxu3 %v2453_v46  ;;  %v2741_v46 = vor.u32 %v3388_v32, %v2738_v34  ;;  %v2706_v27 = vld [vmem:[%s5229_s1 + $0x3a8] sm:$0xf0] }
  0x9c   :  { %1840 = vmatpush.bf16.msra.mxu0 %v2253_v52  ;;  %v2541_v52 = vor.u32 %v3338_v40, %v2538_v43  ;;  %v2506_v40 = vld [vmem:[%s5229_s1 + $0x218] sm:$0xf0]  ;;  %v3346_v43 = vld [vmem:[%s5229_s1 + $0x294] sm:$0xf]  ;;  %v2709_v47 = vor.u32 %v3380_v26, %v2706_v27  ;;  %v3404_v26 = vld [vmem:[%s5229_s1 + $0x464] sm:$0xf] }
  0x9d   :  { %1853 = vmatpush.bf16.msra.mxu1 %v2317_v55  ;;  %v2530_v55 = vld [vmem:[%s5229_s1 + $0x248] sm:$0xf0] }
  0x9e   :  { %1866 = vmatpush.bf16.msra.mxu2 %v2381_v56  ;;  %v3368_v56 = vld [vmem:[%s5229_s1 + $0x344] sm:$0xf]  ;;  %v2802_v27 = vld [vmem:[%s5229_s1 + $0x468] sm:$0xf0] }
  0x9f   :  { %1879 = vmatpush.bf16.msra.mxu3 %v2445_v60  ;;  %v2533_v60 = vor.u32 %v3336_v54, %v2530_v55  ;;  %v2661_v63 = vor.u32 %v3368_v56, %v2658_v57  ;;  %v3328_v54 = vld [vmem:[%s5229_s1 + $0x204] sm:$0xf]  ;;  %v2498_v55 = vld [vmem:[%s5229_s1 + $0x208] sm:$0xf0] }
  0xa0   :  { %1841 = vmatpush.bf16.msra.mxu0 %v2245_v3  ;;  %v2725_v3 = vor.u32 %v3384_v58, %v2722_v59  ;;  %v1635_v34 = vpop.f32.mrf.mxu0  ;;  %v2562_v56 = vld [vmem:[%s5229_s1 + $0x288] sm:$0xf0]  ;;  %v3360_v57 = vld [vmem:[%s5229_s1 + $0x304] sm:$0xf] }
  0xa1   :  { %1854 = vmatpush.bf16.msra.mxu1 %v2309_v7  ;;  %v3382_v7 = vld [vmem:[%s5229_s1 + $0x3b4] sm:$0xf]  ;;  %v1636_v45 = vadd.f32 %v1635_v34, %v286_v15 }
  0xa2   :  { %1867 = vmatpush.bf16.msra.mxu2 %v2373_v8  ;;  %v2714_v8 = vld [vmem:[%s5229_s1 + $0x3b8] sm:$0xf0] }
  0xa3   :  { %1880 = vmatpush.bf16.msra.mxu3 %v2437_v11  ;;  %1842 = vmatmul.bf16.vlgmr.msra.gmra.mxu0 %v3854_v19  ;;  %v3352_v19 = vld [vmem:[%s5229_s1 + $0x2c4] sm:$0xf]  ;;  %v2589_v11 = vor.u32 %v3350_v1, %v2586_v2  ;;  %v2717_v16 = vor.u32 %v3382_v7, %v2714_v8  ;;  %v3406_v1 = vld [vmem:[%s5229_s1 + $0x474] sm:$0xf]  ;;  %v2810_v2 = vld [vmem:[%s5229_s1 + $0x478] sm:$0xf0] }
  0xa4   :  { %1886 = vmatpush.bf16.msrb.mxu0 %v2557_v12  ;;  %1855 = vmatmul.bf16.vlgmr.msra.gmra.mxu1 %v3858_v22  ;;  %v2594_v22 = vld [vmem:[%s5229_s1 + $0x2c8] sm:$0xf0]  ;;  %v2653_v12 = vor.u32 %v3366_v4, %v2650_v5  ;;  %v2501_v4 = vor.u32 %v3328_v54, %v2498_v55  ;;  %v2874_v5 = vld [vmem:[%s5229_s1 + $0x4f8] sm:$0xf0]  ;;  %v3438_v7 = vld [vmem:[%s5229_s1 + $0x574] sm:$0xf] }
  0xa5   :  { %1899 = vmatpush.bf16.msrb.mxu1 %v2621_v13  ;;  %1868 = vmatmul.bf16.vlgmr.msra.gmra.mxu2 %v3852_v18  ;;  %v2669_v18 = vor.u32 %v3370_v48, %v2666_v49  ;;  %v2597_v62 = vor.u32 %v3352_v19, %v2594_v22  ;;  %v2514_v13 = vld [vmem:[%s5229_s1 + $0x228] sm:$0xf0]  ;;  %v2570_v48 = vld [vmem:[%s5229_s1 + $0x298] sm:$0xf0]  ;;  %v3362_v49 = vld [vmem:[%s5229_s1 + $0x314] sm:$0xf] }
  0xa6   :  { %1912 = vmatpush.bf16.msrb.mxu2 %v2685_v14  ;;  %1881 = vmatmul.bf16.vlgmr.msra.gmra.mxu3 %v3856_v20  ;;  %v2733_v20 = vor.u32 %v3386_v50, %v2730_v51  ;;  %v3348_v14 = vld [vmem:[%s5229_s1 + $0x2a4] sm:$0xf]  ;;  %v2517_v32 = vor.u32 %v3332_v10, %v2514_v13  ;;  %v2634_v50 = vld [vmem:[%s5229_s1 + $0x318] sm:$0xf0]  ;;  %v3378_v51 = vld [vmem:[%s5229_s1 + $0x394] sm:$0xf]  ;;  %v2573_v19 = vor.u32 %v3346_v43, %v2570_v48 }
  0xa7   :  { %1925 = vmatpush.bf16.msrb.mxu3 %v2749_v21  ;;  %v3364_v21 = vld [vmem:[%s5229_s1 + $0x324] sm:$0xf]  ;;  %v2938_v8 = vld [vmem:[%s5229_s1 + $0x578] sm:$0xf0]  ;;  %v3454_v13 = vld [vmem:[%s5229_s1 + $0x5f4] sm:$0xf] }
  0xa8   :  { %1887 = vmatpush.bf16.msrb.mxu0 %v2549_v36  ;;  %v2581_v36 = vor.u32 %v3348_v14, %v2578_v17  ;;  %v3344_v22 = vld [vmem:[%s5229_s1 + $0x284] sm:$0xf]  ;;  %v1661_v58 = vpop.f32.mrf.mxu2  ;;  %v1637_v10 = vpop.f32.mrf.mxu0  ;;  %v3002_v14 = vld [vmem:[%s5229_s1 + $0x5f8] sm:$0xf0]  ;;  %v2813_v17 = vor.u32 %v3406_v1, %v2810_v2  ;;  %v2994_v43 = vld [vmem:[%s5229_s1 + $0x5e8] sm:$0xf0] }
  0xa9   :  { %1900 = vmatpush.bf16.msrb.mxu1 %v2613_v37  ;;  %v2645_v37 = vor.u32 %v3364_v21, %v2642_v24  ;;  %v1674_v0 = vpop.f32.mrf.mxu3  ;;  %v2941_v24 = vor.u32 %v3438_v7, %v2938_v8  ;;  %v3005_v34 = vor.u32 %v3454_v13, %v3002_v14  ;;  %v3434_v54 = vld [vmem:[%s5229_s1 + $0x554] sm:$0xf]  ;;  %v2922_v55 = vld [vmem:[%s5229_s1 + $0x558] sm:$0xf0] }
  0xaa   :  { %1913 = vmatpush.bf16.msrb.mxu2 %v2677_v39  ;;  %v3330_v39 = vld [vmem:[%s5229_s1 + $0x214] sm:$0xf]  ;;  %v2906_v13 = vld [vmem:[%s5229_s1 + $0x538] sm:$0xf0] }
  0xab   :  { %1926 = vmatpush.bf16.msrb.mxu3 %v2741_v46  ;;  %v1648_v46 = vpop.f32.mrf.mxu1  ;;  %v3446_v14 = vld [vmem:[%s5229_s1 + $0x5b4] sm:$0xf] }
  0xac   :  { %1888 = vmatpush.bf16.msrb.mxu0 %v2541_v52  ;;  %v2698_v52 = vld [vmem:[%s5229_s1 + $0x398] sm:$0xf0] }
  0xad   :  { %1901 = vmatpush.bf16.msrb.mxu1 %v2605_v53  ;;  %v1649_v53 = vadd.f32 %v1648_v46, %v1636_v45  ;;  %v2701_v59 = vor.u32 %v3378_v51, %v2698_v52  ;;  %v2805_v46 = vor.u32 %v3404_v26, %v2802_v27  ;;  %v2794_v51 = vld [vmem:[%s5229_s1 + $0x458] sm:$0xf0]  ;;  %v3418_v52 = vld [vmem:[%s5229_s1 + $0x4d4] sm:$0xf]  ;;  %v2770_v26 = vld [vmem:[%s5229_s1 + $0x428] sm:$0xf0] }
  0xae   :  { %1914 = vmatpush.bf16.msrb.mxu2 %v2669_v18  ;;  %v2509_v18 = vor.u32 %v3330_v39, %v2506_v40  ;;  %v2930_v39 = vld [vmem:[%s5229_s1 + $0x568] sm:$0xf0]  ;;  %v3452_v40 = vld [vmem:[%s5229_s1 + $0x5e4] sm:$0xf] }
  0xaf   :  { %1927 = vmatpush.bf16.msrb.mxu3 %v2733_v20  ;;  %v2637_v20 = vor.u32 %v3362_v49, %v2634_v50  ;;  %v3402_v50 = vld [vmem:[%s5229_s1 + $0x454] sm:$0xf]  ;;  %v3412_v27 = vld [vmem:[%s5229_s1 + $0x4a4] sm:$0xf] }
  0xb0   :  { %1889 = vmatpush.bf16.msrb.mxu0 %v2533_v60  ;;  %v2626_v60 = vld [vmem:[%s5229_s1 + $0x308] sm:$0xf0]  ;;  %v1663_v45 = vpop.f32.mrf.mxu2 }
  0xb1   :  { %1902 = vmatpush.bf16.msrb.mxu1 %v2597_v62  ;;  %v2690_v62 = vld [vmem:[%s5229_s1 + $0x388] sm:$0xf0]  ;;  %v3444_v45 = vld [vmem:[%s5229_s1 + $0x5a4] sm:$0xf] }
  0xb2   :  { %1915 = vmatpush.bf16.msrb.mxu2 %v2661_v63  ;;  %v1662_v63 = vadd.f32 %v1661_v58, %v1649_v53  ;;  %v2997_v53 = vor.u32 %v3452_v40, %v2994_v43  ;;  %v2786_v58 = vld [vmem:[%s5229_s1 + $0x448] sm:$0xf0] }
  0xb3   :  { %1928 = vmatpush.bf16.msrb.mxu3 %v2725_v3  ;;  %v3422_v3 = vld [vmem:[%s5229_s1 + $0x4f4] sm:$0xf]  ;;  %v1650_v15 = vpop.f32.mrf.mxu1 }
  0xb4   :  { %1890 = vmatpush.bf16.msrb.mxu0 %v2525_v9  ;;  %v4810_v9 = vadd.f32 %v1674_v0, %v1662_v63  ;;  %v2877_v21 = vor.u32 %v3422_v3, %v2874_v5  ;;  %v3398_v3 = vld [vmem:[%s5229_s1 + $0x434] sm:$0xf] }
  0xb5   :  { %1903 = vmatpush.bf16.msrb.mxu1 %v2589_v11  ;;  %v2565_v11 = vor.u32 %v3344_v22, %v2562_v56  ;;  %v2925_v56 = vor.u32 %v3434_v54, %v2922_v55  ;;  %v3414_v5 = vld [vmem:[%s5229_s1 + $0x4b4] sm:$0xf] }
  0xb6   :  { %1916 = vmatpush.bf16.msrb.mxu2 %v2653_v12  ;;  %v2629_v12 = vor.u32 %v3360_v57, %v2626_v60  ;;  %v3400_v57 = vld [vmem:[%s5229_s1 + $0x444] sm:$0xf]  ;;  %v2914_v60 = vld [vmem:[%s5229_s1 + $0x548] sm:$0xf0] }
  0xb7   :  { %1929 = vmatpush.bf16.msrb.mxu3 %v2717_v16  ;;  %v2693_v16 = vor.u32 %v3376_v61, %v2690_v62  ;;  %v3448_v61 = vld [vmem:[%s5229_s1 + $0x5c4] sm:$0xf]  ;;  %v2978_v62 = vld [vmem:[%s5229_s1 + $0x5c8] sm:$0xf0]  ;;  %v2789_v63 = vor.u32 %v3400_v57, %v2786_v58 }
  0xb8   :  { %1891 = vmatpush.bf16.msrb.mxu0 %v2517_v32  ;;  %v3420_v32 = vld [vmem:[%s5229_s1 + $0x4e4] sm:$0xf]  ;;  %v2981_v10 = vor.u32 %v3448_v61, %v2978_v62 }
  0xb9   :  { %1904 = vmatpush.bf16.msrb.mxu1 %v2581_v36  ;;  %v2866_v36 = vld [vmem:[%s5229_s1 + $0x4e8] sm:$0xf0]  ;;  %v3392_v58 = vld [vmem:[%s5229_s1 + $0x404] sm:$0xf] }
  0xba   :  { %1917 = vmatpush.bf16.msrb.mxu2 %v2645_v37  ;;  %v3436_v37 = vld [vmem:[%s5229_s1 + $0x564] sm:$0xf]  ;;  %v2869_v48 = vor.u32 %v3420_v32, %v2866_v36  ;;  %v2834_v36 = vld [vmem:[%s5229_s1 + $0x4a8] sm:$0xf0] }
  0xbb   :  { %1930 = vmatpush.bf16.msrb.mxu3 %v2709_v47  ;;  %v1676_v47 = vpop.f32.mrf.mxu3  ;;  %v2933_v49 = vor.u32 %v3436_v37, %v2930_v39  ;;  %v3428_v37 = vld [vmem:[%s5229_s1 + $0x524] sm:$0xf]  ;;  %v2898_v39 = vld [vmem:[%s5229_s1 + $0x528] sm:$0xf0] }
  0xbc   :  { %1892 = vmatpush.bf16.msrb.mxu0 %v2509_v18  ;;  %v2858_v18 = vld [vmem:[%s5229_s1 + $0x4d8] sm:$0xf0]  ;;  %v3424_v61 = vld [vmem:[%s5229_s1 + $0x504] sm:$0xf] }
  0xbd   :  { %1905 = vmatpush.bf16.msrb.mxu1 %v2573_v19  ;;  %v3450_v19 = vld [vmem:[%s5229_s1 + $0x5d4] sm:$0xf]  ;;  %v2861_v22 = vor.u32 %v3418_v52, %v2858_v18 }
  0xbe   :  { %1918 = vmatpush.bf16.msrb.mxu2 %v2637_v20  ;;  %v2797_v20 = vor.u32 %v3402_v50, %v2794_v51  ;;  %v2837_v50 = vor.u32 %v3412_v27, %v2834_v36  ;;  %v2901_v51 = vor.u32 %v3428_v37, %v2898_v39  ;;  %v3394_v52 = vld [vmem:[%s5229_s1 + $0x414] sm:$0xf]  ;;  %v3058_v27 = vld [vmem:[%s5229_s1 + $0x668] sm:$0xf0]  ;;  %v3500_v37 = vld [vmem:[%s5229_s1 + $0x764] sm:$0xf] }
  0xbf   :  { %1931 = vmatpush.bf16.msrb.mxu3 %v2701_v59  ;;  %v3432_v59 = vld [vmem:[%s5229_s1 + $0x544] sm:$0xf]  ;;  %v3410_v18 = vld [vmem:[%s5229_s1 + $0x494] sm:$0xf]  ;;  %v3122_v36 = vld [vmem:[%s5229_s1 + $0x6e8] sm:$0xf0] }
  0xc0   :  { %1893 = vmatpush.bf16.msrb.mxu0 %v2501_v4  ;;  %v1687_v0 = vpop.f32.mrf.mxu0  ;;  %v2917_v2 = vor.u32 %v3432_v59, %v2914_v60  ;;  %v2778_v4 = vld [vmem:[%s5229_s1 + $0x438] sm:$0xf0]  ;;  %v3408_v59 = vld [vmem:[%s5229_s1 + $0x484] sm:$0xf]  ;;  %v2818_v60 = vld [vmem:[%s5229_s1 + $0x488] sm:$0xf0] }
  0xc1   :  { %1906 = vmatpush.bf16.msrb.mxu1 %v2565_v11  ;;  %v1688_v7 = vadd.f32 %v1687_v0, %v4810_v9  ;;  %v1700_v8 = vpop.f32.mrf.mxu1  ;;  %v2842_v11 = vld [vmem:[%s5229_s1 + $0x4b8] sm:$0xf0]  ;;  %v2882_v0 = vld [vmem:[%s5229_s1 + $0x508] sm:$0xf0] }
  0xc2   :  { %1919 = vmatpush.bf16.msrb.mxu2 %v2629_v12  ;;  %v3430_v12 = vld [vmem:[%s5229_s1 + $0x534] sm:$0xf]  ;;  %v2970_v9 = vld [vmem:[%s5229_s1 + $0x5b8] sm:$0xf0]  ;;  %v3186_v39 = vld [vmem:[%s5229_s1 + $0x768] sm:$0xf0] }
  0xc3   :  { %1932 = vmatpush.bf16.msrb.mxu3 %v2693_v16  ;;  %1894 = vmatmul.bf16.vlgmr.msrb.gmra.mxu0 %v4016_v41  ;;  %v3416_v41 = vld [vmem:[%s5229_s1 + $0x4c4] sm:$0xf]  ;;  %v1701_v15 = vadd.f32 %v1700_v8, %v1688_v7  ;;  %v2781_v16 = vor.u32 %v3398_v3, %v2778_v4  ;;  %v3470_v4 = vld [vmem:[%s5229_s1 + $0x674] sm:$0xf] }
  0xc4   :  { %1938 = vmatpush.bf16.msra.mxu0 %v2813_v17  ;;  %1907 = vmatmul.bf16.vlgmr.msrb.gmra.mxu1 %v4020_v44  ;;  %v2850_v44 = vld [vmem:[%s5229_s1 + $0x4c8] sm:$0xf0]  ;;  %v2845_v17 = vor.u32 %v3414_v5, %v2842_v11  ;;  %v3066_v5 = vld [vmem:[%s5229_s1 + $0x678] sm:$0xf0]  ;;  %v3486_v7 = vld [vmem:[%s5229_s1 + $0x6f4] sm:$0xf] }
  0xc5   :  { %1951 = vmatpush.bf16.msra.mxu1 %v2877_v21  ;;  %1920 = vmatmul.bf16.vlgmr.msrb.gmra.mxu2 %v4008_v38  ;;  %v2986_v38 = vld [vmem:[%s5229_s1 + $0x5d8] sm:$0xf0]  ;;  %v2853_v1 = vor.u32 %v3416_v41, %v2850_v44  ;;  %v2909_v21 = vor.u32 %v3430_v12, %v2906_v13  ;;  %v2754_v41 = vld [vmem:[%s5229_s1 + $0x408] sm:$0xf0]  ;;  %v3502_v11 = vld [vmem:[%s5229_s1 + $0x774] sm:$0xf]  ;;  %v2821_v13 = vor.u32 %v3408_v59, %v2818_v60 }
  0xc6   :  { %1964 = vmatpush.bf16.msra.mxu2 %v2941_v24  ;;  %1933 = vmatmul.bf16.vlgmr.msrb.gmra.mxu3 %v4018_v42  ;;  %v2989_v42 = vor.u32 %v3450_v19, %v2986_v38  ;;  %v3396_v24 = vld [vmem:[%s5229_s1 + $0x424] sm:$0xf]  ;;  %v2826_v19 = vld [vmem:[%s5229_s1 + $0x498] sm:$0xf0]  ;;  %v3426_v38 = vld [vmem:[%s5229_s1 + $0x514] sm:$0xf]  ;;  %v2757_v8 = vor.u32 %v3392_v58, %v2754_v41 }
  0xc7   :  { %1977 = vmatpush.bf16.msra.mxu3 %v3005_v34  ;;  %v2973_v34 = vor.u32 %v3446_v14, %v2970_v9  ;;  %v2773_v47 = vor.u32 %v3396_v24, %v2770_v26  ;;  %v3194_v12 = vld [vmem:[%s5229_s1 + $0x778] sm:$0xf0]  ;;  %v2885_v14 = vor.u32 %v3424_v61, %v2882_v0  ;;  %v3518_v9 = vld [vmem:[%s5229_s1 + $0x7f4] sm:$0xf]  ;;  %v3468_v26 = vld [vmem:[%s5229_s1 + $0x664] sm:$0xf] }
  0xc8   :  { %1939 = vmatpush.bf16.msra.mxu0 %v2805_v46  ;;  %v1713_v32 = vpop.f32.mrf.mxu2  ;;  %v2962_v46 = vld [vmem:[%s5229_s1 + $0x5a8] sm:$0xf0]  ;;  %v3197_v24 = vor.u32 %v3502_v11, %v3194_v12  ;;  %v3462_v0 = vld [vmem:[%s5229_s1 + $0x634] sm:$0xf] }
  0xc9   :  { %1952 = vmatpush.bf16.msra.mxu1 %v2869_v48  ;;  %v1714_v40 = vadd.f32 %v1713_v32, %v1701_v15  ;;  %v1726_v43 = vpop.f32.mrf.mxu3  ;;  %v1702_v54 = vpop.f32.mrf.mxu1  ;;  %v2965_v55 = vor.u32 %v3444_v45, %v2962_v46  ;;  %v3258_v15 = vld [vmem:[%s5229_s1 + $0x7f8] sm:$0xf0]  ;;  %v3484_v32 = vld [vmem:[%s5229_s1 + $0x6e4] sm:$0xf]  ;;  %v3061_v45 = vor.u32 %v3468_v26, %v3058_v27  ;;  %v3170_v58 = vld [vmem:[%s5229_s1 + $0x748] sm:$0xf0] }
  0xca   :  { %1965 = vmatpush.bf16.msra.mxu2 %v2933_v49  ;;  %v1689_v49 = vpop.f32.mrf.mxu0  ;;  %v3125_v46 = vor.u32 %v3484_v32, %v3122_v36  ;;  %v3178_v54 = vld [vmem:[%s5229_s1 + $0x758] sm:$0xf0]  ;;  %v3154_v26 = vld [vmem:[%s5229_s1 + $0x728] sm:$0xf0] }
  0xcb   :  { %1978 = vmatpush.bf16.msra.mxu3 %v2997_v53  ;;  %v4943_v48 = vadd.f32 %v1726_v43, %v1714_v40  ;;  %v2762_v53 = vld [vmem:[%s5229_s1 + $0x418] sm:$0xf0]  ;;  %v3516_v40 = vld [vmem:[%s5229_s1 + $0x7e4] sm:$0xf]  ;;  %v3250_v43 = vld [vmem:[%s5229_s1 + $0x7e8] sm:$0xf0] }
  0xcc   :  { %1940 = vmatpush.bf16.msra.mxu0 %v2797_v20  ;;  %v2890_v20 = vld [vmem:[%s5229_s1 + $0x518] sm:$0xf0]  ;;  %v2765_v57 = vor.u32 %v3394_v52, %v2762_v53  ;;  %v3466_v49 = vld [vmem:[%s5229_s1 + $0x654] sm:$0xf]  ;;  %v3253_v52 = vor.u32 %v3516_v40, %v3250_v43  ;;  %v3218_v36 = vld [vmem:[%s5229_s1 + $0x7a8] sm:$0xf0] }
  0xcd   :  { %1953 = vmatpush.bf16.msra.mxu1 %v2861_v22  ;;  %v3442_v22 = vld [vmem:[%s5229_s1 + $0x594] sm:$0xf]  ;;  %v2893_v44 = vor.u32 %v3426_v38, %v2890_v20  ;;  %v3114_v53 = vld [vmem:[%s5229_s1 + $0x6d8] sm:$0xf0] }
  0xce   :  { %1966 = vmatpush.bf16.msra.mxu2 %v2925_v56  ;;  %v2954_v56 = vld [vmem:[%s5229_s1 + $0x598] sm:$0xf0] }
  0xcf   :  { %1979 = vmatpush.bf16.msra.mxu3 %v2989_v42  ;;  %v2829_v42 = vor.u32 %v3410_v18, %v2826_v19  ;;  %v3498_v18 = vld [vmem:[%s5229_s1 + $0x754] sm:$0xf] }
  0xd0   :  { %1941 = vmatpush.bf16.msra.mxu0 %v2789_v63  ;;  %v1715_v62 = vpop.f32.mrf.mxu2  ;;  %v2957_v63 = vor.u32 %v3442_v22, %v2954_v56  ;;  %v3181_v20 = vor.u32 %v3498_v18, %v3178_v54  ;;  %v3480_v22 = vld [vmem:[%s5229_s1 + $0x6c4] sm:$0xf]  ;;  %v3106_v56 = vld [vmem:[%s5229_s1 + $0x6c8] sm:$0xf0]  ;;  %v3146_v18 = vld [vmem:[%s5229_s1 + $0x718] sm:$0xf0] }
  0xd1   :  { %1954 = vmatpush.bf16.msra.mxu1 %v2853_v1  ;;  %v3440_v1 = vld [vmem:[%s5229_s1 + $0x584] sm:$0xf]  ;;  %v1728_v3 = vpop.f32.mrf.mxu3  ;;  %v3109_v62 = vor.u32 %v3480_v22, %v3106_v56  ;;  %v3506_v54 = vld [vmem:[%s5229_s1 + $0x794] sm:$0xf] }
  0xd2   :  { %1967 = vmatpush.bf16.msra.mxu2 %v2917_v2  ;;  %v2946_v2 = vld [vmem:[%s5229_s1 + $0x588] sm:$0xf0]  ;;  %v3488_v56 = vld [vmem:[%s5229_s1 + $0x704] sm:$0xf] }
  0xd3   :  { %1980 = vmatpush.bf16.msra.mxu3 %v2981_v10  ;;  %v3130_v10 = vld [vmem:[%s5229_s1 + $0x6f8] sm:$0xf0] }
  0xd4   :  { %1942 = vmatpush.bf16.msra.mxu0 %v2781_v16  ;;  %v2949_v16 = vor.u32 %v3440_v1, %v2946_v2  ;;  %v3034_v1 = vld [vmem:[%s5229_s1 + $0x638] sm:$0xf0]  ;;  %v3478_v2 = vld [vmem:[%s5229_s1 + $0x6b4] sm:$0xf] }
  0xd5   :  { %1955 = vmatpush.bf16.msra.mxu1 %v2845_v17  ;;  %v3069_v17 = vor.u32 %v3470_v4, %v3066_v5  ;;  %v3098_v4 = vld [vmem:[%s5229_s1 + $0x6b8] sm:$0xf0]  ;;  %v3494_v5 = vld [vmem:[%s5229_s1 + $0x734] sm:$0xf]  ;;  %v3037_v11 = vor.u32 %v3462_v0, %v3034_v1 }
  0xd6   :  { %1968 = vmatpush.bf16.msra.mxu2 %v2909_v21  ;;  %v3133_v21 = vor.u32 %v3486_v7, %v3130_v10  ;;  %v3162_v7 = vld [vmem:[%s5229_s1 + $0x738] sm:$0xf0]  ;;  %v3101_v12 = vor.u32 %v3478_v2, %v3098_v4 }
  0xd7   :  { %1981 = vmatpush.bf16.msra.mxu3 %v2973_v34  ;;  %v3261_v34 = vor.u32 %v3518_v9, %v3258_v15  ;;  %v3226_v10 = vld [vmem:[%s5229_s1 + $0x7b8] sm:$0xf0]  ;;  %v3026_v9 = vld [vmem:[%s5229_s1 + $0x628] sm:$0xf0]  ;;  %v3476_v15 = vld [vmem:[%s5229_s1 + $0x6a4] sm:$0xf] }
  0xd8   :  { %1943 = vmatpush.bf16.msra.mxu0 %v2773_v47  ;;  %v3189_v47 = vor.u32 %v3500_v37, %v3186_v39 }
  0xd9   :  { %1956 = vmatpush.bf16.msra.mxu1 %v2837_v50  ;;  %v3050_v50 = vld [vmem:[%s5229_s1 + $0x658] sm:$0xf0] }
  0xda   :  { %1969 = vmatpush.bf16.msra.mxu2 %v2901_v51  ;;  %v3482_v51 = vld [vmem:[%s5229_s1 + $0x6d4] sm:$0xf]  ;;  %v3053_v19 = vor.u32 %v3466_v49, %v3050_v50  ;;  %v3018_v49 = vld [vmem:[%s5229_s1 + $0x618] sm:$0xf0] }
  0xdb   :  { %1982 = vmatpush.bf16.msra.mxu3 %v2965_v55  ;;  %v3242_v55 = vld [vmem:[%s5229_s1 + $0x7d8] sm:$0xf0]  ;;  %v3117_v38 = vor.u32 %v3482_v51, %v3114_v53  ;;  %v3474_v50 = vld [vmem:[%s5229_s1 + $0x694] sm:$0xf] }
  0xdc   :  { %1944 = vmatpush.bf16.msra.mxu0 %v2765_v57  ;;  %v3496_v57 = vld [vmem:[%s5229_s1 + $0x744] sm:$0xf]  ;;  %v3490_v53 = vld [vmem:[%s5229_s1 + $0x714] sm:$0xf] }
  0xdd   :  { %1957 = vmatpush.bf16.msra.mxu1 %v2829_v42  ;;  %v3512_v42 = vld [vmem:[%s5229_s1 + $0x7c4] sm:$0xf] }
  0xde   :  { %1970 = vmatpush.bf16.msra.mxu2 %v2893_v44  ;;  %v3234_v44 = vld [vmem:[%s5229_s1 + $0x7c8] sm:$0xf0] }
  0xdf   :  { %1983 = vmatpush.bf16.msra.mxu3 %v2957_v63  ;;  %v3173_v63 = vor.u32 %v3496_v57, %v3170_v58  ;;  %v3138_v57 = vld [vmem:[%s5229_s1 + $0x708] sm:$0xf0] }
  0xe0   :  { %1945 = vmatpush.bf16.msra.mxu0 %v2757_v8  ;;  %v1739_v41 = vpop.f32.mrf.mxu0  ;;  %v3510_v8 = vld [vmem:[%s5229_s1 + $0x7b4] sm:$0xf] }
  0xe1   :  { %1958 = vmatpush.bf16.msra.mxu1 %v2821_v13  ;;  %v1740_v59 = vadd.f32 %v1739_v41, %v4943_v48  ;;  %v1752_v61 = vpop.f32.mrf.mxu1  ;;  %v3237_v48 = vor.u32 %v3512_v42, %v3234_v44  ;;  %v3165_v13 = vor.u32 %v3494_v5, %v3162_v7  ;;  %v3504_v41 = vld [vmem:[%s5229_s1 + $0x784] sm:$0xf]  ;;  %v3202_v42 = vld [vmem:[%s5229_s1 + $0x788] sm:$0xf0] }
  0xe2   :  { %1971 = vmatpush.bf16.msra.mxu2 %v2885_v14  ;;  %v3460_v14 = vld [vmem:[%s5229_s1 + $0x624] sm:$0xf] }
  0xe3   :  { %1984 = vmatpush.bf16.msra.mxu3 %v2949_v16  ;;  %1946 = vmatmul.bf16.vlgmr.msra.gmra.mxu0 %v4209_v25  ;;  %v3514_v25 = vld [vmem:[%s5229_s1 + $0x7d4] sm:$0xf]  ;;  %v1753_v3 = vadd.f32 %v1752_v61, %v1740_v59  ;;  %v3229_v16 = vor.u32 %v3510_v8, %v3226_v10  ;;  %v3029_v39 = vor.u32 %v3460_v14, %v3026_v9 }
  0xe4   :  { %1990 = vmatpush.bf16.msrb.mxu0 %v3069_v17  ;;  %1959 = vmatmul.bf16.vlgmr.msra.gmra.mxu1 %v4222_v30  ;;  %v3042_v30 = vld [vmem:[%s5229_s1 + $0x648] sm:$0xf0]  ;;  %v3141_v61 = vor.u32 %v3488_v56, %v3138_v57 }
  0xe5   :  { %2003 = vmatpush.bf16.msrb.mxu1 %v3133_v21  ;;  %1972 = vmatmul.bf16.vlgmr.msra.gmra.mxu2 %v4220_v29  ;;  %v3464_v29 = vld [vmem:[%s5229_s1 + $0x644] sm:$0xf]  ;;  %v3090_v21 = vld [vmem:[%s5229_s1 + $0x6a8] sm:$0xf0] }
  0xe6   :  { %2016 = vmatpush.bf16.msrb.mxu2 %v3197_v24  ;;  %1985 = vmatmul.bf16.vlgmr.msra.gmra.mxu3 %v4230_v33  ;;  %v3245_v33 = vor.u32 %v3514_v25, %v3242_v55  ;;  %v3045_v60 = vor.u32 %v3464_v29, %v3042_v30  ;;  %v3492_v24 = vld [vmem:[%s5229_s1 + $0x724] sm:$0xf]  ;;  %v3210_v25 = vld [vmem:[%s5229_s1 + $0x798] sm:$0xf0]  ;;  %v3010_v29 = vld [vmem:[%s5229_s1 + $0x608] sm:$0xf0] }
  0xe7   :  { %2029 = vmatpush.bf16.msrb.mxu3 %v3261_v34  ;;  %v3508_v34 = vld [vmem:[%s5229_s1 + $0x7a4] sm:$0xf]  ;;  %v3213_v22 = vor.u32 %v3506_v54, %v3210_v25 }
  0xe8   :  { %1991 = vmatpush.bf16.msrb.mxu0 %v3061_v45  ;;  %v1765_v17 = vpop.f32.mrf.mxu2  ;;  %v1741_v37 = vpop.f32.mrf.mxu0  ;;  %v3093_v45 = vor.u32 %v3476_v15, %v3090_v21  ;;  %v3221_v51 = vor.u32 %v3508_v34, %v3218_v36  ;;  %v3472_v30 = vld [vmem:[%s5229_s1 + $0x684] sm:$0xf] }
  0xe9   :  { %2004 = vmatpush.bf16.msrb.mxu1 %v3125_v46  ;;  %v1766_v27 = vadd.f32 %v1765_v17, %v1753_v3  ;;  %v1778_v32 = vpop.f32.mrf.mxu3  ;;  %v1754_v40 = vpop.f32.mrf.mxu1  ;;  %v3157_v46 = vor.u32 %v3492_v24, %v3154_v26 }
  0xea   :  { %2017 = vmatpush.bf16.msrb.mxu2 %v3189_v47  ;;  %v3458_v47 = vld [vmem:[%s5229_s1 + $0x614] sm:$0xf] }
  0xeb   :  { %2030 = vmatpush.bf16.msrb.mxu3 %v3253_v52  ;;  %v1779_v43 = vadd.f32 %v1778_v32, %v1766_v27  ;;  %v3082_v52 = vld [vmem:[%s5229_s1 + $0x698] sm:$0xf0]  ;;  %v3021_v55 = vor.u32 %v3458_v47, %v3018_v49 }
  0xec   :  { %1992 = vmatpush.bf16.msrb.mxu0 %v3053_v19  ;;  %v3085_v19 = vor.u32 %v3474_v50, %v3082_v52  ;;  %v3527_v50 = vmov 0.0  }
  0xed   :  { %2005 = vmatpush.bf16.msrb.mxu1 %v3117_v38  ;;  %v3149_v38 = vor.u32 %v3490_v53, %v3146_v18  ;;  %2061 = vst [vmem:[#allocation3] sm:$0xf] %v3527_v50 }
  0xee   :  { %2018 = vmatpush.bf16.msrb.mxu2 %v3181_v20  ;;  %v3456_v20 = vld [vmem:[%s5229_s1 + $0x604] sm:$0xf] }
  0xef   :  { %2031 = vmatpush.bf16.msrb.mxu3 %v3245_v33  ;;  %v3074_v33 = vld [vmem:[%s5229_s1 + $0x688] sm:$0xf0]  ;;  %v3013_v59 = vor.u32 %v3456_v20, %v3010_v29 }
  0xf0   :  { %1993 = vmatpush.bf16.msrb.mxu0 %v3045_v60  ;;  %v1767_v58 = vpop.f32.mrf.mxu2  ;;  %v3077_v60 = vor.u32 %v3472_v30, %v3074_v33 }
  0xf1   :  { %2006 = vmatpush.bf16.msrb.mxu1 %v3109_v62  ;;  %v1780_v44 = vpop.f32.mrf.mxu3  ;;  %v3205_v62 = vor.u32 %v3504_v41, %v3202_v42 }
  0xf2   :  { %2019 = vmatpush.bf16.msrb.mxu2 %v3173_v63 }
  0xf3   :  { %2032 = vmatpush.bf16.msrb.mxu3 %v3237_v48 }
  0xf4   :  { %1994 = vmatpush.bf16.msrb.mxu0 %v3037_v11 }
  0xf5   :  { %2007 = vmatpush.bf16.msrb.mxu1 %v3101_v12 }
  0xf6   :  { %2020 = vmatpush.bf16.msrb.mxu2 %v3165_v13 }
  0xf7   :  { %2033 = vmatpush.bf16.msrb.mxu3 %v3229_v16 }
  0xf8   :  { %1995 = vmatpush.bf16.msrb.mxu0 %v3029_v39 }
  0xf9   :  { %2008 = vmatpush.bf16.msrb.mxu1 %v3093_v45 }
  0xfa   :  { %2021 = vmatpush.bf16.msrb.mxu2 %v3157_v46 }
  0xfb   :  { %2034 = vmatpush.bf16.msrb.mxu3 %v3221_v51 }
  0xfc   :  { %1996 = vmatpush.bf16.msrb.mxu0 %v3021_v55 }
  0xfd   :  { %2009 = vmatpush.bf16.msrb.mxu1 %v3085_v19 }
  0xfe   :  { %2022 = vmatpush.bf16.msrb.mxu2 %v3149_v38 }
  0xff   :  { %2035 = vmatpush.bf16.msrb.mxu3 %v3213_v22 }
 0x100   :  { %1997 = vmatpush.bf16.msrb.mxu0 %v3013_v59  ;;  %v1791_v63 = vpop.f32.mrf.mxu0 }
 0x101   :  { %2010 = vmatpush.bf16.msrb.mxu1 %v3077_v60  ;;  %v1792_v0 = vadd.f32 %v1791_v63, %v1779_v43  ;;  %v1804_v1 = vpop.f32.mrf.mxu1 }
 0x102   :  { %2023 = vmatpush.bf16.msrb.mxu2 %v3141_v61 }
 0x103   :  { %2036 = vmatpush.bf16.msrb.mxu3 %v3205_v62  ;;  %1998 = vmatmul.bf16.vlgmr.msrb.gmra.mxu0 %v4419_v23  ;;  %v1805_v2 = vadd.f32 %v1804_v1, %v1792_v0  ;;  %v287_v23 = vperm.slane %v4711_v6, 1 }
 0x104   :  { %2011 = vmatmul.bf16.vlgmr.msrb.gmra.mxu1 %v4432_v31 }
 0x105   :  { %2024 = vmatmul.bf16.vlgmr.msrb.gmra.mxu2 %v4430_v28 }
 0x106   :  { %2037 = vmatmul.bf16.vlgmr.msrb.gmra.mxu3 %v4440_v35 }
 0x108   :  { %v1817_v48 = vpop.f32.mrf.mxu2  ;;  %v1793_v5 = vpop.f32.mrf.mxu0 }
 0x109   :  { %v1818_v3 = vadd.f32 %v1817_v48, %v1805_v2  ;;  %v1830_v4 = vpop.f32.mrf.mxu3  ;;  %v1806_v7 = vpop.f32.mrf.mxu1 }
 0x10b   :  { %v5194_v8 = vadd.f32 %v1830_v4, %v1818_v3 }
 0x10d   :  { %v2075_v20 = vmul.f32 %v5194_v8, %v5194_v8  ;;  %v2063_v57 = vrot.slane %v5194_v8, 4 }
 0x10f   :  { %v2077_v56 = vrot.slane %v2075_v20, 4  ;;  %v2064_v62 = vadd.f32 %v2063_v57, %v5194_v8 }
 0x110   :  { %v1819_v10 = vpop.f32.mrf.mxu2 }
 0x111   :  { %v1832_v11 = vpop.f32.mrf.mxu3  ;;  %v2078_v42 = vadd.f32 %v2077_v56, %v2075_v20  ;;  %v2065_v48 = vrot.slane %v2064_v62, 2 }
 0x113   :  { %v2079_v0 = vrot.slane %v2078_v42, 2 }
 0x115   :  { %v2080_v7 = vadd.f32 %v2079_v0, %v2078_v42 }
 0x120   :  { %v1843_v31 = vpop.f32.mrf.mxu0 }
 0x121   :  { %v1844_v12 = vadd.f32 %v1843_v31, %v287_v23  ;;  %v1856_v28 = vpop.f32.mrf.mxu1  ;;  %v2066_v31 = vadd.f32 %v2065_v48, %v2064_v62 }
 0x123   :  { %v1857_v13 = vadd.f32 %v1856_v28, %v1844_v12 }
 0x128   :  { %v1869_v35 = vpop.f32.mrf.mxu2  ;;  %v1845_v16 = vpop.f32.mrf.mxu0 }
 0x129   :  { %v1870_v14 = vadd.f32 %v1869_v35, %v1857_v13  ;;  %v1882_v9 = vpop.f32.mrf.mxu3  ;;  %v1858_v17 = vpop.f32.mrf.mxu1  ;;  %v2081_v13 = vrot.slane %v2080_v7, 1 }
 0x12b   :  { %v1883_v15 = vadd.f32 %v1882_v9, %v1870_v14  ;;  %v2067_v9 = vrot.slane %v2066_v31, 1  ;;  %v2082_v16 = vadd.f32 %v2081_v13, %v2080_v7 }
 0x130   :  { %v1871_v21 = vpop.f32.mrf.mxu2 }
 0x131   :  { %v1884_v24 = vpop.f32.mrf.mxu3 }
 0x132   :  { %v2068_v24 = vadd.f32 %v2067_v9, %v2066_v31 }
 0x140   :  { %v1895_v26 = vpop.f32.mrf.mxu0 }
 0x141   :  { %v1908_v27 = vpop.f32.mrf.mxu1  ;;  %v1896_v45 = vadd.f32 %v1895_v26, %v1883_v15 }
 0x143   :  { %v1909_v51 = vadd.f32 %v1908_v27, %v1896_v45  ;;  %v2062_v27 = vld [vmem:[#allocation3] sm:$0xf] }
 0x148   :  { %v1921_v32 = vpop.f32.mrf.mxu2  ;;  %v1897_v36 = vpop.f32.mrf.mxu0 }
 0x149   :  { %v1934_v34 = vpop.f32.mrf.mxu3  ;;  %v1910_v37 = vpop.f32.mrf.mxu1  ;;  %v1922_v53 = vadd.f32 %v1921_v32, %v1909_v51 }
 0x14b   :  { %v1935_v25 = vadd.f32 %v1934_v34, %v1922_v53  ;;  %v2090_v34 = vsel %vm2089_vm0, %v2068_v24, %v2082_v16 }
 0x150   :  { %v1923_v39 = vpop.f32.mrf.mxu2 }
 0x151   :  { %v1936_v6 = vpop.f32.mrf.mxu3 }
 0x160   :  { %v1947_v40 = vpop.f32.mrf.mxu0 }
 0x161   :  { %v1960_v43 = vpop.f32.mrf.mxu1  ;;  %v1948_v55 = vadd.f32 %v1947_v40, %v1935_v25 }
 0x163   :  { %v1961_v19 = vadd.f32 %v1960_v43, %v1948_v55 }
 0x168   :  { %v1973_v46 = vpop.f32.mrf.mxu2  ;;  %v1949_v49 = vpop.f32.mrf.mxu0 }
 0x169   :  { %v1986_v47 = vpop.f32.mrf.mxu3  ;;  %v1962_v52 = vpop.f32.mrf.mxu1  ;;  %v1974_v38 = vadd.f32 %v1973_v46, %v1961_v19  ;;  %v2123_v19 = vld [vmem:[%s5233_s4] sm:$0x3] }
 0x16b   :  { %v1987_v29 = vadd.f32 %v1986_v47, %v1974_v38 }
 0x170   :  { %v1975_v18 = vpop.f32.mrf.mxu2 }
 0x171   :  { %v1988_v54 = vpop.f32.mrf.mxu3  ;;  %v2110_v18 = vld [vmem:[%s5232_s3] sm:$0x3] }
 0x180   :  { %v1999_v30 = vpop.f32.mrf.mxu0 }
 0x181   :  { %v2012_v22 = vpop.f32.mrf.mxu1  ;;  %v2000_v33 = vadd.f32 %v1999_v30, %v1987_v29 }
 0x183   :  { %v2013_v58 = vadd.f32 %v2012_v22, %v2000_v33 }
 0x188   :  { %v2025_v41 = vpop.f32.mrf.mxu2  ;;  %v2001_v60 = vpop.f32.mrf.mxu0 }
 0x189   :  { %v2026_v44 = vadd.f32 %v2025_v41, %v2013_v58  ;;  %v2038_v59 = vpop.f32.mrf.mxu3  ;;  %v2014_v61 = vpop.f32.mrf.mxu1 }
 0x18b   :  { %v2039_v63 = vadd.f32 %v2038_v59, %v2026_v44 }
 0x18d   :  { %v2069_v1 = vrot.slane %v2039_v63, 4  ;;  %v2076_v2 = vmul.f32 %v2039_v63, %v2039_v63 }
 0x18f   :  { %v2070_v3 = vadd.f32 %v2069_v1, %v2039_v63  ;;  %v2083_v4 = vrot.slane %v2076_v2, 4 }
 0x190   :  { %v2027_v5 = vpop.f32.mrf.mxu2 }
 0x191   :  { %v2071_v10 = vrot.slane %v2070_v3, 2  ;;  %v2084_v11 = vadd.f32 %v2083_v4, %v2076_v2  ;;  %v2040_v23 = vpop.f32.mrf.mxu3 }
 0x193   :  { %v2072_v12 = vadd.f32 %v2071_v10, %v2070_v3  ;;  %v2085_v28 = vrot.slane %v2084_v11, 2 }
 0x195   :  { %v2073_v35 = vrot.slane %v2072_v12, 1  ;;  %v2086_v14 = vadd.f32 %v2085_v28, %v2084_v11 }
 0x197   :  { %v2087_v15 = vrot.slane %v2086_v14, 1  ;;  %v2074_v17 = vadd.f32 %v2073_v35, %v2072_v12 }
 0x199   :  { %v2088_v21 = vadd.f32 %v2087_v15, %v2086_v14 }
 0x19b   :  { %v2091_v26 = vsel %vm2089_vm0, %v2074_v17, %v2088_v21 }
 0x19c   :  { %v2094_v32 = vrot.slane %v2091_v26, 6 }
 0x19e   :  { %v2096_v36 = vsel %vm2095_vm1, %v2090_v34, %v2094_v32 }
 0x19f   :  { %v2098_v37 = vadd.f32 %v2096_v36, %v2062_v27 }
 0x1a1   :  { %2099 = vst [vmem:[#allocation3] sm:$0xf] %v2098_v37 }
 0x1a8   :  { %v2103_v39 = vld [vmem:[#allocation3] ss:$2 sm:$0x3]  ;;  %v2106_v6 = vld [vmem:[#allocation3 + $0x1] ss:$2 sm:$0x3] }
 0x1a9   :  { %v2104_v40 = vmul.f32 0.125, %v2103_v39  ;;  %v2107_v43 = vmul.f32 0.125, %v2106_v6 }
 0x1ab   :  { %v2108_v45 = vmul.f32 %v2104_v40, %v2104_v40 }
 0x1ad   :  { %v2109_v46 = vsub.f32 %v2107_v43, %v2108_v45 }
 0x1af   :  { %v2111_v47 = vadd.f32 1e-05, %v2109_v46 }
 0x1b1   :  { %3521 = vrsqrt.f32 %v2111_v47  ;;  %vm2118_vm3 = vweird.f32 %v2111_v47 }
 0x1b7   :  { %v3522_v49 = vpop.eup %3521 }
 0x1b8   :  { %v2113_v50 = vmul.f32 %v3522_v49, %v2111_v47  ;;  %vm2119_vm2 = vweird.f32 %v3522_v49 }
 0x1b9   :  { %vm2120_vm4 = vmor %vm2118_vm3, %vm2119_vm2 }
 0x1ba   :  { %v2114_v51 = vmul.f32 %v3522_v49, %v2113_v50 }
 0x1bc   :  { %v2115_v52 = vmul.f32 0.5, %v2114_v51 }
 0x1be   :  { %v2116_v53 = vsub.f32 1.5, %v2115_v52 }
 0x1c0   :  { %v2117_v54 = vmul.f32 %v3522_v49, %v2116_v53 }
 0x1c2   :  { %v2121_v25 = vsel %vm2120_vm4, %v3522_v49, %v2117_v54 }
 0x1c3   :  { %v2122_v55 = vmul.f32 %v2121_v25, %v2110_v18 }
 0x1c5   :  { %v2124_v38 = vmul.f32 %v2122_v55, %v2104_v40  ;;  %v2129_v20 = vperm.slane %v2122_v55, 0  ;;  %v2130_v29 = vperm.slane %v2122_v55, 1 }
 0x1c7   :  { %v2125_v30 = vsub.f32 %v2123_v19, %v2124_v38  ;;  %v2133_v22 = vmul.f32 %v2129_v20, %v5194_v8  ;;  %v2134_v33 = vmul.f32 %v2130_v29, %v2039_v63 }
 0x1c9   :  { %v2136_v56 = vperm.slane %v2125_v30, 0  ;;  %v2137_v57 = vperm.slane %v2125_v30, 1 }
 0x1cb   :  { %v5208_v58 = vadd.f32 %v2136_v56, %v2133_v22  ;;  %v5210_v41 = vadd.f32 %v2137_v57, %v2134_v33 }
 0x1cd   :  { %v5213_v42 = vmul.f32 0.70710677, %v5208_v58  ;;  %v5216_v44 = vmul.f32 0.70710677, %v5210_v41 }
 0x1cf   :  { %v2146_v59 = vmul.f32 %v5213_v42, %v5213_v42  ;;  %v2186_v60 = vmul.f32 %v5216_v44, %v5216_v44 }
 0x1d1   :  { %v2147_v8 = vmin.f32 %v2146_v59, 16.0  ;;  %v2187_v61 = vmin.f32 %v2186_v60, 16.0 }
 0x1d3   :  { %v2148_v62 = vmul.f32 2.1237322e-06, %v2147_v8  ;;  %v2159_v63 = vmul.f32 3.8918573e-05, %v2147_v8  ;;  %v2188_v0 = vmul.f32 2.1237322e-06, %v2187_v61 }
 0x1d4   :  { %v2199_v1 = vmul.f32 3.8918573e-05, %v2187_v61 }
 0x1d5   :  { %v2149_v2 = vadd.f32 0.00028619796, %v2148_v62  ;;  %v2160_v48 = vadd.f32 0.001143296, %v2159_v63  ;;  %v2189_v3 = vadd.f32 0.00028619796, %v2188_v0 }
 0x1d6   :  { %v2200_v4 = vadd.f32 0.001143296, %v2199_v1 }
 0x1d7   :  { %v2150_v5 = vmul.f32 %v2149_v2, %v2147_v8  ;;  %v2161_v7 = vmul.f32 %v2160_v48, %v2147_v8  ;;  %v2190_v10 = vmul.f32 %v2189_v3, %v2187_v61  ;;  %v2142_v3 = vmul.f32 0.5, %v5208_v58 }
 0x1d8   :  { %v2201_v11 = vmul.f32 %v2200_v4, %v2187_v61 }
 0x1d9   :  { %v2151_v23 = vadd.f32 0.0036580483, %v2150_v5  ;;  %v2162_v31 = vadd.f32 0.014752088, %v2161_v7  ;;  %v2191_v13 = vadd.f32 0.0036580483, %v2190_v10 }
 0x1da   :  { %v2202_v12 = vadd.f32 0.014752088, %v2201_v11  ;;  %v2143_v5 = vmul.f32 0.5, %v5210_v41 }
 0x1db   :  { %v2163_v28 = vmul.f32 %v2162_v31, %v2147_v8  ;;  %v2152_v14 = vmul.f32 %v2151_v23, %v2147_v8  ;;  %v2192_v17 = vmul.f32 %v2191_v13, %v2187_v61 }
 0x1dc   :  { %v2203_v35 = vmul.f32 %v2202_v12, %v2187_v61 }
 0x1dd   :  { %v2164_v9 = vadd.f32 0.112945676, %v2163_v28  ;;  %v2153_v24 = vadd.f32 0.05243302, %v2152_v14  ;;  %v2193_v34 = vadd.f32 0.05243302, %v2192_v17 }
 0x1de   :  { %v2204_v15 = vadd.f32 0.112945676, %v2203_v35 }
 0x1df   :  { %v2165_v16 = vmul.f32 %v2164_v9, %v2147_v8  ;;  %v2154_v37 = vmul.f32 %v2153_v24, %v2147_v8  ;;  %v2194_v40 = vmul.f32 %v2193_v34, %v2187_v61 }
 0x1e0   :  { %v2205_v21 = vmul.f32 %v2204_v15, %v2187_v61 }
 0x1e1   :  { %v2166_v26 = vadd.f32 0.4994258, %v2165_v16  ;;  %v2155_v43 = vadd.f32 0.18741608, %v2154_v37  ;;  %v2195_v45 = vadd.f32 0.18741608, %v2194_v40 }
 0x1e2   :  { %v2206_v27 = vadd.f32 0.4994258, %v2205_v21 }
 0x1e3   :  { %v2167_v32 = vmul.f32 %v2166_v26, %v2147_v8  ;;  %v2156_v47 = vmul.f32 %v2155_v43, %v2147_v8  ;;  %v2196_v51 = vmul.f32 %v2195_v45, %v2187_v61 }
 0x1e4   :  { %v2207_v36 = vmul.f32 %v2206_v27, %v2187_v61 }
 0x1e5   :  { %v2168_v39 = vadd.f32 1.0, %v2167_v32  ;;  %v2157_v18 = vadd.f32 1.1283791, %v2156_v47  ;;  %v2197_v20 = vadd.f32 1.1283791, %v2196_v51 }
 0x1e6   :  { %v2208_v6 = vadd.f32 1.0, %v2207_v36 }
 0x1e7   :  { %3523 = vrcp.f32 %v2168_v39  ;;  %v2180_v54 = vand.u32 2147483648, %v2168_v39  ;;  %v2178_v19 = vand.u32 2147483647, %v2168_v39  ;;  %vm2174_vm7 = vweird.f32 %v2168_v39 }
 0x1e8   :  { %3525 = vrcp.f32 %v2208_v6  ;;  %v2220_v38 = vand.u32 2147483648, %v2208_v6  ;;  %v2218_v30 = vand.u32 2147483647, %v2208_v6  ;;  %vm2214_vm9 = vweird.f32 %v2208_v6 }
 0x1e9   :  { %v2181_v33 = vor.u32 1.1754944e-38, %v2180_v54  ;;  %v2158_v57 = vmul.f32 %v2157_v18, %v5213_v42  ;;  %vm2179_vm10 = vcmp.eq.f32.partialorder %v2178_v19, 8.507059e+37  ;;  %v2198_v61 = vmul.f32 %v2197_v20, %v5216_v44 }
 0x1ea   :  { %v2221_v60 = vor.u32 1.1754944e-38, %v2220_v38  ;;  %vm2219_vm12 = vcmp.eq.f32.partialorder %v2218_v30, 8.507059e+37 }
 0x1ed   :  { %v3524_v46 = vpop.eup %3523 }
 0x1ee   :  { %v3526_v49 = vpop.eup %3525  ;;  %v2170_v50 = vmul.f32 %v3524_v46, %v2168_v39  ;;  %vm2175_vm5 = vweird.f32 %v3524_v46 }
 0x1ef   :  { %v2210_v52 = vmul.f32 %v3526_v49, %v2208_v6  ;;  %vm2215_vm6 = vweird.f32 %v3526_v49  ;;  %vm2176_vm8 = vmor %vm2174_vm7, %vm2175_vm5 }
 0x1f0   :  { %v2171_v53 = vsub.f32 1.0, %v2170_v50  ;;  %vm2216_vm11 = vmor %vm2214_vm9, %vm2215_vm6 }
 0x1f1   :  { %v2211_v25 = vsub.f32 1.0, %v2210_v52 }
 0x1f2   :  { %v2172_v55 = vmul.f32 %v3524_v46, %v2171_v53 }
 0x1f3   :  { %v2212_v29 = vmul.f32 %v3526_v49, %v2211_v25 }
 0x1f4   :  { %v2173_v22 = vadd.f32 %v3524_v46, %v2172_v55 }
 0x1f5   :  { %v2213_v56 = vadd.f32 %v3526_v49, %v2212_v29 }
 0x1f6   :  { %v2177_v59 = vsel %vm2176_vm8, %v3524_v46, %v2173_v22 }
 0x1f7   :  { %v2182_v8 = vsel %vm2179_vm10, %v2181_v33, %v2177_v59  ;;  %v2217_v62 = vsel %vm2216_vm11, %v3526_v49, %v2213_v56 }
 0x1f8   :  { %v2183_v63 = vmul.f32 %v2182_v8, %v2158_v57  ;;  %v2222_v0 = vsel %vm2219_vm12, %v2221_v60, %v2217_v62 }
 0x1f9   :  { %v2223_v1 = vmul.f32 %v2222_v0, %v2198_v61 }
 0x1fa   :  { %v3262_v2 = vclamps-f32 %v2183_v63, 1.0 }
 0x1fb   :  { %v3263_v48 = vclamps-f32 %v2223_v1, 1.0 }
 0x1fc   :  { %v2226_v4 = vadd.f32 1.0, %v3262_v2 }
 0x1fd   :  { %v2227_v42 = vadd.f32 1.0, %v3263_v48 }
 0x1fe   :  { %v2228_v7 = vmul.f32 %v2226_v4, %v2142_v3 }
 0x1ff   :  { %v2229_v10 = vmul.f32 %v2227_v42, %v2143_v5 }
 0x201   :  { %v2230_v11 = vpack.c.bf16 %v2229_v10, %v2228_v7 }
 0x203   :  { %2231 = vst [vmem:[%s5234_s5] sm:$0xff] %v2230_v11 }

</bundles_post_ra>
